<compile_context>
chip_gen: v6e
topology: v6e:2x2x1
jax: 0.10.0
libtpu: 0.0.40
codegen_flags: <defaults>
</compile_context>

<pallas_src>
import math

import jax
import jax.numpy as jnp
from jax import lax
from jax.experimental import pallas as pl
from jax.experimental.pallas import tpu as pltpu


def _layer_norm(x, gamma, beta, eps=1e-5):
    mu = jnp.mean(x, axis=-1, keepdims=True)
    var = jnp.mean(jnp.square(x - mu), axis=-1, keepdims=True)
    return (x - mu) * lax.rsqrt(var + eps) * gamma + beta


def _gelu_tanh(x):
    # TODO(synk): PyTorch F.gelu default is the exact erf formulation; the tanh
    # approximation is used here for robust Mosaic lowering.
    c = math.sqrt(2.0 / math.pi)
    return 0.5 * x * (1.0 + jnp.tanh(c * (x + 0.044715 * x * x * x)))


def _make_kernel(n_heads, block_b, c_in, seq_len, d_model):
    dk = d_model // n_heads
    S = block_b * c_in          # sequences per grid step
    R = S * seq_len             # token rows per grid step

    def kernel(x_ref, m_ref, pos_ref, wfe_ref, bfe_ref,
               wqkv_ref, bqkv_ref, wo_ref, bo_ref,
               g1_ref, be1_ref, w1_ref, b1_ref, w2_ref, b2_ref,
               g2_ref, be2_ref, o_ref):
        dm = d_model
        bf16 = jnp.bfloat16

        # ---- feature embedding (Linear(1, d_model)) + positional embedding ----
        # x_ref is [block_b, C*T, 1]; pos_ref ([C*T, dm]) broadcasts over the
        # leading batch axis — no per-step jnp.tile copy.
        e2 = x_ref[...] * wfe_ref[...] + bfe_ref[...] + pos_ref[...]   # [BB, CT, dm]
        e2 = e2.reshape(R, dm)                                         # f32, rows (b, c, t)

        # ---- fused QKV projection: bf16 operands, f32 accumulation ----
        # (1/sqrt(dk) is already folded into the Q columns of wqkv/bqkv.)
        qkv = jnp.dot(e2.astype(bf16), wqkv_ref[...],
                      preferred_element_type=jnp.float32) + bqkv_ref[...]
        q = qkv[:, 0 * dm:1 * dm].reshape(S, seq_len, dm).astype(bf16)
        k = qkv[:, 1 * dm:2 * dm].reshape(S, seq_len, dm).astype(bf16)
        v = qkv[:, 2 * dm:3 * dm].reshape(S, seq_len, dm).astype(bf16)

        # Additive attention bias (0 = attend, -1e9 = drop), precomputed in the
        # wrapper.  TODO(synk): mask polarity follows the in-file reference
        # (mask > 0 == attend); verify against FullAttentionWithMask.
        bias = m_ref[...]                                              # [S, 1, T] f32

        # ---- multi-head attention, batched over all S sequences per head ----
        # (Heads stay a short static loop: multi-batch-dim dot_general does not
        #  lower robustly in Mosaic; each per-head op is batched over S.)
        heads = []
        for h in range(n_heads):
            sl = slice(h * dk, (h + 1) * dk)
            s = jnp.einsum('sqd,skd->sqk', q[:, :, sl], k[:, :, sl],
                           preferred_element_type=jnp.float32) + bias
            s = s - jnp.max(s, axis=-1, keepdims=True)
            p = jnp.exp(s)
            p = p * pl.reciprocal(jnp.sum(p, axis=-1, keepdims=True), approx=True)
            heads.append(jnp.einsum('sqk,skd->sqd', p.astype(bf16), v[:, :, sl],
                                    preferred_element_type=jnp.float32))
        o_cat = jnp.concatenate(heads, axis=-1).reshape(R, dm)
        attn = jnp.dot(o_cat.astype(bf16), wo_ref[...],
                       preferred_element_type=jnp.float32) + bo_ref[...]

        # ---- residual + LayerNorm 1 (f32 elementwise) ----
        x1 = _layer_norm(e2 + attn, g1_ref[...], be1_ref[...])

        # ---- position-wise FFN (Conv1d kernel-size 1 == Linear), gelu ----
        y = jnp.dot(x1.astype(bf16), w1_ref[...],
                    preferred_element_type=jnp.float32) + b1_ref[...]
        y = _gelu_tanh(y)
        y = jnp.dot(y.astype(bf16), w2_ref[...],
                    preferred_element_type=jnp.float32) + b2_ref[...]

        # ---- residual + LayerNorm 2 ----
        out2 = _layer_norm(x1 + y, g2_ref[...], be2_ref[...])         # [R, dm]

        # ---- write '(b d) t m -> b t (d m)' via direct lane-offset stores ----
        out4 = out2.reshape(block_b, c_in, seq_len, dm)               # [BB, C, T, dm]
        for c in range(c_in):
            o_ref[:, :, c * dm:(c + 1) * dm] = out4[:, c].astype(o_ref.dtype)

    return kernel


def _pick_block_b(B, C, T, target_rows=1024):
    """Largest divisor of B with >= 2 grid steps and <= target_rows rows/step.

    Keeping the grid length >= 2 (and even when possible) preserves input/
    output DMA pipelining and lets the 'parallel' batch axis split across
    v7x's two TensorCores.
    """
    best = 1
    for bb in range(1, max(B // 2, 1) + 1):
        if B % bb:
            continue
        if B // bb < 2:
            continue
        if bb * C * T <= target_rows:
            best = bb
    return best


def _vmem_limit_bytes():
    """~3/4 of physical VMEM, capped at 96 MiB (≈96 MiB v5e/v6e, ≈48 MiB v7x)."""
    try:
        cap = pltpu.get_tpu_info().vmem_capacity_bytes
        return int(min(cap * 3 // 4, 96 * 1024 * 1024))
    except Exception:
        return 48 * 1024 * 1024


def token_embedding_with_mask(x, mask, params, n_heads, block_b=None,
                              out_dtype=jnp.float32):
    B, T, C = x.shape
    dm = params["w_fe"].shape[-1]
    d_ff = params["w1"].shape[-1]
    dk = dm // n_heads
    scale = 1.0 / math.sqrt(dk)

    if block_b is None:
        block_b = _pick_block_b(B, C, T)
    assert B % block_b == 0, "block_b must divide the batch size"
    S = block_b * C
    CT = C * T

    # Small input rearranges ('b t d -> (b d) t'); the big OUTPUT layout is
    # produced directly by the kernel (no epilogue transpose over HBM).
    x_r = jnp.transpose(x, (0, 2, 1)).reshape(B, CT, 1).astype(jnp.float32)
    m_r = jnp.transpose(mask, (0, 2, 1)).reshape(B * C, 1, T)
    # Additive attention bias: 0 where attended, -1e9 where masked out.
    m_bias = jnp.where(m_r > 0, 0.0, -1e9).astype(jnp.float32)
    pos_r = jnp.transpose(params["pos"][0], (1, 0, 2)).reshape(CT, dm).astype(jnp.float32)

    # Fused QKV weights / biases (one matmul in the kernel); 1/sqrt(dk) folded
    # into the Q columns; matmul weights packed as bf16.
    w_qkv = jnp.concatenate([params["wq"] * scale, params["wk"], params["wv"]],
                            axis=1).astype(jnp.bfloat16)
    b_qkv = jnp.concatenate([params["bq"] * scale, params["bk"], params["bv"]],
                            axis=1).astype(jnp.float32)
    w_o = params["wo"].astype(jnp.bfloat16)
    w_1 = params["w1"].astype(jnp.bfloat16)
    w_2 = params["w2"].astype(jnp.bfloat16)

    def const(shape):
        # Constant block index -> fetched once, resident across grid steps;
        # Buffered(1) drops the (unused) second pipeline buffer for these.
        return pl.BlockSpec(shape, lambda g: (0,) * len(shape),
                            pipeline_mode=pl.Buffered(1))

    in_specs = [
        pl.BlockSpec((block_b, CT, 1), lambda g: (g, 0, 0)),   # x tokens of this block
        pl.BlockSpec((S, 1, T), lambda g: (g, 0, 0)),          # additive attention bias
        const((CT, dm)),                                       # positional embedding
        const((1, dm)), const((1, dm)),                        # w_fe, b_fe
        const((dm, 3 * dm)), const((1, 3 * dm)),               # fused wqkv, bqkv
        const((dm, dm)), const((1, dm)),                       # wo, bo
        const((1, dm)), const((1, dm)),                        # ln1 gamma, beta
        const((dm, d_ff)), const((1, d_ff)),                   # ffn w1, b1
        const((d_ff, dm)), const((1, dm)),                     # ffn w2, b2
        const((1, dm)), const((1, dm)),                        # ln2 gamma, beta
    ]

    out = pl.pallas_call(
        _make_kernel(n_heads, block_b, C, T, dm),
        out_shape=jax.ShapeDtypeStruct((B, T, C * dm), out_dtype),
        grid_spec=pltpu.PrefetchScalarGridSpec(
            num_scalar_prefetch=0,
            grid=(B // block_b,),
            in_specs=in_specs,
            out_specs=pl.BlockSpec((block_b, T, C * dm), lambda g: (g, 0, 0)),
        ),
        compiler_params=pltpu.CompilerParams(
            dimension_semantics=("parallel",),       # batched axis shards across TCs
            vmem_limit_bytes=_vmem_limit_bytes(),
        ),
    )(x_r, m_bias, pos_r,
      params["w_fe"].astype(jnp.float32), params["b_fe"].astype(jnp.float32),
      w_qkv, b_qkv, w_o, params["bo"].astype(jnp.float32),
      params["g1"], params["be1"],
      w_1, params["b1"].astype(jnp.float32), w_2, params["b2"].astype(jnp.float32),
      params["g2"], params["be2"])
    return out


def reference(x, mask, params, n_heads):
    """Pure-JAX (f32) reference of the same forward pass (for a sanity check)."""
    B, T, C = x.shape
    dm = params["w_fe"].shape[-1]
    emb = x[..., None] * params["w_fe"][0] + params["b_fe"][0] + params["pos"][0]
    xr = emb.transpose(0, 2, 1, 3).reshape(B * C, T, dm)
    mr = mask.transpose(0, 2, 1).reshape(B * C, T)
    q = xr @ params["wq"] + params["bq"][0]
    k = xr @ params["wk"] + params["bk"][0]
    v = xr @ params["wv"] + params["bv"][0]
    dk = dm // n_heads
    qh = q.reshape(B * C, T, n_heads, dk)
    kh = k.reshape(B * C, T, n_heads, dk)
    vh = v.reshape(B * C, T, n_heads, dk)
    s = jnp.einsum("bqhd,bkhd->bhqk", qh, kh) / math.sqrt(dk)
    s = jnp.where(mr[:, None, None, :] > 0, s, -1e9)
    a = jax.nn.softmax(s, axis=-1)
    o = jnp.einsum("bhqk,bkhd->bqhd", a, vh).reshape(B * C, T, dm)
    o = o @ params["wo"] + params["bo"][0]
    x1 = _layer_norm(xr + o, params["g1"][0], params["be1"][0])
    y = _gelu_tanh(x1 @ params["w1"] + params["b1"][0])
    y = y @ params["w2"] + params["b2"][0]
    out = _layer_norm(x1 + y, params["g2"][0], params["be2"][0])
    return out.reshape(B, C, T, dm).transpose(0, 2, 1, 3).reshape(B, T, C * dm)


if __name__ == "__main__":
    # small shapes: B=8, seq_len T=8, c_in C=4, d_model=32, n_heads=4, d_ff=64
    B, T, C, dm, H, d_ff = 8, 8, 4, 32, 4, 64
    key = jax.random.PRNGKey(0)
    ks = jax.random.split(key, 20)

    def init(k, shp, s=0.05):
        return jax.random.normal(k, shp, jnp.float32) * s

    params = {
        "w_fe": init(ks[0], (1, dm)),                 # Linear(1, d_model) weight (transposed)
        "b_fe": init(ks[1], (1, dm)),
        "pos": init(ks[2], (1, T, C, dm), 0.1),       # pos_embedding [1, seq_len, c_in, d_model]
        "wq": init(ks[3], (dm, dm)), "bq": init(ks[4], (1, dm)),
        "wk": init(ks[5], (dm, dm)), "bk": init(ks[6], (1, dm)),
        "wv": init(ks[7], (dm, dm)), "bv": init(ks[8], (1, dm)),
        "wo": init(ks[9], (dm, dm)), "bo": init(ks[10], (1, dm)),
        "g1": jnp.ones((1, dm), jnp.float32), "be1": jnp.zeros((1, dm), jnp.float32),
        "w1": init(ks[11], (dm, d_ff)), "b1": init(ks[12], (1, d_ff)),
        "w2": init(ks[13], (d_ff, dm)), "b2": init(ks[14], (1, dm)),
        "g2": jnp.ones((1, dm), jnp.float32), "be2": jnp.zeros((1, dm), jnp.float32),
    }

    x = jax.random.normal(ks[15], (B, T, C), jnp.float32)
    mask = (jax.random.uniform(ks[16], (B, T, C)) > 0.3).astype(jnp.float32)

    out = token_embedding_with_mask(x, mask, params, H)   # block_b auto (grid >= 2)
    out = jax.block_until_ready(out)

    ref = reference(x, mask, params, H)
    assert out.shape == (B, T, C * dm), out.shape
    assert bool(jnp.all(jnp.isfinite(out)))
    # tolerance covers bf16 matmul operands + approximate EUP reciprocal in softmax
    assert bool(jnp.allclose(out, ref, atol=2e-2, rtol=2e-2)), \
        float(jnp.max(jnp.abs(out - ref)))
    print("KERNEL_OK")
</pallas_src>

<mosaic_0001>
module attributes {stable_mosaic.version = 11 : i64} {
  func.func @kernel(%arg0: i32, %arg1: memref<4x32x1xf32, #tpu.memory_space<vmem>>, %arg2: memref<16x1x8xf32, #tpu.memory_space<vmem>>, %arg3: memref<32x32xf32, #tpu.memory_space<vmem>>, %arg4: memref<1x32xf32, #tpu.memory_space<vmem>>, %arg5: memref<1x32xf32, #tpu.memory_space<vmem>>, %arg6: memref<32x96xbf16, #tpu.memory_space<vmem>>, %arg7: memref<1x96xf32, #tpu.memory_space<vmem>>, %arg8: memref<32x32xbf16, #tpu.memory_space<vmem>>, %arg9: memref<1x32xf32, #tpu.memory_space<vmem>>, %arg10: memref<1x32xf32, #tpu.memory_space<vmem>>, %arg11: memref<1x32xf32, #tpu.memory_space<vmem>>, %arg12: memref<32x64xbf16, #tpu.memory_space<vmem>>, %arg13: memref<1x64xf32, #tpu.memory_space<vmem>>, %arg14: memref<64x32xbf16, #tpu.memory_space<vmem>>, %arg15: memref<1x32xf32, #tpu.memory_space<vmem>>, %arg16: memref<1x32xf32, #tpu.memory_space<vmem>>, %arg17: memref<1x32xf32, #tpu.memory_space<vmem>>, %arg18: memref<4x8x128xf32, #tpu.memory_space<vmem>>) attributes {dimension_semantics = [#tpu.dimension_semantics<parallel>], iteration_bounds = array<i64: 2>, scalar_prefetch = 0 : i64, scratch_operands = 0 : i64, tpu.core_type = #tpu.core_type<tc>, window_params = [{transform_indices = @transform_0, window_bounds = array<i64: 4, 32, 1>}, {transform_indices = @transform_1, window_bounds = array<i64: 16, 1, 8>}, {pipeline_mode = #tpu.pipeline_mode<synchronous>, transform_indices = @transform_2, window_bounds = array<i64: 32, 32>}, {pipeline_mode = #tpu.pipeline_mode<synchronous>, transform_indices = @transform_3, window_bounds = array<i64: 1, 32>}, {pipeline_mode = #tpu.pipeline_mode<synchronous>, transform_indices = @transform_4, window_bounds = array<i64: 1, 32>}, {pipeline_mode = #tpu.pipeline_mode<synchronous>, transform_indices = @transform_5, window_bounds = array<i64: 32, 96>}, {pipeline_mode = #tpu.pipeline_mode<synchronous>, transform_indices = @transform_6, window_bounds = array<i64: 1, 96>}, {pipeline_mode = #tpu.pipeline_mode<synchronous>, transform_indices = @transform_7, window_bounds = array<i64: 32, 32>}, {pipeline_mode = #tpu.pipeline_mode<synchronous>, transform_indices = @transform_8, window_bounds = array<i64: 1, 32>}, {pipeline_mode = #tpu.pipeline_mode<synchronous>, transform_indices = @transform_9, window_bounds = array<i64: 1, 32>}, {pipeline_mode = #tpu.pipeline_mode<synchronous>, transform_indices = @transform_10, window_bounds = array<i64: 1, 32>}, {pipeline_mode = #tpu.pipeline_mode<synchronous>, transform_indices = @transform_11, window_bounds = array<i64: 32, 64>}, {pipeline_mode = #tpu.pipeline_mode<synchronous>, transform_indices = @transform_12, window_bounds = array<i64: 1, 64>}, {pipeline_mode = #tpu.pipeline_mode<synchronous>, transform_indices = @transform_13, window_bounds = array<i64: 64, 32>}, {pipeline_mode = #tpu.pipeline_mode<synchronous>, transform_indices = @transform_14, window_bounds = array<i64: 1, 32>}, {pipeline_mode = #tpu.pipeline_mode<synchronous>, transform_indices = @transform_15, window_bounds = array<i64: 1, 32>}, {pipeline_mode = #tpu.pipeline_mode<synchronous>, transform_indices = @transform_16, window_bounds = array<i64: 1, 32>}, {transform_indices = @transform_17, window_bounds = array<i64: 4, 8, 128>}]} {
    %c0 = arith.constant 0 : index
    %c0_0 = arith.constant 0 : index
    %c0_1 = arith.constant 0 : index
    %0 = vector.load %arg1[%c0, %c0_0, %c0_1] : memref<4x32x1xf32, #tpu.memory_space<vmem>>, vector<4x32x1xf32>
    %c0_2 = arith.constant 0 : index
    %c0_3 = arith.constant 0 : index
    %1 = vector.load %arg4[%c0_2, %c0_3] : memref<1x32xf32, #tpu.memory_space<vmem>>, vector<1x32xf32>
    %2 = vector.shape_cast %1 : vector<1x32xf32> to vector<1x1x32xf32>
    %3 = vector.broadcast %0 : vector<4x32x1xf32> to vector<4x32x32xf32>
    %4 = vector.broadcast %2 : vector<1x1x32xf32> to vector<4x32x32xf32>
    %5 = arith.mulf %3, %4 : vector<4x32x32xf32>
    %c0_4 = arith.constant 0 : index
    %c0_5 = arith.constant 0 : index
    %6 = vector.load %arg5[%c0_4, %c0_5] : memref<1x32xf32, #tpu.memory_space<vmem>>, vector<1x32xf32>
    %7 = vector.shape_cast %6 : vector<1x32xf32> to vector<1x1x32xf32>
    %8 = vector.broadcast %7 : vector<1x1x32xf32> to vector<4x32x32xf32>
    %9 = arith.addf %5, %8 : vector<4x32x32xf32>
    %c0_6 = arith.constant 0 : index
    %c0_7 = arith.constant 0 : index
    %10 = vector.load %arg3[%c0_6, %c0_7] : memref<32x32xf32, #tpu.memory_space<vmem>>, vector<32x32xf32>
    %11 = vector.shape_cast %10 : vector<32x32xf32> to vector<1x32x32xf32>
    %12 = vector.broadcast %11 : vector<1x32x32xf32> to vector<4x32x32xf32>
    %13 = arith.addf %9, %12 : vector<4x32x32xf32>
    %14 = vector.shape_cast %13 : vector<4x32x32xf32> to vector<128x32xf32>
    %15 = arith.truncf %14 : vector<128x32xf32> to vector<128x32xbf16>
    %c0_8 = arith.constant 0 : index
    %c0_9 = arith.constant 0 : index
    %16 = vector.load %arg6[%c0_8, %c0_9] : memref<32x96xbf16, #tpu.memory_space<vmem>>, vector<32x96xbf16>
    %cst = arith.constant dense<0.000000e+00> : vector<128x96xf32>
    %17 = tpu.matmul %15, %16, %cst {dimension_numbers = #tpu.dot_dimension_numbers<[1], [0], [0], [1], [0, 0, 1, 1], [], []>} : vector<128x32xbf16>, vector<32x96xbf16>, vector<128x96xf32> -> vector<128x96xf32>
    %c0_10 = arith.constant 0 : index
    %c0_11 = arith.constant 0 : index
    %18 = vector.load %arg7[%c0_10, %c0_11] : memref<1x96xf32, #tpu.memory_space<vmem>>, vector<1x96xf32>
    %19 = vector.broadcast %18 : vector<1x96xf32> to vector<128x96xf32>
    %20 = arith.addf %17, %19 : vector<128x96xf32>
    %21 = vector.extract_strided_slice %20 {offsets = [0, 0], sizes = [128, 32], strides = [1, 1]} : vector<128x96xf32> to vector<128x32xf32>
    %22 = vector.shape_cast %21 : vector<128x32xf32> to vector<16x8x32xf32>
    %23 = arith.truncf %22 : vector<16x8x32xf32> to vector<16x8x32xbf16>
    %24 = vector.extract_strided_slice %20 {offsets = [0, 32], sizes = [128, 32], strides = [1, 1]} : vector<128x96xf32> to vector<128x32xf32>
    %25 = vector.shape_cast %24 : vector<128x32xf32> to vector<16x8x32xf32>
    %26 = arith.truncf %25 : vector<16x8x32xf32> to vector<16x8x32xbf16>
    %27 = vector.extract_strided_slice %20 {offsets = [0, 64], sizes = [128, 32], strides = [1, 1]} : vector<128x96xf32> to vector<128x32xf32>
    %28 = vector.shape_cast %27 : vector<128x32xf32> to vector<16x8x32xf32>
    %29 = arith.truncf %28 : vector<16x8x32xf32> to vector<16x8x32xbf16>
    %c0_12 = arith.constant 0 : index
    %c0_13 = arith.constant 0 : index
    %c0_14 = arith.constant 0 : index
    %30 = vector.load %arg2[%c0_12, %c0_13, %c0_14] : memref<16x1x8xf32, #tpu.memory_space<vmem>>, vector<16x1x8xf32>
    %31 = vector.extract_strided_slice %23 {offsets = [0, 0, 0], sizes = [16, 8, 8], strides = [1, 1, 1]} : vector<16x8x32xbf16> to vector<16x8x8xbf16>
    %32 = vector.extract_strided_slice %26 {offsets = [0, 0, 0], sizes = [16, 8, 8], strides = [1, 1, 1]} : vector<16x8x32xbf16> to vector<16x8x8xbf16>
    "tpu.trace_start"() <{level = 10 : i32, message = "sqd,skd->sqk"}> : () -> ()
    %cst_15 = arith.constant dense<0.000000e+00> : vector<16x8x8xf32>
    %33 = tpu.matmul %31, %32, %cst_15 {dimension_numbers = #tpu.dot_dimension_numbers<[2], [2], [1], [1], [0, 0, 0, 1, 1, 1], [0], [0]>} : vector<16x8x8xbf16>, vector<16x8x8xbf16>, vector<16x8x8xf32> -> vector<16x8x8xf32>
    "tpu.trace_stop"() : () -> ()
    %34 = vector.broadcast %30 : vector<16x1x8xf32> to vector<16x8x8xf32>
    %35 = arith.addf %33, %34 : vector<16x8x8xf32>
    %cst_16 = arith.constant dense<0xFF800000> : vector<16x8xf32>
    %36 = vector.multi_reduction <maximumf>, %35, %cst_16 [2] : vector<16x8x8xf32> to vector<16x8xf32>
    %37 = vector.shape_cast %36 : vector<16x8xf32> to vector<16x8x1xf32>
    %38 = vector.broadcast %37 : vector<16x8x1xf32> to vector<16x8x8xf32>
    %39 = arith.subf %35, %38 : vector<16x8x8xf32>
    %40 = math.exp %39 : vector<16x8x8xf32>
    %cst_17 = arith.constant dense<0.000000e+00> : vector<16x8xf32>
    %41 = vector.multi_reduction <add>, %40, %cst_17 [2] : vector<16x8x8xf32> to vector<16x8xf32>
    %42 = vector.shape_cast %41 : vector<16x8xf32> to vector<16x8x1xf32>
    %43 = tpu.reciprocal %42 {approx = true} : vector<16x8x1xf32> -> vector<16x8x1xf32>
    %44 = vector.broadcast %43 : vector<16x8x1xf32> to vector<16x8x8xf32>
    %45 = arith.mulf %40, %44 : vector<16x8x8xf32>
    %46 = arith.truncf %45 : vector<16x8x8xf32> to vector<16x8x8xbf16>
    %47 = vector.extract_strided_slice %29 {offsets = [0, 0, 0], sizes = [16, 8, 8], strides = [1, 1, 1]} : vector<16x8x32xbf16> to vector<16x8x8xbf16>
    "tpu.trace_start"() <{level = 10 : i32, message = "sqk,skd->sqd"}> : () -> ()
    %cst_18 = arith.constant dense<0.000000e+00> : vector<16x8x8xf32>
    %48 = tpu.matmul %46, %47, %cst_18 {dimension_numbers = #tpu.dot_dimension_numbers<[2], [1], [1], [2], [0, 0, 0, 1, 1, 2], [0], [0]>} : vector<16x8x8xbf16>, vector<16x8x8xbf16>, vector<16x8x8xf32> -> vector<16x8x8xf32>
    "tpu.trace_stop"() : () -> ()
    %49 = vector.extract_strided_slice %23 {offsets = [0, 0, 8], sizes = [16, 8, 8], strides = [1, 1, 1]} : vector<16x8x32xbf16> to vector<16x8x8xbf16>
    %50 = vector.extract_strided_slice %26 {offsets = [0, 0, 8], sizes = [16, 8, 8], strides = [1, 1, 1]} : vector<16x8x32xbf16> to vector<16x8x8xbf16>
    "tpu.trace_start"() <{level = 10 : i32, message = "sqd,skd->sqk"}> : () -> ()
    %cst_19 = arith.constant dense<0.000000e+00> : vector<16x8x8xf32>
    %51 = tpu.matmul %49, %50, %cst_19 {dimension_numbers = #tpu.dot_dimension_numbers<[2], [2], [1], [1], [0, 0, 0, 1, 1, 1], [0], [0]>} : vector<16x8x8xbf16>, vector<16x8x8xbf16>, vector<16x8x8xf32> -> vector<16x8x8xf32>
    "tpu.trace_stop"() : () -> ()
    %52 = vector.broadcast %30 : vector<16x1x8xf32> to vector<16x8x8xf32>
    %53 = arith.addf %51, %52 : vector<16x8x8xf32>
    %cst_20 = arith.constant dense<0xFF800000> : vector<16x8xf32>
    %54 = vector.multi_reduction <maximumf>, %53, %cst_20 [2] : vector<16x8x8xf32> to vector<16x8xf32>
    %55 = vector.shape_cast %54 : vector<16x8xf32> to vector<16x8x1xf32>
    %56 = vector.broadcast %55 : vector<16x8x1xf32> to vector<16x8x8xf32>
    %57 = arith.subf %53, %56 : vector<16x8x8xf32>
    %58 = math.exp %57 : vector<16x8x8xf32>
    %cst_21 = arith.constant dense<0.000000e+00> : vector<16x8xf32>
    %59 = vector.multi_reduction <add>, %58, %cst_21 [2] : vector<16x8x8xf32> to vector<16x8xf32>
    %60 = vector.shape_cast %59 : vector<16x8xf32> to vector<16x8x1xf32>
    %61 = tpu.reciprocal %60 {approx = true} : vector<16x8x1xf32> -> vector<16x8x1xf32>
    %62 = vector.broadcast %61 : vector<16x8x1xf32> to vector<16x8x8xf32>
    %63 = arith.mulf %58, %62 : vector<16x8x8xf32>
    %64 = arith.truncf %63 : vector<16x8x8xf32> to vector<16x8x8xbf16>
    %65 = vector.extract_strided_slice %29 {offsets = [0, 0, 8], sizes = [16, 8, 8], strides = [1, 1, 1]} : vector<16x8x32xbf16> to vector<16x8x8xbf16>
    "tpu.trace_start"() <{level = 10 : i32, message = "sqk,skd->sqd"}> : () -> ()
    %cst_22 = arith.constant dense<0.000000e+00> : vector<16x8x8xf32>
    %66 = tpu.matmul %64, %65, %cst_22 {dimension_numbers = #tpu.dot_dimension_numbers<[2], [1], [1], [2], [0, 0, 0, 1, 1, 2], [0], [0]>} : vector<16x8x8xbf16>, vector<16x8x8xbf16>, vector<16x8x8xf32> -> vector<16x8x8xf32>
    "tpu.trace_stop"() : () -> ()
    %67 = vector.extract_strided_slice %23 {offsets = [0, 0, 16], sizes = [16, 8, 8], strides = [1, 1, 1]} : vector<16x8x32xbf16> to vector<16x8x8xbf16>
    %68 = vector.extract_strided_slice %26 {offsets = [0, 0, 16], sizes = [16, 8, 8], strides = [1, 1, 1]} : vector<16x8x32xbf16> to vector<16x8x8xbf16>
    "tpu.trace_start"() <{level = 10 : i32, message = "sqd,skd->sqk"}> : () -> ()
    %cst_23 = arith.constant dense<0.000000e+00> : vector<16x8x8xf32>
    %69 = tpu.matmul %67, %68, %cst_23 {dimension_numbers = #tpu.dot_dimension_numbers<[2], [2], [1], [1], [0, 0, 0, 1, 1, 1], [0], [0]>} : vector<16x8x8xbf16>, vector<16x8x8xbf16>, vector<16x8x8xf32> -> vector<16x8x8xf32>
    "tpu.trace_stop"() : () -> ()
    %70 = vector.broadcast %30 : vector<16x1x8xf32> to vector<16x8x8xf32>
    %71 = arith.addf %69, %70 : vector<16x8x8xf32>
    %cst_24 = arith.constant dense<0xFF800000> : vector<16x8xf32>
    %72 = vector.multi_reduction <maximumf>, %71, %cst_24 [2] : vector<16x8x8xf32> to vector<16x8xf32>
    %73 = vector.shape_cast %72 : vector<16x8xf32> to vector<16x8x1xf32>
    %74 = vector.broadcast %73 : vector<16x8x1xf32> to vector<16x8x8xf32>
    %75 = arith.subf %71, %74 : vector<16x8x8xf32>
    %76 = math.exp %75 : vector<16x8x8xf32>
    %cst_25 = arith.constant dense<0.000000e+00> : vector<16x8xf32>
    %77 = vector.multi_reduction <add>, %76, %cst_25 [2] : vector<16x8x8xf32> to vector<16x8xf32>
    %78 = vector.shape_cast %77 : vector<16x8xf32> to vector<16x8x1xf32>
    %79 = tpu.reciprocal %78 {approx = true} : vector<16x8x1xf32> -> vector<16x8x1xf32>
    %80 = vector.broadcast %79 : vector<16x8x1xf32> to vector<16x8x8xf32>
    %81 = arith.mulf %76, %80 : vector<16x8x8xf32>
    %82 = arith.truncf %81 : vector<16x8x8xf32> to vector<16x8x8xbf16>
    %83 = vector.extract_strided_slice %29 {offsets = [0, 0, 16], sizes = [16, 8, 8], strides = [1, 1, 1]} : vector<16x8x32xbf16> to vector<16x8x8xbf16>
    "tpu.trace_start"() <{level = 10 : i32, message = "sqk,skd->sqd"}> : () -> ()
    %cst_26 = arith.constant dense<0.000000e+00> : vector<16x8x8xf32>
    %84 = tpu.matmul %82, %83, %cst_26 {dimension_numbers = #tpu.dot_dimension_numbers<[2], [1], [1], [2], [0, 0, 0, 1, 1, 2], [0], [0]>} : vector<16x8x8xbf16>, vector<16x8x8xbf16>, vector<16x8x8xf32> -> vector<16x8x8xf32>
    "tpu.trace_stop"() : () -> ()
    %85 = vector.extract_strided_slice %23 {offsets = [0, 0, 24], sizes = [16, 8, 8], strides = [1, 1, 1]} : vector<16x8x32xbf16> to vector<16x8x8xbf16>
    %86 = vector.extract_strided_slice %26 {offsets = [0, 0, 24], sizes = [16, 8, 8], strides = [1, 1, 1]} : vector<16x8x32xbf16> to vector<16x8x8xbf16>
    "tpu.trace_start"() <{level = 10 : i32, message = "sqd,skd->sqk"}> : () -> ()
    %cst_27 = arith.constant dense<0.000000e+00> : vector<16x8x8xf32>
    %87 = tpu.matmul %85, %86, %cst_27 {dimension_numbers = #tpu.dot_dimension_numbers<[2], [2], [1], [1], [0, 0, 0, 1, 1, 1], [0], [0]>} : vector<16x8x8xbf16>, vector<16x8x8xbf16>, vector<16x8x8xf32> -> vector<16x8x8xf32>
    "tpu.trace_stop"() : () -> ()
    %88 = vector.broadcast %30 : vector<16x1x8xf32> to vector<16x8x8xf32>
    %89 = arith.addf %87, %88 : vector<16x8x8xf32>
    %cst_28 = arith.constant dense<0xFF800000> : vector<16x8xf32>
    %90 = vector.multi_reduction <maximumf>, %89, %cst_28 [2] : vector<16x8x8xf32> to vector<16x8xf32>
    %91 = vector.shape_cast %90 : vector<16x8xf32> to vector<16x8x1xf32>
    %92 = vector.broadcast %91 : vector<16x8x1xf32> to vector<16x8x8xf32>
    %93 = arith.subf %89, %92 : vector<16x8x8xf32>
    %94 = math.exp %93 : vector<16x8x8xf32>
    %cst_29 = arith.constant dense<0.000000e+00> : vector<16x8xf32>
    %95 = vector.multi_reduction <add>, %94, %cst_29 [2] : vector<16x8x8xf32> to vector<16x8xf32>
    %96 = vector.shape_cast %95 : vector<16x8xf32> to vector<16x8x1xf32>
    %97 = tpu.reciprocal %96 {approx = true} : vector<16x8x1xf32> -> vector<16x8x1xf32>
    %98 = vector.broadcast %97 : vector<16x8x1xf32> to vector<16x8x8xf32>
    %99 = arith.mulf %94, %98 : vector<16x8x8xf32>
    %100 = arith.truncf %99 : vector<16x8x8xf32> to vector<16x8x8xbf16>
    %101 = vector.extract_strided_slice %29 {offsets = [0, 0, 24], sizes = [16, 8, 8], strides = [1, 1, 1]} : vector<16x8x32xbf16> to vector<16x8x8xbf16>
    "tpu.trace_start"() <{level = 10 : i32, message = "sqk,skd->sqd"}> : () -> ()
    %cst_30 = arith.constant dense<0.000000e+00> : vector<16x8x8xf32>
    %102 = tpu.matmul %100, %101, %cst_30 {dimension_numbers = #tpu.dot_dimension_numbers<[2], [1], [1], [2], [0, 0, 0, 1, 1, 2], [0], [0]>} : vector<16x8x8xbf16>, vector<16x8x8xbf16>, vector<16x8x8xf32> -> vector<16x8x8xf32>
    "tpu.trace_stop"() : () -> ()
    %103 = tpu.concatenate %48, %66, %84, %102 in 2 : vector<16x8x8xf32>, vector<16x8x8xf32>, vector<16x8x8xf32>, vector<16x8x8xf32> -> vector<16x8x32xf32>
    %104 = vector.shape_cast %103 : vector<16x8x32xf32> to vector<128x32xf32>
    %105 = arith.truncf %104 : vector<128x32xf32> to vector<128x32xbf16>
    %c0_31 = arith.constant 0 : index
    %c0_32 = arith.constant 0 : index
    %106 = vector.load %arg8[%c0_31, %c0_32] : memref<32x32xbf16, #tpu.memory_space<vmem>>, vector<32x32xbf16>
    %cst_33 = arith.constant dense<0.000000e+00> : vector<128x32xf32>
    %107 = tpu.matmul %105, %106, %cst_33 {dimension_numbers = #tpu.dot_dimension_numbers<[1], [0], [0], [1], [0, 0, 1, 1], [], []>} : vector<128x32xbf16>, vector<32x32xbf16>, vector<128x32xf32> -> vector<128x32xf32>
    %c0_34 = arith.constant 0 : index
    %c0_35 = arith.constant 0 : index
    %108 = vector.load %arg9[%c0_34, %c0_35] : memref<1x32xf32, #tpu.memory_space<vmem>>, vector<1x32xf32>
    %109 = vector.broadcast %108 : vector<1x32xf32> to vector<128x32xf32>
    %110 = arith.addf %107, %109 : vector<128x32xf32>
    %111 = arith.addf %14, %110 : vector<128x32xf32>
    %c0_36 = arith.constant 0 : index
    %c0_37 = arith.constant 0 : index
    %112 = vector.load %arg10[%c0_36, %c0_37] : memref<1x32xf32, #tpu.memory_space<vmem>>, vector<1x32xf32>
    %c0_38 = arith.constant 0 : index
    %c0_39 = arith.constant 0 : index
    %113 = vector.load %arg11[%c0_38, %c0_39] : memref<1x32xf32, #tpu.memory_space<vmem>>, vector<1x32xf32>
    %cst_40 = arith.constant dense<0.000000e+00> : vector<128xf32>
    %114 = vector.multi_reduction <add>, %111, %cst_40 [1] : vector<128x32xf32> to vector<128xf32>
    %115 = vector.shape_cast %114 : vector<128xf32> to vector<128x1xf32>
    %cst_41 = arith.constant 3.200000e+01 : f32
    %116 = vector.broadcast %cst_41 : f32 to vector<128x1xf32>
    %117 = arith.divf %115, %116 : vector<128x1xf32>
    %118 = vector.broadcast %117 : vector<128x1xf32> to vector<128x32xf32>
    %119 = arith.subf %111, %118 : vector<128x32xf32>
    %120 = arith.mulf %119, %119 : vector<128x32xf32>
    %cst_42 = arith.constant dense<0.000000e+00> : vector<128xf32>
    %121 = vector.multi_reduction <add>, %120, %cst_42 [1] : vector<128x32xf32> to vector<128xf32>
    %122 = vector.shape_cast %121 : vector<128xf32> to vector<128x1xf32>
    %cst_43 = arith.constant 3.200000e+01 : f32
    %123 = vector.broadcast %cst_43 : f32 to vector<128x1xf32>
    %124 = arith.divf %122, %123 : vector<128x1xf32>
    %125 = vector.broadcast %117 : vector<128x1xf32> to vector<128x32xf32>
    %126 = arith.subf %111, %125 : vector<128x32xf32>
    %cst_44 = arith.constant 9.99999974E-6 : f32
    %127 = vector.broadcast %cst_44 : f32 to vector<128x1xf32>
    %128 = arith.addf %124, %127 : vector<128x1xf32>
    %129 = math.rsqrt %128 : vector<128x1xf32>
    %130 = vector.broadcast %129 : vector<128x1xf32> to vector<128x32xf32>
    %131 = arith.mulf %126, %130 : vector<128x32xf32>
    %132 = vector.broadcast %112 : vector<1x32xf32> to vector<128x32xf32>
    %133 = arith.mulf %131, %132 : vector<128x32xf32>
    %134 = vector.broadcast %113 : vector<1x32xf32> to vector<128x32xf32>
    %135 = arith.addf %133, %134 : vector<128x32xf32>
    %136 = arith.truncf %135 : vector<128x32xf32> to vector<128x32xbf16>
    %c0_45 = arith.constant 0 : index
    %c0_46 = arith.constant 0 : index
    %137 = vector.load %arg12[%c0_45, %c0_46] : memref<32x64xbf16, #tpu.memory_space<vmem>>, vector<32x64xbf16>
    %cst_47 = arith.constant dense<0.000000e+00> : vector<128x64xf32>
    %138 = tpu.matmul %136, %137, %cst_47 {dimension_numbers = #tpu.dot_dimension_numbers<[1], [0], [0], [1], [0, 0, 1, 1], [], []>} : vector<128x32xbf16>, vector<32x64xbf16>, vector<128x64xf32> -> vector<128x64xf32>
    %c0_48 = arith.constant 0 : index
    %c0_49 = arith.constant 0 : index
    %139 = vector.load %arg13[%c0_48, %c0_49] : memref<1x64xf32, #tpu.memory_space<vmem>>, vector<1x64xf32>
    %140 = vector.broadcast %139 : vector<1x64xf32> to vector<128x64xf32>
    %141 = arith.addf %138, %140 : vector<128x64xf32>
    %cst_50 = arith.constant 5.000000e-01 : f32
    %142 = vector.broadcast %cst_50 : f32 to vector<128x64xf32>
    %143 = arith.mulf %142, %141 : vector<128x64xf32>
    %cst_51 = arith.constant 4.471500e-02 : f32
    %144 = vector.broadcast %cst_51 : f32 to vector<128x64xf32>
    %145 = arith.mulf %144, %141 : vector<128x64xf32>
    %146 = arith.mulf %145, %141 : vector<128x64xf32>
    %147 = arith.mulf %146, %141 : vector<128x64xf32>
    %148 = arith.addf %141, %147 : vector<128x64xf32>
    %cst_52 = arith.constant 0.797884583 : f32
    %149 = vector.broadcast %cst_52 : f32 to vector<128x64xf32>
    %150 = arith.mulf %149, %148 : vector<128x64xf32>
    %151 = math.tanh %150 : vector<128x64xf32>
    %cst_53 = arith.constant 1.000000e+00 : f32
    %152 = vector.broadcast %cst_53 : f32 to vector<128x64xf32>
    %153 = arith.addf %152, %151 : vector<128x64xf32>
    %154 = arith.mulf %143, %153 : vector<128x64xf32>
    %155 = arith.truncf %154 : vector<128x64xf32> to vector<128x64xbf16>
    %c0_54 = arith.constant 0 : index
    %c0_55 = arith.constant 0 : index
    %156 = vector.load %arg14[%c0_54, %c0_55] : memref<64x32xbf16, #tpu.memory_space<vmem>>, vector<64x32xbf16>
    %cst_56 = arith.constant dense<0.000000e+00> : vector<128x32xf32>
    %157 = tpu.matmul %155, %156, %cst_56 {dimension_numbers = #tpu.dot_dimension_numbers<[1], [0], [0], [1], [0, 0, 1, 1], [], []>} : vector<128x64xbf16>, vector<64x32xbf16>, vector<128x32xf32> -> vector<128x32xf32>
    %c0_57 = arith.constant 0 : index
    %c0_58 = arith.constant 0 : index
    %158 = vector.load %arg15[%c0_57, %c0_58] : memref<1x32xf32, #tpu.memory_space<vmem>>, vector<1x32xf32>
    %159 = vector.broadcast %158 : vector<1x32xf32> to vector<128x32xf32>
    %160 = arith.addf %157, %159 : vector<128x32xf32>
    %161 = arith.addf %135, %160 : vector<128x32xf32>
    %c0_59 = arith.constant 0 : index
    %c0_60 = arith.constant 0 : index
    %162 = vector.load %arg16[%c0_59, %c0_60] : memref<1x32xf32, #tpu.memory_space<vmem>>, vector<1x32xf32>
    %c0_61 = arith.constant 0 : index
    %c0_62 = arith.constant 0 : index
    %163 = vector.load %arg17[%c0_61, %c0_62] : memref<1x32xf32, #tpu.memory_space<vmem>>, vector<1x32xf32>
    %cst_63 = arith.constant dense<0.000000e+00> : vector<128xf32>
    %164 = vector.multi_reduction <add>, %161, %cst_63 [1] : vector<128x32xf32> to vector<128xf32>
    %165 = vector.shape_cast %164 : vector<128xf32> to vector<128x1xf32>
    %cst_64 = arith.constant 3.200000e+01 : f32
    %166 = vector.broadcast %cst_64 : f32 to vector<128x1xf32>
    %167 = arith.divf %165, %166 : vector<128x1xf32>
    %168 = vector.broadcast %167 : vector<128x1xf32> to vector<128x32xf32>
    %169 = arith.subf %161, %168 : vector<128x32xf32>
    %170 = arith.mulf %169, %169 : vector<128x32xf32>
    %cst_65 = arith.constant dense<0.000000e+00> : vector<128xf32>
    %171 = vector.multi_reduction <add>, %170, %cst_65 [1] : vector<128x32xf32> to vector<128xf32>
    %172 = vector.shape_cast %171 : vector<128xf32> to vector<128x1xf32>
    %cst_66 = arith.constant 3.200000e+01 : f32
    %173 = vector.broadcast %cst_66 : f32 to vector<128x1xf32>
    %174 = arith.divf %172, %173 : vector<128x1xf32>
    %175 = vector.broadcast %167 : vector<128x1xf32> to vector<128x32xf32>
    %176 = arith.subf %161, %175 : vector<128x32xf32>
    %cst_67 = arith.constant 9.99999974E-6 : f32
    %177 = vector.broadcast %cst_67 : f32 to vector<128x1xf32>
    %178 = arith.addf %174, %177 : vector<128x1xf32>
    %179 = math.rsqrt %178 : vector<128x1xf32>
    %180 = vector.broadcast %179 : vector<128x1xf32> to vector<128x32xf32>
    %181 = arith.mulf %176, %180 : vector<128x32xf32>
    %182 = vector.broadcast %162 : vector<1x32xf32> to vector<128x32xf32>
    %183 = arith.mulf %181, %182 : vector<128x32xf32>
    %184 = vector.broadcast %163 : vector<1x32xf32> to vector<128x32xf32>
    %185 = arith.addf %183, %184 : vector<128x32xf32>
    %186 = vector.shape_cast %185 : vector<128x32xf32> to vector<4x4x8x32xf32>
    %187 = vector.extract_strided_slice %186 {offsets = [0, 0, 0, 0], sizes = [4, 1, 8, 32], strides = [1, 1, 1, 1]} : vector<4x4x8x32xf32> to vector<4x1x8x32xf32>
    %188 = vector.shape_cast %187 : vector<4x1x8x32xf32> to vector<4x8x32xf32>
    %c0_68 = arith.constant 0 : index
    %c0_69 = arith.constant 0 : index
    %c0_70 = arith.constant 0 : index
    %189 = vector.load %arg18[%c0_68, %c0_69, %c0_70] : memref<4x8x128xf32, #tpu.memory_space<vmem>>, vector<4x8x32xf32>
    tpu.vector_store %arg18[%c0_68, %c0_69, %c0_70], %188 {strides = array<i32>} : memref<4x8x128xf32, #tpu.memory_space<vmem>>, vector<4x8x32xf32>,
    %190 = vector.extract_strided_slice %186 {offsets = [0, 1, 0, 0], sizes = [4, 1, 8, 32], strides = [1, 1, 1, 1]} : vector<4x4x8x32xf32> to vector<4x1x8x32xf32>
    %191 = vector.shape_cast %190 : vector<4x1x8x32xf32> to vector<4x8x32xf32>
    %c0_71 = arith.constant 0 : index
    %c0_72 = arith.constant 0 : index
    %c32 = arith.constant 32 : index
    %192 = vector.load %arg18[%c0_71, %c0_72, %c32] : memref<4x8x128xf32, #tpu.memory_space<vmem>>, vector<4x8x32xf32>
    tpu.vector_store %arg18[%c0_71, %c0_72, %c32], %191 {strides = array<i32>} : memref<4x8x128xf32, #tpu.memory_space<vmem>>, vector<4x8x32xf32>,
    %193 = vector.extract_strided_slice %186 {offsets = [0, 2, 0, 0], sizes = [4, 1, 8, 32], strides = [1, 1, 1, 1]} : vector<4x4x8x32xf32> to vector<4x1x8x32xf32>
    %194 = vector.shape_cast %193 : vector<4x1x8x32xf32> to vector<4x8x32xf32>
    %c0_73 = arith.constant 0 : index
    %c0_74 = arith.constant 0 : index
    %c64 = arith.constant 64 : index
    %195 = vector.load %arg18[%c0_73, %c0_74, %c64] : memref<4x8x128xf32, #tpu.memory_space<vmem>>, vector<4x8x32xf32>
    tpu.vector_store %arg18[%c0_73, %c0_74, %c64], %194 {strides = array<i32>} : memref<4x8x128xf32, #tpu.memory_space<vmem>>, vector<4x8x32xf32>,
    %196 = vector.extract_strided_slice %186 {offsets = [0, 3, 0, 0], sizes = [4, 1, 8, 32], strides = [1, 1, 1, 1]} : vector<4x4x8x32xf32> to vector<4x1x8x32xf32>
    %197 = vector.shape_cast %196 : vector<4x1x8x32xf32> to vector<4x8x32xf32>
    %c0_75 = arith.constant 0 : index
    %c0_76 = arith.constant 0 : index
    %c96 = arith.constant 96 : index
    %198 = vector.load %arg18[%c0_75, %c0_76, %c96] : memref<4x8x128xf32, #tpu.memory_space<vmem>>, vector<4x8x32xf32>
    tpu.vector_store %arg18[%c0_75, %c0_76, %c96], %197 {strides = array<i32>} : memref<4x8x128xf32, #tpu.memory_space<vmem>>, vector<4x8x32xf32>,
    return
  }
  func.func @transform_0(%arg0: i32) -> (i32, i32, i32) {
    %c0_i32 = arith.constant 0 : i32
    %c0_i32_0 = arith.constant 0 : i32
    %c0_i32_1 = arith.constant 0 : i32
    return %arg0, %c0_i32, %c0_i32_0 : i32, i32, i32
  }
  func.func @transform_1(%arg0: i32) -> (i32, i32, i32) {
    %c0_i32 = arith.constant 0 : i32
    %c0_i32_0 = arith.constant 0 : i32
    %c0_i32_1 = arith.constant 0 : i32
    return %arg0, %c0_i32, %c0_i32_0 : i32, i32, i32
  }
  func.func @transform_2(%arg0: i32) -> (i32, i32) {
    %c0_i32 = arith.constant 0 : i32
    %c0_i32_0 = arith.constant 0 : i32
    %c0_i32_1 = arith.constant 0 : i32
    return %c0_i32, %c0_i32_0 : i32, i32
  }
  func.func @transform_3(%arg0: i32) -> (i32, i32) {
    %c0_i32 = arith.constant 0 : i32
    %c0_i32_0 = arith.constant 0 : i32
    %c0_i32_1 = arith.constant 0 : i32
    return %c0_i32, %c0_i32_0 : i32, i32
  }
  func.func @transform_4(%arg0: i32) -> (i32, i32) {
    %c0_i32 = arith.constant 0 : i32
    %c0_i32_0 = arith.constant 0 : i32
    %c0_i32_1 = arith.constant 0 : i32
    return %c0_i32, %c0_i32_0 : i32, i32
  }
  func.func @transform_5(%arg0: i32) -> (i32, i32) {
    %c0_i32 = arith.constant 0 : i32
    %c0_i32_0 = arith.constant 0 : i32
    %c0_i32_1 = arith.constant 0 : i32
    return %c0_i32, %c0_i32_0 : i32, i32
  }
  func.func @transform_6(%arg0: i32) -> (i32, i32) {
    %c0_i32 = arith.constant 0 : i32
    %c0_i32_0 = arith.constant 0 : i32
    %c0_i32_1 = arith.constant 0 : i32
    return %c0_i32, %c0_i32_0 : i32, i32
  }
  func.func @transform_7(%arg0: i32) -> (i32, i32) {
    %c0_i32 = arith.constant 0 : i32
    %c0_i32_0 = arith.constant 0 : i32
    %c0_i32_1 = arith.constant 0 : i32
    return %c0_i32, %c0_i32_0 : i32, i32
  }
  func.func @transform_8(%arg0: i32) -> (i32, i32) {
    %c0_i32 = arith.constant 0 : i32
    %c0_i32_0 = arith.constant 0 : i32
    %c0_i32_1 = arith.constant 0 : i32
    return %c0_i32, %c0_i32_0 : i32, i32
  }
  func.func @transform_9(%arg0: i32) -> (i32, i32) {
    %c0_i32 = arith.constant 0 : i32
    %c0_i32_0 = arith.constant 0 : i32
    %c0_i32_1 = arith.constant 0 : i32
    return %c0_i32, %c0_i32_0 : i32, i32
  }
  func.func @transform_10(%arg0: i32) -> (i32, i32) {
    %c0_i32 = arith.constant 0 : i32
    %c0_i32_0 = arith.constant 0 : i32
    %c0_i32_1 = arith.constant 0 : i32
    return %c0_i32, %c0_i32_0 : i32, i32
  }
  func.func @transform_11(%arg0: i32) -> (i32, i32) {
    %c0_i32 = arith.constant 0 : i32
    %c0_i32_0 = arith.constant 0 : i32
    %c0_i32_1 = arith.constant 0 : i32
    return %c0_i32, %c0_i32_0 : i32, i32
  }
  func.func @transform_12(%arg0: i32) -> (i32, i32) {
    %c0_i32 = arith.constant 0 : i32
    %c0_i32_0 = arith.constant 0 : i32
    %c0_i32_1 = arith.constant 0 : i32
    return %c0_i32, %c0_i32_0 : i32, i32
  }
  func.func @transform_13(%arg0: i32) -> (i32, i32) {
    %c0_i32 = arith.constant 0 : i32
    %c0_i32_0 = arith.constant 0 : i32
    %c0_i32_1 = arith.constant 0 : i32
    return %c0_i32, %c0_i32_0 : i32, i32
  }
  func.func @transform_14(%arg0: i32) -> (i32, i32) {
    %c0_i32 = arith.constant 0 : i32
    %c0_i32_0 = arith.constant 0 : i32
    %c0_i32_1 = arith.constant 0 : i32
    return %c0_i32, %c0_i32_0 : i32, i32
  }
  func.func @transform_15(%arg0: i32) -> (i32, i32) {
    %c0_i32 = arith.constant 0 : i32
    %c0_i32_0 = arith.constant 0 : i32
    %c0_i32_1 = arith.constant 0 : i32
    return %c0_i32, %c0_i32_0 : i32, i32
  }
  func.func @transform_16(%arg0: i32) -> (i32, i32) {
    %c0_i32 = arith.constant 0 : i32
    %c0_i32_0 = arith.constant 0 : i32
    %c0_i32_1 = arith.constant 0 : i32
    return %c0_i32, %c0_i32_0 : i32, i32
  }
  func.func @transform_17(%arg0: i32) -> (i32, i32, i32) {
    %c0_i32 = arith.constant 0 : i32
    %c0_i32_0 = arith.constant 0 : i32
    %c0_i32_1 = arith.constant 0 : i32
    return %arg0, %c0_i32, %c0_i32_0 : i32, i32, i32
  }
}

</mosaic_0001>

<bundles_post_ra>
// kernel: tpu_custom_call.1
= control target key start
LH: loop header
LB: loop body
LE: loop exit
PB: predicated region body
PF: predicated region fallthrough
CT: control target
= control target key end

     0   :  { %s14867_s0 = inlined_call_operand.vmem [shape: f32[8,32,1], index: 0, kind: input, shape index: {}]   ;;  %s14868_s1 = inlined_call_operand.vmem [shape: f32[32,1,8], index: 1, kind: input, shape index: {}]   ;;  %s14869_s2 = inlined_call_operand.vmem [shape: f32[32,32], index: 2, kind: input, shape index: {}]   ;;  %s14870_s3 = inlined_call_operand.vmem [shape: f32[1,32], index: 3, kind: input, shape index: {}]   ;;  %s14871_s4 = inlined_call_operand.vmem [shape: f32[1,32], index: 4, kind: input, shape index: {}]   ;;  %s14872_s5 = inlined_call_operand.vmem [shape: bf16[32,96], index: 5, kind: input, shape index: {}]   ;;  %s14873_s6 = inlined_call_operand.vmem [shape: f32[1,96], index: 6, kind: input, shape index: {}]   ;;  %s14874_s7 = inlined_call_operand.vmem [shape: bf16[32,32], index: 7, kind: input, shape index: {}]   ;;  %s14875_s8 = inlined_call_operand.vmem [shape: f32[1,32], index: 8, kind: input, shape index: {}]   ;;  %s14876_s9 = inlined_call_operand.vmem [shape: f32[1,32], index: 9, kind: input, shape index: {}]   ;;  %s14877_s10 = inlined_call_operand.vmem [shape: f32[1,32], index: 10, kind: input, shape index: {}]   ;;  %s14878_s11 = inlined_call_operand.vmem [shape: bf16[32,64], index: 11, kind: input, shape index: {}]   ;;  %s14879_s12 = inlined_call_operand.vmem [shape: f32[1,64], index: 12, kind: input, shape index: {}]   ;;  %s14880_s13 = inlined_call_operand.vmem [shape: bf16[64,32], index: 13, kind: input, shape index: {}]   ;;  %s14881_s14 = inlined_call_operand.vmem [shape: f32[1,32], index: 14, kind: input, shape index: {}]   ;;  %s14882_s15 = inlined_call_operand.vmem [shape: f32[1,32], index: 15, kind: input, shape index: {}]   ;;  %s14883_s16 = inlined_call_operand.vmem [shape: f32[1,32], index: 16, kind: input, shape index: {}]   ;;  %s14884_s17 = inlined_call_operand.hbm [shape: f32[8,8,128], index: 17, kind: output, shape index: {}]  }
   0x1   :  { %14915 = sst [smem:[#allocation44_spill]] %s14867_s0 }
   0x2   :  { %14916 = sst [smem:[#allocation45_spill]] %s14868_s1 }
   0x3   :  { %14917 = sst [smem:[#allocation46_spill]] %s14869_s2 }
   0x4   :  { %14918 = sst [smem:[#allocation47_spill]] %s14870_s3 }
   0x5   :  { %14919 = sst [smem:[#allocation48_spill]] %s14871_s4 }
   0x6   :  { %14920 = sst [smem:[#allocation49_spill]] %s14872_s5 }
   0x7   :  { %14921 = sst [smem:[#allocation50_spill]] %s14873_s6 }
   0x8   :  { %22 = vsyncpa [#allocation3], 0 }
   0x9   :  { %24 = vsyncpa [#allocation3 + $0x1], 0  ;;  %s11722_s24 = smov 0   ;;  %s11724_s25 = smov 0  }
   0xa   :  { %s11726_s26 = smov 0   ;;  %s11728_s27 = smov 0  }
   0xb LB: > { %s11743_s28 = sadd.s32 4294967295, %s11610_s27   ;;  %s9594_s29 = sadd.s32 4294967294, %s11610_s27   ;;  %s11610_s27 = sphi %s11728_s27, %s15032_s27   ;;  %s11606_s26 = sphi %s11726_s26, %s15031_s26   ;;  %s11602_s25 = sphi %s11724_s25, %s15030_s25   ;;  %s11598_s24 = sphi %s11722_s24, %s15029_s24  }
   0xc   : > { %s11747_s0 = sadd.s32 1, %s11610_s27   ;;  %s404_s30 = sadd.s32 1, %s11606_s26 }
   0xd   : > { %s401_s18 = ssub.s32 %s11610_s27, %s11747_s0  ;;  %p414_p0 = scmp.ne.s32.totalorder %s11606_s26, %s11602_s25 }
   0xe   : > { %p402_p1 = scmp.eq.s32.totalorder %s401_s18, 0  ;;  %p415_p2 = scmp.eq.s32.totalorder %s11743_s28, 1 }
   0xf   : > { %p420_p3 = scmp.ne.s32.totalorder %s11602_s25, %s11598_s24  ;;  %p421_p4 = scmp.eq.s32.totalorder %s9594_s29, 1 }
  0x10   : > { %s11758_s19 = scalar_select %p402_p1, %s11606_s26, %s404_s30  }
  0x11   : > { %p11760_p5 = por %p415_p2, %p414_p0  ;;  %p11764_p6 = por %p421_p4, %p420_p3 }
  0x12   : > { %p9597_p7 = scmp.ge.s32.totalorder %s11610_s27, 1  ;;  %p502_p8 = scmp.lt.s32.totalorder %s11610_s27, 3 }
  0x14   : > { %p503_p9 = pnand %p9597_p7, %p502_p8 }
  0x16   : > { %506 = sbr.rel (%p503_p9) target bundleno = 4682 (0x124a), region = 88 }
  0x1b   : > { %s9599_s21 = sshll.u32 %s11743_s28, 2  ;;  %v11612_v0 = vmov 0   ;;  %s14924_s30 = sld [smem:[#allocation44_spill]]  ;;  %vm766_vm0 = vcmask 261120   ;;  %vm11614_vm1 = vmmov 0   ;;  %vm1019_vm2 = vcmask 64512  }
  0x1c   : > { %11019 = vset.pattern.permute.xlu1 %v11612_v0  ;;  %11018 = vset.pattern.permute.xlu0 %v11612_v0  ;;  %p560_p10 = scmp.lt.s32.totalorder %s9599_s21, 7  ;;  %s14925_s5 = sld [smem:[#allocation49_spill]]  ;;  %vm1998_vm3 = vcmask 1043456   ;;  %vm8250_vm4 = vcmask 130048   ;;  %vm8267_vm5 = vcmask 195584   ;;  %vm9050_vm6 = vcmask 523264  }
  0x1d   : > { %s14926_s3 = sld [smem:[#allocation47_spill]]  ;;  %s14913_s29 = smov 64   ;;  %vm9462_vm7 = vcmask 523520   ;;  %vm9483_vm8 = vcmask 785920   ;;  %vm9504_vm9 = vcmask 1048320  }
  0x1e   : > { %s15034_s21 = smov (!%p560_p10, %s9599_s21), 7  ;;  %s14927_s4 = sld [smem:[#allocation48_spill]] }
  0x1f   : > { %s9804_s22 = sshll.u32 %s15034_s21, 5  ;;  %s14928_s2 = sld [smem:[#allocation46_spill]] }
  0x20   : > { %s14945_s6 = sld [smem:[#allocation50_spill]]  ;;  %s11619_s21 = smov 56  }
  0x21   : > { %s11774_s18 = scalar_lea.vmem %s14924_s30, %s9804_s22  ;;  %s9602_s30 = sshll.u32 %s11743_s28, 4 }
  0x22   : > { %v575_v1 = vld [vmem:[%s11774_s18 + $0x10] sm:$0xff]  ;;  %v573_v2 = vld [vmem:[%s11774_s18] sm:$0xff]  ;;  %v576_v3 = vld [vmem:[%s11774_s18 + $0x18] sm:$0xff]  ;;  %p567_p11 = scmp.lt.s32.totalorder %s9602_s30, 31  ;;  %s14946_s22 = sld [smem:[#allocation45_spill]] }
  0x23   : > { %602 = vperm.xlu1 %11019, %v575_v1   ;;  %592 = vperm.xlu0 %11018, %v573_v2   ;;  %v574_v4 = vld [vmem:[%s11774_s18 + $0x8] sm:$0xff]  ;;  %v577_v7 = vld [vmem:[%s11774_s18 + $0x20] sm:$0xff]  ;;  %v580_v9 = vld [vmem:[%s11774_s18 + $0x38] sm:$0xff]  ;;  %s11620_s23 = smov 80  }
  0x24   : > { %v11140_v5 = vld [vmem:[%s14925_s5 + $0x8] sm:$0xff]   ;;  %v11141_v8 = vld [vmem:[%s14925_s5] sm:$0xff]   ;;  %v579_v10 = vld [vmem:[%s11774_s18 + $0x30] sm:$0xff]  ;;  %s15036_s30 = smov (!%p567_p11, %s9602_s30), 31 }
  0x25   : > { %v578_v6 = vld [vmem:[%s11774_s18 + $0x28] sm:$0xff]  ;;  %10104 = vmatprep.subr.bf16.mxu0 %v11140_v5  ;;  %10956 = vmatprep.subr.bf16.mxu1 %v11140_v5  ;;  %v581_v12 = vld [vmem:[%s11774_s18 + $0x40] sm:$0xff]  ;;  %v584_v13 = vld [vmem:[%s11774_s18 + $0x58] sm:$0xff] }
  0x26   : > { %10105 = vmatpush3.bf16.msra.mxu0 %v11140_v5  ;;  %10958 = vmatpush3.bf16.msra.mxu1 %v11140_v5  ;;  %v582_v11 = vld [vmem:[%s11774_s18 + $0x48] sm:$0xff]  ;;  %v583_v14 = vld [vmem:[%s11774_s18 + $0x50] sm:$0xff]  ;;  %v585_v16 = vld [vmem:[%s11774_s18 + $0x60] sm:$0xff] }
  0x27   : > { %607 = vperm.xlu1 %11019, %v576_v3   ;;  %597 = vperm.xlu0 %11018, %v574_v4   ;;  %v586_v15 = vld [vmem:[%s11774_s18 + $0x68] sm:$0xff]  ;;  %v588_v17 = vld [vmem:[%s11774_s18 + $0x78] sm:$0xff]  ;;  %v587_v18 = vld [vmem:[%s11774_s18 + $0x70] sm:$0xff]  ;;  %s14910_s18 = smov 96  }
  0x28   : > { %10106 = vmatprep.subr.bf16.mxu0 %v11141_v8  ;;  %10957 = vmatprep.subr.bf16.mxu1 %v11141_v8  ;;  %v11801_v19 = vld [vmem:[%s14926_s3] ss:$0 sm:$0xff]  ;;  %v11815_v29 = vld [vmem:[%s14928_s2 + $0x10] sm:$0xff]  ;;  %v11825_v33 = vld [vmem:[%s14928_s2 + $0x18] sm:$0xff]  ;;  %s12119_s3 = scalar_lea.vmem %s14946_s22, %s15036_s30  ;;  %s11618_s30 = smov 120  }
  0x29   : > { %v11806_v22 = vld [vmem:[%s14927_s4] ss:$0 sm:$0xff]  ;;  %v716_v34 = vld [vmem:[%s14928_s2 + $0x8] sm:$0xff]  ;;  %s11617_s4 = smov 88   ;;  %s11621_s22 = smov 112  }
  0x2a   : > { %10107 = vmatpush3.bf16.msra.mxu0 %v11141_v8  ;;  %10959 = vmatpush3.bf16.msra.mxu1 %v11141_v8  ;;  %v715_v32 = vld [vmem:[%s14928_s2] sm:$0xff]  ;;  %s11630_s2 = smov [#allocation2]  }
  0x2b   : > { %617 = vperm.xlu1 %11019, %v578_v6   ;;  %612 = vperm.xlu0 %11018, %v577_v7  }
  0x2f   : > { %627 = vperm.xlu1 %11019, %v580_v9   ;;  %622 = vperm.xlu0 %11018, %v579_v10  }
  0x33   : > { %637 = vperm.xlu1 %11019, %v582_v11   ;;  %632 = vperm.xlu0 %11018, %v581_v12  }
  0x37   : > { %647 = vperm.xlu1 %11019, %v584_v13   ;;  %642 = vperm.xlu0 %11018, %v583_v14  }
  0x3b   : > { %657 = vperm.xlu1 %11019, %v586_v15   ;;  %652 = vperm.xlu0 %11018, %v585_v16  }
  0x3f   : > { %667 = vperm.xlu1 %11019, %v588_v17   ;;  %662 = vperm.xlu0 %11018, %v587_v18  }
  0x9e   : > { %v603_v20 = vpop.permute.xlu1 %602  ;;  %v593_v21 = vpop.permute.xlu0 %592 }
  0x9f   : > { %v678_v23 = vmul.f32 %v11801_v19, %v603_v20  ;;  %v676_v24 = vmul.f32 %v11801_v19, %v593_v21 }
  0xa1   : > { %v701_v25 = vadd.f32 %v11806_v22, %v678_v23  ;;  %v699_v26 = vadd.f32 %v11806_v22, %v676_v24 }
  0xa2   : > { %v608_v27 = vpop.permute.xlu1 %607  ;;  %v598_v28 = vpop.permute.xlu0 %597 }
  0xa3   : > { %v679_v30 = vmul.f32 %v11801_v19, %v608_v27  ;;  %v677_v31 = vmul.f32 %v11801_v19, %v598_v28  ;;  %v11833_v37 = vadd.f32 %v11815_v29, %v701_v25  ;;  %v11835_v40 = vadd.f32 %v715_v32, %v699_v26 }
  0xa5   : > { %v702_v35 = vadd.f32 %v11806_v22, %v679_v30  ;;  %v700_v36 = vadd.f32 %v11806_v22, %v677_v31  ;;  %14929 = vst [vmem:[#allocation5_spill] sm:$0xff] %v11833_v37  ;;  %14930 = vst [vmem:[#allocation6_spill] sm:$0xff] %v11835_v40 }
  0xa6   : > { %v618_v38 = vpop.permute.xlu1 %617  ;;  %v613_v39 = vpop.permute.xlu0 %612 }
  0xa7   : > { %v11838_v41 = vadd.f32 %v11825_v33, %v702_v35  ;;  %v681_v42 = vmul.f32 %v11801_v19, %v618_v38  ;;  %v680_v43 = vmul.f32 %v11801_v19, %v613_v39  ;;  %v11842_v44 = vadd.f32 %v716_v34, %v700_v36 }
  0xa9   : > { %14931 = vst [vmem:[#allocation7_spill] sm:$0xff] %v11838_v41  ;;  %14932 = vst [vmem:[#allocation8_spill] sm:$0xff] %v11842_v44  ;;  %v704_v45 = vadd.f32 %v11806_v22, %v681_v42  ;;  %v703_v46 = vadd.f32 %v11806_v22, %v680_v43  ;;  %v735_v47 = vpack.c.bf16 %v11842_v44, %v11835_v40 }
  0xaa   : > { %v736_v48 = vpack.c.bf16 %v11838_v41, %v11833_v37  ;;  %v628_v49 = vpop.permute.xlu1 %627  ;;  %v623_v50 = vpop.permute.xlu0 %622 }
  0xab   : > { %v11850_v51 = vadd.f32 %v716_v34, %v704_v45  ;;  %v11852_v52 = vadd.f32 %v715_v32, %v703_v46  ;;  %v683_v53 = vmul.f32 %v11801_v19, %v628_v49  ;;  %v682_v54 = vmul.f32 %v11801_v19, %v623_v50  ;;  %10108 = vmatprep.mubr.msk.bf16.mxu0 %vm766_vm0, %v735_v47 }
  0xac   : > { %10109 = vmatmul.mubr.msk.bf16.vlgmr.msra.gmra.mxu0 %vm766_vm0, %v736_v48 }
  0xad   : > { %14933 = vst [vmem:[#allocation9_spill] sm:$0xff] %v11850_v51  ;;  %14934 = vst [vmem:[#allocation10_spill] sm:$0xff] %v11852_v52  ;;  %v706_v55 = vadd.f32 %v11806_v22, %v683_v53  ;;  %v705_v56 = vadd.f32 %v11806_v22, %v682_v54  ;;  %v737_v57 = vpack.c.bf16 %v11850_v51, %v11852_v52  ;;  %v11515_v51 = vld [vmem:[%s12119_s3 + $0xe] ss:$0 sm:$0xff] }
  0xae   : > { %v638_v58 = vpop.permute.xlu1 %637  ;;  %v633_v59 = vpop.permute.xlu0 %632 }
  0xaf   : > { %v11863_v60 = vadd.f32 %v11825_v33, %v706_v55  ;;  %v11866_v61 = vadd.f32 %v11815_v29, %v705_v56  ;;  %v685_v62 = vmul.f32 %v11801_v19, %v638_v58  ;;  %v684_v63 = vmul.f32 %v11801_v19, %v633_v59  ;;  %10112 = vmatprep.mubr.msk.bf16.mxu0 %vm766_vm0, %v737_v57 }
  0xb1   : > { %14935 = vst [vmem:[#allocation11_spill] sm:$0xff] %v11863_v60  ;;  %14936 = vst [vmem:[#allocation12_spill] sm:$0xff] %v11866_v61  ;;  %v708_v0 = vadd.f32 %v11806_v22, %v685_v62  ;;  %v707_v1 = vadd.f32 %v11806_v22, %v684_v63  ;;  %v738_v2 = vpack.c.bf16 %v11863_v60, %v11866_v61 }
  0xb2   : > { %v648_v3 = vpop.permute.xlu1 %647  ;;  %v643_v4 = vpop.permute.xlu0 %642 }
  0xb3   : > { %v687_v5 = vmul.f32 %v11801_v19, %v648_v3  ;;  %v686_v6 = vmul.f32 %v11801_v19, %v643_v4  ;;  %v11877_v7 = vadd.f32 %v715_v32, %v707_v1  ;;  %v11879_v8 = vadd.f32 %v716_v34, %v708_v0 }
  0xb4   : > { %10113 = vmatmul.mubr.msk.bf16.gmra.mxu0 %vm766_vm0, %v738_v2 }
  0xb5   : > { %14937 = vst [vmem:[#allocation13_spill] sm:$0xff] %v11877_v7  ;;  %14938 = vst [vmem:[#allocation14_spill] sm:$0xff] %v11879_v8  ;;  %v710_v9 = vadd.f32 %v11806_v22, %v687_v5  ;;  %v709_v10 = vadd.f32 %v11806_v22, %v686_v6  ;;  %v739_v11 = vpack.c.bf16 %v11879_v8, %v11877_v7  ;;  %v11511_v8 = vld [vmem:[%s12119_s3 + $0xa] ss:$0 sm:$0xff]  ;;  %v11513_v7 = vld [vmem:[%s12119_s3 + $0xc] ss:$0 sm:$0xff] }
  0xb6   : > { %v658_v12 = vpop.permute.xlu1 %657  ;;  %v653_v13 = vpop.permute.xlu0 %652 }
  0xb7   : > { %v11887_v14 = vadd.f32 %v11825_v33, %v710_v9  ;;  %v11890_v15 = vadd.f32 %v11815_v29, %v709_v10  ;;  %v689_v16 = vmul.f32 %v11801_v19, %v658_v12  ;;  %v688_v17 = vmul.f32 %v11801_v19, %v653_v13  ;;  %10116 = vmatprep.mubr.msk.bf16.mxu1 %vm766_vm0, %v739_v11 }
  0xb9   : > { %14939 = vst [vmem:[#allocation15_spill] sm:$0xff] %v11887_v14  ;;  %14940 = vst [vmem:[#allocation16_spill] sm:$0xff] %v11890_v15  ;;  %v712_v18 = vadd.f32 %v11806_v22, %v689_v16  ;;  %v711_v20 = vadd.f32 %v11806_v22, %v688_v17  ;;  %v740_v21 = vpack.c.bf16 %v11887_v14, %v11890_v15 }
  0xba   : > { %v668_v23 = vpop.permute.xlu1 %667  ;;  %v663_v24 = vpop.permute.xlu0 %662 }
  0xbb   : > { %v11899_v25 = vadd.f32 %v716_v34, %v712_v18  ;;  %v11901_v26 = vadd.f32 %v715_v32, %v711_v20  ;;  %v691_v27 = vmul.f32 %v11801_v19, %v668_v23  ;;  %v690_v28 = vmul.f32 %v11801_v19, %v663_v24  ;;  %10117 = vmatmul.mubr.msk.bf16.vlgmr.msra.gmra.mxu1 %vm766_vm0, %v740_v21 }
  0xbc   : > { %v14885_v32 = vmov 0.0  }
  0xbd   : > { %14941 = vst [vmem:[#allocation17_spill] sm:$0xff] %v11899_v25  ;;  %14942 = vst [vmem:[#allocation18_spill] sm:$0xff] %v11901_v26  ;;  %v714_v30 = vadd.f32 %v11806_v22, %v691_v27  ;;  %v713_v31 = vadd.f32 %v11806_v22, %v690_v28  ;;  %v741_v35 = vpack.c.bf16 %v11899_v25, %v11901_v26  ;;  %10124 = vmatprep.subr.bf16.mxu1 %v14885_v32 }
  0xbe   : > { %10148 = vmatprep.subr.bf16.mxu0 %v14885_v32  ;;  %10150 = vmatprep.mubr.msk.bf16.mxu0 %vm11614_vm1, %v14885_v32 }
  0xbf   : > { %v11911_v36 = vadd.f32 %v11825_v33, %v714_v30  ;;  %v11914_v34 = vadd.f32 %v11815_v29, %v713_v31  ;;  %10120 = vmatprep.mubr.msk.bf16.mxu1 %vm766_vm0, %v741_v35  ;;  %v9605_v29 = vld [vmem:[%s14945_s6] ss:$0 sm:$0xff] }
  0xc1   : > { %14943 = vst [vmem:[#allocation19_spill] sm:$0xff] %v11911_v36  ;;  %14944 = vst [vmem:[#allocation20_spill] sm:$0xff] %v11914_v34  ;;  %v742_v19 = vpack.c.bf16 %v11911_v36, %v11914_v34 }
  0xc3   : > { %10121 = vmatmul.mubr.msk.bf16.gmra.mxu1 %vm766_vm0, %v742_v19 }
  0xc4   : > { %10126 = vmatprep.mubr.msk.bf16.mxu1 %vm11614_vm1, %v14885_v32 }
 0x16c   : > { %v10110_v22 = vpop.f32.mrf.mxu0 }
 0x16d   : > { %v834_v42 = vadd.f32 %v10110_v22, %v9605_v29 }
 0x16e   : > { %v825_v33 = vpop.f32.mrf.mxu0 }
 0x16f   : > { %v826_v38 = vadd.f32 %v9605_v29, %v825_v33  ;;  %v11933_v48 = vpack.c.bf16 %v834_v42, %v834_v42 }
 0x170   : > { %v10111_v39 = vpop.f32.mrf.mxu0 }
 0x171   : > { %v11929_v43 = vpack.c.bf16 %v826_v38, %v826_v38  ;;  %v837_v49 = vadd.f32 %v10111_v39, %v9605_v29 }
 0x172   : > { %v828_v45 = vpop.f32.mrf.mxu0 }
 0x173   : > { %v829_v46 = vadd.f32 %v9605_v29, %v828_v45  ;;  %1017 = vrot.lane.b32.xlu0 %v11929_v43, %s14910_s18  ;;  %v11941_v56 = vpack.c.bf16 %v837_v49, %v837_v49 }
 0x174   : > { %v10114_v47 = vpop.f32.mrf.mxu0 }
 0x175   : > { %v11935_v50 = vpack.c.bf16 %v829_v46, %v829_v46  ;;  %v850_v57 = vadd.f32 %v10114_v47, %v9605_v29 }
 0x176   : > { %v841_v53 = vpop.f32.mrf.mxu0 }
 0x177   : > { %v842_v54 = vadd.f32 %v9605_v29, %v841_v53  ;;  %1067 = vrot.lane.b32.xlu1 %v11935_v50, %s14910_s18  ;;  %1116 = vrot.lane.b32.xlu0 %v11933_v48, %s14910_s18  ;;  %v11949_v0 = vpack.c.bf16 %v850_v57, %v850_v57 }
 0x178   : > { %v10115_v55 = vpop.f32.mrf.mxu0 }
 0x179   : > { %v11943_v58 = vpack.c.bf16 %v842_v54, %v842_v54  ;;  %v853_v1 = vadd.f32 %v10115_v55, %v9605_v29 }
 0x17a   : > { %v844_v59 = vpop.f32.mrf.mxu0 }
 0x17b   : > { %v845_v62 = vadd.f32 %v9605_v29, %v844_v59  ;;  %1165 = vrot.lane.b32.xlu1 %v11941_v56, %s14910_s18  ;;  %1214 = vrot.lane.b32.xlu0 %v11943_v58, %s14910_s18  ;;  %v10118_v63 = vpop.f32.mrf.mxu1  ;;  %v11959_v9 = vpack.c.bf16 %v853_v1, %v853_v1 }
 0x17c   : > { %v866_v10 = vadd.f32 %v10118_v63, %v9605_v29 }
 0x17d   : > { %v11951_v2 = vpack.c.bf16 %v845_v62, %v845_v62  ;;  %v857_v3 = vpop.f32.mrf.mxu1 }
 0x17e   : > { %v858_v4 = vadd.f32 %v9605_v29, %v857_v3  ;;  %v11967_v17 = vpack.c.bf16 %v866_v10, %v866_v10 }
 0x17f   : > { %1263 = vrot.lane.b32.xlu1 %v11951_v2, %s14910_s18  ;;  %1312 = vrot.lane.b32.xlu0 %v11949_v0, %s14910_s18  ;;  %v10119_v5 = vpop.f32.mrf.mxu1 }
 0x180   : > { %v11957_v6 = vpack.c.bf16 %v858_v4, %v858_v4  ;;  %v869_v18 = vadd.f32 %v10119_v5, %v9605_v29 }
 0x181   : > { %v860_v11 = vpop.f32.mrf.mxu1 }
 0x182   : > { %v861_v12 = vadd.f32 %v9605_v29, %v860_v11  ;;  %v11975_v27 = vpack.c.bf16 %v869_v18, %v869_v18 }
 0x183   : > { %1361 = vrot.lane.b32.xlu1 %v11959_v9, %s14910_s18  ;;  %1410 = vrot.lane.b32.xlu0 %v11957_v6, %s14910_s18  ;;  %v10122_v13 = vpop.f32.mrf.mxu1 }
 0x184   : > { %v11965_v16 = vpack.c.bf16 %v861_v12, %v861_v12  ;;  %v882_v28 = vadd.f32 %v10122_v13, %v9605_v29 }
 0x185   : > { %v873_v20 = vpop.f32.mrf.mxu1 }
 0x186   : > { %v874_v21 = vadd.f32 %v9605_v29, %v873_v20  ;;  %v11983_v19 = vpack.c.bf16 %v882_v28, %v882_v28 }
 0x187   : > { %1459 = vrot.lane.b32.xlu1 %v11965_v16, %s14910_s18  ;;  %1508 = vrot.lane.b32.xlu0 %v11967_v17, %s14910_s18  ;;  %v10123_v23 = vpop.f32.mrf.mxu1 }
 0x188   : > { %v11973_v24 = vpack.c.bf16 %v874_v21, %v874_v21  ;;  %v885_v22 = vadd.f32 %v10123_v23, %v9605_v29 }
 0x189   : > { %v876_v30 = vpop.f32.mrf.mxu1 }
 0x18a   : > { %v877_v31 = vadd.f32 %v9605_v29, %v876_v30  ;;  %v11989_v33 = vpack.c.bf16 %v885_v22, %v885_v22 }
 0x18b   : > { %1557 = vrot.lane.b32.xlu1 %v11975_v27, %s14910_s18  ;;  %1606 = vrot.lane.b32.xlu0 %v11973_v24, %s14910_s18 }
 0x18c   : > { %v11981_v35 = vpack.c.bf16 %v877_v31, %v877_v31 }
 0x18f   : > { %1655 = vrot.lane.b32.xlu1 %v11981_v35, %s14910_s18  ;;  %1704 = vrot.lane.b32.xlu0 %v11983_v19, %s14910_s18 }
 0x193   : > { %1753 = vrot.lane.b32.xlu1 %v11989_v33, %s14910_s18  ;;  %2042 = vrot.lane.b32.xlu0 %v11935_v50, %s14913_s29  ;;  %s11628_s18 = smov 24  }
 0x197   : > { %1993 = vrot.lane.b32.xlu1 %v11929_v43, %s14913_s29  ;;  %2138 = vrot.lane.b32.xlu0 %v11941_v56, %s14913_s29 }
 0x19b   : > { %2090 = vrot.lane.b32.xlu1 %v11933_v48, %s14913_s29  ;;  %2330 = vrot.lane.b32.xlu0 %v11959_v9, %s14913_s29 }
 0x19f   : > { %2186 = vrot.lane.b32.xlu1 %v11943_v58, %s14913_s29  ;;  %2426 = vrot.lane.b32.xlu0 %v11965_v16, %s14913_s29 }
 0x1a3   : > { %2282 = vrot.lane.b32.xlu1 %v11949_v0, %s14913_s29  ;;  %2234 = vrot.lane.b32.xlu0 %v11951_v2, %s14913_s29 }
 0x1a7   : > { %2378 = vrot.lane.b32.xlu1 %v11957_v6, %s14913_s29 }
 0x1ab   : > { %2474 = vrot.lane.b32.xlu1 %v11967_v17, %s14913_s29 }
 0x1e5   : > { %v1018_v29 = vpop.permute.xlu0 %1017 }
 0x1e6   : > { %v1024_v38 = vsel %vm1019_vm2, %v1018_v29, 0 }
 0x1e7   : > { %10125 = vmatpush3.bf16.xpose.msra.mxu1 %v1024_v38 }
 0x1e8   : > { %10130 = vmatprep.subr.bf16.mxu1 %v14885_v32 }
 0x1e9   : > { %v1117_v39 = vpop.permute.xlu0 %1116  ;;  %v1068_v42 = vpop.permute.xlu1 %1067 }
 0x1ea   : > { %v1073_v46 = vsel %vm1019_vm2, %v1068_v42, 0  ;;  %v1122_v54 = vsel %vm1019_vm2, %v1117_v39, 0 }
 0x1ed   : > { %v1215_v45 = vpop.permute.xlu0 %1214  ;;  %v1166_v49 = vpop.permute.xlu1 %1165 }
 0x1ee   : > { %v1220_v47 = vsel %vm1019_vm2, %v1215_v45, 0  ;;  %10127 = vmatmul.mubr.msk.bf16.vlgmr.msra.gmra.mxu1 %vm1019_vm2, %v11929_v43  ;;  %v1171_v63 = vsel %vm1019_vm2, %v1166_v49, 0 }
 0x1ef   : > { %10131 = vmatpush3.bf16.xpose.msra.mxu1 %v1073_v46  ;;  %10149 = vmatpush3.bf16.xpose.msra.mxu0 %v1220_v47  ;;  %v9616_v46 = vld [vmem:[%s12119_s3] ss:$0 sm:$0xff] }
 0x1f0   : > { %10132 = vmatprep.mubr.msk.bf16.mxu1 %vm11614_vm1, %v14885_v32  ;;  %10136 = vmatprep.subr.bf16.mxu1 %v14885_v32 }
 0x1f1   : > { %10160 = vmatprep.subr.bf16.mxu0 %v14885_v32  ;;  %v1313_v53 = vpop.permute.xlu0 %1312  ;;  %v1264_v57 = vpop.permute.xlu1 %1263 }
 0x1f2   : > { %v1318_v55 = vsel %vm1019_vm2, %v1313_v53, 0  ;;  %v1269_v5 = vsel %vm1019_vm2, %v1264_v57, 0 }
 0x1f5   : > { %v1411_v59 = vpop.permute.xlu0 %1410  ;;  %v1362_v62 = vpop.permute.xlu1 %1361 }
 0x1f6   : > { %10133 = vmatmul.mubr.msk.bf16.vlgmr.msra.gmra.mxu1 %vm1019_vm2, %v11935_v50  ;;  %10151 = vmatmul.mubr.msk.bf16.vlgmr.msra.gmra.mxu0 %vm1019_vm2, %v11943_v58  ;;  %v1416_v1 = vsel %vm1019_vm2, %v1411_v59, 0  ;;  %v1367_v13 = vsel %vm1019_vm2, %v1362_v62, 0  ;;  %v9617_v59 = vld [vmem:[%s12119_s3 + $0x1] ss:$0 sm:$0xff] }
 0x1f7   : > { %10137 = vmatpush3.bf16.xpose.msra.mxu1 %v1122_v54  ;;  %10161 = vmatpush3.bf16.xpose.msra.mxu0 %v1318_v55 }
 0x1f8   : > { %10138 = vmatprep.mubr.msk.bf16.mxu1 %vm11614_vm1, %v14885_v32  ;;  %10162 = vmatprep.mubr.msk.bf16.mxu0 %vm11614_vm1, %v14885_v32 }
 0x1f9   : > { %10142 = vmatprep.subr.bf16.mxu1 %v14885_v32  ;;  %10172 = vmatprep.subr.bf16.mxu0 %v14885_v32  ;;  %v1460_v3 = vpop.permute.xlu1 %1459  ;;  %v1509_v4 = vpop.permute.xlu0 %1508 }
 0x1fa   : > { %v1514_v10 = vsel %vm1019_vm2, %v1509_v4, 0  ;;  %v1465_v28 = vsel %vm1019_vm2, %v1460_v3, 0 }
 0x1fd   : > { %v1558_v11 = vpop.permute.xlu1 %1557  ;;  %v1607_v12 = vpop.permute.xlu0 %1606 }
 0x1fe   : > { %10139 = vmatmul.mubr.msk.bf16.vlgmr.msra.gmra.mxu1 %vm1019_vm2, %v11933_v48  ;;  %10163 = vmatmul.mubr.msk.bf16.vlgmr.msra.gmra.mxu0 %vm1019_vm2, %v11949_v0  ;;  %v1612_v18 = vsel %vm1019_vm2, %v1607_v12, 0  ;;  %v1563_v22 = vsel %vm1019_vm2, %v1558_v11, 0 }
 0x1ff   : > { %10143 = vmatpush3.bf16.xpose.msra.mxu1 %v1171_v63  ;;  %10173 = vmatpush3.bf16.xpose.msra.mxu0 %v1416_v1  ;;  %v9620_v63 = vld [vmem:[%s12119_s3 + $0x4] ss:$0 sm:$0xff] }
 0x200   : > { %10144 = vmatprep.mubr.msk.bf16.mxu1 %vm11614_vm1, %v14885_v32  ;;  %10174 = vmatprep.mubr.msk.bf16.mxu0 %vm11614_vm1, %v14885_v32 }
 0x201   : > { %10154 = vmatprep.subr.bf16.mxu1 %v14885_v32  ;;  %10184 = vmatprep.subr.bf16.mxu0 %v14885_v32  ;;  %v1656_v20 = vpop.permute.xlu1 %1655  ;;  %v1705_v21 = vpop.permute.xlu0 %1704 }
 0x202   : > { %v1710_v30 = vsel %vm1019_vm2, %v1705_v21, 0  ;;  %v1661_v38 = vsel %vm1019_vm2, %v1656_v20, 0  ;;  %v9618_v21 = vld [vmem:[%s12119_s3 + $0x2] ss:$0 sm:$0xff] }
 0x205   : > { %v1754_v23 = vpop.permute.xlu1 %1753  ;;  %v2043_v42 = vpop.permute.xlu0 %2042 }
 0x206   : > { %10145 = vmatmul.mubr.msk.bf16.vlgmr.msra.gmra.mxu1 %vm1019_vm2, %v11941_v56  ;;  %10175 = vmatmul.mubr.msk.bf16.vlgmr.msra.gmra.mxu0 %vm1019_vm2, %v11957_v6  ;;  %v1759_v39 = vsel %vm1019_vm2, %v1754_v23, 0  ;;  %v2048_v45 = vsel %vm1998_vm3, %v2043_v42, 0  ;;  %v9622_v23 = vld [vmem:[%s12119_s3 + $0x6] ss:$0 sm:$0xff] }
 0x207   : > { %10155 = vmatpush3.bf16.xpose.msra.mxu1 %v1269_v5  ;;  %10185 = vmatpush3.bf16.xpose.msra.mxu0 %v1514_v10 }
 0x208   : > { %10156 = vmatprep.mubr.msk.bf16.mxu1 %vm11614_vm1, %v14885_v32  ;;  %10186 = vmatprep.mubr.msk.bf16.mxu0 %vm11614_vm1, %v14885_v32 }
 0x209   : > { %10166 = vmatprep.subr.bf16.mxu1 %v14885_v32  ;;  %10196 = vmatprep.subr.bf16.mxu0 %v14885_v32  ;;  %v1994_v31 = vpop.permute.xlu1 %1993 }
 0x20a   : > { %v2000_v29 = vsel %vm1998_vm3, %v1994_v31, 0 }
 0x20e   : > { %10157 = vmatmul.mubr.msk.bf16.vlgmr.msra.gmra.mxu1 %vm1019_vm2, %v11951_v2  ;;  %10187 = vmatmul.mubr.msk.bf16.vlgmr.msra.gmra.mxu0 %vm1019_vm2, %v11967_v17 }
 0x20f   : > { %10167 = vmatpush3.bf16.xpose.msra.mxu1 %v1367_v13  ;;  %10197 = vmatpush3.bf16.xpose.msra.mxu0 %v1612_v18 }
 0x210   : > { %10168 = vmatprep.mubr.msk.bf16.mxu1 %vm11614_vm1, %v14885_v32  ;;  %10198 = vmatprep.mubr.msk.bf16.mxu0 %vm11614_vm1, %v14885_v32 }
 0x211   : > { %10178 = vmatprep.subr.bf16.mxu1 %v14885_v32  ;;  %10208 = vmatprep.subr.bf16.mxu0 %v14885_v32 }
 0x216   : > { %10169 = vmatmul.mubr.msk.bf16.vlgmr.msra.gmra.mxu1 %vm1019_vm2, %v11959_v9  ;;  %10199 = vmatmul.mubr.msk.bf16.vlgmr.msra.gmra.mxu0 %vm1019_vm2, %v11973_v24 }
 0x217   : > { %10179 = vmatpush3.bf16.xpose.msra.mxu1 %v1465_v28  ;;  %10209 = vmatpush3.bf16.xpose.msra.mxu0 %v1710_v30 }
 0x218   : > { %10180 = vmatprep.mubr.msk.bf16.mxu1 %vm11614_vm1, %v14885_v32  ;;  %10210 = vmatprep.mubr.msk.bf16.mxu0 %vm11614_vm1, %v14885_v32 }
 0x219   : > { %10190 = vmatprep.subr.bf16.mxu1 %v14885_v32  ;;  %10220 = vmatprep.subr.bf16.mxu0 %v14885_v32 }
 0x21e   : > { %10181 = vmatmul.mubr.msk.bf16.vlgmr.msra.gmra.mxu1 %vm1019_vm2, %v11965_v16  ;;  %10211 = vmatmul.mubr.msk.bf16.vlgmr.msra.gmra.mxu0 %vm1019_vm2, %v11983_v19 }
 0x21f   : > { %10191 = vmatpush3.bf16.xpose.msra.mxu1 %v1563_v22  ;;  %10221 = vmatpush3.bf16.msra.mxu0 %v2000_v29 }
 0x220   : > { %10192 = vmatprep.mubr.msk.bf16.mxu1 %vm11614_vm1, %v14885_v32  ;;  %10202 = vmatprep.subr.bf16.mxu1 %v14885_v32 }
 0x221   : > { %10222 = vmatprep.mubr.msk.bf16.mxu0 %vm11614_vm1, %v14885_v32  ;;  %10232 = vmatprep.subr.bf16.mxu0 %v14885_v32 }
 0x226   : > { %10193 = vmatmul.mubr.msk.bf16.vlgmr.msra.gmra.mxu1 %vm1019_vm2, %v11975_v27 }
 0x227   : > { %10203 = vmatpush3.bf16.xpose.msra.mxu1 %v1661_v38  ;;  %10204 = vmatprep.mubr.msk.bf16.mxu1 %vm11614_vm1, %v14885_v32 }
 0x228   : > { %10214 = vmatprep.subr.bf16.mxu1 %v14885_v32 }
 0x22e   : > { %10205 = vmatmul.mubr.msk.bf16.vlgmr.msra.gmra.mxu1 %vm1019_vm2, %v11981_v35 }
 0x22f   : > { %10215 = vmatpush3.bf16.xpose.msra.mxu1 %v1759_v39  ;;  %10216 = vmatprep.mubr.msk.bf16.mxu1 %vm11614_vm1, %v14885_v32 }
 0x230   : > { %10226 = vmatprep.subr.bf16.mxu1 %v14885_v32 }
 0x236   : > { %10217 = vmatmul.mubr.msk.bf16.vlgmr.msra.gmra.mxu1 %vm1019_vm2, %v11989_v33 }
 0x237   : > { %10227 = vmatpush3.bf16.msra.mxu1 %v2048_v45  ;;  %10228 = vmatprep.mubr.msk.bf16.mxu1 %vm11614_vm1, %v14885_v32 }
 0x238   : > { %10238 = vmatprep.subr.bf16.mxu1 %v14885_v32 }
 0x2ae   : > { %v1060_v47 = vpop.f32.mrf.mxu1 }
 0x2af   : > { %v12122_v49 = vadd.f32 %v9616_v46, %v1060_v47 }
 0x2b0   : > { %v10128_v53 = vpop.f32.mrf.mxu1 }
 0x2b1   : > { %v1801_v54 = vsel %vm1019_vm2, %v12122_v49, -inf }
 0x2b2   : > { %1802 = vmax.xlane.f32.xlu0 %v1801_v54  ;;  %v1063_v55 = vpop.f32.mrf.mxu1 }
 0x2b3   : > { %v9619_v55 = vld [vmem:[%s12119_s3 + $0x3] ss:$0 sm:$0xff] }
 0x2b4   : > { %v10129_v57 = vpop.f32.mrf.mxu1 }
 0x2b5   : > { %v9624_v57 = vld [vmem:[%s12119_s3 + $0x8] ss:$0 sm:$0xff] }
 0x2b6   : > { %v1109_v62 = vpop.f32.mrf.mxu1  ;;  %v1256_v1 = vpop.f32.mrf.mxu0 }
 0x2b7   : > { %v12128_v3 = vadd.f32 %v9617_v59, %v1109_v62  ;;  %v12130_v10 = vadd.f32 %v9620_v63, %v1256_v1 }
 0x2b8   : > { %v10134_v4 = vpop.f32.mrf.mxu1  ;;  %v10152_v5 = vpop.f32.mrf.mxu0 }
 0x2b9   : > { %v1804_v11 = vsel %vm1019_vm2, %v12128_v3, -inf  ;;  %v1813_v28 = vsel %vm1019_vm2, %v12130_v10, -inf }
 0x2ba   : > { %1805 = vmax.xlane.f32.xlu1 %v1804_v11  ;;  %v1112_v12 = vpop.f32.mrf.mxu1  ;;  %v1259_v13 = vpop.f32.mrf.mxu0 }
 0x2bc   : > { %v10135_v18 = vpop.f32.mrf.mxu1  ;;  %v10153_v20 = vpop.f32.mrf.mxu0 }
 0x2be   : > { %v1158_v30 = vpop.f32.mrf.mxu1  ;;  %1814 = vmax.xlane.f32.xlu1 %v1813_v28  ;;  %v1354_v31 = vpop.f32.mrf.mxu0  ;;  %v9626_v28 = vld [vmem:[%s12119_s3 + $0xa] ss:$0 sm:$0xff] }
 0x2bf   : > { %v12138_v22 = vadd.f32 %v9618_v21, %v1158_v30  ;;  %v12140_v29 = vadd.f32 %v9622_v23, %v1354_v31  ;;  %v9621_v23 = vld [vmem:[%s12119_s3 + $0x5] ss:$0 sm:$0xff] }
 0x2c0   : > { %v10140_v38 = vpop.f32.mrf.mxu1  ;;  %v10164_v39 = vpop.f32.mrf.mxu0 }
 0x2c1   : > { %v1807_v42 = vsel %vm1019_vm2, %v12138_v22, -inf  ;;  %v1819_v45 = vsel %vm1019_vm2, %v12140_v29, -inf }
 0x2c2   : > { %1808 = vmax.xlane.f32.xlu0 %v1807_v42  ;;  %v1161_v46 = vpop.f32.mrf.mxu1  ;;  %1820 = vmax.xlane.f32.xlu1 %v1819_v45  ;;  %v1357_v47 = vpop.f32.mrf.mxu0 }
 0x2c4   : > { %v10141_v53 = vpop.f32.mrf.mxu1  ;;  %v10165_v54 = vpop.f32.mrf.mxu0 }
 0x2c6   : > { %v1207_v59 = vpop.f32.mrf.mxu1  ;;  %v1452_v62 = vpop.f32.mrf.mxu0 }
 0x2c7   : > { %v12148_v63 = vadd.f32 %v9619_v55, %v1207_v59  ;;  %v12150_v1 = vadd.f32 %v9624_v57, %v1452_v62  ;;  %v9623_v59 = vld [vmem:[%s12119_s3 + $0x7] ss:$0 sm:$0xff]  ;;  %v9628_v62 = vld [vmem:[%s12119_s3 + $0xc] ss:$0 sm:$0xff] }
 0x2c8   : > { %v10146_v4 = vpop.f32.mrf.mxu1  ;;  %v10176_v5 = vpop.f32.mrf.mxu0 }
 0x2c9   : > { %v1810_v11 = vsel %vm1019_vm2, %v12148_v63, -inf  ;;  %v1825_v12 = vsel %vm1019_vm2, %v12150_v1, -inf }
 0x2ca   : > { %1811 = vmax.xlane.f32.xlu0 %v1810_v11  ;;  %v1210_v13 = vpop.f32.mrf.mxu1  ;;  %1826 = vmax.xlane.f32.xlu1 %v1825_v12  ;;  %v1455_v18 = vpop.f32.mrf.mxu0 }
 0x2cc   : > { %v10147_v20 = vpop.f32.mrf.mxu1  ;;  %v10177_v21 = vpop.f32.mrf.mxu0 }
 0x2ce   : > { %v1305_v30 = vpop.f32.mrf.mxu1  ;;  %v1550_v31 = vpop.f32.mrf.mxu0 }
 0x2cf   : > { %v12158_v38 = vadd.f32 %v9621_v23, %v1305_v30  ;;  %v12160_v39 = vadd.f32 %v9626_v28, %v1550_v31 }
 0x2d0   : > { %v10158_v42 = vpop.f32.mrf.mxu1  ;;  %v10188_v45 = vpop.f32.mrf.mxu0 }
 0x2d1   : > { %v1816_v46 = vsel %vm1019_vm2, %v12158_v38, -inf  ;;  %v1831_v47 = vsel %vm1019_vm2, %v12160_v39, -inf  ;;  %v9625_v42 = vld [vmem:[%s12119_s3 + $0x9] ss:$0 sm:$0xff] }
 0x2d2   : > { %1817 = vmax.xlane.f32.xlu0 %v1816_v46  ;;  %v1308_v53 = vpop.f32.mrf.mxu1  ;;  %1832 = vmax.xlane.f32.xlu1 %v1831_v47  ;;  %v1553_v54 = vpop.f32.mrf.mxu0 }
 0x2d4   : > { %v10159_v55 = vpop.f32.mrf.mxu1  ;;  %v10189_v57 = vpop.f32.mrf.mxu0 }
 0x2d6   : > { %v1403_v4 = vpop.f32.mrf.mxu1  ;;  %v1648_v5 = vpop.f32.mrf.mxu0 }
 0x2d7   : > { %v12168_v11 = vadd.f32 %v9623_v59, %v1403_v4  ;;  %v12170_v12 = vadd.f32 %v9628_v62, %v1648_v5  ;;  %v9627_v5 = vld [vmem:[%s12119_s3 + $0xb] ss:$0 sm:$0xff] }
 0x2d8   : > { %v10170_v13 = vpop.f32.mrf.mxu1  ;;  %v10200_v18 = vpop.f32.mrf.mxu0 }
 0x2d9   : > { %v1822_v20 = vsel %vm1019_vm2, %v12168_v11, -inf  ;;  %v1837_v21 = vsel %vm1019_vm2, %v12170_v12, -inf }
 0x2da   : > { %1823 = vmax.xlane.f32.xlu0 %v1822_v20  ;;  %v1406_v23 = vpop.f32.mrf.mxu1  ;;  %1838 = vmax.xlane.f32.xlu1 %v1837_v21  ;;  %v1651_v28 = vpop.f32.mrf.mxu0 }
 0x2dc   : > { %v10171_v30 = vpop.f32.mrf.mxu1  ;;  %v10201_v31 = vpop.f32.mrf.mxu0 }
 0x2dd   : > { %v9629_v30 = vld [vmem:[%s12119_s3 + $0xd] ss:$0 sm:$0xff] }
 0x2de   : > { %v1501_v45 = vpop.f32.mrf.mxu1  ;;  %v1746_v46 = vpop.f32.mrf.mxu0 }
 0x2df   : > { %v12177_v47 = vadd.f32 %v9625_v42, %v1501_v45 }
 0x2e0   : > { %v10182_v53 = vpop.f32.mrf.mxu1  ;;  %v10212_v54 = vpop.f32.mrf.mxu0 }
 0x2e1   : > { %v1828_v55 = vsel %vm1019_vm2, %v12177_v47, -inf }
 0x2e2   : > { %1829 = vmax.xlane.f32.xlu0 %v1828_v55  ;;  %v1504_v57 = vpop.f32.mrf.mxu1  ;;  %v1749_v59 = vpop.f32.mrf.mxu0 }
 0x2e3   : > { %v9631_v57 = vld [vmem:[%s12119_s3 + $0xf] ss:$0 sm:$0xff] }
 0x2e4   : > { %v10183_v62 = vpop.f32.mrf.mxu1  ;;  %v10213_v4 = vpop.f32.mrf.mxu0 }
 0x2e6   : > { %v1599_v13 = vpop.f32.mrf.mxu1 }
 0x2e7   : > { %v12182_v18 = vadd.f32 %v9627_v5, %v1599_v13 }
 0x2e8   : > { %v10194_v20 = vpop.f32.mrf.mxu1 }
 0x2e9   : > { %v1834_v21 = vsel %vm1019_vm2, %v12182_v18, -inf }
 0x2ea   : > { %1835 = vmax.xlane.f32.xlu0 %v1834_v21  ;;  %v1602_v23 = vpop.f32.mrf.mxu1  ;;  %v9630_v21 = vld [vmem:[%s12119_s3 + $0xe] ss:$0 sm:$0xff] }
 0x2eb   : > { %2522 = vrot.lane.b32.xlu1 %v11975_v27, %s14913_s29  ;;  %v12199_v23 = vadd.f32 %v9630_v21, %v1746_v46 }
 0x2ec   : > { %v10195_v28 = vpop.f32.mrf.mxu1 }
 0x2ed   : > { %v1843_v28 = vsel %vm1019_vm2, %v12199_v23, -inf }
 0x2ee   : > { %v1697_v31 = vpop.f32.mrf.mxu1 }
 0x2ef   : > { %v12189_v42 = vadd.f32 %v9629_v30, %v1697_v31  ;;  %v12205_v30 = vpop.permute.xlu0 %2138  ;;  %v12207_v31 = vpop.permute.xlu1 %2090 }
 0x2f0   : > { %v10206_v45 = vpop.f32.mrf.mxu1 }
 0x2f1   : > { %v1840_v53 = vsel %vm1019_vm2, %v12189_v42, -inf }
 0x2f2   : > { %1841 = vmax.xlane.f32.xlu0 %v1840_v53  ;;  %v1700_v54 = vpop.f32.mrf.mxu1 }
 0x2f3   : > { %v12209_v45 = vpop.permute.xlu0 %2330  ;;  %v12211_v53 = vpop.permute.xlu1 %2186 }
 0x2f4   : > { %v10207_v55 = vpop.f32.mrf.mxu1 }
 0x2f6   : > { %v1795_v59 = vpop.f32.mrf.mxu1 }
 0x2f7   : > { %v12194_v62 = vadd.f32 %v9631_v57, %v1795_v59  ;;  %v12213_v54 = vpop.permute.xlu0 %2426  ;;  %v12215_v55 = vpop.permute.xlu1 %2282 }
 0x2f8   : > { %v10218_v4 = vpop.f32.mrf.mxu1 }
 0x2f9   : > { %v1846_v5 = vsel %vm1019_vm2, %v12194_v62, -inf }
 0x2fa   : > { %1847 = vmax.xlane.f32.xlu0 %v1846_v5  ;;  %v1798_v13 = vpop.f32.mrf.mxu1 }
 0x2fb   : > { %v12217_v46 = vpop.permute.xlu0 %2234  ;;  %v12219_v57 = vpop.permute.xlu1 %2378 }
 0x2fc   : > { %v10219_v20 = vpop.f32.mrf.mxu1 }
 0x2ff   : > { %v12222_v13 = vpop.permute.xlu1 %2474 }
 0x30f   : > { %1844 = vmax.xlane.f32.xlu1 %v1843_v28 }
 0x310   : > { %2570 = vrot.lane.b32.xlu0 %v11973_v24, %s14913_s29 }
 0x33b   : > { %v1803_v59 = vpop.xlane.xlu0 %1802 }
 0x33c   : > { %v1849_v4 = vsub.f32 %v12122_v49, %v1803_v59 }
 0x33e   : > { %v1865_v5 = vmul.f32 1.442695, %v1849_v4 }
 0x340   : > { %11150 = vpow2.f32 %v1865_v5 }
 0x343   : > { %v1806_v20 = vpop.xlane.xlu1 %1805 }
 0x344   : > { %v1850_v21 = vsub.f32 %v12128_v3, %v1806_v20 }
 0x346   : > { %v1867_v28 = vmul.f32 1.442695, %v1850_v21 }
 0x347   : > { %v1815_v32 = vpop.xlane.xlu1 %1814 }
 0x348   : > { %11152 = vpow2.f32 %v1867_v28  ;;  %v1853_v36 = vsub.f32 %v12130_v10, %v1815_v32 }
 0x34a   : > { %v1873_v25 = vmul.f32 1.442695, %v1853_v36 }
 0x34b   : > { %v1821_v34 = vpop.xlane.xlu1 %1820  ;;  %v1809_v26 = vpop.xlane.xlu0 %1808 }
 0x34c   : > { %11154 = vpow2.f32 %v1873_v25  ;;  %v1855_v14 = vsub.f32 %v12140_v29, %v1821_v34  ;;  %v1851_v49 = vsub.f32 %v12138_v22, %v1809_v26 }
 0x34d   : > { %v12228_v59 = vpop.eup %11150 }
 0x34e   : > { %v1869_v4 = vmul.f32 1.442695, %v1851_v49  ;;  %v1897_v5 = vsel %vm1019_vm2, %v12228_v59, 0.0  ;;  %v1877_v3 = vmul.f32 1.442695, %v1855_v14 }
 0x34f   : > { %1898 = vadd.xlane.f32.xlu1 %v1897_v5 }
 0x350   : > { %11156 = vpow2.f32 %v1869_v4 }
 0x351   : > { %11158 = vpow2.f32 %v1877_v3 }
 0x353   : > { %v1827_v20 = vpop.xlane.xlu1 %1826  ;;  %v1812_v32 = vpop.xlane.xlu0 %1811 }
 0x354   : > { %v1857_v36 = vsub.f32 %v12150_v1, %v1827_v20  ;;  %v1852_v25 = vsub.f32 %v12148_v63, %v1812_v32 }
 0x355   : > { %v12234_v10 = vpop.eup %11152 }
 0x356   : > { %v1881_v34 = vmul.f32 1.442695, %v1857_v36  ;;  %v1871_v26 = vmul.f32 1.442695, %v1852_v25  ;;  %v1900_v22 = vsel %vm1019_vm2, %v12234_v10, 0.0 }
 0x357   : > { %1901 = vadd.xlane.f32.xlu0 %v1900_v22 }
 0x358   : > { %11160 = vpow2.f32 %v1881_v34 }
 0x359   : > { %v12238_v29 = vpop.eup %11154  ;;  %11162 = vpow2.f32 %v1871_v26 }
 0x35a   : > { %v1909_v14 = vsel %vm1019_vm2, %v12238_v29, 0.0 }
 0x35b   : > { %1910 = vadd.xlane.f32.xlu1 %v1909_v14  ;;  %v1818_v21 = vpop.xlane.xlu0 %1817 }
 0x35c   : > { %v1854_v1 = vsub.f32 %v12158_v38, %v1818_v21 }
 0x35d   : > { %v12243_v63 = vpop.eup %11156 }
 0x35e   : > { %v1875_v28 = vmul.f32 1.442695, %v1854_v1  ;;  %v1903_v49 = vsel %vm1019_vm2, %v12243_v63, 0.0  ;;  %v12247_v4 = vpop.eup %11158 }
 0x35f   : > { %1904 = vadd.xlane.f32.xlu1 %v1903_v49  ;;  %v1915_v5 = vsel %vm1019_vm2, %v12247_v4, 0.0 }
 0x360   : > { %11164 = vpow2.f32 %v1875_v28 }
 0x363   : > { %v1824_v3 = vpop.xlane.xlu0 %1823  ;;  %1916 = vadd.xlane.f32.xlu1 %v1915_v5 }
 0x364   : > { %v1856_v20 = vsub.f32 %v12168_v11, %v1824_v3 }
 0x365   : > { %v12252_v32 = vpop.eup %11160 }
 0x366   : > { %v12254_v38 = vpop.eup %11162  ;;  %v1879_v36 = vmul.f32 1.442695, %v1856_v20  ;;  %v1921_v25 = vsel %vm1019_vm2, %v12252_v32, 0.0 }
 0x367   : > { %v1906_v34 = vsel %vm1019_vm2, %v12254_v38, 0.0  ;;  %1922 = vadd.xlane.f32.xlu1 %v1921_v25 }
 0x368   : > { %1907 = vadd.xlane.f32.xlu0 %v1906_v34  ;;  %11166 = vpow2.f32 %v1879_v36  ;;  %v1833_v34 = vpop.xlane.xlu1 %1832 }
 0x36b   : > { %v1830_v26 = vpop.xlane.xlu0 %1829 }
 0x36c   : > { %v1858_v22 = vsub.f32 %v12177_v47, %v1830_v26  ;;  %v1859_v26 = vsub.f32 %v12160_v39, %v1833_v34 }
 0x36d   : > { %v12261_v14 = vpop.eup %11164 }
 0x36e   : > { %v1883_v11 = vmul.f32 1.442695, %v1858_v22  ;;  %v1912_v21 = vsel %vm1019_vm2, %v12261_v14, 0.0 }
 0x36f   : > { %1913 = vadd.xlane.f32.xlu0 %v1912_v21 }
 0x370   : > { %11168 = vpow2.f32 %v1883_v11  ;;  %v1839_v11 = vpop.xlane.xlu1 %1838 }
 0x373   : > { %v1836_v1 = vpop.xlane.xlu0 %1835 }
 0x374   : > { %v1860_v28 = vsub.f32 %v12182_v18, %v1836_v1  ;;  %v1885_v1 = vmul.f32 1.442695, %v1859_v26  ;;  %v12287_v39 = vpop.permute.xlu1 %2522 }
 0x375   : > { %v12266_v49 = vpop.eup %11166 }
 0x376   : > { %v1887_v5 = vmul.f32 1.442695, %v1860_v28  ;;  %v1918_v3 = vsel %vm1019_vm2, %v12266_v49, 0.0 }
 0x377   : > { %1919 = vadd.xlane.f32.xlu0 %v1918_v3 }
 0x378   : > { %11170 = vpow2.f32 %v1887_v5  ;;  %2618 = vrot.lane.b32.xlu1 %v11981_v35, %s14913_s29 }
 0x37b   : > { %v1842_v47 = vpop.xlane.xlu0 %1841 }
 0x37c   : > { %v1862_v20 = vsub.f32 %v12189_v42, %v1842_v47  ;;  %v1861_v42 = vsub.f32 %v12170_v12, %v1839_v11 }
 0x37d   : > { %v12273_v36 = vpop.eup %11168 }
 0x37e   : > { %v1891_v25 = vmul.f32 1.442695, %v1862_v20  ;;  %v1924_v18 = vsel %vm1019_vm2, %v12273_v36, 0.0  ;;  %v1889_v28 = vmul.f32 1.442695, %v1861_v42 }
 0x37f   : > { %1925 = vadd.xlane.f32.xlu0 %v1924_v18 }
 0x380   : > { %11172 = vpow2.f32 %v1891_v25 }
 0x381   : > { %11174 = vpow2.f32 %v1885_v1 }
 0x382   : > { %11176 = vpow2.f32 %v1889_v28 }
 0x383   : > { %v1848_v11 = vpop.xlane.xlu0 %1847 }
 0x385   : > { %v12278_v22 = vpop.eup %11170 }
 0x386   : > { %v1930_v21 = vsel %vm1019_vm2, %v12278_v22, 0.0 }
 0x387   : > { %1931 = vadd.xlane.f32.xlu0 %v1930_v21 }
 0x38d   : > { %v12283_v5 = vpop.eup %11172 }
 0x38e   : > { %v1936_v3 = vsel %vm1019_vm2, %v12283_v5, 0.0  ;;  %v12289_v20 = vpop.eup %11174 }
 0x38f   : > { %1937 = vadd.xlane.f32.xlu0 %v1936_v3  ;;  %v1927_v12 = vsel %vm1019_vm2, %v12289_v20, 0.0  ;;  %v12294_v34 = vpop.eup %11176 }
 0x390   : > { %v1933_v26 = vsel %vm1019_vm2, %v12294_v34, 0.0 }
 0x398   : > { %v1845_v47 = vpop.xlane.xlu1 %1844 }
 0x399   : > { %v1863_v25 = vsub.f32 %v12199_v23, %v1845_v47  ;;  %v1864_v23 = vsub.f32 %v12194_v62, %v1848_v11  ;;  %v12327_v47 = vpop.permute.xlu0 %2570 }
 0x39b   : > { %v1893_v18 = vmul.f32 1.442695, %v1863_v25  ;;  %v1895_v42 = vmul.f32 1.442695, %v1864_v23 }
 0x39c   : > { %1928 = vadd.xlane.f32.xlu1 %v1927_v12 }
 0x39d   : > { %11178 = vpow2.f32 %v1893_v18 }
 0x39e   : > { %11180 = vpow2.f32 %v1895_v42  ;;  %v14947_v42 = vmov 0.0  }
 0x3a0   : > { %1934 = vadd.xlane.f32.xlu1 %v1933_v26 }
 0x3a5   : > { %2666 = vrot.lane.b32.xlu0 %v11983_v19, %s14913_s29 }
 0x3aa   : > { %v12300_v21 = vpop.eup %11178 }
 0x3ab   : > { %v1939_v1 = vsel %vm1019_vm2, %v12300_v21, 0.0  ;;  %v12307_v28 = vpop.eup %11180 }
 0x3ac   : > { %1940 = vadd.xlane.f32.xlu1 %v1939_v1  ;;  %v1942_v3 = vsel %vm1019_vm2, %v12307_v28, 0.0  ;;  %v2096_v1 = vsel %vm1998_vm3, %v12207_v31, 0 }
 0x3bd   : > { %2714 = vrot.lane.b32.xlu1 %v11989_v33, %s14913_s29  ;;  %s11629_s29 = smov 32  }
 0x3c1   : > { %2814 = vrot.lane.b32.xlu1 %v11935_v50, %s11617_s4 }
 0x3c4   : > { %1943 = vadd.xlane.f32.xlu0 %v1942_v3 }
 0x3c5   : > { %2812 = vrot.lane.b32.xlu1 %v11935_v50, %s11618_s30 }
 0x3c9   : > { %2914 = vrot.lane.b32.xlu1 %v11941_v56, %s11617_s4 }
 0x3cd   : > { %2912 = vrot.lane.b32.xlu1 %v11941_v56, %s11618_s30 }
 0x3d1   : > { %3014 = vrot.lane.b32.xlu1 %v11951_v2, %s11617_s4 }
 0x3d5   : > { %3012 = vrot.lane.b32.xlu1 %v11951_v2, %s11618_s30 }
 0x3d8   : > { %v1899_v62 = vpop.xlane.xlu1 %1898 }
 0x3d9   : > { %11182 = vrcp.f32 %v1899_v62  ;;  %3114 = vrot.lane.b32.xlu1 %v11959_v9, %s11617_s4 }
 0x3da   : > { %2764 = vrot.lane.b32.xlu0 %v11929_v43, %s11617_s4 }
 0x3dd   : > { %3112 = vrot.lane.b32.xlu1 %v11959_v9, %s11618_s30 }
 0x3de   : > { %2762 = vrot.lane.b32.xlu0 %v11929_v43, %s11618_s30 }
 0x3e0   : > { %v1902_v25 = vpop.xlane.xlu0 %1901 }
 0x3e1   : > { %11184 = vrcp.f32 %v1902_v25  ;;  %3214 = vrot.lane.b32.xlu1 %v11965_v16, %s11617_s4  ;;  %v2144_v25 = vsel %vm1998_vm3, %v12205_v30, 0 }
 0x3e2   : > { %2864 = vrot.lane.b32.xlu0 %v11933_v48, %s11617_s4 }
 0x3e4   : > { %v1911_v18 = vpop.xlane.xlu1 %1910 }
 0x3e5   : > { %3212 = vrot.lane.b32.xlu1 %v11965_v16, %s11618_s30 }
 0x3e6   : > { %v11183_v12 = vpop.eup %11182  ;;  %2862 = vrot.lane.b32.xlu0 %v11933_v48, %s11618_s30 }
 0x3e7   : > { %v1961_v26 = vmul.f32 %v11183_v12, %v12228_v59 }
 0x3e8   : > { %v1905_v11 = vpop.xlane.xlu1 %1904 }
 0x3e9   : > { %3314 = vrot.lane.b32.xlu1 %v11975_v27, %s11617_s4  ;;  %v1977_v23 = vpack.c.bf16 %v1961_v26, %v1961_v26  ;;  %11186 = vrcp.f32 %v1905_v11 }
 0x3ea   : > { %2964 = vrot.lane.b32.xlu0 %v11943_v58, %s11617_s4  ;;  %11188 = vrcp.f32 %v1911_v18 }
 0x3eb   : > { %10223 = vmatmul.mubr.msk.bf16.vlgmr.msra.gmra.mxu0 %vm1019_vm2, %v1977_v23 }
 0x3ec   : > { %10233 = vmatpush3.bf16.msra.mxu0 %v2096_v1  ;;  %10234 = vmatprep.mubr.msk.bf16.mxu0 %vm11614_vm1, %v14947_v42  ;;  %v1917_v12 = vpop.xlane.xlu1 %1916  ;;  %v2192_v1 = vsel %vm1998_vm3, %v12211_v53, 0 }
 0x3ed   : > { %3312 = vrot.lane.b32.xlu1 %v11975_v27, %s11618_s30  ;;  %10244 = vmatprep.subr.bf16.mxu0 %v14947_v42 }
 0x3ee   : > { %v11185_v59 = vpop.eup %11184  ;;  %2962 = vrot.lane.b32.xlu0 %v11943_v58, %s11618_s30 }
 0x3ef   : > { %v1962_v3 = vmul.f32 %v11185_v59, %v12234_v10 }
 0x3f0   : > { %v1923_v23 = vpop.xlane.xlu1 %1922 }
 0x3f1   : > { %v1908_v62 = vpop.xlane.xlu0 %1907  ;;  %3414 = vrot.lane.b32.xlu1 %v11981_v35, %s11617_s4  ;;  %v1978_v31 = vpack.c.bf16 %v1962_v3, %v1962_v3 }
 0x3f2   : > { %3064 = vrot.lane.b32.xlu0 %v11949_v0, %s11617_s4  ;;  %11190 = vrcp.f32 %v1908_v62 }
 0x3f3   : > { %10229 = vmatmul.mubr.msk.bf16.vlgmr.msra.gmra.mxu1 %vm1019_vm2, %v1978_v31  ;;  %11192 = vrcp.f32 %v1917_v12  ;;  %v2240_v12 = vsel %vm1998_vm3, %v12217_v46, 0 }
 0x3f4   : > { %10239 = vmatpush3.bf16.msra.mxu1 %v2144_v25  ;;  %10240 = vmatprep.mubr.msk.bf16.mxu1 %vm11614_vm1, %v14947_v42 }
 0x3f5   : > { %3412 = vrot.lane.b32.xlu1 %v11981_v35, %s11618_s30  ;;  %10250 = vmatprep.subr.bf16.mxu1 %v14947_v42 }
 0x3f6   : > { %3062 = vrot.lane.b32.xlu0 %v11949_v0, %s11618_s30  ;;  %v11187_v10 = vpop.eup %11186 }
 0x3f7   : > { %v1963_v30 = vmul.f32 %v11187_v10, %v12243_v63  ;;  %v11189_v11 = vpop.eup %11188 }
 0x3f8   : > { %v1914_v18 = vpop.xlane.xlu0 %1913  ;;  %v1965_v63 = vmul.f32 %v11189_v11, %v12238_v29  ;;  %v2288_v29 = vsel %vm1998_vm3, %v12215_v55, 0 }
 0x3f9   : > { %3514 = vrot.lane.b32.xlu1 %v11989_v33, %s11617_s4  ;;  %11194 = vrcp.f32 %v1914_v18  ;;  %v1979_v26 = vpack.c.bf16 %v1963_v30, %v1963_v30 }
 0x3fa   : > { %3164 = vrot.lane.b32.xlu0 %v11957_v6, %s11617_s4  ;;  %11196 = vrcp.f32 %v1923_v23  ;;  %v1981_v62 = vpack.c.bf16 %v1965_v63, %v1965_v63  ;;  %v2480_v63 = vsel %vm1998_vm3, %v12222_v13, 0 }
 0x3fb   : > { %10235 = vmatmul.mubr.msk.bf16.vlgmr.msra.gmra.mxu0 %vm1019_vm2, %v1979_v26  ;;  %v2384_v26 = vsel %vm1998_vm3, %v12219_v57, 0 }
 0x3fc   : > { %10245 = vmatpush3.bf16.msra.mxu0 %v2192_v1  ;;  %10246 = vmatprep.mubr.msk.bf16.mxu0 %vm11614_vm1, %v14947_v42 }
 0x3fd   : > { %3512 = vrot.lane.b32.xlu1 %v11989_v33, %s11618_s30  ;;  %10256 = vmatprep.subr.bf16.mxu0 %v14947_v42 }
 0x3fe   : > { %3162 = vrot.lane.b32.xlu0 %v11957_v6, %s11618_s30 }
 0x3ff   : > { %v11191_v59 = vpop.eup %11190 }
 0x400   : > { %v1920_v3 = vpop.xlane.xlu0 %1919  ;;  %v1964_v53 = vmul.f32 %v11191_v59, %v12254_v38  ;;  %v11193_v31 = vpop.eup %11192  ;;  %v2432_v59 = vsel %vm1998_vm3, %v12213_v54, 0 }
 0x401   : > { %3754 = vrot.lane.b32.xlu1 %v11929_v43, %s11619_s21  ;;  %11198 = vrcp.f32 %v1920_v3  ;;  %v1967_v38 = vmul.f32 %v11193_v31, %v12247_v4 }
 0x402   : > { %3264 = vrot.lane.b32.xlu0 %v11967_v17, %s11617_s4  ;;  %v1980_v25 = vpack.c.bf16 %v1964_v53, %v1964_v53  ;;  %v2528_v53 = vsel %vm1998_vm3, %v12287_v39, 0 }
 0x403   : > { %10247 = vmatmul.mubr.msk.bf16.vlgmr.msra.gmra.mxu0 %vm1019_vm2, %v1981_v62  ;;  %v1983_v30 = vpack.c.bf16 %v1967_v38, %v1967_v38 }
 0x404   : > { %10241 = vmatmul.mubr.msk.bf16.vlgmr.msra.gmra.mxu1 %vm1019_vm2, %v1980_v25  ;;  %10257 = vmatpush3.bf16.msra.mxu0 %v2288_v29  ;;  %v2619_v25 = vpop.permute.xlu1 %2618 }
 0x405   : > { %10251 = vmatpush3.bf16.msra.mxu1 %v2240_v12  ;;  %3850 = vrot.lane.b32.xlu1 %v11933_v48, %s11619_s21  ;;  %v2624_v39 = vsel %vm1998_vm3, %v2619_v25, 0 }
 0x406   : > { %v11195_v10 = vpop.eup %11194  ;;  %3262 = vrot.lane.b32.xlu0 %v11967_v17, %s11618_s30  ;;  %10258 = vmatprep.mubr.msk.bf16.mxu0 %vm11614_vm1, %v14947_v42 }
 0x407   : > { %10268 = vmatprep.subr.bf16.mxu0 %v14947_v42  ;;  %10252 = vmatprep.mubr.msk.bf16.mxu1 %vm11614_vm1, %v14947_v42  ;;  %v1966_v46 = vmul.f32 %v11195_v10, %v12261_v14  ;;  %v11197_v18 = vpop.eup %11196  ;;  %v2336_v14 = vsel %vm1998_vm3, %v12209_v45, 0 }
 0x408   : > { %v1926_v55 = vpop.xlane.xlu0 %1925  ;;  %10262 = vmatprep.subr.bf16.mxu1 %v14947_v42  ;;  %v1969_v11 = vmul.f32 %v11197_v18, %v12252_v32  ;;  %v2576_v18 = vsel %vm1998_vm3, %v12327_v47, 0 }
 0x409   : > { %11200 = vrcp.f32 %v1926_v55  ;;  %3946 = vrot.lane.b32.xlu1 %v11943_v58, %s11619_s21  ;;  %v1982_v4 = vpack.c.bf16 %v1966_v46, %v1966_v46 }
 0x40a   : > { %3364 = vrot.lane.b32.xlu0 %v11973_v24, %s11617_s4  ;;  %v1985_v1 = vpack.c.bf16 %v1969_v11, %v1969_v11 }
 0x40b   : > { %10259 = vmatmul.mubr.msk.bf16.vlgmr.msra.gmra.mxu0 %vm1019_vm2, %v1983_v30 }
 0x40c   : > { %10253 = vmatmul.mubr.msk.bf16.vlgmr.msra.gmra.mxu1 %vm1019_vm2, %v1982_v4  ;;  %10269 = vmatpush3.bf16.msra.mxu0 %v2384_v26 }
 0x40d   : > { %10263 = vmatpush3.bf16.msra.mxu1 %v2336_v14  ;;  %4042 = vrot.lane.b32.xlu1 %v11949_v0, %s11619_s21 }
 0x40e   : > { %v11199_v23 = vpop.eup %11198  ;;  %3362 = vrot.lane.b32.xlu0 %v11973_v24, %s11618_s30  ;;  %10270 = vmatprep.mubr.msk.bf16.mxu0 %vm11614_vm1, %v14947_v42 }
 0x40f   : > { %10280 = vmatprep.subr.bf16.mxu0 %v14947_v42  ;;  %10264 = vmatprep.mubr.msk.bf16.mxu1 %vm11614_vm1, %v14947_v42  ;;  %v1968_v45 = vmul.f32 %v11199_v23, %v12266_v49 }
 0x410   : > { %v1932_v57 = vpop.xlane.xlu0 %1931  ;;  %10274 = vmatprep.subr.bf16.mxu1 %v14947_v42 }
 0x411   : > { %11202 = vrcp.f32 %v1932_v57  ;;  %4138 = vrot.lane.b32.xlu1 %v11957_v6, %s11619_s21  ;;  %v1984_v32 = vpack.c.bf16 %v1968_v45, %v1968_v45 }
 0x412   : > { %3464 = vrot.lane.b32.xlu0 %v11983_v19, %s11617_s4  ;;  %s11622_s4 = smov 48  }
 0x413   : > { %10271 = vmatmul.mubr.msk.bf16.vlgmr.msra.gmra.mxu0 %vm1019_vm2, %v1985_v1 }
 0x414   : > { %10265 = vmatmul.mubr.msk.bf16.vlgmr.msra.gmra.mxu1 %vm1019_vm2, %v1984_v32  ;;  %10281 = vmatpush3.bf16.msra.mxu0 %v2480_v63 }
 0x415   : > { %10275 = vmatpush3.bf16.msra.mxu1 %v2432_v59  ;;  %4234 = vrot.lane.b32.xlu1 %v11967_v17, %s11619_s21 }
 0x416   : > { %v11201_v49 = vpop.eup %11200  ;;  %3462 = vrot.lane.b32.xlu0 %v11983_v19, %s11618_s30  ;;  %10276 = vmatprep.mubr.msk.bf16.mxu1 %vm11614_vm1, %v14947_v42  ;;  %s11623_s30 = smov 72  }
 0x417   : > { %v1970_v13 = vmul.f32 %v11201_v49, %v12273_v36  ;;  %10286 = vmatprep.subr.bf16.mxu1 %v14947_v42  ;;  %10282 = vmatprep.mubr.msk.bf16.mxu0 %vm11614_vm1, %v14947_v42 }
 0x418   : > { %v1938_v3 = vpop.xlane.xlu0 %1937  ;;  %10292 = vmatprep.subr.bf16.mxu0 %v14947_v42 }
 0x419   : > { %11204 = vrcp.f32 %v1938_v3  ;;  %v1986_v54 = vpack.c.bf16 %v1970_v13, %v1970_v13  ;;  %4282 = vrot.lane.b32.xlu1 %v11975_v27, %s11619_s21 }
 0x41a   : > { %3802 = vrot.lane.b32.xlu0 %v11935_v50, %s11619_s21 }
 0x41c   : > { %10277 = vmatmul.mubr.msk.bf16.vlgmr.msra.gmra.mxu1 %vm1019_vm2, %v1986_v54  ;;  %v2667_v23 = vpop.permute.xlu0 %2666 }
 0x41d   : > { %10287 = vmatpush3.bf16.msra.mxu1 %v2528_v53  ;;  %10288 = vmatprep.mubr.msk.bf16.mxu1 %vm11614_vm1, %v14947_v42  ;;  %v2672_v47 = vsel %vm1998_vm3, %v2667_v23, 0 }
 0x41e   : > { %v11203_v36 = vpop.eup %11202  ;;  %3898 = vrot.lane.b32.xlu0 %v11941_v56, %s11619_s21  ;;  %10298 = vmatprep.subr.bf16.mxu1 %v14947_v42 }
 0x41f   : > { %v1972_v62 = vmul.f32 %v11203_v36, %v12278_v22 }
 0x421   : > { %v1988_v31 = vpack.c.bf16 %v1972_v62, %v1972_v62 }
 0x422   : > { %3994 = vrot.lane.b32.xlu0 %v11951_v2, %s11619_s21 }
 0x424   : > { %10289 = vmatmul.mubr.msk.bf16.vlgmr.msra.gmra.mxu1 %vm1019_vm2, %v1988_v31 }
 0x425   : > { %10299 = vmatpush3.bf16.msra.mxu1 %v2624_v39  ;;  %v1929_v12 = vpop.xlane.xlu1 %1928  ;;  %10300 = vmatprep.mubr.msk.bf16.mxu1 %vm11614_vm1, %v14947_v42 }
 0x426   : > { %v11205_v29 = vpop.eup %11204  ;;  %11206 = vrcp.f32 %v1929_v12  ;;  %4090 = vrot.lane.b32.xlu0 %v11959_v9, %s11619_s21  ;;  %10310 = vmatprep.subr.bf16.mxu1 %v14947_v42 }
 0x427   : > { %v1974_v22 = vmul.f32 %v11205_v29, %v12283_v5 }
 0x429   : > { %v1990_v38 = vpack.c.bf16 %v1974_v22, %v1974_v22  ;;  %v1935_v10 = vpop.xlane.xlu1 %1934 }
 0x42a   : > { %11208 = vrcp.f32 %v1935_v10  ;;  %4186 = vrot.lane.b32.xlu0 %v11965_v16, %s11619_s21 }
 0x42c   : > { %10301 = vmatmul.mubr.msk.bf16.vlgmr.msra.gmra.mxu1 %vm1019_vm2, %v1990_v38 }
 0x42d   : > { %10312 = vmatprep.mubr.msk.bf16.mxu1 %vm11614_vm1, %v14947_v42 }
 0x433   : > { %v11207_v55 = vpop.eup %11206 }
 0x434   : > { %v1971_v4 = vmul.f32 %v11207_v55, %v12289_v20 }
 0x435   : > { %v1941_v46 = vpop.xlane.xlu1 %1940 }
 0x436   : > { %11210 = vrcp.f32 %v1941_v46  ;;  %v1987_v30 = vpack.c.bf16 %v1971_v4, %v1971_v4 }
 0x437   : > { %v11209_v5 = vpop.eup %11208 }
 0x438   : > { %10283 = vmatmul.mubr.msk.bf16.vlgmr.msra.gmra.mxu0 %vm1019_vm2, %v1987_v30  ;;  %v1973_v20 = vmul.f32 %v11209_v5, %v12294_v34 }
 0x439   : > { %v2715_v26 = vpop.permute.xlu1 %2714  ;;  %10293 = vmatpush3.bf16.msra.mxu0 %v2576_v18  ;;  %10294 = vmatprep.mubr.msk.bf16.mxu0 %vm11614_vm1, %v14947_v42 }
 0x43a   : > { %v2720_v14 = vsel %vm1998_vm3, %v2715_v26, 0  ;;  %10304 = vmatprep.subr.bf16.mxu0 %v14947_v42  ;;  %v1989_v57 = vpack.c.bf16 %v1973_v20, %v1973_v20 }
 0x43b   : > { %10311 = vmatpush3.bf16.msra.mxu1 %v2720_v14 }
 0x43c   : > { %10322 = vmatprep.subr.bf16.mxu1 %v14947_v42 }
 0x43d   : > { %v2815_v11 = vpop.permute.xlu1 %2814 }
 0x43e   : > { %v2820_v10 = vsel %vm1019_vm2, %v2815_v11, 0 }
 0x440   : > { %10295 = vmatmul.mubr.msk.bf16.vlgmr.msra.gmra.mxu0 %vm1019_vm2, %v1989_v57 }
 0x441   : > { %v2813_v45 = vpop.permute.xlu1 %2812  ;;  %10305 = vmatpush3.bf16.msra.mxu0 %v2672_v47  ;;  %10306 = vmatprep.mubr.msk.bf16.mxu0 %vm11614_vm1, %v14947_v42 }
 0x442   : > { %10316 = vmatprep.subr.bf16.mxu0 %v14947_v42 }
 0x443   : > { %v11211_v32 = vpop.eup %11210 }
 0x444   : > { %v1975_v1 = vmul.f32 %v11211_v32, %v12300_v21 }
 0x445   : > { %v2915_v34 = vpop.permute.xlu1 %2914 }
 0x446   : > { %v1991_v63 = vpack.c.bf16 %v1975_v1, %v1975_v1  ;;  %v2920_v30 = vsel %vm1019_vm2, %v2915_v34, 0 }
 0x448   : > { %10307 = vmatmul.mubr.msk.bf16.vlgmr.msra.gmra.mxu0 %vm1019_vm2, %v1991_v63 }
 0x449   : > { %v2913_v59 = vpop.permute.xlu1 %2912  ;;  %10318 = vmatprep.mubr.msk.bf16.mxu0 %vm11614_vm1, %v14947_v42 }
 0x44d   : > { %v3015_v49 = vpop.permute.xlu1 %3014  ;;  %v1944_v13 = vpop.xlane.xlu0 %1943 }
 0x44e   : > { %11212 = vrcp.f32 %v1944_v13  ;;  %v3020_v20 = vsel %vm1019_vm2, %v3015_v49, 0 }
 0x451   : > { %v3013_v3 = vpop.permute.xlu1 %3012  ;;  %v2765_v54 = vpop.permute.xlu0 %2764 }
 0x452   : > { %v2770_v53 = vsel %vm1019_vm2, %v2765_v54, 0 }
 0x453   : > { %10317 = vmatpush3.bf16.xpose.msra.mxu0 %v2770_v53 }
 0x454   : > { %10328 = vmatprep.subr.bf16.mxu0 %v14947_v42 }
 0x455   : > { %v3115_v36 = vpop.permute.xlu1 %3114  ;;  %v2763_v21 = vpop.permute.xlu0 %2762 }
 0x456   : > { %v3120_v32 = vsel %vm1019_vm2, %v3115_v36, 0 }
 0x459   : > { %v12502_v62 = vpop.permute.xlu1 %3112  ;;  %v2865_v31 = vpop.permute.xlu0 %2864 }
 0x45a   : > { %v2870_v25 = vsel %vm1019_vm2, %v2865_v31, 0  ;;  %10319 = vmatmul.mubr.msk.bf16.vlgmr.msra.gmra.mxu0 %vm1019_vm2, %v2763_v21 }
 0x45b   : > { %v11213_v39 = vpop.eup %11212  ;;  %10329 = vmatpush3.bf16.xpose.msra.mxu0 %v2870_v25  ;;  %10330 = vmatprep.mubr.msk.bf16.mxu0 %vm11614_vm1, %v14947_v42 }
 0x45c   : > { %v1976_v29 = vmul.f32 %v11213_v39, %v12307_v28  ;;  %10340 = vmatprep.subr.bf16.mxu0 %v14947_v42 }
 0x45d   : > { %v2863_v12 = vpop.permute.xlu0 %2862  ;;  %v3215_v38 = vpop.permute.xlu1 %3214 }
 0x45e   : > { %v1992_v22 = vpack.c.bf16 %v1976_v29, %v1976_v29  ;;  %v3220_v49 = vsel %vm1019_vm2, %v3215_v38, 0 }
 0x460   : > { %10313 = vmatmul.mubr.msk.bf16.vlgmr.msra.gmra.mxu1 %vm1019_vm2, %v1992_v22 }
 0x461   : > { %10323 = vmatpush3.bf16.xpose.msra.mxu1 %v2820_v10  ;;  %v2965_v55 = vpop.permute.xlu0 %2964  ;;  %10324 = vmatprep.mubr.msk.bf16.mxu1 %vm11614_vm1, %v14947_v42  ;;  %v3213_v28 = vpop.permute.xlu1 %3212 }
 0x462   : > { %v2970_v46 = vsel %vm1019_vm2, %v2965_v55, 0  ;;  %10331 = vmatmul.mubr.msk.bf16.vlgmr.msra.gmra.mxu0 %vm1019_vm2, %v2863_v12  ;;  %10334 = vmatprep.subr.bf16.mxu1 %v14947_v42 }
 0x463   : > { %10341 = vmatpush3.bf16.xpose.msra.mxu0 %v2970_v46  ;;  %10342 = vmatprep.mubr.msk.bf16.mxu0 %vm11614_vm1, %v14947_v42 }
 0x464   : > { %10352 = vmatprep.subr.bf16.mxu0 %v14947_v42 }
 0x465   : > { %v2963_v4 = vpop.permute.xlu0 %2962  ;;  %v3315_v26 = vpop.permute.xlu1 %3314 }
 0x466   : > { %v3320_v36 = vsel %vm1019_vm2, %v3315_v26, 0 }
 0x468   : > { %10325 = vmatmul.mubr.msk.bf16.vlgmr.msra.gmra.mxu1 %vm1019_vm2, %v2813_v45 }
 0x469   : > { %10335 = vmatpush3.bf16.xpose.msra.mxu1 %v2920_v30  ;;  %v3065_v5 = vpop.permute.xlu0 %3064  ;;  %10336 = vmatprep.mubr.msk.bf16.mxu1 %vm11614_vm1, %v14947_v42  ;;  %v3313_v11 = vpop.permute.xlu1 %3312 }
 0x46a   : > { %v3070_v18 = vsel %vm1019_vm2, %v3065_v5, 0  ;;  %10343 = vmatmul.mubr.msk.bf16.vlgmr.msra.gmra.mxu0 %vm1019_vm2, %v2963_v4  ;;  %10346 = vmatprep.subr.bf16.mxu1 %v14947_v42 }
 0x46b   : > { %10353 = vmatpush3.bf16.xpose.msra.mxu0 %v3070_v18  ;;  %10354 = vmatprep.mubr.msk.bf16.mxu0 %vm11614_vm1, %v14947_v42 }
 0x46c   : > { %10364 = vmatprep.subr.bf16.mxu0 %v14947_v42 }
 0x46d   : > { %v3063_v14 = vpop.permute.xlu0 %3062  ;;  %v3415_v45 = vpop.permute.xlu1 %3414 }
 0x46e   : > { %v3420_v39 = vsel %vm1019_vm2, %v3415_v45, 0 }
 0x470   : > { %10337 = vmatmul.mubr.msk.bf16.vlgmr.msra.gmra.mxu1 %vm1019_vm2, %v2913_v59 }
 0x471   : > { %10347 = vmatpush3.bf16.xpose.msra.mxu1 %v3020_v20  ;;  %v3165_v23 = vpop.permute.xlu0 %3164  ;;  %10348 = vmatprep.mubr.msk.bf16.mxu1 %vm11614_vm1, %v14947_v42  ;;  %v3413_v63 = vpop.permute.xlu1 %3412 }
 0x472   : > { %v3170_v57 = vsel %vm1019_vm2, %v3165_v23, 0  ;;  %10355 = vmatmul.mubr.msk.bf16.vlgmr.msra.gmra.mxu0 %vm1019_vm2, %v3063_v14  ;;  %10358 = vmatprep.subr.bf16.mxu1 %v14947_v42 }
 0x473   : > { %10365 = vmatpush3.bf16.xpose.msra.mxu0 %v3170_v57  ;;  %10366 = vmatprep.mubr.msk.bf16.mxu0 %vm11614_vm1, %v14947_v42 }
 0x474   : > { %10376 = vmatprep.subr.bf16.mxu0 %v14947_v42 }
 0x475   : > { %v3163_v47 = vpop.permute.xlu0 %3162  ;;  %v3515_v54 = vpop.permute.xlu1 %3514 }
 0x476   : > { %v3520_v22 = vsel %vm1019_vm2, %v3515_v54, 0 }
 0x478   : > { %10349 = vmatmul.mubr.msk.bf16.vlgmr.msra.gmra.mxu1 %vm1019_vm2, %v3013_v3 }
 0x479   : > { %10359 = vmatpush3.bf16.xpose.msra.mxu1 %v3120_v32  ;;  %v3265_v1 = vpop.permute.xlu0 %3264  ;;  %10360 = vmatprep.mubr.msk.bf16.mxu1 %vm11614_vm1, %v14947_v42  ;;  %v3513_v21 = vpop.permute.xlu1 %3512 }
 0x47a   : > { %v3270_v34 = vsel %vm1019_vm2, %v3265_v1, 0  ;;  %10367 = vmatmul.mubr.msk.bf16.vlgmr.msra.gmra.mxu0 %vm1019_vm2, %v3163_v47  ;;  %10370 = vmatprep.subr.bf16.mxu1 %v14947_v42 }
 0x47b   : > { %10377 = vmatpush3.bf16.xpose.msra.mxu0 %v3270_v34  ;;  %10378 = vmatprep.mubr.msk.bf16.mxu0 %vm11614_vm1, %v14947_v42 }
 0x47c   : > { %10388 = vmatprep.subr.bf16.mxu0 %v14947_v42 }
 0x47d   : > { %v3263_v59 = vpop.permute.xlu0 %3262  ;;  %v3755_v25 = vpop.permute.xlu1 %3754 }
 0x47e   : > { %v3760_v12 = vsel %vm1998_vm3, %v3755_v25, 0 }
 0x480   : > { %10361 = vmatmul.mubr.msk.bf16.vlgmr.msra.gmra.mxu1 %vm1019_vm2, %v12502_v62 }
 0x481   : > { %10371 = vmatpush3.bf16.xpose.msra.mxu1 %v3220_v49  ;;  %v3365_v13 = vpop.permute.xlu0 %3364  ;;  %10372 = vmatprep.mubr.msk.bf16.mxu1 %vm11614_vm1, %v14947_v42 }
 0x482   : > { %v3370_v3 = vsel %vm1019_vm2, %v3365_v13, 0  ;;  %10379 = vmatmul.mubr.msk.bf16.vlgmr.msra.gmra.mxu0 %vm1019_vm2, %v3263_v59  ;;  %10382 = vmatprep.subr.bf16.mxu1 %v14947_v42 }
 0x483   : > { %10389 = vmatpush3.bf16.xpose.msra.mxu0 %v3370_v3  ;;  %10390 = vmatprep.mubr.msk.bf16.mxu0 %vm11614_vm1, %v14947_v42 }
 0x484   : > { %10400 = vmatprep.subr.bf16.mxu0 %v14947_v42 }
 0x485   : > { %v3363_v53 = vpop.permute.xlu0 %3362 }
 0x488   : > { %10373 = vmatmul.mubr.msk.bf16.vlgmr.msra.gmra.mxu1 %vm1019_vm2, %v3213_v28 }
 0x489   : > { %10383 = vmatpush3.bf16.xpose.msra.mxu1 %v3320_v36  ;;  %v3465_v62 = vpop.permute.xlu0 %3464  ;;  %10384 = vmatprep.mubr.msk.bf16.mxu1 %vm11614_vm1, %v14947_v42 }
 0x48a   : > { %v3470_v31 = vsel %vm1019_vm2, %v3465_v62, 0  ;;  %10391 = vmatmul.mubr.msk.bf16.vlgmr.msra.gmra.mxu0 %vm1019_vm2, %v3363_v53  ;;  %10394 = vmatprep.subr.bf16.mxu1 %v14947_v42 }
 0x48b   : > { %10401 = vmatpush3.bf16.xpose.msra.mxu0 %v3470_v31  ;;  %10402 = vmatprep.mubr.msk.bf16.mxu0 %vm11614_vm1, %v14947_v42 }
 0x48c   : > { %10412 = vmatprep.subr.bf16.mxu0 %v14947_v42 }
 0x48d   : > { %v3463_v29 = vpop.permute.xlu0 %3462 }
 0x490   : > { %10385 = vmatmul.mubr.msk.bf16.vlgmr.msra.gmra.mxu1 %vm1019_vm2, %v3313_v11 }
 0x491   : > { %10395 = vmatpush3.bf16.xpose.msra.mxu1 %v3420_v39  ;;  %10396 = vmatprep.mubr.msk.bf16.mxu1 %vm11614_vm1, %v14947_v42  ;;  %v3803_v38 = vpop.permute.xlu0 %3802 }
 0x492   : > { %10403 = vmatmul.mubr.msk.bf16.vlgmr.msra.gmra.mxu0 %vm1019_vm2, %v3463_v29  ;;  %10406 = vmatprep.subr.bf16.mxu1 %v14947_v42  ;;  %v3808_v10 = vsel %vm1998_vm3, %v3803_v38, 0 }
 0x493   : > { %10413 = vmatpush3.bf16.msra.mxu0 %v3760_v12  ;;  %10414 = vmatprep.mubr.msk.bf16.mxu0 %vm11614_vm1, %v14947_v42 }
 0x494   : > { %10424 = vmatprep.subr.bf16.mxu0 %v14947_v42 }
 0x498   : > { %10397 = vmatmul.mubr.msk.bf16.vlgmr.msra.gmra.mxu1 %vm1019_vm2, %v3413_v63 }
 0x499   : > { %10407 = vmatpush3.bf16.xpose.msra.mxu1 %v3520_v22  ;;  %10408 = vmatprep.mubr.msk.bf16.mxu1 %vm11614_vm1, %v14947_v42 }
 0x49a   : > { %10418 = vmatprep.subr.bf16.mxu1 %v14947_v42 }
 0x4a0   : > { %10409 = vmatmul.mubr.msk.bf16.vlgmr.msra.gmra.mxu1 %vm1019_vm2, %v3513_v21 }
 0x4a1   : > { %10419 = vmatpush3.bf16.msra.mxu1 %v3808_v10  ;;  %10420 = vmatprep.mubr.msk.bf16.mxu1 %vm11614_vm1, %v14947_v42 }
 0x4a2   : > { %10430 = vmatprep.subr.bf16.mxu1 %v14947_v42 }
 0x4ab   : > { %v12591_v55 = vpop.f32.mrf.mxu0 }
 0x4ac   : > { %14948 = vst [vmem:[#allocation21_spill] sm:$0xff] %v12591_v55 }
 0x4ad   : > { %v10224_v46 = vpop.f32.mrf.mxu0 }
 0x4af   : > { %v2039_v28 = vpop.f32.mrf.mxu0 }
 0x4b1   : > { %v10225_v4 = vpop.f32.mrf.mxu0 }
 0x4b3   : > { %v12593_v30 = vpop.f32.mrf.mxu1 }
 0x4b4   : > { %14949 = vst [vmem:[#allocation22_spill] sm:$0xff] %v12593_v30 }
 0x4b5   : > { %v10230_v5 = vpop.f32.mrf.mxu1 }
 0x4b7   : > { %v2087_v18 = vpop.f32.mrf.mxu1 }
 0x4b9   : > { %v10231_v26 = vpop.f32.mrf.mxu1 }
 0x4bb   : > { %v12595_v14 = vpop.f32.mrf.mxu0 }
 0x4bc   : > { %14950 = vst [vmem:[#allocation23_spill] sm:$0xff] %v12595_v14 }
 0x4bd   : > { %v10236_v20 = vpop.f32.mrf.mxu0 }
 0x4bf   : > { %v2135_v11 = vpop.f32.mrf.mxu0 }
 0x4c1   : > { %v10237_v23 = vpop.f32.mrf.mxu0 }
 0x4c3   : > { %v12597_v57 = vpop.f32.mrf.mxu0 }
 0x4c4   : > { %14951 = vst [vmem:[#allocation24_spill] sm:$0xff] %v12597_v57  ;;  %v12599_v47 = vpop.f32.mrf.mxu1 }
 0x4c5   : > { %14952 = vst [vmem:[#allocation25_spill] sm:$0xff] %v12599_v47  ;;  %v10248_v45 = vpop.f32.mrf.mxu0 }
 0x4c6   : > { %v10242_v32 = vpop.f32.mrf.mxu1 }
 0x4c7   : > { %v2231_v1 = vpop.f32.mrf.mxu0 }
 0x4c8   : > { %v2183_v34 = vpop.f32.mrf.mxu1 }
 0x4c9   : > { %v10249_v63 = vpop.f32.mrf.mxu0 }
 0x4ca   : > { %v10243_v59 = vpop.f32.mrf.mxu1 }
 0x4cb   : > { %v12601_v49 = vpop.f32.mrf.mxu0 }
 0x4cc   : > { %14953 = vst [vmem:[#allocation26_spill] sm:$0xff] %v12601_v49  ;;  %v12603_v13 = vpop.f32.mrf.mxu1 }
 0x4cd   : > { %14954 = vst [vmem:[#allocation27_spill] sm:$0xff] %v12603_v13  ;;  %v10260_v3 = vpop.f32.mrf.mxu0 }
 0x4ce   : > { %v10254_v54 = vpop.f32.mrf.mxu1 }
 0x4cf   : > { %v2327_v53 = vpop.f32.mrf.mxu0 }
 0x4d0   : > { %v2279_v36 = vpop.f32.mrf.mxu1 }
 0x4d1   : > { %v10261_v21 = vpop.f32.mrf.mxu0 }
 0x4d2   : > { %v10255_v62 = vpop.f32.mrf.mxu1 }
 0x4d3   : > { %v12605_v31 = vpop.f32.mrf.mxu0 }
 0x4d4   : > { %14955 = vst [vmem:[#allocation28_spill] sm:$0xff] %v12605_v31  ;;  %v12607_v25 = vpop.f32.mrf.mxu1 }
 0x4d5   : > { %14956 = vst [vmem:[#allocation29_spill] sm:$0xff] %v12607_v25  ;;  %v10272_v39 = vpop.f32.mrf.mxu0  ;;  %v11531_v25 = vld [vmem:[%s12119_s3 + $0xe] ss:$0 sm:$0xff] }
 0x4d6   : > { %v10266_v29 = vpop.f32.mrf.mxu1 }
 0x4d7   : > { %v2423_v12 = vpop.f32.mrf.mxu0 }
 0x4d8   : > { %v2375_v22 = vpop.f32.mrf.mxu1 }
 0x4d9   : > { %v10273_v38 = vpop.f32.mrf.mxu0 }
 0x4da   : > { %v10267_v10 = vpop.f32.mrf.mxu1  ;;  %v11502_v38 = vld [vmem:[%s12119_s3] ss:$0 sm:$0xff] }
 0x4dc   : > { %v12609_v46 = vpop.f32.mrf.mxu1 }
 0x4dd   : > { %14957 = vst [vmem:[#allocation30_spill] sm:$0xff] %v12609_v46  ;;  %v11529_v46 = vld [vmem:[%s12119_s3 + $0xc] ss:$0 sm:$0xff] }
 0x4de   : > { %v10278_v28 = vpop.f32.mrf.mxu1 }
 0x4e0   : > { %v2471_v4 = vpop.f32.mrf.mxu1 }
 0x4e2   : > { %v10279_v5 = vpop.f32.mrf.mxu1 }
 0x4e4   : > { %v12611_v18 = vpop.f32.mrf.mxu1 }
 0x4e5   : > { %14958 = vst [vmem:[#allocation31_spill] sm:$0xff] %v12611_v18 }
 0x4e6   : > { %v10290_v26 = vpop.f32.mrf.mxu1 }
 0x4e8   : > { %v2567_v20 = vpop.f32.mrf.mxu1 }
 0x4ea   : > { %v10291_v11 = vpop.f32.mrf.mxu1 }
 0x4ec   : > { %v12613_v23 = vpop.f32.mrf.mxu1 }
 0x4ed   : > { %14959 = vst [vmem:[#allocation32_spill] sm:$0xff] %v12613_v23 }
 0x4ee   : > { %v10302_v45 = vpop.f32.mrf.mxu1 }
 0x4f0   : > { %v2663_v32 = vpop.f32.mrf.mxu1 }
 0x4f1   : > { %v11503_v32 = vld [vmem:[%s12119_s3 + $0x2] ss:$0 sm:$0xff] }
 0x4f2   : > { %v10303_v1 = vpop.f32.mrf.mxu1 }
 0x4f8   : > { %v12615_v34 = vpop.f32.mrf.mxu0 }
 0x4f9   : > { %14960 = vst [vmem:[#allocation33_spill] sm:$0xff] %v12615_v34 }
 0x4fa   : > { %v10284_v63 = vpop.f32.mrf.mxu0 }
 0x4fc   : > { %v2519_v59 = vpop.f32.mrf.mxu0 }
 0x4fe   : > { %v10285_v3 = vpop.f32.mrf.mxu0 }
 0x500   : > { %v12617_v54 = vpop.f32.mrf.mxu0 }
 0x501   : > { %14961 = vst [vmem:[#allocation34_spill] sm:$0xff] %v12617_v54 }
 0x502   : > { %v10296_v53 = vpop.f32.mrf.mxu0 }
 0x504   : > { %v2615_v36 = vpop.f32.mrf.mxu0 }
 0x506   : > { %v10297_v21 = vpop.f32.mrf.mxu0 }
 0x508   : > { %v12619_v62 = vpop.f32.mrf.mxu0 }
 0x509   : > { %14962 = vst [vmem:[#allocation35_spill] sm:$0xff] %v12619_v62 }
 0x50a   : > { %v10308_v39 = vpop.f32.mrf.mxu0 }
 0x50c   : > { %v2711_v29 = vpop.f32.mrf.mxu0 }
 0x50d   : > { %v11504_v29 = vld [vmem:[%s12119_s3 + $0x1] ss:$0 sm:$0xff] }
 0x50e   : > { %v10309_v12 = vpop.f32.mrf.mxu0 }
 0x51a   : > { %v2806_v22 = vpop.f32.mrf.mxu0 }
 0x51b   : > { %v12622_v10 = vadd.f32 %v11502_v38, %v2806_v22 }
 0x51c   : > { %v10320_v28 = vpop.f32.mrf.mxu0 }
 0x51d   : > { %v3562_v4 = vsel %vm1019_vm2, %v12622_v10, -inf  ;;  %v11505_v28 = vld [vmem:[%s12119_s3 + $0x4] ss:$0 sm:$0xff] }
 0x51e   : > { %3563 = vmax.xlane.f32.xlu0 %v3562_v4  ;;  %v2809_v5 = vpop.f32.mrf.mxu0 }
 0x520   : > { %v12626_v26 = vpop.f32.mrf.mxu1  ;;  %v10321_v20 = vpop.f32.mrf.mxu0 }
 0x521   : > { %14963 = vst [vmem:[#allocation36_spill] sm:$0xff] %v12626_v26 }
 0x522   : > { %v10314_v11 = vpop.f32.mrf.mxu1  ;;  %v2906_v45 = vpop.f32.mrf.mxu0 }
 0x523   : > { %v12629_v1 = vadd.f32 %v11503_v32, %v2906_v45 }
 0x524   : > { %v2759_v63 = vpop.f32.mrf.mxu1  ;;  %v10332_v59 = vpop.f32.mrf.mxu0 }
 0x525   : > { %v3568_v3 = vsel %vm1019_vm2, %v12629_v1, -inf }
 0x526   : > { %v10315_v53 = vpop.f32.mrf.mxu1  ;;  %3569 = vmax.xlane.f32.xlu0 %v3568_v3  ;;  %v2909_v36 = vpop.f32.mrf.mxu0 }
 0x527   : > { %v11506_v53 = vld [vmem:[%s12119_s3 + $0x3] ss:$0 sm:$0xff] }
 0x528   : > { %v2856_v21 = vpop.f32.mrf.mxu1  ;;  %v10333_v39 = vpop.f32.mrf.mxu0 }
 0x529   : > { %v12634_v12 = vadd.f32 %v11504_v29, %v2856_v21  ;;  %v11507_v29 = vld [vmem:[%s12119_s3 + $0x6] ss:$0 sm:$0xff] }
 0x52a   : > { %v10326_v22 = vpop.f32.mrf.mxu1  ;;  %v3006_v38 = vpop.f32.mrf.mxu0 }
 0x52b   : > { %v12637_v4 = vadd.f32 %v11505_v28, %v3006_v38  ;;  %v3565_v5 = vsel %vm1019_vm2, %v12634_v12, -inf }
 0x52c   : > { %3566 = vmax.xlane.f32.xlu1 %v3565_v5  ;;  %v2859_v20 = vpop.f32.mrf.mxu1  ;;  %v10344_v11 = vpop.f32.mrf.mxu0 }
 0x52d   : > { %v3574_v63 = vsel %vm1019_vm2, %v12637_v4, -inf }
 0x52e   : > { %v10327_v45 = vpop.f32.mrf.mxu1  ;;  %v3009_v32 = vpop.f32.mrf.mxu0 }
 0x530   : > { %v2956_v59 = vpop.f32.mrf.mxu1  ;;  %3575 = vmax.xlane.f32.xlu1 %v3574_v63  ;;  %v10345_v3 = vpop.f32.mrf.mxu0 }
 0x531   : > { %v12644_v36 = vadd.f32 %v11506_v53, %v2956_v59  ;;  %v11508_v59 = vld [vmem:[%s12119_s3 + $0x5] ss:$0 sm:$0xff] }
 0x532   : > { %v10338_v21 = vpop.f32.mrf.mxu1  ;;  %v3106_v39 = vpop.f32.mrf.mxu0 }
 0x533   : > { %v12647_v22 = vadd.f32 %v11507_v29, %v3106_v39  ;;  %v3571_v38 = vsel %vm1019_vm2, %v12644_v36, -inf  ;;  %v11509_v39 = vld [vmem:[%s12119_s3 + $0x8] ss:$0 sm:$0xff] }
 0x534   : > { %v2959_v28 = vpop.f32.mrf.mxu1  ;;  %3572 = vmax.xlane.f32.xlu0 %v3571_v38  ;;  %v10356_v5 = vpop.f32.mrf.mxu0 }
 0x535   : > { %v3580_v20 = vsel %vm1019_vm2, %v12647_v22, -inf }
 0x536   : > { %v10339_v11 = vpop.f32.mrf.mxu1  ;;  %3581 = vmax.xlane.f32.xlu1 %v3580_v20  ;;  %v3109_v45 = vpop.f32.mrf.mxu0 }
 0x538   : > { %v3056_v32 = vpop.f32.mrf.mxu1  ;;  %v10357_v63 = vpop.f32.mrf.mxu0 }
 0x539   : > { %v12654_v3 = vadd.f32 %v11508_v59, %v3056_v32  ;;  %v11510_v59 = vld [vmem:[%s12119_s3 + $0x7] ss:$0 sm:$0xff] }
 0x53a   : > { %v10350_v53 = vpop.f32.mrf.mxu1  ;;  %v3206_v21 = vpop.f32.mrf.mxu0 }
 0x53b   : > { %v12657_v29 = vadd.f32 %v11509_v39, %v3206_v21  ;;  %v3577_v38 = vsel %vm1019_vm2, %v12654_v3, -inf }
 0x53c   : > { %v3059_v28 = vpop.f32.mrf.mxu1  ;;  %3578 = vmax.xlane.f32.xlu0 %v3577_v38  ;;  %v10368_v5 = vpop.f32.mrf.mxu0 }
 0x53d   : > { %v3586_v20 = vsel %vm1019_vm2, %v12657_v29, -inf }
 0x53e   : > { %v10351_v11 = vpop.f32.mrf.mxu1  ;;  %3587 = vmax.xlane.f32.xlu1 %v3586_v20  ;;  %v3209_v45 = vpop.f32.mrf.mxu0 }
 0x540   : > { %v3156_v32 = vpop.f32.mrf.mxu1  ;;  %v10369_v63 = vpop.f32.mrf.mxu0 }
 0x541   : > { %v12664_v53 = vadd.f32 %v11510_v59, %v3156_v32  ;;  %v11512_v59 = vld [vmem:[%s12119_s3 + $0x9] ss:$0 sm:$0xff] }
 0x542   : > { %v10362_v21 = vpop.f32.mrf.mxu1  ;;  %v3306_v39 = vpop.f32.mrf.mxu0 }
 0x543   : > { %v12667_v15 = vadd.f32 %v11511_v8, %v3306_v39  ;;  %v3583_v38 = vsel %vm1019_vm2, %v12664_v53, -inf }
 0x544   : > { %v3159_v28 = vpop.f32.mrf.mxu1  ;;  %3584 = vmax.xlane.f32.xlu0 %v3583_v38  ;;  %v10380_v5 = vpop.f32.mrf.mxu0 }
 0x545   : > { %v3592_v20 = vsel %vm1019_vm2, %v12667_v15, -inf }
 0x546   : > { %v10363_v11 = vpop.f32.mrf.mxu1  ;;  %3593 = vmax.xlane.f32.xlu1 %v3592_v20  ;;  %v3309_v45 = vpop.f32.mrf.mxu0 }
 0x548   : > { %v3256_v32 = vpop.f32.mrf.mxu1  ;;  %v10381_v63 = vpop.f32.mrf.mxu0 }
 0x549   : > { %v12674_v21 = vadd.f32 %v11512_v59, %v3256_v32  ;;  %v11514_v59 = vld [vmem:[%s12119_s3 + $0xb] ss:$0 sm:$0xff] }
 0x54a   : > { %v10374_v8 = vpop.f32.mrf.mxu1  ;;  %v3406_v39 = vpop.f32.mrf.mxu0 }
 0x54b   : > { %v12677_v60 = vadd.f32 %v11513_v7, %v3406_v39  ;;  %v3589_v38 = vsel %vm1019_vm2, %v12674_v21, -inf }
 0x54c   : > { %v3259_v28 = vpop.f32.mrf.mxu1  ;;  %3590 = vmax.xlane.f32.xlu0 %v3589_v38  ;;  %v10392_v5 = vpop.f32.mrf.mxu0 }
 0x54d   : > { %v3598_v20 = vsel %vm1019_vm2, %v12677_v60, -inf }
 0x54e   : > { %v10375_v11 = vpop.f32.mrf.mxu1  ;;  %3599 = vmax.xlane.f32.xlu1 %v3598_v20  ;;  %v3409_v45 = vpop.f32.mrf.mxu0 }
 0x550   : > { %v3356_v32 = vpop.f32.mrf.mxu1  ;;  %v10393_v63 = vpop.f32.mrf.mxu0 }
 0x551   : > { %v12684_v8 = vadd.f32 %v11514_v59, %v3356_v32  ;;  %v11516_v59 = vld [vmem:[%s12119_s3 + $0xd] ss:$0 sm:$0xff] }
 0x552   : > { %v10386_v7 = vpop.f32.mrf.mxu1  ;;  %v3506_v39 = vpop.f32.mrf.mxu0 }
 0x553   : > { %v12687_v61 = vadd.f32 %v11515_v51, %v3506_v39  ;;  %v3595_v38 = vsel %vm1019_vm2, %v12684_v8, -inf }
 0x554   : > { %v3359_v28 = vpop.f32.mrf.mxu1  ;;  %3596 = vmax.xlane.f32.xlu0 %v3595_v38  ;;  %v10404_v5 = vpop.f32.mrf.mxu0 }
 0x555   : > { %v3604_v20 = vsel %vm1019_vm2, %v12687_v61, -inf  ;;  %v11517_v5 = vld [vmem:[%s12119_s3 + $0xf] ss:$0 sm:$0xff] }
 0x556   : > { %v10387_v11 = vpop.f32.mrf.mxu1  ;;  %3605 = vmax.xlane.f32.xlu1 %v3604_v20  ;;  %v3509_v45 = vpop.f32.mrf.mxu0 }
 0x558   : > { %v3456_v32 = vpop.f32.mrf.mxu1  ;;  %v10405_v63 = vpop.f32.mrf.mxu0 }
 0x559   : > { %v12694_v7 = vadd.f32 %v11516_v59, %v3456_v32  ;;  %v12709_v32 = vpop.permute.xlu1 %3850 }
 0x55a   : > { %v10398_v51 = vpop.f32.mrf.mxu1 }
 0x55b   : > { %v3601_v39 = vsel %vm1019_vm2, %v12694_v7, -inf }
 0x55c   : > { %v3459_v52 = vpop.f32.mrf.mxu1  ;;  %3602 = vmax.xlane.f32.xlu0 %v3601_v39 }
 0x55d   : > { %v12707_v52 = vpop.permute.xlu0 %3898  ;;  %v12713_v59 = vpop.permute.xlu1 %3946 }
 0x55e   : > { %v10399_v38 = vpop.f32.mrf.mxu1 }
 0x560   : > { %v3556_v28 = vpop.f32.mrf.mxu1 }
 0x561   : > { %v12699_v41 = vadd.f32 %v11517_v5, %v3556_v28  ;;  %v12711_v63 = vpop.permute.xlu0 %3994  ;;  %v12717_v51 = vpop.permute.xlu1 %4042 }
 0x562   : > { %v10410_v44 = vpop.f32.mrf.mxu1 }
 0x563   : > { %v3607_v20 = vsel %vm1019_vm2, %v12699_v41, -inf }
 0x564   : > { %v3559_v11 = vpop.f32.mrf.mxu1  ;;  %3608 = vmax.xlane.f32.xlu0 %v3607_v20 }
 0x565   : > { %v12715_v44 = vpop.permute.xlu0 %4090  ;;  %v12721_v38 = vpop.permute.xlu1 %4138 }
 0x566   : > { %v10411_v45 = vpop.f32.mrf.mxu1 }
 0x567   : > { %4378 = vrot.lane.b32.xlu1 %v11981_v35, %s11619_s21 }
 0x569   : > { %v12719_v39 = vpop.permute.xlu0 %4186  ;;  %v12724_v11 = vpop.permute.xlu1 %4234 }
 0x56d   : > { %v12727_v40 = vpop.permute.xlu1 %4282 }
 0x57a   : > { %4330 = vrot.lane.b32.xlu0 %v11973_v24, %s11619_s21 }
 0x5a7   : > { %v3564_v28 = vpop.xlane.xlu0 %3563 }
 0x5a8   : > { %v3610_v5 = vsub.f32 %v12622_v10, %v3564_v28 }
 0x5aa   : > { %v3626_v20 = vmul.f32 1.442695, %v3610_v5 }
 0x5ac   : > { %11214 = vpow2.f32 %v3626_v20 }
 0x5af   : > { %v3570_v45 = vpop.xlane.xlu0 %3569 }
 0x5b0   : > { %v3612_v37 = vsub.f32 %v12629_v1, %v3570_v45 }
 0x5b2   : > { %v3630_v62 = vmul.f32 1.442695, %v3612_v37 }
 0x5b4   : > { %11216 = vpow2.f32 %v3630_v62 }
 0x5b5   : > { %v3567_v26 = vpop.xlane.xlu1 %3566 }
 0x5b6   : > { %v3611_v54 = vsub.f32 %v12634_v12, %v3567_v26 }
 0x5b8   : > { %v3628_v23 = vmul.f32 1.442695, %v3611_v54 }
 0x5b9   : > { %v12730_v34 = vpop.eup %11214  ;;  %v3576_v18 = vpop.xlane.xlu1 %3575 }
 0x5ba   : > { %11218 = vpow2.f32 %v3628_v23  ;;  %v3614_v10 = vsub.f32 %v12637_v4, %v3576_v18  ;;  %v3658_v28 = vsel %vm1019_vm2, %v12730_v34, 0.0 }
 0x5bb   : > { %3659 = vadd.xlane.f32.xlu1 %v3658_v28 }
 0x5bc   : > { %v3634_v5 = vmul.f32 1.442695, %v3614_v10 }
 0x5bd   : > { %v3573_v1 = vpop.xlane.xlu0 %3572 }
 0x5be   : > { %11220 = vpow2.f32 %v3634_v5  ;;  %v3613_v37 = vsub.f32 %v12644_v36, %v3573_v1 }
 0x5bf   : > { %v3582_v62 = vpop.xlane.xlu1 %3581 }
 0x5c0   : > { %v3632_v20 = vmul.f32 1.442695, %v3613_v37  ;;  %v3616_v26 = vsub.f32 %v12647_v22, %v3582_v62 }
 0x5c1   : > { %v12737_v54 = vpop.eup %11216 }
 0x5c2   : > { %11222 = vpow2.f32 %v3632_v20  ;;  %v3638_v12 = vmul.f32 1.442695, %v3616_v26  ;;  %v3664_v18 = vsel %vm1019_vm2, %v12737_v54, 0.0 }
 0x5c3   : > { %3665 = vadd.xlane.f32.xlu1 %v3664_v18 }
 0x5c4   : > { %11224 = vpow2.f32 %v3638_v12 }
 0x5c5   : > { %v3579_v23 = vpop.xlane.xlu0 %3578 }
 0x5c6   : > { %v3615_v4 = vsub.f32 %v12654_v3, %v3579_v23 }
 0x5c7   : > { %v12742_v45 = vpop.eup %11218  ;;  %v3588_v10 = vpop.xlane.xlu1 %3587 }
 0x5c8   : > { %v3636_v36 = vmul.f32 1.442695, %v3615_v4  ;;  %v3618_v28 = vsub.f32 %v12657_v29, %v3588_v10  ;;  %v3661_v22 = vsel %vm1019_vm2, %v12742_v45, 0.0 }
 0x5c9   : > { %3662 = vadd.xlane.f32.xlu0 %v3661_v22 }
 0x5ca   : > { %11226 = vpow2.f32 %v3636_v36  ;;  %v3642_v5 = vmul.f32 1.442695, %v3618_v28 }
 0x5cb   : > { %v12747_v1 = vpop.eup %11220 }
 0x5cc   : > { %11228 = vpow2.f32 %v3642_v5  ;;  %v3670_v37 = vsel %vm1019_vm2, %v12747_v1, 0.0 }
 0x5cd   : > { %3671 = vadd.xlane.f32.xlu1 %v3670_v37  ;;  %v3585_v3 = vpop.xlane.xlu0 %3584 }
 0x5ce   : > { %v3617_v62 = vsub.f32 %v12664_v53, %v3585_v3 }
 0x5cf   : > { %v12752_v20 = vpop.eup %11222  ;;  %v3594_v26 = vpop.xlane.xlu1 %3593 }
 0x5d0   : > { %v3640_v29 = vmul.f32 1.442695, %v3617_v62  ;;  %v3620_v12 = vsub.f32 %v12667_v15, %v3594_v26  ;;  %v3667_v18 = vsel %vm1019_vm2, %v12752_v20, 0.0 }
 0x5d1   : > { %v12757_v23 = vpop.eup %11224  ;;  %3668 = vadd.xlane.f32.xlu0 %v3667_v18 }
 0x5d2   : > { %11230 = vpow2.f32 %v3640_v29  ;;  %v3646_v4 = vmul.f32 1.442695, %v3620_v12  ;;  %v3676_v10 = vsel %vm1019_vm2, %v12757_v23, 0.0 }
 0x5d3   : > { %3677 = vadd.xlane.f32.xlu1 %v3676_v10 }
 0x5d4   : > { %11232 = vpow2.f32 %v3646_v4 }
 0x5d5   : > { %v3591_v53 = vpop.xlane.xlu0 %3590 }
 0x5d6   : > { %v3619_v36 = vsub.f32 %v12674_v21, %v3591_v53 }
 0x5d7   : > { %v12762_v28 = vpop.eup %11226  ;;  %v3600_v22 = vpop.xlane.xlu1 %3599 }
 0x5d8   : > { %v3644_v15 = vmul.f32 1.442695, %v3619_v36  ;;  %v3622_v5 = vsub.f32 %v12677_v60, %v3600_v22  ;;  %v3673_v37 = vsel %vm1019_vm2, %v12762_v28, 0.0 }
 0x5d9   : > { %v12767_v3 = vpop.eup %11228  ;;  %3674 = vadd.xlane.f32.xlu0 %v3673_v37 }
 0x5da   : > { %11234 = vpow2.f32 %v3644_v15  ;;  %v3650_v62 = vmul.f32 1.442695, %v3622_v5  ;;  %v3682_v26 = vsel %vm1019_vm2, %v12767_v3, 0.0 }
 0x5db   : > { %3683 = vadd.xlane.f32.xlu1 %v3682_v26 }
 0x5dc   : > { %11236 = vpow2.f32 %v3650_v62 }
 0x5dd   : > { %v3597_v21 = vpop.xlane.xlu0 %3596 }
 0x5de   : > { %v3621_v29 = vsub.f32 %v12684_v8, %v3597_v21 }
 0x5df   : > { %v12772_v12 = vpop.eup %11230 }
 0x5e0   : > { %v3648_v18 = vmul.f32 1.442695, %v3621_v29  ;;  %v3679_v60 = vsel %vm1019_vm2, %v12772_v12, 0.0  ;;  %v3606_v29 = vpop.xlane.xlu1 %3605 }
 0x5e1   : > { %v12776_v4 = vpop.eup %11232  ;;  %3680 = vadd.xlane.f32.xlu0 %v3679_v60 }
 0x5e2   : > { %11238 = vpow2.f32 %v3648_v18  ;;  %v3688_v10 = vsel %vm1019_vm2, %v12776_v4, 0.0  ;;  %v3624_v18 = vsub.f32 %v12687_v61, %v3606_v29 }
 0x5e3   : > { %3689 = vadd.xlane.f32.xlu1 %v3688_v10 }
 0x5e4   : > { %v3654_v60 = vmul.f32 1.442695, %v3624_v18 }
 0x5e5   : > { %v3603_v53 = vpop.xlane.xlu0 %3602 }
 0x5e6   : > { %v3623_v36 = vsub.f32 %v12694_v7, %v3603_v53 }
 0x5e7   : > { %v12781_v22 = vpop.eup %11234 }
 0x5e8   : > { %v3652_v8 = vmul.f32 1.442695, %v3623_v36  ;;  %v3685_v15 = vsel %vm1019_vm2, %v12781_v22, 0.0 }
 0x5e9   : > { %v12785_v5 = vpop.eup %11236  ;;  %3686 = vadd.xlane.f32.xlu0 %v3685_v15 }
 0x5ea   : > { %11240 = vpow2.f32 %v3652_v8  ;;  %v3694_v37 = vsel %vm1019_vm2, %v12785_v5, 0.0 }
 0x5eb   : > { %3695 = vadd.xlane.f32.xlu1 %v3694_v37  ;;  %11242 = vpow2.f32 %v3654_v60 }
 0x5ed   : > { %v3609_v10 = vpop.xlane.xlu0 %3608 }
 0x5ee   : > { %v3625_v53 = vsub.f32 %v12699_v41, %v3609_v10  ;;  %v12819_v41 = vpop.permute.xlu1 %4378 }
 0x5ef   : > { %v12789_v62 = vpop.eup %11238 }
 0x5f0   : > { %v3691_v26 = vsel %vm1019_vm2, %v12789_v62, 0.0  ;;  %v3656_v36 = vmul.f32 1.442695, %v3625_v53 }
 0x5f1   : > { %3692 = vadd.xlane.f32.xlu0 %v3691_v26  ;;  %v12835_v29 = vpop.permute.xlu0 %4330 }
 0x5f2   : > { %11244 = vpow2.f32 %v3656_v36 }
 0x5f7   : > { %v12793_v7 = vpop.eup %11240 }
 0x5f8   : > { %v3697_v21 = vsel %vm1019_vm2, %v12793_v7, 0.0  ;;  %v12803_v8 = vpop.eup %11242 }
 0x5f9   : > { %3698 = vadd.xlane.f32.xlu0 %v3697_v21  ;;  %v3700_v15 = vsel %vm1019_vm2, %v12803_v8, 0.0 }
 0x5fc   : > { %4474 = vrot.lane.b32.xlu1 %v11989_v33, %s11619_s21 }
 0x5ff   : > { %v12807_v37 = vpop.eup %11244 }
 0x600   : > { %v3703_v61 = vsel %vm1019_vm2, %v12807_v37, 0.0 }
 0x60f   : > { %4426 = vrot.lane.b32.xlu0 %v11983_v19, %s11619_s21  ;;  %s11624_s21 = smov 104  }
 0x620   : > { %3701 = vadd.xlane.f32.xlu1 %v3700_v15  ;;  %v3856_v15 = vsel %vm1998_vm3, %v12709_v32, 0 }
 0x62e   : > { %3704 = vadd.xlane.f32.xlu0 %v3703_v61 }
 0x631   : > { %4574 = vrot.lane.b32.xlu1 %v11935_v50, %s11620_s23 }
 0x635   : > { %4572 = vrot.lane.b32.xlu1 %v11935_v50, %s11621_s22 }
 0x639   : > { %4674 = vrot.lane.b32.xlu1 %v11941_v56, %s11620_s23 }
 0x63d   : > { %4672 = vrot.lane.b32.xlu1 %v11941_v56, %s11621_s22 }
 0x641   : > { %4774 = vrot.lane.b32.xlu1 %v11951_v2, %s11620_s23 }
 0x644   : > { %v3660_v26 = vpop.xlane.xlu1 %3659  ;;  %4524 = vrot.lane.b32.xlu0 %v11929_v43, %s11620_s23 }
 0x645   : > { %11246 = vrcp.f32 %v3660_v26  ;;  %4772 = vrot.lane.b32.xlu1 %v11951_v2, %s11621_s22 }
 0x648   : > { %4522 = vrot.lane.b32.xlu0 %v11929_v43, %s11621_s22 }
 0x649   : > { %4874 = vrot.lane.b32.xlu1 %v11959_v9, %s11620_s23 }
 0x64c   : > { %v3666_v21 = vpop.xlane.xlu1 %3665  ;;  %4624 = vrot.lane.b32.xlu0 %v11933_v48, %s11620_s23 }
 0x64d   : > { %11248 = vrcp.f32 %v3666_v21  ;;  %4872 = vrot.lane.b32.xlu1 %v11959_v9, %s11621_s22 }
 0x650   : > { %4622 = vrot.lane.b32.xlu0 %v11933_v48, %s11621_s22 }
 0x651   : > { %4974 = vrot.lane.b32.xlu1 %v11965_v16, %s11620_s23 }
 0x652   : > { %v11247_v18 = vpop.eup %11246  ;;  %v3663_v60 = vpop.xlane.xlu0 %3662 }
 0x653   : > { %11250 = vrcp.f32 %v3663_v60  ;;  %v3722_v10 = vmul.f32 %v11247_v18, %v12730_v34  ;;  %v3952_v18 = vsel %vm1998_vm3, %v12713_v59, 0 }
 0x654   : > { %4724 = vrot.lane.b32.xlu0 %v11943_v58, %s11620_s23 }
 0x655   : > { %4972 = vrot.lane.b32.xlu1 %v11965_v16, %s11621_s22  ;;  %v3738_v53 = vpack.c.bf16 %v3722_v10, %v3722_v10 }
 0x656   : > { %v3672_v36 = vpop.xlane.xlu1 %3671 }
 0x657   : > { %11252 = vrcp.f32 %v3672_v36  ;;  %10415 = vmatmul.mubr.msk.bf16.vlgmr.msra.gmra.mxu0 %vm1019_vm2, %v3738_v53 }
 0x658   : > { %10425 = vmatpush3.bf16.msra.mxu0 %v3856_v15  ;;  %4722 = vrot.lane.b32.xlu0 %v11943_v58, %s11621_s22  ;;  %v3904_v15 = vsel %vm1998_vm3, %v12707_v52, 0  ;;  %v4048_v52 = vsel %vm1998_vm3, %v12717_v51, 0 }
 0x659   : > { %5074 = vrot.lane.b32.xlu1 %v11975_v27, %s11620_s23  ;;  %10426 = vmatprep.mubr.msk.bf16.mxu0 %vm11614_vm1, %v14947_v42 }
 0x65a   : > { %v11249_v34 = vpop.eup %11248  ;;  %v3669_v61 = vpop.xlane.xlu0 %3668  ;;  %10436 = vmatprep.subr.bf16.mxu0 %v14947_v42 }
 0x65b   : > { %11254 = vrcp.f32 %v3669_v61  ;;  %v3724_v32 = vmul.f32 %v11249_v34, %v12737_v54 }
 0x65c   : > { %v3678_v26 = vpop.xlane.xlu1 %3677  ;;  %4824 = vrot.lane.b32.xlu0 %v11949_v0, %s11620_s23 }
 0x65d   : > { %11256 = vrcp.f32 %v3678_v26  ;;  %5072 = vrot.lane.b32.xlu1 %v11975_v27, %s11621_s22  ;;  %v3740_v21 = vpack.c.bf16 %v3724_v32, %v3724_v32 }
 0x65f   : > { %10427 = vmatmul.mubr.msk.bf16.vlgmr.msra.gmra.mxu0 %vm1019_vm2, %v3740_v21 }
 0x660   : > { %v11251_v60 = vpop.eup %11250  ;;  %10437 = vmatpush3.bf16.msra.mxu0 %v3952_v18  ;;  %4822 = vrot.lane.b32.xlu0 %v11949_v0, %s11621_s22 }
 0x661   : > { %v3723_v54 = vmul.f32 %v11251_v60, %v12742_v45  ;;  %5174 = vrot.lane.b32.xlu1 %v11981_v35, %s11620_s23  ;;  %10438 = vmatprep.mubr.msk.bf16.mxu0 %vm11614_vm1, %v14947_v42 }
 0x662   : > { %v3675_v10 = vpop.xlane.xlu0 %3674  ;;  %10448 = vmatprep.subr.bf16.mxu0 %v14947_v42 }
 0x663   : > { %v3739_v53 = vpack.c.bf16 %v3723_v54, %v3723_v54  ;;  %11258 = vrcp.f32 %v3675_v10 }
 0x664   : > { %v11253_v59 = vpop.eup %11252  ;;  %v3684_v36 = vpop.xlane.xlu1 %3683  ;;  %4924 = vrot.lane.b32.xlu0 %v11957_v6, %s11620_s23 }
 0x665   : > { %11260 = vrcp.f32 %v3684_v36  ;;  %5172 = vrot.lane.b32.xlu1 %v11981_v35, %s11621_s22  ;;  %10421 = vmatmul.mubr.msk.bf16.vlgmr.msra.gmra.mxu1 %vm1019_vm2, %v3739_v53  ;;  %v3726_v45 = vmul.f32 %v11253_v59, %v12747_v1 }
 0x666   : > { %10431 = vmatpush3.bf16.msra.mxu1 %v3904_v15  ;;  %10432 = vmatprep.mubr.msk.bf16.mxu1 %vm11614_vm1, %v14947_v42 }
 0x667   : > { %v3742_v34 = vpack.c.bf16 %v3726_v45, %v3726_v45  ;;  %10442 = vmatprep.subr.bf16.mxu1 %v14947_v42 }
 0x668   : > { %v11255_v61 = vpop.eup %11254  ;;  %4922 = vrot.lane.b32.xlu0 %v11957_v6, %s11621_s22 }
 0x669   : > { %v3725_v32 = vmul.f32 %v11255_v61, %v12752_v20  ;;  %5274 = vrot.lane.b32.xlu1 %v11989_v33, %s11620_s23  ;;  %10439 = vmatmul.mubr.msk.bf16.vlgmr.msra.gmra.mxu0 %vm1019_vm2, %v3742_v34  ;;  %v4000_v20 = vsel %vm1998_vm3, %v12711_v63, 0  ;;  %v4144_v63 = vsel %vm1998_vm3, %v12721_v38, 0 }
 0x66a   : > { %v11257_v1 = vpop.eup %11256  ;;  %10449 = vmatpush3.bf16.msra.mxu0 %v4048_v52  ;;  %v3681_v26 = vpop.xlane.xlu0 %3680  ;;  %10450 = vmatprep.mubr.msk.bf16.mxu0 %vm11614_vm1, %v14947_v42 }
 0x66b   : > { %v3741_v21 = vpack.c.bf16 %v3725_v32, %v3725_v32  ;;  %11262 = vrcp.f32 %v3681_v26  ;;  %10460 = vmatprep.subr.bf16.mxu0 %v14947_v42  ;;  %v3728_v18 = vmul.f32 %v11257_v1, %v12757_v23  ;;  %v4336_v1 = vsel %vm1998_vm3, %v12835_v29, 0 }
 0x66c   : > { %v3690_v51 = vpop.xlane.xlu1 %3689  ;;  %5024 = vrot.lane.b32.xlu0 %v11967_v17, %s11620_s23 }
 0x66d   : > { %11264 = vrcp.f32 %v3690_v51  ;;  %5272 = vrot.lane.b32.xlu1 %v11989_v33, %s11621_s22  ;;  %10433 = vmatmul.mubr.msk.bf16.vlgmr.msra.gmra.mxu1 %vm1019_vm2, %v3741_v21  ;;  %v3744_v60 = vpack.c.bf16 %v3728_v18, %v3728_v18 }
 0x66e   : > { %10443 = vmatpush3.bf16.msra.mxu1 %v4000_v20  ;;  %10444 = vmatprep.mubr.msk.bf16.mxu1 %vm11614_vm1, %v14947_v42 }
 0x66f   : > { %10454 = vmatprep.subr.bf16.mxu1 %v14947_v42 }
 0x670   : > { %v11259_v23 = vpop.eup %11258  ;;  %5022 = vrot.lane.b32.xlu0 %v11967_v17, %s11621_s22 }
 0x671   : > { %v3727_v54 = vmul.f32 %v11259_v23, %v12762_v28  ;;  %5514 = vrot.lane.b32.xlu1 %v11929_v43, %s11622_s4  ;;  %10451 = vmatmul.mubr.msk.bf16.vlgmr.msra.gmra.mxu0 %vm1019_vm2, %v3744_v60  ;;  %v4096_v28 = vsel %vm1998_vm3, %v12715_v44, 0  ;;  %v4240_v44 = vsel %vm1998_vm3, %v12724_v11, 0  ;;  %v4192_v11 = vsel %vm1998_vm3, %v12719_v39, 0 }
 0x672   : > { %v11261_v10 = vpop.eup %11260  ;;  %10461 = vmatpush3.bf16.msra.mxu0 %v4144_v63  ;;  %v3687_v53 = vpop.xlane.xlu0 %3686  ;;  %10462 = vmatprep.mubr.msk.bf16.mxu0 %vm11614_vm1, %v14947_v42  ;;  %v4384_v63 = vsel %vm1998_vm3, %v12819_v41, 0 }
 0x673   : > { %v3743_v59 = vpack.c.bf16 %v3727_v54, %v3727_v54  ;;  %v3730_v36 = vmul.f32 %v11261_v10, %v12767_v3  ;;  %11266 = vrcp.f32 %v3687_v53  ;;  %10472 = vmatprep.subr.bf16.mxu0 %v14947_v42 }
 0x674   : > { %v3696_v38 = vpop.xlane.xlu1 %3695  ;;  %5124 = vrot.lane.b32.xlu0 %v11973_v24, %s11620_s23 }
 0x675   : > { %11268 = vrcp.f32 %v3696_v38  ;;  %5610 = vrot.lane.b32.xlu1 %v11933_v48, %s11622_s4  ;;  %10445 = vmatmul.mubr.msk.bf16.vlgmr.msra.gmra.mxu1 %vm1019_vm2, %v3743_v59  ;;  %v3746_v3 = vpack.c.bf16 %v3730_v36, %v3730_v36 }
 0x676   : > { %10455 = vmatpush3.bf16.msra.mxu1 %v4096_v28  ;;  %10456 = vmatprep.mubr.msk.bf16.mxu1 %vm11614_vm1, %v14947_v42 }
 0x677   : > { %10466 = vmatprep.subr.bf16.mxu1 %v14947_v42 }
 0x678   : > { %v11263_v15 = vpop.eup %11262  ;;  %5122 = vrot.lane.b32.xlu0 %v11973_v24, %s11621_s22  ;;  %v4475_v10 = vpop.permute.xlu1 %4474 }
 0x679   : > { %v3729_v45 = vmul.f32 %v11263_v15, %v12772_v12  ;;  %5706 = vrot.lane.b32.xlu1 %v11943_v58, %s11622_s4  ;;  %10463 = vmatmul.mubr.msk.bf16.vlgmr.msra.gmra.mxu0 %vm1019_vm2, %v3746_v3  ;;  %v4480_v41 = vsel %vm1998_vm3, %v4475_v10, 0 }
 0x67a   : > { %v11265_v34 = vpop.eup %11264  ;;  %10473 = vmatpush3.bf16.msra.mxu0 %v4240_v44  ;;  %v3693_v61 = vpop.xlane.xlu0 %3692  ;;  %10474 = vmatprep.mubr.msk.bf16.mxu0 %vm11614_vm1, %v14947_v42 }
 0x67b   : > { %v3745_v52 = vpack.c.bf16 %v3729_v45, %v3729_v45  ;;  %v3732_v32 = vmul.f32 %v11265_v34, %v12776_v4  ;;  %11270 = vrcp.f32 %v3693_v61  ;;  %10484 = vmatprep.subr.bf16.mxu0 %v14947_v42 }
 0x67c   : > { %5224 = vrot.lane.b32.xlu0 %v11983_v19, %s11620_s23  ;;  %s11625_s23 = smov 40  }
 0x67d   : > { %5802 = vrot.lane.b32.xlu1 %v11949_v0, %s11622_s4  ;;  %10457 = vmatmul.mubr.msk.bf16.vlgmr.msra.gmra.mxu1 %vm1019_vm2, %v3745_v52  ;;  %v3748_v12 = vpack.c.bf16 %v3732_v32, %v3732_v32 }
 0x67e   : > { %10467 = vmatpush3.bf16.msra.mxu1 %v4192_v11  ;;  %10468 = vmatprep.mubr.msk.bf16.mxu1 %vm11614_vm1, %v14947_v42 }
 0x67f   : > { %10478 = vmatprep.subr.bf16.mxu1 %v14947_v42 }
 0x680   : > { %v11267_v4 = vpop.eup %11266  ;;  %5222 = vrot.lane.b32.xlu0 %v11983_v19, %s11621_s22  ;;  %s11627_s22 = smov 16  }
 0x681   : > { %v3731_v39 = vmul.f32 %v11267_v4, %v12781_v22  ;;  %5898 = vrot.lane.b32.xlu1 %v11957_v6, %s11622_s4  ;;  %10475 = vmatmul.mubr.msk.bf16.vlgmr.msra.gmra.mxu0 %vm1019_vm2, %v3748_v12  ;;  %v4288_v22 = vsel %vm1998_vm3, %v12727_v40, 0 }
 0x682   : > { %v11269_v26 = vpop.eup %11268  ;;  %10485 = vmatpush3.bf16.msra.mxu0 %v4336_v1  ;;  %v3699_v21 = vpop.xlane.xlu0 %3698  ;;  %10486 = vmatprep.mubr.msk.bf16.mxu0 %vm11614_vm1, %v14947_v42 }
 0x683   : > { %v3747_v18 = vpack.c.bf16 %v3731_v39, %v3731_v39  ;;  %v3734_v51 = vmul.f32 %v11269_v26, %v12785_v5  ;;  %11272 = vrcp.f32 %v3699_v21  ;;  %10496 = vmatprep.subr.bf16.mxu0 %v14947_v42 }
 0x684   : > { %5562 = vrot.lane.b32.xlu0 %v11935_v50, %s11622_s4 }
 0x685   : > { %5994 = vrot.lane.b32.xlu1 %v11967_v17, %s11622_s4  ;;  %10469 = vmatmul.mubr.msk.bf16.vlgmr.msra.gmra.mxu1 %vm1019_vm2, %v3747_v18  ;;  %v3750_v5 = vpack.c.bf16 %v3734_v51, %v3734_v51 }
 0x686   : > { %10479 = vmatpush3.bf16.msra.mxu1 %v4288_v22  ;;  %v4427_v29 = vpop.permute.xlu0 %4426  ;;  %10480 = vmatprep.mubr.msk.bf16.mxu1 %vm11614_vm1, %v14947_v42 }
 0x687   : > { %v4432_v20 = vsel %vm1998_vm3, %v4427_v29, 0  ;;  %10490 = vmatprep.subr.bf16.mxu1 %v14947_v42 }
 0x688   : > { %v11271_v60 = vpop.eup %11270  ;;  %5658 = vrot.lane.b32.xlu0 %v11941_v56, %s11622_s4 }
 0x689   : > { %v3733_v40 = vmul.f32 %v11271_v60, %v12789_v62  ;;  %6042 = vrot.lane.b32.xlu1 %v11975_v27, %s11622_s4  ;;  %10487 = vmatmul.mubr.msk.bf16.vlgmr.msra.gmra.mxu0 %vm1019_vm2, %v3750_v5 }
 0x68a   : > { %10497 = vmatpush3.bf16.msra.mxu0 %v4432_v20  ;;  %10498 = vmatprep.mubr.msk.bf16.mxu0 %vm11614_vm1, %v14947_v42 }
 0x68b   : > { %v3749_v23 = vpack.c.bf16 %v3733_v40, %v3733_v40  ;;  %10508 = vmatprep.subr.bf16.mxu0 %v14947_v42 }
 0x68c   : > { %5754 = vrot.lane.b32.xlu0 %v11951_v2, %s11622_s4 }
 0x68d   : > { %10481 = vmatmul.mubr.msk.bf16.vlgmr.msra.gmra.mxu1 %vm1019_vm2, %v3749_v23 }
 0x68e   : > { %10491 = vmatpush3.bf16.msra.mxu1 %v4384_v63  ;;  %10492 = vmatprep.mubr.msk.bf16.mxu1 %vm11614_vm1, %v14947_v42 }
 0x68f   : > { %10502 = vmatprep.subr.bf16.mxu1 %v14947_v42 }
 0x690   : > { %v11273_v62 = vpop.eup %11272  ;;  %5850 = vrot.lane.b32.xlu0 %v11959_v9, %s11622_s4 }
 0x691   : > { %v3735_v54 = vmul.f32 %v11273_v62, %v12793_v7 }
 0x693   : > { %v3751_v53 = vpack.c.bf16 %v3735_v54, %v3735_v54 }
 0x694   : > { %5946 = vrot.lane.b32.xlu0 %v11965_v16, %s11622_s4 }
 0x695   : > { %10493 = vmatmul.mubr.msk.bf16.vlgmr.msra.gmra.mxu1 %vm1019_vm2, %v3751_v53 }
 0x696   : > { %10503 = vmatpush3.bf16.msra.mxu1 %v4480_v41  ;;  %10504 = vmatprep.mubr.msk.bf16.mxu1 %vm11614_vm1, %v14947_v42 }
 0x697   : > { %10514 = vmatprep.subr.bf16.mxu1 %v14947_v42 }
 0x6a9   : > { %v3702_v59 = vpop.xlane.xlu1 %3701 }
 0x6aa   : > { %11274 = vrcp.f32 %v3702_v59 }
 0x6ad   : > { %v4575_v36 = vpop.permute.xlu1 %4574 }
 0x6ae   : > { %v4580_v51 = vsel %vm1019_vm2, %v4575_v36, 0 }
 0x6b1   : > { %v4573_v38 = vpop.permute.xlu1 %4572 }
 0x6b5   : > { %v4675_v7 = vpop.permute.xlu1 %4674 }
 0x6b6   : > { %v4680_v60 = vsel %vm1019_vm2, %v4675_v7, 0 }
 0x6b7   : > { %v11275_v28 = vpop.eup %11274  ;;  %v3705_v3 = vpop.xlane.xlu0 %3704 }
 0x6b8   : > { %v3736_v15 = vmul.f32 %v11275_v28, %v12803_v8  ;;  %11276 = vrcp.f32 %v3705_v3 }
 0x6b9   : > { %v4673_v44 = vpop.permute.xlu1 %4672 }
 0x6ba   : > { %v3752_v45 = vpack.c.bf16 %v3736_v15, %v3736_v15 }
 0x6bb   : > { %v4525_v34 = vpop.permute.xlu0 %4524 }
 0x6bc   : > { %v4530_v61 = vsel %vm1019_vm2, %v4525_v34, 0  ;;  %10499 = vmatmul.mubr.msk.bf16.vlgmr.msra.gmra.mxu0 %vm1019_vm2, %v3752_v45 }
 0x6bd   : > { %v4775_v52 = vpop.permute.xlu1 %4774  ;;  %10509 = vmatpush3.bf16.xpose.msra.mxu0 %v4530_v61  ;;  %10510 = vmatprep.mubr.msk.bf16.mxu0 %vm11614_vm1, %v14947_v42 }
 0x6be   : > { %10520 = vmatprep.subr.bf16.mxu0 %v14947_v42  ;;  %v4780_v54 = vsel %vm1019_vm2, %v4775_v52, 0 }
 0x6bf   : > { %v4523_v32 = vpop.permute.xlu0 %4522 }
 0x6c1   : > { %v4773_v11 = vpop.permute.xlu1 %4772 }
 0x6c3   : > { %v4625_v12 = vpop.permute.xlu0 %4624 }
 0x6c4   : > { %v4630_v8 = vsel %vm1019_vm2, %v4625_v12, 0  ;;  %10511 = vmatmul.mubr.msk.bf16.vlgmr.msra.gmra.mxu0 %vm1019_vm2, %v4523_v32 }
 0x6c5   : > { %v11277_v4 = vpop.eup %11276  ;;  %v4875_v1 = vpop.permute.xlu1 %4874  ;;  %10521 = vmatpush3.bf16.xpose.msra.mxu0 %v4630_v8  ;;  %10522 = vmatprep.mubr.msk.bf16.mxu0 %vm11614_vm1, %v14947_v42 }
 0x6c6   : > { %v3737_v39 = vmul.f32 %v11277_v4, %v12807_v37  ;;  %10532 = vmatprep.subr.bf16.mxu0 %v14947_v42 }
 0x6c7   : > { %v4623_v26 = vpop.permute.xlu0 %4622 }
 0x6c8   : > { %v3753_v21 = vpack.c.bf16 %v3737_v39, %v3737_v39 }
 0x6c9   : > { %v4873_v18 = vpop.permute.xlu1 %4872 }
 0x6ca   : > { %10505 = vmatmul.mubr.msk.bf16.vlgmr.msra.gmra.mxu1 %vm1019_vm2, %v3753_v21 }
 0x6cb   : > { %10515 = vmatpush3.bf16.xpose.msra.mxu1 %v4580_v51  ;;  %v4725_v22 = vpop.permute.xlu0 %4724  ;;  %10516 = vmatprep.mubr.msk.bf16.mxu1 %vm11614_vm1, %v14947_v42 }
 0x6cc   : > { %v4730_v29 = vsel %vm1019_vm2, %v4725_v22, 0  ;;  %10523 = vmatmul.mubr.msk.bf16.vlgmr.msra.gmra.mxu0 %vm1019_vm2, %v4623_v26  ;;  %10526 = vmatprep.subr.bf16.mxu1 %v14947_v42 }
 0x6cd   : > { %v4975_v37 = vpop.permute.xlu1 %4974  ;;  %10533 = vmatpush3.bf16.xpose.msra.mxu0 %v4730_v29  ;;  %10534 = vmatprep.mubr.msk.bf16.mxu0 %vm11614_vm1, %v14947_v42 }
 0x6ce   : > { %10544 = vmatprep.subr.bf16.mxu0 %v14947_v42 }
 0x6cf   : > { %v4723_v5 = vpop.permute.xlu0 %4722 }
 0x6d1   : > { %v4973_v20 = vpop.permute.xlu1 %4972 }
 0x6d2   : > { %10517 = vmatmul.mubr.msk.bf16.vlgmr.msra.gmra.mxu1 %vm1019_vm2, %v4573_v38  ;;  %v4880_v38 = vsel %vm1019_vm2, %v4875_v1, 0 }
 0x6d3   : > { %10527 = vmatpush3.bf16.xpose.msra.mxu1 %v4680_v60  ;;  %v4825_v40 = vpop.permute.xlu0 %4824  ;;  %10528 = vmatprep.mubr.msk.bf16.mxu1 %vm11614_vm1, %v14947_v42 }
 0x6d4   : > { %v4830_v23 = vsel %vm1019_vm2, %v4825_v40, 0  ;;  %10535 = vmatmul.mubr.msk.bf16.vlgmr.msra.gmra.mxu0 %vm1019_vm2, %v4723_v5  ;;  %10538 = vmatprep.subr.bf16.mxu1 %v14947_v42 }
 0x6d5   : > { %v5075_v63 = vpop.permute.xlu1 %5074  ;;  %10545 = vmatpush3.bf16.xpose.msra.mxu0 %v4830_v23  ;;  %10546 = vmatprep.mubr.msk.bf16.mxu0 %vm11614_vm1, %v14947_v42 }
 0x6d6   : > { %10556 = vmatprep.subr.bf16.mxu0 %v14947_v42  ;;  %v5080_v32 = vsel %vm1019_vm2, %v5075_v63, 0 }
 0x6d7   : > { %v4823_v62 = vpop.permute.xlu0 %4822 }
 0x6d9   : > { %v5073_v10 = vpop.permute.xlu1 %5072 }
 0x6da   : > { %10529 = vmatmul.mubr.msk.bf16.vlgmr.msra.gmra.mxu1 %vm1019_vm2, %v4673_v44  ;;  %v4980_v44 = vsel %vm1019_vm2, %v4975_v37, 0 }
 0x6db   : > { %10539 = vmatpush3.bf16.xpose.msra.mxu1 %v4780_v54  ;;  %v4925_v53 = vpop.permute.xlu0 %4924  ;;  %10540 = vmatprep.mubr.msk.bf16.mxu1 %vm11614_vm1, %v14947_v42 }
 0x6dc   : > { %v4930_v41 = vsel %vm1019_vm2, %v4925_v53, 0  ;;  %10547 = vmatmul.mubr.msk.bf16.vlgmr.msra.gmra.mxu0 %vm1019_vm2, %v4823_v62  ;;  %10550 = vmatprep.subr.bf16.mxu1 %v14947_v42 }
 0x6dd   : > { %10557 = vmatpush3.bf16.xpose.msra.mxu0 %v4930_v41  ;;  %10558 = vmatprep.mubr.msk.bf16.mxu0 %vm11614_vm1, %v14947_v42  ;;  %v5175_v36 = vpop.permute.xlu1 %5174 }
 0x6de   : > { %10568 = vmatprep.subr.bf16.mxu0 %v14947_v42  ;;  %v5180_v1 = vsel %vm1019_vm2, %v5175_v36, 0 }
 0x6df   : > { %v4923_v59 = vpop.permute.xlu0 %4922 }
 0x6e1   : > { %v5173_v3 = vpop.permute.xlu1 %5172 }
 0x6e2   : > { %10541 = vmatmul.mubr.msk.bf16.vlgmr.msra.gmra.mxu1 %vm1019_vm2, %v4773_v11 }
 0x6e3   : > { %10551 = vmatpush3.bf16.xpose.msra.mxu1 %v4880_v38  ;;  %v5025_v7 = vpop.permute.xlu0 %5024  ;;  %10552 = vmatprep.mubr.msk.bf16.mxu1 %vm11614_vm1, %v14947_v42 }
 0x6e4   : > { %v5030_v28 = vsel %vm1019_vm2, %v5025_v7, 0  ;;  %10559 = vmatmul.mubr.msk.bf16.vlgmr.msra.gmra.mxu0 %vm1019_vm2, %v4923_v59  ;;  %10562 = vmatprep.subr.bf16.mxu1 %v14947_v42  ;;  %v11527_v7 = vld [vmem:[%s12119_s3 + $0xa] ss:$0 sm:$0xff] }
 0x6e5   : > { %10569 = vmatpush3.bf16.xpose.msra.mxu0 %v5030_v28  ;;  %10570 = vmatprep.mubr.msk.bf16.mxu0 %vm11614_vm1, %v14947_v42  ;;  %v5275_v61 = vpop.permute.xlu1 %5274 }
 0x6e6   : > { %10580 = vmatprep.subr.bf16.mxu0 %v14947_v42  ;;  %v5280_v21 = vsel %vm1019_vm2, %v5275_v61, 0 }
 0x6e7   : > { %v5023_v15 = vpop.permute.xlu0 %5022 }
 0x6e9   : > { %v5273_v11 = vpop.permute.xlu1 %5272 }
 0x6ea   : > { %10553 = vmatmul.mubr.msk.bf16.vlgmr.msra.gmra.mxu1 %vm1019_vm2, %v4873_v18 }
 0x6eb   : > { %10563 = vmatpush3.bf16.xpose.msra.mxu1 %v4980_v44  ;;  %v5125_v45 = vpop.permute.xlu0 %5124  ;;  %10564 = vmatprep.mubr.msk.bf16.mxu1 %vm11614_vm1, %v14947_v42 }
 0x6ec   : > { %v5130_v34 = vsel %vm1019_vm2, %v5125_v45, 0  ;;  %10571 = vmatmul.mubr.msk.bf16.vlgmr.msra.gmra.mxu0 %vm1019_vm2, %v5023_v15  ;;  %10574 = vmatprep.subr.bf16.mxu1 %v14947_v42 }
 0x6ed   : > { %10581 = vmatpush3.bf16.xpose.msra.mxu0 %v5130_v34  ;;  %10582 = vmatprep.mubr.msk.bf16.mxu0 %vm11614_vm1, %v14947_v42  ;;  %v5515_v4 = vpop.permute.xlu1 %5514 }
 0x6ee   : > { %10592 = vmatprep.subr.bf16.mxu0 %v14947_v42  ;;  %v5520_v26 = vsel %vm1998_vm3, %v5515_v4, 0 }
 0x6ef   : > { %v5123_v52 = vpop.permute.xlu0 %5122 }
 0x6f2   : > { %10565 = vmatmul.mubr.msk.bf16.vlgmr.msra.gmra.mxu1 %vm1019_vm2, %v4973_v20 }
 0x6f3   : > { %10575 = vmatpush3.bf16.xpose.msra.mxu1 %v5080_v32  ;;  %v5225_v12 = vpop.permute.xlu0 %5224  ;;  %10576 = vmatprep.mubr.msk.bf16.mxu1 %vm11614_vm1, %v14947_v42  ;;  %v11523_v32 = vld [vmem:[%s12119_s3 + $0x6] ss:$0 sm:$0xff] }
 0x6f4   : > { %v5230_v8 = vsel %vm1019_vm2, %v5225_v12, 0  ;;  %10583 = vmatmul.mubr.msk.bf16.vlgmr.msra.gmra.mxu0 %vm1019_vm2, %v5123_v52  ;;  %10586 = vmatprep.subr.bf16.mxu1 %v14947_v42 }
 0x6f5   : > { %10593 = vmatpush3.bf16.xpose.msra.mxu0 %v5230_v8  ;;  %10594 = vmatprep.mubr.msk.bf16.mxu0 %vm11614_vm1, %v14947_v42 }
 0x6f6   : > { %10604 = vmatprep.subr.bf16.mxu0 %v14947_v42 }
 0x6f7   : > { %v5223_v39 = vpop.permute.xlu0 %5222 }
 0x6fa   : > { %10577 = vmatmul.mubr.msk.bf16.vlgmr.msra.gmra.mxu1 %vm1019_vm2, %v5073_v10 }
 0x6fb   : > { %10587 = vmatpush3.bf16.xpose.msra.mxu1 %v5180_v1  ;;  %10588 = vmatprep.mubr.msk.bf16.mxu1 %vm11614_vm1, %v14947_v42  ;;  %v5563_v18 = vpop.permute.xlu0 %5562 }
 0x6fc   : > { %10595 = vmatmul.mubr.msk.bf16.vlgmr.msra.gmra.mxu0 %vm1019_vm2, %v5223_v39  ;;  %10598 = vmatprep.subr.bf16.mxu1 %v14947_v42  ;;  %v5568_v51 = vsel %vm1998_vm3, %v5563_v18, 0 }
 0x6fd   : > { %10605 = vmatpush3.bf16.msra.mxu0 %v5520_v26  ;;  %10606 = vmatprep.mubr.msk.bf16.mxu0 %vm11614_vm1, %v14947_v42 }
 0x6fe   : > { %10616 = vmatprep.subr.bf16.mxu0 %v14947_v42 }
 0x702   : > { %10589 = vmatmul.mubr.msk.bf16.vlgmr.msra.gmra.mxu1 %vm1019_vm2, %v5173_v3 }
 0x703   : > { %10599 = vmatpush3.bf16.xpose.msra.mxu1 %v5280_v21  ;;  %10600 = vmatprep.mubr.msk.bf16.mxu1 %vm11614_vm1, %v14947_v42 }
 0x704   : > { %10610 = vmatprep.subr.bf16.mxu1 %v14947_v42 }
 0x70a   : > { %10601 = vmatmul.mubr.msk.bf16.vlgmr.msra.gmra.mxu1 %vm1019_vm2, %v5273_v11 }
 0x70b   : > { %10611 = vmatpush3.bf16.msra.mxu1 %v5568_v51  ;;  %10612 = vmatprep.mubr.msk.bf16.mxu1 %vm11614_vm1, %v14947_v42 }
 0x70c   : > { %10622 = vmatprep.subr.bf16.mxu1 %v14947_v42 }
 0x717   : > { %v13091_v22 = vpop.f32.mrf.mxu0 }
 0x719   : > { %v10416_v29 = vpop.f32.mrf.mxu0 }
 0x71b   : > { %v3799_v37 = vpop.f32.mrf.mxu0 }
 0x71d   : > { %v10417_v5 = vpop.f32.mrf.mxu0 }
 0x71f   : > { %v13093_v20 = vpop.f32.mrf.mxu0 }
 0x721   : > { %v10428_v60 = vpop.f32.mrf.mxu0 }
 0x723   : > { %v3895_v40 = vpop.f32.mrf.mxu0 }
 0x725   : > { %v13095_v23 = vpop.f32.mrf.mxu1  ;;  %v10429_v63 = vpop.f32.mrf.mxu0 }
 0x727   : > { %v10422_v54 = vpop.f32.mrf.mxu1 }
 0x729   : > { %v3847_v10 = vpop.f32.mrf.mxu1  ;;  %v13099_v53 = vpop.f32.mrf.mxu0 }
 0x72a   : > { %v11521_v10 = vld [vmem:[%s12119_s3 + $0x4] ss:$0 sm:$0xff] }
 0x72b   : > { %v10423_v41 = vpop.f32.mrf.mxu1  ;;  %v10440_v59 = vpop.f32.mrf.mxu0 }
 0x72d   : > { %v13101_v36 = vpop.f32.mrf.mxu1  ;;  %v3991_v38 = vpop.f32.mrf.mxu0 }
 0x72f   : > { %v10434_v28 = vpop.f32.mrf.mxu1  ;;  %v10441_v3 = vpop.f32.mrf.mxu0 }
 0x731   : > { %v3943_v15 = vpop.f32.mrf.mxu1  ;;  %v13105_v44 = vpop.f32.mrf.mxu0 }
 0x733   : > { %v10435_v45 = vpop.f32.mrf.mxu1  ;;  %v10452_v34 = vpop.f32.mrf.mxu0 }
 0x735   : > { %v13107_v61 = vpop.f32.mrf.mxu1  ;;  %v4087_v52 = vpop.f32.mrf.mxu0 }
 0x736   : > { %v11525_v52 = vld [vmem:[%s12119_s3 + $0x8] ss:$0 sm:$0xff] }
 0x737   : > { %v10446_v11 = vpop.f32.mrf.mxu1  ;;  %v10453_v12 = vpop.f32.mrf.mxu0 }
 0x739   : > { %v4039_v8 = vpop.f32.mrf.mxu1  ;;  %v13111_v4 = vpop.f32.mrf.mxu0 }
 0x73a   : > { %14964 = vst [vmem:[#allocation37_spill] sm:$0xff] %v13111_v4 }
 0x73b   : > { %v10447_v1 = vpop.f32.mrf.mxu1  ;;  %v10464_v39 = vpop.f32.mrf.mxu0 }
 0x73d   : > { %v13113_v26 = vpop.f32.mrf.mxu1  ;;  %v4183_v21 = vpop.f32.mrf.mxu0 }
 0x73f   : > { %v10458_v51 = vpop.f32.mrf.mxu1  ;;  %v10465_v29 = vpop.f32.mrf.mxu0 }
 0x741   : > { %v4135_v37 = vpop.f32.mrf.mxu1  ;;  %v13117_v5 = vpop.f32.mrf.mxu0 }
 0x743   : > { %v10459_v60 = vpop.f32.mrf.mxu1  ;;  %v10476_v40 = vpop.f32.mrf.mxu0 }
 0x745   : > { %v13119_v63 = vpop.f32.mrf.mxu1  ;;  %v4279_v54 = vpop.f32.mrf.mxu0 }
 0x746   : > { %14965 = vst [vmem:[#allocation38_spill] sm:$0xff] %v13119_v63 }
 0x747   : > { %v10470_v41 = vpop.f32.mrf.mxu1  ;;  %v10477_v59 = vpop.f32.mrf.mxu0 }
 0x749   : > { %v4231_v38 = vpop.f32.mrf.mxu1  ;;  %v13123_v28 = vpop.f32.mrf.mxu0 }
 0x74a   : > { %14966 = vst [vmem:[#allocation39_spill] sm:$0xff] %v13123_v28  ;;  %v11518_v38 = vld [vmem:[%s12119_s3] ss:$0 sm:$0xff] }
 0x74b   : > { %v10471_v3 = vpop.f32.mrf.mxu1  ;;  %v10488_v15 = vpop.f32.mrf.mxu0 }
 0x74d   : > { %v13125_v45 = vpop.f32.mrf.mxu1  ;;  %v4375_v34 = vpop.f32.mrf.mxu0 }
 0x74f   : > { %v10482_v11 = vpop.f32.mrf.mxu1  ;;  %v10489_v12 = vpop.f32.mrf.mxu0 }
 0x751   : > { %v4327_v8 = vpop.f32.mrf.mxu1 }
 0x753   : > { %v10483_v1 = vpop.f32.mrf.mxu1 }
 0x755   : > { %v13129_v39 = vpop.f32.mrf.mxu1 }
 0x756   : > { %14967 = vst [vmem:[#allocation40_spill] sm:$0xff] %v13129_v39 }
 0x757   : > { %v10494_v51 = vpop.f32.mrf.mxu1 }
 0x759   : > { %v4423_v29 = vpop.f32.mrf.mxu1 }
 0x75b   : > { %v10495_v37 = vpop.f32.mrf.mxu1 }
 0x75c   : > { %v11519_v37 = vld [vmem:[%s12119_s3 + $0x2] ss:$0 sm:$0xff] }
 0x77c   : > { %v13133_v60 = vpop.f32.mrf.mxu0 }
 0x77d   : > { %14968 = vst [vmem:[#allocation41_spill] sm:$0xff] %v13133_v60 }
 0x77e   : > { %v10500_v40 = vpop.f32.mrf.mxu0 }
 0x780   : > { %v4471_v54 = vpop.f32.mrf.mxu0 }
 0x782   : > { %v10501_v41 = vpop.f32.mrf.mxu0 }
 0x784   : > { %v4566_v59 = vpop.f32.mrf.mxu0 }
 0x785   : > { %v13136_v3 = vadd.f32 %v11518_v38, %v4566_v59 }
 0x786   : > { %v10512_v15 = vpop.f32.mrf.mxu0 }
 0x787   : > { %v5322_v34 = vsel %vm1019_vm2, %v13136_v3, -inf }
 0x788   : > { %5323 = vmax.xlane.f32.xlu0 %v5322_v34  ;;  %v4569_v11 = vpop.f32.mrf.mxu0 }
 0x78a   : > { %v13140_v12 = vpop.f32.mrf.mxu1  ;;  %v10513_v8 = vpop.f32.mrf.mxu0 }
 0x78b   : > { %14969 = vst [vmem:[#allocation42_spill] sm:$0xff] %v13140_v12  ;;  %v11520_v8 = vld [vmem:[%s12119_s3 + $0x1] ss:$0 sm:$0xff] }
 0x78c   : > { %v10506_v51 = vpop.f32.mrf.mxu1  ;;  %v4666_v29 = vpop.f32.mrf.mxu0 }
 0x78d   : > { %v13145_v40 = vadd.f32 %v11519_v37, %v4666_v29 }
 0x78e   : > { %v4519_v54 = vpop.f32.mrf.mxu1  ;;  %v10524_v41 = vpop.f32.mrf.mxu0 }
 0x78f   : > { %v5328_v59 = vsel %vm1019_vm2, %v13145_v40, -inf }
 0x790   : > { %v10507_v38 = vpop.f32.mrf.mxu1  ;;  %5329 = vmax.xlane.f32.xlu0 %v5328_v59  ;;  %v4669_v15 = vpop.f32.mrf.mxu0 }
 0x792   : > { %v4616_v34 = vpop.f32.mrf.mxu1  ;;  %v10525_v11 = vpop.f32.mrf.mxu0 }
 0x793   : > { %v13150_v21 = vadd.f32 %v11520_v8, %v4616_v34  ;;  %v11522_v8 = vld [vmem:[%s12119_s3 + $0x3] ss:$0 sm:$0xff] }
 0x794   : > { %v10518_v51 = vpop.f32.mrf.mxu1  ;;  %v4766_v1 = vpop.f32.mrf.mxu0 }
 0x795   : > { %v13153_v29 = vadd.f32 %v11521_v10, %v4766_v1  ;;  %v5325_v37 = vsel %vm1019_vm2, %v13150_v21, -inf }
 0x796   : > { %5326 = vmax.xlane.f32.xlu1 %v5325_v37  ;;  %v4619_v54 = vpop.f32.mrf.mxu1  ;;  %v10536_v41 = vpop.f32.mrf.mxu0 }
 0x797   : > { %v5334_v15 = vsel %vm1019_vm2, %v13153_v29, -inf }
 0x798   : > { %v10519_v59 = vpop.f32.mrf.mxu1  ;;  %v4769_v38 = vpop.f32.mrf.mxu0 }
 0x79a   : > { %v4716_v11 = vpop.f32.mrf.mxu1  ;;  %5335 = vmax.xlane.f32.xlu1 %v5334_v15  ;;  %v10537_v34 = vpop.f32.mrf.mxu0 }
 0x79b   : > { %v13160_v51 = vadd.f32 %v11522_v8, %v4716_v11  ;;  %v11524_v8 = vld [vmem:[%s12119_s3 + $0x5] ss:$0 sm:$0xff] }
 0x79c   : > { %v10530_v10 = vpop.f32.mrf.mxu1  ;;  %v4866_v1 = vpop.f32.mrf.mxu0 }
 0x79d   : > { %v13163_v62 = vadd.f32 %v11523_v32, %v4866_v1  ;;  %v5331_v37 = vsel %vm1019_vm2, %v13160_v51, -inf }
 0x79e   : > { %v4719_v54 = vpop.f32.mrf.mxu1  ;;  %5332 = vmax.xlane.f32.xlu0 %v5331_v37  ;;  %v10548_v41 = vpop.f32.mrf.mxu0 }
 0x79f   : > { %v5340_v59 = vsel %vm1019_vm2, %v13163_v62, -inf }
 0x7a0   : > { %v10531_v38 = vpop.f32.mrf.mxu1  ;;  %5341 = vmax.xlane.f32.xlu1 %v5340_v59  ;;  %v4869_v15 = vpop.f32.mrf.mxu0 }
 0x7a2   : > { %v4816_v11 = vpop.f32.mrf.mxu1  ;;  %v10549_v34 = vpop.f32.mrf.mxu0 }
 0x7a3   : > { %v13170_v10 = vadd.f32 %v11524_v8, %v4816_v11  ;;  %v11526_v8 = vld [vmem:[%s12119_s3 + $0x7] ss:$0 sm:$0xff] }
 0x7a4   : > { %v10542_v32 = vpop.f32.mrf.mxu1  ;;  %v4966_v1 = vpop.f32.mrf.mxu0 }
 0x7a5   : > { %v13173_v18 = vadd.f32 %v11525_v52, %v4966_v1  ;;  %v5337_v37 = vsel %vm1019_vm2, %v13170_v10, -inf }
 0x7a6   : > { %v4819_v54 = vpop.f32.mrf.mxu1  ;;  %5338 = vmax.xlane.f32.xlu0 %v5337_v37  ;;  %v10560_v41 = vpop.f32.mrf.mxu0 }
 0x7a7   : > { %v5346_v59 = vsel %vm1019_vm2, %v13173_v18, -inf }
 0x7a8   : > { %v10543_v38 = vpop.f32.mrf.mxu1  ;;  %5347 = vmax.xlane.f32.xlu1 %v5346_v59  ;;  %v4969_v15 = vpop.f32.mrf.mxu0 }
 0x7aa   : > { %v4916_v11 = vpop.f32.mrf.mxu1  ;;  %v10561_v34 = vpop.f32.mrf.mxu0 }
 0x7ab   : > { %v13180_v32 = vadd.f32 %v11526_v8, %v4916_v11  ;;  %v11528_v8 = vld [vmem:[%s12119_s3 + $0x9] ss:$0 sm:$0xff] }
 0x7ac   : > { %v10554_v52 = vpop.f32.mrf.mxu1  ;;  %v5066_v1 = vpop.f32.mrf.mxu0 }
 0x7ad   : > { %v13183_v31 = vadd.f32 %v11527_v7, %v5066_v1  ;;  %v5343_v37 = vsel %vm1019_vm2, %v13180_v32, -inf }
 0x7ae   : > { %v4919_v54 = vpop.f32.mrf.mxu1  ;;  %5344 = vmax.xlane.f32.xlu0 %v5343_v37  ;;  %v10572_v41 = vpop.f32.mrf.mxu0 }
 0x7af   : > { %v5352_v59 = vsel %vm1019_vm2, %v13183_v31, -inf }
 0x7b0   : > { %v10555_v38 = vpop.f32.mrf.mxu1  ;;  %5353 = vmax.xlane.f32.xlu1 %v5352_v59  ;;  %v5069_v15 = vpop.f32.mrf.mxu0 }
 0x7b2   : > { %v5016_v11 = vpop.f32.mrf.mxu1  ;;  %v10573_v34 = vpop.f32.mrf.mxu0 }
 0x7b3   : > { %v13190_v52 = vadd.f32 %v11528_v8, %v5016_v11  ;;  %v11530_v8 = vld [vmem:[%s12119_s3 + $0xb] ss:$0 sm:$0xff] }
 0x7b4   : > { %v10566_v7 = vpop.f32.mrf.mxu1  ;;  %v5166_v1 = vpop.f32.mrf.mxu0 }
 0x7b5   : > { %v13193_v49 = vadd.f32 %v11529_v46, %v5166_v1  ;;  %v5349_v37 = vsel %vm1019_vm2, %v13190_v52, -inf }
 0x7b6   : > { %v5019_v54 = vpop.f32.mrf.mxu1  ;;  %5350 = vmax.xlane.f32.xlu0 %v5349_v37  ;;  %v10584_v41 = vpop.f32.mrf.mxu0 }
 0x7b7   : > { %v5358_v59 = vsel %vm1019_vm2, %v13193_v49, -inf }
 0x7b8   : > { %v10567_v38 = vpop.f32.mrf.mxu1  ;;  %5359 = vmax.xlane.f32.xlu1 %v5358_v59  ;;  %v5169_v15 = vpop.f32.mrf.mxu0 }
 0x7ba   : > { %v5116_v11 = vpop.f32.mrf.mxu1  ;;  %v10585_v34 = vpop.f32.mrf.mxu0 }
 0x7bb   : > { %v13200_v7 = vadd.f32 %v11530_v8, %v5116_v11  ;;  %v11532_v8 = vld [vmem:[%s12119_s3 + $0xd] ss:$0 sm:$0xff] }
 0x7bc   : > { %v10578_v46 = vpop.f32.mrf.mxu1  ;;  %v5266_v1 = vpop.f32.mrf.mxu0 }
 0x7bd   : > { %v13203_v57 = vadd.f32 %v11531_v25, %v5266_v1  ;;  %v5355_v37 = vsel %vm1019_vm2, %v13200_v7, -inf }
 0x7be   : > { %v5119_v54 = vpop.f32.mrf.mxu1  ;;  %5356 = vmax.xlane.f32.xlu0 %v5355_v37  ;;  %v10596_v41 = vpop.f32.mrf.mxu0 }
 0x7bf   : > { %v5364_v59 = vsel %vm1019_vm2, %v13203_v57, -inf  ;;  %v11533_v41 = vld [vmem:[%s12119_s3 + $0xf] ss:$0 sm:$0xff] }
 0x7c0   : > { %v10579_v38 = vpop.f32.mrf.mxu1  ;;  %5365 = vmax.xlane.f32.xlu1 %v5364_v59  ;;  %v5269_v15 = vpop.f32.mrf.mxu0 }
 0x7c2   : > { %v5216_v11 = vpop.f32.mrf.mxu1  ;;  %v10597_v34 = vpop.f32.mrf.mxu0 }
 0x7c3   : > { %v13210_v46 = vadd.f32 %v11532_v8, %v5216_v11  ;;  %v13225_v11 = vpop.permute.xlu1 %5610 }
 0x7c4   : > { %v10590_v25 = vpop.f32.mrf.mxu1 }
 0x7c5   : > { %v5361_v1 = vsel %vm1019_vm2, %v13210_v46, -inf }
 0x7c6   : > { %v5219_v13 = vpop.f32.mrf.mxu1  ;;  %5362 = vmax.xlane.f32.xlu0 %v5361_v1 }
 0x7c7   : > { %v13223_v13 = vpop.permute.xlu0 %5658  ;;  %v13229_v8 = vpop.permute.xlu1 %5706 }
 0x7c8   : > { %v10591_v37 = vpop.f32.mrf.mxu1 }
 0x7ca   : > { %v5316_v54 = vpop.f32.mrf.mxu1 }
 0x7cb   : > { %v13215_v14 = vadd.f32 %v11533_v41, %v5316_v54  ;;  %v13227_v34 = vpop.permute.xlu0 %5754  ;;  %v13233_v25 = vpop.permute.xlu1 %5802 }
 0x7cc   : > { %v10602_v47 = vpop.f32.mrf.mxu1 }
 0x7cd   : > { %v5367_v59 = vsel %vm1019_vm2, %v13215_v14, -inf }
 0x7ce   : > { %v5319_v38 = vpop.f32.mrf.mxu1  ;;  %5368 = vmax.xlane.f32.xlu0 %v5367_v59 }
 0x7cf   : > { %v13231_v47 = vpop.permute.xlu0 %5850  ;;  %v13237_v37 = vpop.permute.xlu1 %5898 }
 0x7d0   : > { %v10603_v15 = vpop.f32.mrf.mxu1 }
 0x7d1   : > { %6138 = vrot.lane.b32.xlu1 %v11981_v35, %s11622_s4 }
 0x7d3   : > { %v13235_v1 = vpop.permute.xlu0 %5946  ;;  %v13240_v38 = vpop.permute.xlu1 %5994 }
 0x7d7   : > { %v13243_v30 = vpop.permute.xlu1 %6042 }
 0x7e4   : > { %6090 = vrot.lane.b32.xlu0 %v11973_v24, %s11622_s4 }
 0x811   : > { %v5324_v54 = vpop.xlane.xlu0 %5323 }
 0x812   : > { %v5370_v41 = vsub.f32 %v13136_v3, %v5324_v54 }
 0x814   : > { %v5386_v59 = vmul.f32 1.442695, %v5370_v41 }
 0x816   : > { %11278 = vpow2.f32 %v5386_v59 }
 0x819   : > { %v5330_v15 = vpop.xlane.xlu0 %5329 }
 0x81a   : > { %v5372_v55 = vsub.f32 %v13145_v40, %v5330_v15 }
 0x81c   : > { %v5390_v60 = vmul.f32 1.442695, %v5372_v55 }
 0x81e   : > { %11280 = vpow2.f32 %v5390_v60 }
 0x81f   : > { %v5327_v12 = vpop.xlane.xlu1 %5326 }
 0x820   : > { %v5371_v28 = vsub.f32 %v13150_v21, %v5327_v12 }
 0x822   : > { %v5388_v39 = vmul.f32 1.442695, %v5371_v28 }
 0x823   : > { %v13246_v4 = vpop.eup %11278  ;;  %v5336_v63 = vpop.xlane.xlu1 %5335 }
 0x824   : > { %11282 = vpow2.f32 %v5388_v39  ;;  %v5374_v3 = vsub.f32 %v13153_v29, %v5336_v63  ;;  %v5418_v54 = vsel %vm1019_vm2, %v13246_v4, 0.0 }
 0x825   : > { %5419 = vadd.xlane.f32.xlu1 %v5418_v54 }
 0x826   : > { %v5394_v41 = vmul.f32 1.442695, %v5374_v3 }
 0x827   : > { %v5333_v40 = vpop.xlane.xlu0 %5332 }
 0x828   : > { %11284 = vpow2.f32 %v5394_v41  ;;  %v5373_v55 = vsub.f32 %v13160_v51, %v5333_v40 }
 0x829   : > { %v5342_v60 = vpop.xlane.xlu1 %5341 }
 0x82a   : > { %v5392_v59 = vmul.f32 1.442695, %v5373_v55  ;;  %v5376_v21 = vsub.f32 %v13163_v62, %v5342_v60 }
 0x82b   : > { %v13253_v28 = vpop.eup %11280 }
 0x82c   : > { %11286 = vpow2.f32 %v5392_v59  ;;  %v5398_v12 = vmul.f32 1.442695, %v5376_v21  ;;  %v5424_v63 = vsel %vm1019_vm2, %v13253_v28, 0.0 }
 0x82d   : > { %5425 = vadd.xlane.f32.xlu1 %v5424_v63 }
 0x82e   : > { %11288 = vpow2.f32 %v5398_v12 }
 0x82f   : > { %v5339_v39 = vpop.xlane.xlu0 %5338 }
 0x830   : > { %v5375_v29 = vsub.f32 %v13170_v10, %v5339_v39 }
 0x831   : > { %v13258_v15 = vpop.eup %11282  ;;  %v5348_v3 = vpop.xlane.xlu1 %5347 }
 0x832   : > { %v5396_v51 = vmul.f32 1.442695, %v5375_v29  ;;  %v5378_v54 = vsub.f32 %v13173_v18, %v5348_v3  ;;  %v5421_v62 = vsel %vm1019_vm2, %v13258_v15, 0.0 }
 0x833   : > { %5422 = vadd.xlane.f32.xlu0 %v5421_v62 }
 0x834   : > { %11290 = vpow2.f32 %v5396_v51  ;;  %v5402_v41 = vmul.f32 1.442695, %v5378_v54 }
 0x835   : > { %v13263_v40 = vpop.eup %11284 }
 0x836   : > { %11292 = vpow2.f32 %v5402_v41  ;;  %v5430_v55 = vsel %vm1019_vm2, %v13263_v40, 0.0 }
 0x837   : > { %5431 = vadd.xlane.f32.xlu1 %v5430_v55  ;;  %v5345_v10 = vpop.xlane.xlu0 %5344 }
 0x838   : > { %v5377_v60 = vsub.f32 %v13180_v32, %v5345_v10 }
 0x839   : > { %v13268_v59 = vpop.eup %11286  ;;  %v5354_v21 = vpop.xlane.xlu1 %5353 }
 0x83a   : > { %v5400_v18 = vmul.f32 1.442695, %v5377_v60  ;;  %v5380_v12 = vsub.f32 %v13183_v31, %v5354_v21  ;;  %v5427_v63 = vsel %vm1019_vm2, %v13268_v59, 0.0 }
 0x83b   : > { %v13273_v39 = vpop.eup %11288  ;;  %5428 = vadd.xlane.f32.xlu0 %v5427_v63 }
 0x83c   : > { %11294 = vpow2.f32 %v5400_v18  ;;  %v5406_v29 = vmul.f32 1.442695, %v5380_v12  ;;  %v5436_v3 = vsel %vm1019_vm2, %v13273_v39, 0.0 }
 0x83d   : > { %5437 = vadd.xlane.f32.xlu1 %v5436_v3 }
 0x83e   : > { %11296 = vpow2.f32 %v5406_v29 }
 0x83f   : > { %v5351_v32 = vpop.xlane.xlu0 %5350 }
 0x840   : > { %v5379_v51 = vsub.f32 %v13190_v52, %v5351_v32 }
 0x841   : > { %v13278_v54 = vpop.eup %11290  ;;  %v5360_v62 = vpop.xlane.xlu1 %5359 }
 0x842   : > { %v5404_v31 = vmul.f32 1.442695, %v5379_v51  ;;  %v5382_v41 = vsub.f32 %v13193_v49, %v5360_v62  ;;  %v5433_v55 = vsel %vm1019_vm2, %v13278_v54, 0.0 }
 0x843   : > { %v13283_v10 = vpop.eup %11292  ;;  %5434 = vadd.xlane.f32.xlu0 %v5433_v55 }
 0x844   : > { %11298 = vpow2.f32 %v5404_v31  ;;  %v5410_v60 = vmul.f32 1.442695, %v5382_v41  ;;  %v5442_v21 = vsel %vm1019_vm2, %v13283_v10, 0.0 }
 0x845   : > { %5443 = vadd.xlane.f32.xlu1 %v5442_v21 }
 0x846   : > { %11300 = vpow2.f32 %v5410_v60 }
 0x847   : > { %v5357_v52 = vpop.xlane.xlu0 %5356 }
 0x848   : > { %v5381_v18 = vsub.f32 %v13200_v7, %v5357_v52 }
 0x849   : > { %v13288_v12 = vpop.eup %11294 }
 0x84a   : > { %v5408_v63 = vmul.f32 1.442695, %v5381_v18  ;;  %v5439_v49 = vsel %vm1019_vm2, %v13288_v12, 0.0  ;;  %v5366_v18 = vpop.xlane.xlu1 %5365 }
 0x84b   : > { %v13292_v29 = vpop.eup %11296  ;;  %5440 = vadd.xlane.f32.xlu0 %v5439_v49 }
 0x84c   : > { %11302 = vpow2.f32 %v5408_v63  ;;  %v5448_v3 = vsel %vm1019_vm2, %v13292_v29, 0.0  ;;  %v5384_v63 = vsub.f32 %v13203_v57, %v5366_v18 }
 0x84d   : > { %5449 = vadd.xlane.f32.xlu1 %v5448_v3 }
 0x84e   : > { %v5414_v49 = vmul.f32 1.442695, %v5384_v63 }
 0x84f   : > { %v5363_v32 = vpop.xlane.xlu0 %5362 }
 0x850   : > { %v5383_v51 = vsub.f32 %v13210_v46, %v5363_v32 }
 0x851   : > { %v13297_v62 = vpop.eup %11298 }
 0x852   : > { %v5412_v7 = vmul.f32 1.442695, %v5383_v51  ;;  %v5445_v31 = vsel %vm1019_vm2, %v13297_v62, 0.0 }
 0x853   : > { %v13301_v41 = vpop.eup %11300  ;;  %5446 = vadd.xlane.f32.xlu0 %v5445_v31 }
 0x854   : > { %11304 = vpow2.f32 %v5412_v7  ;;  %v5454_v55 = vsel %vm1019_vm2, %v13301_v41, 0.0 }
 0x855   : > { %5455 = vadd.xlane.f32.xlu1 %v5454_v55  ;;  %11306 = vpow2.f32 %v5414_v49 }
 0x857   : > { %v5369_v3 = vpop.xlane.xlu0 %5368 }
 0x858   : > { %v5385_v32 = vsub.f32 %v13215_v14, %v5369_v3  ;;  %v13335_v14 = vpop.permute.xlu1 %6138 }
 0x859   : > { %v13305_v60 = vpop.eup %11302 }
 0x85a   : > { %v5451_v21 = vsel %vm1019_vm2, %v13305_v60, 0.0  ;;  %v5416_v51 = vmul.f32 1.442695, %v5385_v32 }
 0x85b   : > { %5452 = vadd.xlane.f32.xlu0 %v5451_v21  ;;  %v13351_v18 = vpop.permute.xlu0 %6090 }
 0x85c   : > { %11308 = vpow2.f32 %v5416_v51 }
 0x861   : > { %v13309_v46 = vpop.eup %11304 }
 0x862   : > { %v5457_v52 = vsel %vm1019_vm2, %v13309_v46, 0.0  ;;  %v13319_v7 = vpop.eup %11306 }
 0x863   : > { %5458 = vadd.xlane.f32.xlu0 %v5457_v52  ;;  %v5460_v31 = vsel %vm1019_vm2, %v13319_v7, 0.0 }
 0x866   : > { %6234 = vrot.lane.b32.xlu1 %v11989_v33, %s11622_s4 }
 0x869   : > { %v13323_v55 = vpop.eup %11308 }
 0x86a   : > { %v5463_v57 = vsel %vm1019_vm2, %v13323_v55, 0.0 }
 0x879   : > { %6186 = vrot.lane.b32.xlu0 %v11983_v19, %s11622_s4  ;;  %s9805_s4 = sshll.u32 %s11743_s28, 9 }
 0x88a   : > { %5461 = vadd.xlane.f32.xlu1 %v5460_v31  ;;  %v5616_v31 = vsel %vm1998_vm3, %v13225_v11, 0 }
 0x898   : > { %5464 = vadd.xlane.f32.xlu0 %v5463_v57 }
 0x89b   : > { %6334 = vrot.lane.b32.xlu1 %v11935_v50, %s11623_s30 }
 0x89f   : > { %6332 = vrot.lane.b32.xlu1 %v11935_v50, %s11624_s21 }
 0x8a3   : > { %6434 = vrot.lane.b32.xlu1 %v11941_v56, %s11623_s30 }
 0x8a7   : > { %6432 = vrot.lane.b32.xlu1 %v11941_v56, %s11624_s21 }
 0x8ab   : > { %6534 = vrot.lane.b32.xlu1 %v11951_v2, %s11623_s30 }
 0x8ae   : > { %v5420_v21 = vpop.xlane.xlu1 %5419  ;;  %6284 = vrot.lane.b32.xlu0 %v11929_v43, %s11623_s30 }
 0x8af   : > { %11310 = vrcp.f32 %v5420_v21  ;;  %6532 = vrot.lane.b32.xlu1 %v11951_v2, %s11624_s21 }
 0x8b2   : > { %6282 = vrot.lane.b32.xlu0 %v11929_v43, %s11624_s21 }
 0x8b3   : > { %6634 = vrot.lane.b32.xlu1 %v11959_v9, %s11623_s30 }
 0x8b6   : > { %v5426_v52 = vpop.xlane.xlu1 %5425  ;;  %6384 = vrot.lane.b32.xlu0 %v11933_v48, %s11623_s30 }
 0x8b7   : > { %11312 = vrcp.f32 %v5426_v52  ;;  %6632 = vrot.lane.b32.xlu1 %v11959_v9, %s11624_s21 }
 0x8ba   : > { %6382 = vrot.lane.b32.xlu0 %v11933_v48, %s11624_s21 }
 0x8bb   : > { %6734 = vrot.lane.b32.xlu1 %v11965_v16, %s11623_s30 }
 0x8bc   : > { %v11311_v63 = vpop.eup %11310  ;;  %v5423_v49 = vpop.xlane.xlu0 %5422 }
 0x8bd   : > { %v5482_v3 = vmul.f32 %v11311_v63, %v13246_v4  ;;  %11314 = vrcp.f32 %v5423_v49  ;;  %v5712_v63 = vsel %vm1998_vm3, %v13229_v8, 0 }
 0x8be   : > { %6484 = vrot.lane.b32.xlu0 %v11943_v58, %s11623_s30 }
 0x8bf   : > { %v5498_v32 = vpack.c.bf16 %v5482_v3, %v5482_v3  ;;  %6732 = vrot.lane.b32.xlu1 %v11965_v16, %s11624_s21 }
 0x8c0   : > { %v5432_v51 = vpop.xlane.xlu1 %5431 }
 0x8c1   : > { %11316 = vrcp.f32 %v5432_v51  ;;  %10607 = vmatmul.mubr.msk.bf16.vlgmr.msra.gmra.mxu0 %vm1019_vm2, %v5498_v32 }
 0x8c2   : > { %10617 = vmatpush3.bf16.msra.mxu0 %v5616_v31  ;;  %6482 = vrot.lane.b32.xlu0 %v11943_v58, %s11624_s21  ;;  %v5664_v31 = vsel %vm1998_vm3, %v13223_v13, 0  ;;  %v5808_v13 = vsel %vm1998_vm3, %v13233_v25, 0 }
 0x8c3   : > { %6834 = vrot.lane.b32.xlu1 %v11975_v27, %s11623_s30  ;;  %10618 = vmatprep.mubr.msk.bf16.mxu0 %vm11614_vm1, %v14947_v42 }
 0x8c4   : > { %v11313_v4 = vpop.eup %11312  ;;  %v5429_v57 = vpop.xlane.xlu0 %5428  ;;  %10628 = vmatprep.subr.bf16.mxu0 %v14947_v42 }
 0x8c5   : > { %v5484_v21 = vmul.f32 %v11313_v4, %v13253_v28  ;;  %11318 = vrcp.f32 %v5429_v57 }
 0x8c6   : > { %v5438_v11 = vpop.xlane.xlu1 %5437  ;;  %6584 = vrot.lane.b32.xlu0 %v11949_v0, %s11623_s30 }
 0x8c7   : > { %v5500_v52 = vpack.c.bf16 %v5484_v21, %v5484_v21  ;;  %11320 = vrcp.f32 %v5438_v11  ;;  %6832 = vrot.lane.b32.xlu1 %v11975_v27, %s11624_s21 }
 0x8c9   : > { %10619 = vmatmul.mubr.msk.bf16.vlgmr.msra.gmra.mxu0 %vm1019_vm2, %v5500_v52 }
 0x8ca   : > { %v11315_v49 = vpop.eup %11314  ;;  %10629 = vmatpush3.bf16.msra.mxu0 %v5712_v63  ;;  %6582 = vrot.lane.b32.xlu0 %v11949_v0, %s11624_s21 }
 0x8cb   : > { %v5483_v28 = vmul.f32 %v11315_v49, %v13258_v15  ;;  %6934 = vrot.lane.b32.xlu1 %v11981_v35, %s11623_s30  ;;  %10630 = vmatprep.mubr.msk.bf16.mxu0 %vm11614_vm1, %v14947_v42 }
 0x8cc   : > { %v5435_v3 = vpop.xlane.xlu0 %5434  ;;  %10640 = vmatprep.subr.bf16.mxu0 %v14947_v42 }
 0x8cd   : > { %v5499_v32 = vpack.c.bf16 %v5483_v28, %v5483_v28  ;;  %11322 = vrcp.f32 %v5435_v3 }
 0x8ce   : > { %v11317_v8 = vpop.eup %11316  ;;  %v5444_v51 = vpop.xlane.xlu1 %5443  ;;  %6684 = vrot.lane.b32.xlu0 %v11957_v6, %s11623_s30 }
 0x8cf   : > { %v5486_v15 = vmul.f32 %v11317_v8, %v13263_v40  ;;  %11324 = vrcp.f32 %v5444_v51  ;;  %6932 = vrot.lane.b32.xlu1 %v11981_v35, %s11624_s21  ;;  %10613 = vmatmul.mubr.msk.bf16.vlgmr.msra.gmra.mxu1 %vm1019_vm2, %v5499_v32 }
 0x8d0   : > { %10623 = vmatpush3.bf16.msra.mxu1 %v5664_v31  ;;  %10624 = vmatprep.mubr.msk.bf16.mxu1 %vm11614_vm1, %v14947_v42 }
 0x8d1   : > { %v5502_v4 = vpack.c.bf16 %v5486_v15, %v5486_v15  ;;  %10634 = vmatprep.subr.bf16.mxu1 %v14947_v42 }
 0x8d2   : > { %v11319_v57 = vpop.eup %11318  ;;  %6682 = vrot.lane.b32.xlu0 %v11957_v6, %s11624_s21 }
 0x8d3   : > { %v5485_v40 = vmul.f32 %v11319_v57, %v13268_v59  ;;  %7034 = vrot.lane.b32.xlu1 %v11989_v33, %s11623_s30  ;;  %10631 = vmatmul.mubr.msk.bf16.vlgmr.msra.gmra.mxu0 %vm1019_vm2, %v5502_v4  ;;  %v5760_v59 = vsel %vm1998_vm3, %v13227_v34, 0  ;;  %v5904_v34 = vsel %vm1998_vm3, %v13237_v37, 0 }
 0x8d4   : > { %v11321_v21 = vpop.eup %11320  ;;  %10641 = vmatpush3.bf16.msra.mxu0 %v5808_v13  ;;  %v5441_v11 = vpop.xlane.xlu0 %5440  ;;  %10642 = vmatprep.mubr.msk.bf16.mxu0 %vm11614_vm1, %v14947_v42 }
 0x8d5   : > { %v5501_v52 = vpack.c.bf16 %v5485_v40, %v5485_v40  ;;  %v5488_v63 = vmul.f32 %v11321_v21, %v13273_v39  ;;  %11326 = vrcp.f32 %v5441_v11  ;;  %10652 = vmatprep.subr.bf16.mxu0 %v14947_v42 }
 0x8d6   : > { %v5450_v25 = vpop.xlane.xlu1 %5449  ;;  %6784 = vrot.lane.b32.xlu0 %v11967_v17, %s11623_s30 }
 0x8d7   : > { %11328 = vrcp.f32 %v5450_v25  ;;  %7032 = vrot.lane.b32.xlu1 %v11989_v33, %s11624_s21  ;;  %10625 = vmatmul.mubr.msk.bf16.vlgmr.msra.gmra.mxu1 %vm1019_vm2, %v5501_v52  ;;  %v5504_v39 = vpack.c.bf16 %v5488_v63, %v5488_v63  ;;  %v6144_v52 = vsel %vm1998_vm3, %v13335_v14, 0 }
 0x8d8   : > { %10635 = vmatpush3.bf16.msra.mxu1 %v5760_v59  ;;  %10636 = vmatprep.mubr.msk.bf16.mxu1 %vm11614_vm1, %v14947_v42 }
 0x8d9   : > { %10646 = vmatprep.subr.bf16.mxu1 %v14947_v42 }
 0x8da   : > { %v11323_v49 = vpop.eup %11322  ;;  %6782 = vrot.lane.b32.xlu0 %v11967_v17, %s11624_s21 }
 0x8db   : > { %v5487_v28 = vmul.f32 %v11323_v49, %v13278_v54  ;;  %7274 = vrot.lane.b32.xlu1 %v11929_v43, %s11625_s23  ;;  %10643 = vmatmul.mubr.msk.bf16.vlgmr.msra.gmra.mxu0 %vm1019_vm2, %v5504_v39  ;;  %v5856_v43 = vsel %vm1998_vm3, %v13231_v47, 0  ;;  %v6000_v47 = vsel %vm1998_vm3, %v13240_v38, 0 }
 0x8dc   : > { %v11325_v3 = vpop.eup %11324  ;;  %10653 = vmatpush3.bf16.msra.mxu0 %v5904_v34  ;;  %v5447_v32 = vpop.xlane.xlu0 %5446  ;;  %10654 = vmatprep.mubr.msk.bf16.mxu0 %vm11614_vm1, %v14947_v42 }
 0x8dd   : > { %v5503_v8 = vpack.c.bf16 %v5487_v28, %v5487_v28  ;;  %v5490_v51 = vmul.f32 %v11325_v3, %v13283_v10  ;;  %11330 = vrcp.f32 %v5447_v32  ;;  %10664 = vmatprep.subr.bf16.mxu0 %v14947_v42 }
 0x8de   : > { %v5456_v37 = vpop.xlane.xlu1 %5455  ;;  %6884 = vrot.lane.b32.xlu0 %v11973_v24, %s11623_s30 }
 0x8df   : > { %11332 = vrcp.f32 %v5456_v37  ;;  %7370 = vrot.lane.b32.xlu1 %v11933_v48, %s11625_s23  ;;  %10637 = vmatmul.mubr.msk.bf16.vlgmr.msra.gmra.mxu1 %vm1019_vm2, %v5503_v8  ;;  %v5506_v54 = vpack.c.bf16 %v5490_v51, %v5490_v51 }
 0x8e0   : > { %10647 = vmatpush3.bf16.msra.mxu1 %v5856_v43  ;;  %10648 = vmatprep.mubr.msk.bf16.mxu1 %vm11614_vm1, %v14947_v42 }
 0x8e1   : > { %10658 = vmatprep.subr.bf16.mxu1 %v14947_v42 }
 0x8e2   : > { %v11327_v10 = vpop.eup %11326  ;;  %6882 = vrot.lane.b32.xlu0 %v11973_v24, %s11624_s21  ;;  %v6235_v63 = vpop.permute.xlu1 %6234 }
 0x8e3   : > { %v5489_v31 = vmul.f32 %v11327_v10, %v13288_v12  ;;  %7466 = vrot.lane.b32.xlu1 %v11943_v58, %s11625_s23  ;;  %10655 = vmatmul.mubr.msk.bf16.vlgmr.msra.gmra.mxu0 %vm1019_vm2, %v5506_v54  ;;  %v5952_v58 = vsel %vm1998_vm3, %v13235_v1, 0 }
 0x8e4   : > { %v11329_v48 = vpop.eup %11328  ;;  %10665 = vmatpush3.bf16.msra.mxu0 %v6000_v47  ;;  %v5453_v15 = vpop.xlane.xlu0 %5452  ;;  %10666 = vmatprep.mubr.msk.bf16.mxu0 %vm11614_vm1, %v14947_v42 }
 0x8e5   : > { %v5505_v4 = vpack.c.bf16 %v5489_v31, %v5489_v31  ;;  %v5492_v57 = vmul.f32 %v11329_v48, %v13292_v29  ;;  %11334 = vrcp.f32 %v5453_v15  ;;  %10676 = vmatprep.subr.bf16.mxu0 %v14947_v42  ;;  %v6096_v29 = vsel %vm1998_vm3, %v13351_v18, 0 }
 0x8e6   : > { %6984 = vrot.lane.b32.xlu0 %v11983_v19, %s11623_s30 }
 0x8e7   : > { %7562 = vrot.lane.b32.xlu1 %v11949_v0, %s11625_s23  ;;  %10649 = vmatmul.mubr.msk.bf16.vlgmr.msra.gmra.mxu1 %vm1019_vm2, %v5505_v4  ;;  %v5508_v38 = vpack.c.bf16 %v5492_v57, %v5492_v57 }
 0x8e8   : > { %10659 = vmatpush3.bf16.msra.mxu1 %v5952_v58  ;;  %10660 = vmatprep.mubr.msk.bf16.mxu1 %vm11614_vm1, %v14947_v42 }
 0x8e9   : > { %10670 = vmatprep.subr.bf16.mxu1 %v14947_v42 }
 0x8ea   : > { %v11331_v12 = vpop.eup %11330  ;;  %6982 = vrot.lane.b32.xlu0 %v11983_v19, %s11624_s21  ;;  %s15026_s21 = smov 64  }
 0x8eb   : > { %v5491_v1 = vmul.f32 %v11331_v12, %v13297_v62  ;;  %7658 = vrot.lane.b32.xlu1 %v11957_v6, %s11625_s23  ;;  %10667 = vmatmul.mubr.msk.bf16.vlgmr.msra.gmra.mxu0 %vm1019_vm2, %v5508_v38  ;;  %v6048_v6 = vsel %vm1998_vm3, %v13243_v30, 0 }
 0x8ec   : > { %v11333_v0 = vpop.eup %11332  ;;  %10677 = vmatpush3.bf16.msra.mxu0 %v6096_v29  ;;  %v5459_v13 = vpop.xlane.xlu0 %5458  ;;  %10678 = vmatprep.mubr.msk.bf16.mxu0 %vm11614_vm1, %v14947_v42 }
 0x8ed   : > { %v5507_v40 = vpack.c.bf16 %v5491_v1, %v5491_v1  ;;  %v5494_v21 = vmul.f32 %v11333_v0, %v13301_v41  ;;  %11336 = vrcp.f32 %v5459_v13  ;;  %10688 = vmatprep.subr.bf16.mxu0 %v14947_v42 }
 0x8ee   : > { %7322 = vrot.lane.b32.xlu0 %v11935_v50, %s11625_s23 }
 0x8ef   : > { %10661 = vmatmul.mubr.msk.bf16.vlgmr.msra.gmra.mxu1 %vm1019_vm2, %v5507_v40  ;;  %v5510_v18 = vpack.c.bf16 %v5494_v21, %v5494_v21 }
 0x8f0   : > { %10671 = vmatpush3.bf16.msra.mxu1 %v6048_v6  ;;  %v6187_v62 = vpop.permute.xlu0 %6186  ;;  %10672 = vmatprep.mubr.msk.bf16.mxu1 %vm11614_vm1, %v14947_v42 }
 0x8f1   : > { %v6192_v11 = vsel %vm1998_vm3, %v6187_v62, 0  ;;  %10682 = vmatprep.subr.bf16.mxu1 %v14947_v42 }
 0x8f2   : > { %v11335_v41 = vpop.eup %11334  ;;  %7418 = vrot.lane.b32.xlu0 %v11941_v56, %s11625_s23 }
 0x8f3   : > { %v5493_v50 = vmul.f32 %v11335_v41, %v13305_v60  ;;  %10679 = vmatmul.mubr.msk.bf16.vlgmr.msra.gmra.mxu0 %vm1019_vm2, %v5510_v18 }
 0x8f4   : > { %10689 = vmatpush3.bf16.msra.mxu0 %v6192_v11  ;;  %10690 = vmatprep.mubr.msk.bf16.mxu0 %vm11614_vm1, %v14947_v42 }
 0x8f5   : > { %v5509_v30 = vpack.c.bf16 %v5493_v50, %v5493_v50  ;;  %10700 = vmatprep.subr.bf16.mxu0 %v14947_v42 }
 0x8f6   : > { %7514 = vrot.lane.b32.xlu0 %v11951_v2, %s11625_s23  ;;  %v6240_v2 = vsel %vm1998_vm3, %v6235_v63, 0 }
 0x8f7   : > { %10673 = vmatmul.mubr.msk.bf16.vlgmr.msra.gmra.mxu1 %vm1019_vm2, %v5509_v30 }
 0x8f8   : > { %10683 = vmatpush3.bf16.msra.mxu1 %v6144_v52  ;;  %10684 = vmatprep.mubr.msk.bf16.mxu1 %vm11614_vm1, %v14947_v42 }
 0x8f9   : > { %10694 = vmatprep.subr.bf16.mxu1 %v14947_v42 }
 0x8fa   : > { %v11337_v56 = vpop.eup %11336  ;;  %7610 = vrot.lane.b32.xlu0 %v11959_v9, %s11625_s23 }
 0x8fb   : > { %v5495_v60 = vmul.f32 %v11337_v56, %v13309_v46 }
 0x8fd   : > { %v5511_v25 = vpack.c.bf16 %v5495_v60, %v5495_v60 }
 0x8ff   : > { %10685 = vmatmul.mubr.msk.bf16.vlgmr.msra.gmra.mxu1 %vm1019_vm2, %v5511_v25 }
 0x900   : > { %10695 = vmatpush3.bf16.msra.mxu1 %v6240_v2  ;;  %10696 = vmatprep.mubr.msk.bf16.mxu1 %vm11614_vm1, %v14947_v42 }
 0x901   : > { %10706 = vmatprep.subr.bf16.mxu1 %v14947_v42 }
 0x913   : > { %v5462_v14 = vpop.xlane.xlu1 %5461 }
 0x914   : > { %11338 = vrcp.f32 %v5462_v14 }
 0x917   : > { %v6335_v59 = vpop.permute.xlu1 %6334 }
 0x918   : > { %v6340_v57 = vsel %vm1019_vm2, %v6335_v59, 0 }
 0x91b   : > { %v6333_v39 = vpop.permute.xlu1 %6332 }
 0x91f   : > { %v6435_v49 = vpop.permute.xlu1 %6434 }
 0x920   : > { %v6440_v1 = vsel %vm1019_vm2, %v6435_v49, 0 }
 0x921   : > { %v11339_v9 = vpop.eup %11338  ;;  %v5465_v34 = vpop.xlane.xlu0 %5464 }
 0x922   : > { %v5496_v46 = vmul.f32 %v11339_v9, %v13319_v7  ;;  %11340 = vrcp.f32 %v5465_v34 }
 0x923   : > { %v6433_v28 = vpop.permute.xlu1 %6432 }
 0x924   : > { %v5512_v3 = vpack.c.bf16 %v5496_v46, %v5496_v46 }
 0x925   : > { %v6285_v32 = vpop.permute.xlu0 %6284 }
 0x926   : > { %v6290_v8 = vsel %vm1019_vm2, %v6285_v32, 0  ;;  %10691 = vmatmul.mubr.msk.bf16.vlgmr.msra.gmra.mxu0 %vm1019_vm2, %v5512_v3 }
 0x927   : > { %v6535_v51 = vpop.permute.xlu1 %6534  ;;  %10701 = vmatpush3.bf16.xpose.msra.mxu0 %v6290_v8  ;;  %10702 = vmatprep.mubr.msk.bf16.mxu0 %vm11614_vm1, %v14947_v42 }
 0x928   : > { %10712 = vmatprep.subr.bf16.mxu0 %v14947_v42  ;;  %v6540_v6 = vsel %vm1019_vm2, %v6535_v51, 0 }
 0x929   : > { %v6283_v37 = vpop.permute.xlu0 %6282 }
 0x92b   : > { %v6533_v43 = vpop.permute.xlu1 %6532 }
 0x92d   : > { %v6385_v54 = vpop.permute.xlu0 %6384 }
 0x92e   : > { %v6390_v7 = vsel %vm1019_vm2, %v6385_v54, 0  ;;  %10703 = vmatmul.mubr.msk.bf16.vlgmr.msra.gmra.mxu0 %vm1019_vm2, %v6283_v37 }
 0x92f   : > { %v11341_v10 = vpop.eup %11340  ;;  %v6635_v47 = vpop.permute.xlu1 %6634  ;;  %10713 = vmatpush3.bf16.xpose.msra.mxu0 %v6390_v7  ;;  %10714 = vmatprep.mubr.msk.bf16.mxu0 %vm11614_vm1, %v14947_v42 }
 0x930   : > { %v5497_v31 = vmul.f32 %v11341_v10, %v13323_v55  ;;  %10724 = vmatprep.subr.bf16.mxu0 %v14947_v42  ;;  %v6640_v30 = vsel %vm1019_vm2, %v6635_v47, 0 }
 0x931   : > { %v6383_v48 = vpop.permute.xlu0 %6382 }
 0x932   : > { %v5513_v15 = vpack.c.bf16 %v5497_v31, %v5497_v31 }
 0x933   : > { %v6633_v4 = vpop.permute.xlu1 %6632 }
 0x934   : > { %10697 = vmatmul.mubr.msk.bf16.vlgmr.msra.gmra.mxu1 %vm1019_vm2, %v5513_v15 }
 0x935   : > { %10707 = vmatpush3.bf16.xpose.msra.mxu1 %v6340_v57  ;;  %v6485_v58 = vpop.permute.xlu0 %6484  ;;  %10708 = vmatprep.mubr.msk.bf16.mxu1 %vm11614_vm1, %v14947_v42 }
 0x936   : > { %v6490_v38 = vsel %vm1019_vm2, %v6485_v58, 0  ;;  %10715 = vmatmul.mubr.msk.bf16.vlgmr.msra.gmra.mxu0 %vm1019_vm2, %v6383_v48  ;;  %10718 = vmatprep.subr.bf16.mxu1 %v14947_v42 }
 0x937   : > { %v6735_v55 = vpop.permute.xlu1 %6734  ;;  %10725 = vmatpush3.bf16.xpose.msra.mxu0 %v6490_v38  ;;  %10726 = vmatprep.mubr.msk.bf16.mxu0 %vm11614_vm1, %v14947_v42 }
 0x938   : > { %10736 = vmatprep.subr.bf16.mxu0 %v14947_v42  ;;  %v6740_v25 = vsel %vm1019_vm2, %v6735_v55, 0 }
 0x939   : > { %v6483_v12 = vpop.permute.xlu0 %6482 }
 0x93b   : > { %v6733_v29 = vpop.permute.xlu1 %6732 }
 0x93c   : > { %10709 = vmatmul.mubr.msk.bf16.vlgmr.msra.gmra.mxu1 %vm1019_vm2, %v6333_v39 }
 0x93d   : > { %10719 = vmatpush3.bf16.xpose.msra.mxu1 %v6440_v1  ;;  %v6585_v0 = vpop.permute.xlu0 %6584  ;;  %10720 = vmatprep.mubr.msk.bf16.mxu1 %vm11614_vm1, %v14947_v42 }
 0x93e   : > { %v6590_v13 = vsel %vm1019_vm2, %v6585_v0, 0  ;;  %10727 = vmatmul.mubr.msk.bf16.vlgmr.msra.gmra.mxu0 %vm1019_vm2, %v6483_v12  ;;  %10730 = vmatprep.subr.bf16.mxu1 %v14947_v42 }
 0x93f   : > { %v6835_v40 = vpop.permute.xlu1 %6834  ;;  %10737 = vmatpush3.bf16.xpose.msra.mxu0 %v6590_v13  ;;  %10738 = vmatprep.mubr.msk.bf16.mxu0 %vm11614_vm1, %v14947_v42 }
 0x940   : > { %10748 = vmatprep.subr.bf16.mxu0 %v14947_v42  ;;  %v6840_v49 = vsel %vm1019_vm2, %v6835_v40, 0 }
 0x941   : > { %v6583_v21 = vpop.permute.xlu0 %6582 }
 0x943   : > { %v6833_v62 = vpop.permute.xlu1 %6832 }
 0x944   : > { %10721 = vmatmul.mubr.msk.bf16.vlgmr.msra.gmra.mxu1 %vm1019_vm2, %v6433_v28 }
 0x945   : > { %10731 = vmatpush3.bf16.xpose.msra.mxu1 %v6540_v6  ;;  %v6685_v18 = vpop.permute.xlu0 %6684  ;;  %10732 = vmatprep.mubr.msk.bf16.mxu1 %vm11614_vm1, %v14947_v42 }
 0x946   : > { %v6690_v11 = vsel %vm1019_vm2, %v6685_v18, 0  ;;  %10739 = vmatmul.mubr.msk.bf16.vlgmr.msra.gmra.mxu0 %vm1019_vm2, %v6583_v21  ;;  %10742 = vmatprep.subr.bf16.mxu1 %v14947_v42 }
 0x947   : > { %10749 = vmatpush3.bf16.xpose.msra.mxu0 %v6690_v11  ;;  %10750 = vmatprep.mubr.msk.bf16.mxu0 %vm11614_vm1, %v14947_v42  ;;  %v6935_v50 = vpop.permute.xlu1 %6934 }
 0x948   : > { %10760 = vmatprep.subr.bf16.mxu0 %v14947_v42  ;;  %v6940_v3 = vsel %vm1019_vm2, %v6935_v50, 0 }
 0x949   : > { %v6683_v41 = vpop.permute.xlu0 %6682 }
 0x94b   : > { %v6933_v60 = vpop.permute.xlu1 %6932 }
 0x94c   : > { %10733 = vmatmul.mubr.msk.bf16.vlgmr.msra.gmra.mxu1 %vm1019_vm2, %v6533_v43 }
 0x94d   : > { %10743 = vmatpush3.bf16.xpose.msra.mxu1 %v6640_v30  ;;  %v6785_v52 = vpop.permute.xlu0 %6784  ;;  %10744 = vmatprep.mubr.msk.bf16.mxu1 %vm11614_vm1, %v14947_v42 }
 0x94e   : > { %v6790_v56 = vsel %vm1019_vm2, %v6785_v52, 0  ;;  %10751 = vmatmul.mubr.msk.bf16.vlgmr.msra.gmra.mxu0 %vm1019_vm2, %v6683_v41  ;;  %10754 = vmatprep.subr.bf16.mxu1 %v14947_v42 }
 0x94f   : > { %10761 = vmatpush3.bf16.xpose.msra.mxu0 %v6790_v56  ;;  %10762 = vmatprep.mubr.msk.bf16.mxu0 %vm11614_vm1, %v14947_v42  ;;  %v7035_v59 = vpop.permute.xlu1 %7034 }
 0x950   : > { %10772 = vmatprep.subr.bf16.mxu0 %v14947_v42  ;;  %v7040_v51 = vsel %vm1019_vm2, %v7035_v59, 0 }
 0x951   : > { %v6783_v63 = vpop.permute.xlu0 %6782 }
 0x953   : > { %v7033_v9 = vpop.permute.xlu1 %7032 }
 0x954   : > { %10745 = vmatmul.mubr.msk.bf16.vlgmr.msra.gmra.mxu1 %vm1019_vm2, %v6633_v4 }
 0x955   : > { %10755 = vmatpush3.bf16.xpose.msra.mxu1 %v6740_v25  ;;  %v6885_v2 = vpop.permute.xlu0 %6884  ;;  %10756 = vmatprep.mubr.msk.bf16.mxu1 %vm11614_vm1, %v14947_v42 }
 0x956   : > { %v6890_v14 = vsel %vm1019_vm2, %v6885_v2, 0  ;;  %10763 = vmatmul.mubr.msk.bf16.vlgmr.msra.gmra.mxu0 %vm1019_vm2, %v6783_v63  ;;  %10766 = vmatprep.subr.bf16.mxu1 %v14947_v42 }
 0x957   : > { %10773 = vmatpush3.bf16.xpose.msra.mxu0 %v6890_v14  ;;  %10774 = vmatprep.mubr.msk.bf16.mxu0 %vm11614_vm1, %v14947_v42  ;;  %v7275_v28 = vpop.permute.xlu1 %7274 }
 0x958   : > { %10784 = vmatprep.subr.bf16.mxu0 %v14947_v42  ;;  %v7280_v8 = vsel %vm1998_vm3, %v7275_v28, 0 }
 0x959   : > { %v6883_v39 = vpop.permute.xlu0 %6882 }
 0x95c   : > { %10757 = vmatmul.mubr.msk.bf16.vlgmr.msra.gmra.mxu1 %vm1019_vm2, %v6733_v29 }
 0x95d   : > { %10767 = vmatpush3.bf16.xpose.msra.mxu1 %v6840_v49  ;;  %v6985_v34 = vpop.permute.xlu0 %6984  ;;  %10768 = vmatprep.mubr.msk.bf16.mxu1 %vm11614_vm1, %v14947_v42 }
 0x95e   : > { %v6990_v46 = vsel %vm1019_vm2, %v6985_v34, 0  ;;  %10775 = vmatmul.mubr.msk.bf16.vlgmr.msra.gmra.mxu0 %vm1019_vm2, %v6883_v39  ;;  %10778 = vmatprep.subr.bf16.mxu1 %v14947_v42 }
 0x95f   : > { %10785 = vmatpush3.bf16.xpose.msra.mxu0 %v6990_v46  ;;  %10786 = vmatprep.mubr.msk.bf16.mxu0 %vm11614_vm1, %v14947_v42 }
 0x960   : > { %10796 = vmatprep.subr.bf16.mxu0 %v14947_v42 }
 0x961   : > { %v6983_v32 = vpop.permute.xlu0 %6982 }
 0x964   : > { %10769 = vmatmul.mubr.msk.bf16.vlgmr.msra.gmra.mxu1 %vm1019_vm2, %v6833_v62 }
 0x965   : > { %10779 = vmatpush3.bf16.xpose.msra.mxu1 %v6940_v3  ;;  %10780 = vmatprep.mubr.msk.bf16.mxu1 %vm11614_vm1, %v14947_v42  ;;  %v7323_v37 = vpop.permute.xlu0 %7322 }
 0x966   : > { %10787 = vmatmul.mubr.msk.bf16.vlgmr.msra.gmra.mxu0 %vm1019_vm2, %v6983_v32  ;;  %10790 = vmatprep.subr.bf16.mxu1 %v14947_v42  ;;  %v7328_v43 = vsel %vm1998_vm3, %v7323_v37, 0 }
 0x967   : > { %10797 = vmatpush3.bf16.msra.mxu0 %v7280_v8  ;;  %10798 = vmatprep.mubr.msk.bf16.mxu0 %vm11614_vm1, %v14947_v42 }
 0x968   : > { %10808 = vmatprep.subr.bf16.mxu0 %v14947_v42 }
 0x96c   : > { %10781 = vmatmul.mubr.msk.bf16.vlgmr.msra.gmra.mxu1 %vm1019_vm2, %v6933_v60 }
 0x96d   : > { %10791 = vmatpush3.bf16.xpose.msra.mxu1 %v7040_v51  ;;  %10792 = vmatprep.mubr.msk.bf16.mxu1 %vm11614_vm1, %v14947_v42 }
 0x96e   : > { %10802 = vmatprep.subr.bf16.mxu1 %v14947_v42 }
 0x974   : > { %10793 = vmatmul.mubr.msk.bf16.vlgmr.msra.gmra.mxu1 %vm1019_vm2, %v7033_v9 }
 0x975   : > { %10803 = vmatpush3.bf16.msra.mxu1 %v7328_v43  ;;  %10804 = vmatprep.mubr.msk.bf16.mxu1 %vm11614_vm1, %v14947_v42 }
 0x976   : > { %10814 = vmatprep.subr.bf16.mxu1 %v14947_v42 }
 0x981   : > { %v13601_v54 = vpop.f32.mrf.mxu0 }
 0x983   : > { %v10608_v7 = vpop.f32.mrf.mxu0 }
 0x985   : > { %v5559_v10 = vpop.f32.mrf.mxu0 }
 0x987   : > { %v10609_v47 = vpop.f32.mrf.mxu0 }
 0x989   : > { %v13603_v31 = vpop.f32.mrf.mxu0 }
 0x98b   : > { %v10620_v48 = vpop.f32.mrf.mxu0 }
 0x98d   : > { %v5655_v15 = vpop.f32.mrf.mxu0 }
 0x98f   : > { %v13605_v4 = vpop.f32.mrf.mxu1  ;;  %v10621_v57 = vpop.f32.mrf.mxu0 }
 0x991   : > { %v10614_v38 = vpop.f32.mrf.mxu1 }
 0x993   : > { %v5607_v55 = vpop.f32.mrf.mxu1  ;;  %v13609_v12 = vpop.f32.mrf.mxu0 }
 0x994   : > { %v11547_v55 = vld [vmem:[%s12119_s3 + $0xe] ss:$0 sm:$0xff] }
 0x995   : > { %v10615_v29 = vpop.f32.mrf.mxu1  ;;  %v10632_v1 = vpop.f32.mrf.mxu0 }
 0x997   : > { %v13611_v0 = vpop.f32.mrf.mxu1  ;;  %v5751_v13 = vpop.f32.mrf.mxu0 }
 0x999   : > { %v10626_v21 = vpop.f32.mrf.mxu1  ;;  %v10633_v6 = vpop.f32.mrf.mxu0 }
 0x99b   : > { %v5703_v62 = vpop.f32.mrf.mxu1  ;;  %v13615_v18 = vpop.f32.mrf.mxu0 }
 0x99d   : > { %v10627_v11 = vpop.f32.mrf.mxu1  ;;  %v10644_v41 = vpop.f32.mrf.mxu0 }
 0x99f   : > { %v13617_v50 = vpop.f32.mrf.mxu1  ;;  %v5847_v30 = vpop.f32.mrf.mxu0 }
 0x9a1   : > { %v10638_v56 = vpop.f32.mrf.mxu1  ;;  %v10645_v60 = vpop.f32.mrf.mxu0 }
 0x9a3   : > { %v5799_v63 = vpop.f32.mrf.mxu1  ;;  %v13621_v25 = vpop.f32.mrf.mxu0 }
 0x9a5   : > { %v10639_v2 = vpop.f32.mrf.mxu1  ;;  %v10656_v14 = vpop.f32.mrf.mxu0 }
 0x9a7   : > { %v13623_v59 = vpop.f32.mrf.mxu1  ;;  %v5943_v39 = vpop.f32.mrf.mxu0 }
 0x9a8   : > { %v11534_v39 = vld [vmem:[%s12119_s3] ss:$0 sm:$0xff] }
 0x9a9   : > { %v10650_v9 = vpop.f32.mrf.mxu1  ;;  %v10657_v34 = vpop.f32.mrf.mxu0 }
 0x9ab   : > { %v5895_v46 = vpop.f32.mrf.mxu1  ;;  %v13627_v28 = vpop.f32.mrf.mxu0 }
 0x9ad   : > { %v10651_v3 = vpop.f32.mrf.mxu1  ;;  %v10668_v32 = vpop.f32.mrf.mxu0 }
 0x9af   : > { %v13629_v8 = vpop.f32.mrf.mxu1  ;;  %v6039_v51 = vpop.f32.mrf.mxu0 }
 0x9b1   : > { %v10662_v43 = vpop.f32.mrf.mxu1  ;;  %v10669_v7 = vpop.f32.mrf.mxu0 }
 0x9b2   : > { %v11545_v43 = vld [vmem:[%s12119_s3 + $0xc] ss:$0 sm:$0xff] }
 0x9b3   : > { %v5991_v10 = vpop.f32.mrf.mxu1  ;;  %v13633_v47 = vpop.f32.mrf.mxu0 }
 0x9b5   : > { %v10663_v48 = vpop.f32.mrf.mxu1  ;;  %v10680_v15 = vpop.f32.mrf.mxu0 }
 0x9b6   : > { %v11535_v48 = vld [vmem:[%s12119_s3 + $0x2] ss:$0 sm:$0xff] }
 0x9b7   : > { %v13635_v57 = vpop.f32.mrf.mxu1  ;;  %v6135_v38 = vpop.f32.mrf.mxu0 }
 0x9b9   : > { %v10674_v29 = vpop.f32.mrf.mxu1  ;;  %v10681_v1 = vpop.f32.mrf.mxu0 }
 0x9bb   : > { %v6087_v13 = vpop.f32.mrf.mxu1 }
 0x9bd   : > { %v10675_v21 = vpop.f32.mrf.mxu1 }
 0x9bf   : > { %v13639_v6 = vpop.f32.mrf.mxu1 }
 0x9c1   : > { %v10686_v11 = vpop.f32.mrf.mxu1 }
 0x9c3   : > { %v6183_v41 = vpop.f32.mrf.mxu1 }
 0x9c5   : > { %v10687_v30 = vpop.f32.mrf.mxu1 }
 0x9c6   : > { %v11536_v30 = vld [vmem:[%s12119_s3 + $0x1] ss:$0 sm:$0xff] }
 0x9e6   : > { %v13643_v56 = vpop.f32.mrf.mxu0 }
 0x9e7   : > { %14970 = vst [vmem:[#allocation43_spill] sm:$0xff] %v13643_v56 }
 0x9e8   : > { %v10692_v60 = vpop.f32.mrf.mxu0 }
 0x9ea   : > { %v6231_v63 = vpop.f32.mrf.mxu0 }
 0x9ec   : > { %v10693_v2 = vpop.f32.mrf.mxu0 }
 0x9ee   : > { %v6326_v14 = vpop.f32.mrf.mxu0 }
 0x9ef   : > { %v13646_v9 = vadd.f32 %v11534_v39, %v6326_v14  ;;  %v11537_v14 = vld [vmem:[%s12119_s3 + $0x4] ss:$0 sm:$0xff] }
 0x9f0   : > { %v10704_v34 = vpop.f32.mrf.mxu0 }
 0x9f1   : > { %v7082_v46 = vsel %vm1019_vm2, %v13646_v9, -inf }
 0x9f2   : > { %7083 = vmax.xlane.f32.xlu0 %v7082_v46  ;;  %v6329_v3 = vpop.f32.mrf.mxu0 }
 0x9f4   : > { %v13650_v32 = vpop.f32.mrf.mxu1  ;;  %v10705_v51 = vpop.f32.mrf.mxu0 }
 0x9f6   : > { %v10698_v7 = vpop.f32.mrf.mxu1  ;;  %v6426_v10 = vpop.f32.mrf.mxu0 }
 0x9f7   : > { %v13655_v15 = vadd.f32 %v11535_v48, %v6426_v10 }
 0x9f8   : > { %v6279_v38 = vpop.f32.mrf.mxu1  ;;  %v10716_v29 = vpop.f32.mrf.mxu0 }
 0x9f9   : > { %v7088_v1 = vsel %vm1019_vm2, %v13655_v15, -inf  ;;  %v11538_v29 = vld [vmem:[%s12119_s3 + $0x3] ss:$0 sm:$0xff] }
 0x9fa   : > { %v10699_v13 = vpop.f32.mrf.mxu1  ;;  %7089 = vmax.xlane.f32.xlu0 %v7088_v1  ;;  %v6429_v21 = vpop.f32.mrf.mxu0 }
 0x9fc   : > { %v6376_v11 = vpop.f32.mrf.mxu1  ;;  %v10717_v41 = vpop.f32.mrf.mxu0 }
 0x9fd   : > { %v13660_v60 = vadd.f32 %v11536_v30, %v6376_v11  ;;  %v11539_v11 = vld [vmem:[%s12119_s3 + $0x6] ss:$0 sm:$0xff] }
 0x9fe   : > { %v10710_v63 = vpop.f32.mrf.mxu1  ;;  %v6526_v2 = vpop.f32.mrf.mxu0 }
 0x9ff   : > { %v13663_v39 = vadd.f32 %v11537_v14, %v6526_v2  ;;  %v7085_v34 = vsel %vm1019_vm2, %v13660_v60, -inf }
 0xa00   : > { %7086 = vmax.xlane.f32.xlu1 %v7085_v34  ;;  %v6379_v46 = vpop.f32.mrf.mxu1  ;;  %v10728_v3 = vpop.f32.mrf.mxu0 }
 0xa01   : > { %v7094_v10 = vsel %vm1019_vm2, %v13663_v39, -inf }
 0xa02   : > { %v10711_v51 = vpop.f32.mrf.mxu1  ;;  %v6529_v7 = vpop.f32.mrf.mxu0 }
 0xa03   : > { %v11540_v7 = vld [vmem:[%s12119_s3 + $0x5] ss:$0 sm:$0xff] }
 0xa04   : > { %v6476_v48 = vpop.f32.mrf.mxu1  ;;  %7095 = vmax.xlane.f32.xlu1 %v7094_v10  ;;  %v10729_v38 = vpop.f32.mrf.mxu0 }
 0xa05   : > { %v13670_v1 = vadd.f32 %v11538_v29, %v6476_v48  ;;  %v11541_v29 = vld [vmem:[%s12119_s3 + $0x8] ss:$0 sm:$0xff] }
 0xa06   : > { %v10722_v13 = vpop.f32.mrf.mxu1  ;;  %v6626_v21 = vpop.f32.mrf.mxu0 }
 0xa07   : > { %v13673_v41 = vadd.f32 %v11539_v11, %v6626_v21  ;;  %v7091_v30 = vsel %vm1019_vm2, %v13670_v1, -inf }
 0xa08   : > { %v6479_v63 = vpop.f32.mrf.mxu1  ;;  %7092 = vmax.xlane.f32.xlu0 %v7091_v30  ;;  %v10740_v2 = vpop.f32.mrf.mxu0 }
 0xa09   : > { %v7100_v14 = vsel %vm1019_vm2, %v13673_v41, -inf }
 0xa0a   : > { %v10723_v34 = vpop.f32.mrf.mxu1  ;;  %7101 = vmax.xlane.f32.xlu1 %v7100_v14  ;;  %v6629_v46 = vpop.f32.mrf.mxu0 }
 0xa0c   : > { %v6576_v3 = vpop.f32.mrf.mxu1  ;;  %v10741_v51 = vpop.f32.mrf.mxu0 }
 0xa0d   : > { %v13680_v10 = vadd.f32 %v11540_v7, %v6576_v3  ;;  %v11542_v3 = vld [vmem:[%s12119_s3 + $0x7] ss:$0 sm:$0xff] }
 0xa0e   : > { %v10734_v48 = vpop.f32.mrf.mxu1  ;;  %v6726_v38 = vpop.f32.mrf.mxu0 }
 0xa0f   : > { %v13683_v13 = vadd.f32 %v11541_v29, %v6726_v38  ;;  %v7097_v21 = vsel %vm1019_vm2, %v13680_v10, -inf  ;;  %v11543_v38 = vld [vmem:[%s12119_s3 + $0xa] ss:$0 sm:$0xff] }
 0xa10   : > { %v6579_v11 = vpop.f32.mrf.mxu1  ;;  %7098 = vmax.xlane.f32.xlu0 %v7097_v21  ;;  %v10752_v30 = vpop.f32.mrf.mxu0 }
 0xa11   : > { %v7106_v63 = vsel %vm1019_vm2, %v13683_v13, -inf }
 0xa12   : > { %v10735_v2 = vpop.f32.mrf.mxu1  ;;  %7107 = vmax.xlane.f32.xlu1 %v7106_v63  ;;  %v6729_v14 = vpop.f32.mrf.mxu0 }
 0xa14   : > { %v6676_v34 = vpop.f32.mrf.mxu1  ;;  %v10753_v46 = vpop.f32.mrf.mxu0 }
 0xa15   : > { %v13690_v51 = vadd.f32 %v11542_v3, %v6676_v34  ;;  %v11544_v3 = vld [vmem:[%s12119_s3 + $0x9] ss:$0 sm:$0xff] }
 0xa16   : > { %v10746_v7 = vpop.f32.mrf.mxu1  ;;  %v6826_v48 = vpop.f32.mrf.mxu0 }
 0xa17   : > { %v13693_v29 = vadd.f32 %v11543_v38, %v6826_v48  ;;  %v7103_v21 = vsel %vm1019_vm2, %v13690_v51, -inf }
 0xa18   : > { %v6679_v11 = vpop.f32.mrf.mxu1  ;;  %7104 = vmax.xlane.f32.xlu0 %v7103_v21  ;;  %v10764_v30 = vpop.f32.mrf.mxu0 }
 0xa19   : > { %v7112_v63 = vsel %vm1019_vm2, %v13693_v29, -inf }
 0xa1a   : > { %v10747_v2 = vpop.f32.mrf.mxu1  ;;  %7113 = vmax.xlane.f32.xlu1 %v7112_v63  ;;  %v6829_v14 = vpop.f32.mrf.mxu0 }
 0xa1c   : > { %v6776_v34 = vpop.f32.mrf.mxu1  ;;  %v10765_v46 = vpop.f32.mrf.mxu0 }
 0xa1d   : > { %v13700_v7 = vadd.f32 %v11544_v3, %v6776_v34  ;;  %v11546_v3 = vld [vmem:[%s12119_s3 + $0xb] ss:$0 sm:$0xff] }
 0xa1e   : > { %v10758_v48 = vpop.f32.mrf.mxu1  ;;  %v6926_v38 = vpop.f32.mrf.mxu0 }
 0xa1f   : > { %v13703_v62 = vadd.f32 %v11545_v43, %v6926_v38  ;;  %v7109_v21 = vsel %vm1019_vm2, %v13700_v7, -inf }
 0xa20   : > { %v6779_v11 = vpop.f32.mrf.mxu1  ;;  %7110 = vmax.xlane.f32.xlu0 %v7109_v21  ;;  %v10776_v30 = vpop.f32.mrf.mxu0 }
 0xa21   : > { %v7118_v63 = vsel %vm1019_vm2, %v13703_v62, -inf }
 0xa22   : > { %v10759_v2 = vpop.f32.mrf.mxu1  ;;  %7119 = vmax.xlane.f32.xlu1 %v7118_v63  ;;  %v6929_v14 = vpop.f32.mrf.mxu0 }
 0xa24   : > { %v6876_v34 = vpop.f32.mrf.mxu1  ;;  %v10777_v46 = vpop.f32.mrf.mxu0 }
 0xa25   : > { %v13710_v48 = vadd.f32 %v11546_v3, %v6876_v34  ;;  %v11548_v3 = vld [vmem:[%s12119_s3 + $0xd] ss:$0 sm:$0xff] }
 0xa26   : > { %v10770_v43 = vpop.f32.mrf.mxu1  ;;  %v7026_v38 = vpop.f32.mrf.mxu0 }
 0xa27   : > { %v13713_v37 = vadd.f32 %v11547_v55, %v7026_v38  ;;  %v7115_v21 = vsel %vm1019_vm2, %v13710_v48, -inf }
 0xa28   : > { %v6879_v11 = vpop.f32.mrf.mxu1  ;;  %7116 = vmax.xlane.f32.xlu0 %v7115_v21  ;;  %v10788_v30 = vpop.f32.mrf.mxu0 }
 0xa29   : > { %v7124_v63 = vsel %vm1019_vm2, %v13713_v37, -inf  ;;  %v11549_v30 = vld [vmem:[%s12119_s3 + $0xf] ss:$0 sm:$0xff]  ;;  %s14912_s3 = smov 8  }
 0xa2a   : > { %v10771_v2 = vpop.f32.mrf.mxu1  ;;  %7125 = vmax.xlane.f32.xlu1 %v7124_v63  ;;  %v7029_v14 = vpop.f32.mrf.mxu0 }
 0xa2c   : > { %v6976_v34 = vpop.f32.mrf.mxu1  ;;  %v10789_v46 = vpop.f32.mrf.mxu0 }
 0xa2d   : > { %v13720_v43 = vadd.f32 %v11548_v3, %v6976_v34 }
 0xa2e   : > { %v10782_v55 = vpop.f32.mrf.mxu1 }
 0xa2f   : > { %v7121_v38 = vsel %vm1019_vm2, %v13720_v43, -inf }
 0xa30   : > { %v6979_v52 = vpop.f32.mrf.mxu1  ;;  %7122 = vmax.xlane.f32.xlu0 %v7121_v38 }
 0xa31   : > { %v13735_v52 = vpop.permute.xlu0 %7418 }
 0xa32   : > { %v10783_v21 = vpop.f32.mrf.mxu1 }
 0xa34   : > { %v7076_v11 = vpop.f32.mrf.mxu1 }
 0xa35   : > { %v13725_v58 = vadd.f32 %v11549_v30, %v7076_v11  ;;  %v13737_v34 = vpop.permute.xlu0 %7514 }
 0xa36   : > { %v10794_v49 = vpop.f32.mrf.mxu1 }
 0xa37   : > { %v7127_v63 = vsel %vm1019_vm2, %v13725_v58, -inf  ;;  %v13739_v49 = vpop.permute.xlu1 %7370 }
 0xa38   : > { %v7079_v2 = vpop.f32.mrf.mxu1  ;;  %7128 = vmax.xlane.f32.xlu0 %v7127_v63 }
 0xa39   : > { %v13741_v46 = vpop.permute.xlu0 %7610 }
 0xa3a   : > { %v10795_v14 = vpop.f32.mrf.mxu1 }
 0xa3b   : > { %7754 = vrot.lane.b32.xlu1 %v11967_v17, %s11625_s23  ;;  %v13743_v3 = vpop.permute.xlu1 %7466 }
 0xa3f   : > { %7802 = vrot.lane.b32.xlu1 %v11975_v27, %s11625_s23  ;;  %v13746_v21 = vpop.permute.xlu1 %7562 }
 0xa43   : > { %v13749_v11 = vpop.permute.xlu1 %7658 }
 0xa4e   : > { %7706 = vrot.lane.b32.xlu0 %v11965_v16, %s11625_s23 }
 0xa7b   : > { %v7084_v55 = vpop.xlane.xlu0 %7083 }
 0xa7c   : > { %v7130_v38 = vsub.f32 %v13646_v9, %v7084_v55 }
 0xa7e   : > { %v7146_v17 = vmul.f32 1.442695, %v7130_v38 }
 0xa80   : > { %11342 = vpow2.f32 %v7146_v17 }
 0xa83   : > { %v7090_v27 = vpop.xlane.xlu0 %7089 }
 0xa84   : > { %v7132_v16 = vsub.f32 %v13655_v15, %v7090_v27 }
 0xa86   : > { %v7150_v30 = vmul.f32 1.442695, %v7132_v16 }
 0xa88   : > { %11344 = vpow2.f32 %v7150_v30 }
 0xa89   : > { %v7087_v63 = vpop.xlane.xlu1 %7086 }
 0xa8a   : > { %v7131_v2 = vsub.f32 %v13660_v60, %v7087_v63 }
 0xa8c   : > { %v7148_v14 = vmul.f32 1.442695, %v7131_v2 }
 0xa8d   : > { %v13752_v40 = vpop.eup %11342  ;;  %v7096_v56 = vpop.xlane.xlu1 %7095 }
 0xa8e   : > { %11346 = vpow2.f32 %v7148_v14  ;;  %v7134_v9 = vsub.f32 %v13663_v39, %v7096_v56  ;;  %v7178_v55 = vsel %vm1019_vm2, %v13752_v40, 0.0 }
 0xa8f   : > { %7179 = vadd.xlane.f32.xlu1 %v7178_v55 }
 0xa90   : > { %v7154_v38 = vmul.f32 1.442695, %v7134_v9 }
 0xa91   : > { %v7093_v15 = vpop.xlane.xlu0 %7092 }
 0xa92   : > { %11348 = vpow2.f32 %v7154_v38  ;;  %v7133_v17 = vsub.f32 %v13670_v1, %v7093_v15 }
 0xa93   : > { %v7102_v27 = vpop.xlane.xlu1 %7101 }
 0xa94   : > { %v7152_v16 = vmul.f32 1.442695, %v7133_v17  ;;  %v7136_v60 = vsub.f32 %v13673_v41, %v7102_v27 }
 0xa95   : > { %v13759_v30 = vpop.eup %11344 }
 0xa96   : > { %11350 = vpow2.f32 %v7152_v16  ;;  %v7158_v63 = vmul.f32 1.442695, %v7136_v60  ;;  %v7184_v56 = vsel %vm1019_vm2, %v13759_v30, 0.0 }
 0xa97   : > { %7185 = vadd.xlane.f32.xlu1 %v7184_v56 }
 0xa98   : > { %11352 = vpow2.f32 %v7158_v63 }
 0xa99   : > { %v7099_v39 = vpop.xlane.xlu0 %7098 }
 0xa9a   : > { %v7135_v2 = vsub.f32 %v13680_v10, %v7099_v39 }
 0xa9b   : > { %v13764_v14 = vpop.eup %11346  ;;  %v7108_v9 = vpop.xlane.xlu1 %7107 }
 0xa9c   : > { %v7156_v1 = vmul.f32 1.442695, %v7135_v2  ;;  %v7138_v55 = vsub.f32 %v13683_v13, %v7108_v9  ;;  %v7181_v41 = vsel %vm1019_vm2, %v13764_v14, 0.0 }
 0xa9d   : > { %7182 = vadd.xlane.f32.xlu0 %v7181_v41 }
 0xa9e   : > { %11354 = vpow2.f32 %v7156_v1  ;;  %v7162_v38 = vmul.f32 1.442695, %v7138_v55 }
 0xa9f   : > { %v13769_v15 = vpop.eup %11348 }
 0xaa0   : > { %11356 = vpow2.f32 %v7162_v38  ;;  %v7190_v17 = vsel %vm1019_vm2, %v13769_v15, 0.0 }
 0xaa1   : > { %7191 = vadd.xlane.f32.xlu1 %v7190_v17  ;;  %v7105_v10 = vpop.xlane.xlu0 %7104 }
 0xaa2   : > { %v7137_v27 = vsub.f32 %v13690_v51, %v7105_v10 }
 0xaa3   : > { %v13774_v16 = vpop.eup %11350  ;;  %v7114_v60 = vpop.xlane.xlu1 %7113 }
 0xaa4   : > { %v7160_v13 = vmul.f32 1.442695, %v7137_v27  ;;  %v7140_v63 = vsub.f32 %v13693_v29, %v7114_v60  ;;  %v7187_v56 = vsel %vm1019_vm2, %v13774_v16, 0.0 }
 0xaa5   : > { %v13779_v39 = vpop.eup %11352  ;;  %7188 = vadd.xlane.f32.xlu0 %v7187_v56 }
 0xaa6   : > { %11358 = vpow2.f32 %v7160_v13  ;;  %v7166_v2 = vmul.f32 1.442695, %v7140_v63  ;;  %v7196_v9 = vsel %vm1019_vm2, %v13779_v39, 0.0 }
 0xaa7   : > { %7197 = vadd.xlane.f32.xlu1 %v7196_v9 }
 0xaa8   : > { %11360 = vpow2.f32 %v7166_v2 }
 0xaa9   : > { %v7111_v51 = vpop.xlane.xlu0 %7110 }
 0xaaa   : > { %v7139_v1 = vsub.f32 %v13700_v7, %v7111_v51 }
 0xaab   : > { %v13784_v55 = vpop.eup %11354 }
 0xaac   : > { %v7164_v41 = vmul.f32 1.442695, %v7139_v1  ;;  %v7193_v29 = vsel %vm1019_vm2, %v13784_v55, 0.0  ;;  %v7120_v1 = vpop.xlane.xlu1 %7119 }
 0xaad   : > { %v13788_v38 = vpop.eup %11356  ;;  %7194 = vadd.xlane.f32.xlu0 %v7193_v29 }
 0xaae   : > { %11362 = vpow2.f32 %v7164_v41  ;;  %v7202_v17 = vsel %vm1019_vm2, %v13788_v38, 0.0  ;;  %v7142_v41 = vsub.f32 %v13703_v62, %v7120_v1 }
 0xaaf   : > { %7203 = vadd.xlane.f32.xlu1 %v7202_v17 }
 0xab0   : > { %v7170_v17 = vmul.f32 1.442695, %v7142_v41 }
 0xab1   : > { %v7117_v10 = vpop.xlane.xlu0 %7116 }
 0xab2   : > { %v7141_v27 = vsub.f32 %v13710_v48, %v7117_v10 }
 0xab3   : > { %v13793_v60 = vpop.eup %11358  ;;  %v7126_v29 = vpop.xlane.xlu1 %7125 }
 0xab4   : > { %v7168_v7 = vmul.f32 1.442695, %v7141_v27  ;;  %v7199_v13 = vsel %vm1019_vm2, %v13793_v60, 0.0  ;;  %v7144_v10 = vsub.f32 %v13713_v37, %v7126_v29 }
 0xab5   : > { %v13797_v63 = vpop.eup %11360  ;;  %7200 = vadd.xlane.f32.xlu0 %v7199_v13 }
 0xab6   : > { %11364 = vpow2.f32 %v7168_v7  ;;  %v7208_v56 = vsel %vm1019_vm2, %v13797_v63, 0.0  ;;  %v7174_v27 = vmul.f32 1.442695, %v7144_v10  ;;  %v14972_v10 = vpack.i.bf16 %v13611_v0, %v13603_v31 }
 0xab7   : > { %7209 = vadd.xlane.f32.xlu1 %v7208_v56  ;;  %11366 = vpow2.f32 %v7170_v17  ;;  %v14971_v17 = vpack.i.bf16 %v13101_v36, %v13093_v20  ;;  %v14975_v36 = vpack.i.bf16 %v13125_v45, %v13117_v5 }
 0xab8   : > { %11368 = vpow2.f32 %v7174_v27  ;;  %v14973_v27 = vpack.i.bf16 %v13113_v26, %v13105_v44  ;;  %v14976_v44 = vpack.i.bf16 %v13095_v23, %v13091_v22  ;;  %v14977_v26 = vpack.i.bf16 %v13605_v4, %v13601_v54  ;;  %v14980_v54 = vld [vmem:[#allocation38_spill] sm:$0xff]  ;;  %v14981_v4 = vld [vmem:[#allocation37_spill] sm:$0xff] }
 0xab9   : > { %v7123_v7 = vpop.xlane.xlu0 %7122  ;;  %v14979_v22 = vpack.i.bf16 %v13617_v50, %v13609_v12 }
 0xaba   : > { %v7143_v13 = vsub.f32 %v13720_v43, %v7123_v7  ;;  %v13847_v7 = vpop.permute.xlu1 %7754 }
 0xabb   : > { %v13801_v2 = vpop.eup %11362 }
 0xabc   : > { %v7205_v9 = vsel %vm1019_vm2, %v13801_v2, 0.0 }
 0xabd   : > { %7206 = vadd.xlane.f32.xlu0 %v7205_v9  ;;  %v7172_v9 = vmul.f32 1.442695, %v7143_v13  ;;  %v7376_v13 = vsel %vm1998_vm3, %v13739_v49, 0  ;;  %v7472_v49 = vsel %vm1998_vm3, %v13743_v3, 0 }
 0xabe   : > { %v13853_v20 = vpop.permute.xlu1 %7802 }
 0xabf   : > { %11370 = vpow2.f32 %v7172_v9 }
 0xac1   : > { %v7129_v56 = vpop.xlane.xlu0 %7128 }
 0xac3   : > { %v13805_v48 = vpop.eup %11364 }
 0xac4   : > { %v7211_v51 = vsel %vm1019_vm2, %v13805_v48, 0.0 }
 0xac5   : > { %7212 = vadd.xlane.f32.xlu0 %v7211_v51  ;;  %v13817_v51 = vpop.eup %11366  ;;  %v13873_v5 = vpop.permute.xlu0 %7706 }
 0xac6   : > { %v7214_v37 = vsel %vm1019_vm2, %v13817_v51, 0.0  ;;  %v13821_v1 = vpop.eup %11368 }
 0xac8   : > { %7898 = vrot.lane.b32.xlu1 %v11981_v35, %s11625_s23  ;;  %v7145_v35 = vsub.f32 %v13725_v58, %v7129_v56 }
 0xaca   : > { %v7176_v62 = vmul.f32 1.442695, %v7145_v35 }
 0xacc   : > { %11372 = vpow2.f32 %v7176_v62  ;;  %v13825_v43 = vpop.eup %11370 }
 0xacd   : > { %v7217_v58 = vsel %vm1019_vm2, %v13825_v43, 0.0 }
 0xad9   : > { %v13829_v41 = vpop.eup %11372 }
 0xada   : > { %v7223_v29 = vsel %vm1019_vm2, %v13829_v41, 0.0 }
 0xadb   : > { %7850 = vrot.lane.b32.xlu0 %v11973_v24, %s11625_s23  ;;  %v7220_v24 = vsel %vm1019_vm2, %v13821_v1, 0.0 }
 0xaec   : > { %7215 = vadd.xlane.f32.xlu1 %v7214_v37 }
 0xaf0   : > { %7221 = vadd.xlane.f32.xlu1 %v7220_v24 }
 0xafa   : > { %7218 = vadd.xlane.f32.xlu0 %v7217_v58 }
 0xafe   : > { %7224 = vadd.xlane.f32.xlu0 %v7223_v29  ;;  %v7424_v29 = vsel %vm1998_vm3, %v13735_v52, 0 }
 0xb01   : > { %7994 = vrot.lane.b32.xlu1 %v11989_v33, %s11625_s23  ;;  %v14974_v33 = vpack.i.bf16 %v13623_v59, %v13615_v18  ;;  %v14982_v59 = vpack.i.bf16 %v14980_v54, %v14981_v4 }
 0xb05   : > { %11026 = vrot.lane.b32.xlu1 %v14971_v17, %s14912_s3 }
 0xb09   : > { %11036 = vrot.lane.b32.xlu1 %v14972_v10, %s11627_s22  ;;  %v7568_v10 = vsel %vm1998_vm3, %v13746_v21, 0  ;;  %v7520_v21 = vsel %vm1998_vm3, %v13737_v34, 0 }
 0xb0d   : > { %11046 = vrot.lane.b32.xlu1 %v14973_v27, %s14912_s3 }
 0xb11   : > { %11056 = vrot.lane.b32.xlu1 %v14974_v33, %s11627_s22 }
 0xb14   : > { %7946 = vrot.lane.b32.xlu0 %v11983_v19, %s11625_s23  ;;  %v14978_v19 = vpack.i.bf16 %v13107_v61, %v13099_v53  ;;  %s15027_s23 = smov 96  }
 0xb15   : > { %11066 = vrot.lane.b32.xlu1 %v14975_v36, %s14912_s3 }
 0xb18   : > { %v7180_v31 = vpop.xlane.xlu1 %7179  ;;  %11021 = vrot.lane.b32.xlu0 %v14976_v44, %s14912_s3 }
 0xb19   : > { %11374 = vrcp.f32 %v7180_v31 }
 0xb1c   : > { %11031 = vrot.lane.b32.xlu0 %v14977_v26, %s11627_s22 }
 0xb20   : > { %v7186_v0 = vpop.xlane.xlu1 %7185  ;;  %11041 = vrot.lane.b32.xlu0 %v14978_v19, %s14912_s3 }
 0xb21   : > { %11376 = vrcp.f32 %v7186_v0 }
 0xb24   : > { %11051 = vrot.lane.b32.xlu0 %v14979_v22, %s11627_s22 }
 0xb26   : > { %v11375_v23 = vpop.eup %11374  ;;  %v7183_v45 = vpop.xlane.xlu0 %7182 }
 0xb27   : > { %v7242_v18 = vmul.f32 %v11375_v23, %v13752_v40  ;;  %11378 = vrcp.f32 %v7183_v45  ;;  %v7616_v23 = vsel %vm1998_vm3, %v13741_v46, 0  ;;  %v7760_v45 = vsel %vm1998_vm3, %v13847_v7, 0 }
 0xb28   : > { %11061 = vrot.lane.b32.xlu0 %v14982_v59, %s14912_s3  ;;  %v7712_v59 = vsel %vm1998_vm3, %v13873_v5, 0 }
 0xb29   : > { %v7258_v53 = vpack.c.bf16 %v7242_v18, %v7242_v18 }
 0xb2a   : > { %v7192_v61 = vpop.xlane.xlu1 %7191 }
 0xb2b   : > { %11380 = vrcp.f32 %v7192_v61  ;;  %10799 = vmatmul.mubr.msk.bf16.vlgmr.msra.gmra.mxu0 %vm1019_vm2, %v7258_v53 }
 0xb2c   : > { %10809 = vmatpush3.bf16.msra.mxu0 %v7376_v13  ;;  %10810 = vmatprep.mubr.msk.bf16.mxu0 %vm11614_vm1, %v14947_v42  ;;  %v7808_v13 = vsel %vm1998_vm3, %v13853_v20, 0 }
 0xb2d   : > { %10820 = vmatprep.subr.bf16.mxu0 %v14947_v42 }
 0xb2e   : > { %v11377_v12 = vpop.eup %11376  ;;  %v7189_v40 = vpop.xlane.xlu0 %7188 }
 0xb2f   : > { %v7244_v50 = vmul.f32 %v11377_v12, %v13759_v30  ;;  %11382 = vrcp.f32 %v7189_v40 }
 0xb30   : > { %v7198_v56 = vpop.xlane.xlu1 %7197 }
 0xb31   : > { %v7260_v9 = vpack.c.bf16 %v7244_v50, %v7244_v50  ;;  %11384 = vrcp.f32 %v7198_v56 }
 0xb33   : > { %10811 = vmatmul.mubr.msk.bf16.vlgmr.msra.gmra.mxu0 %vm1019_vm2, %v7260_v9 }
 0xb34   : > { %v11379_v35 = vpop.eup %11378  ;;  %10821 = vmatpush3.bf16.msra.mxu0 %v7472_v49  ;;  %10822 = vmatprep.mubr.msk.bf16.mxu0 %vm11614_vm1, %v14947_v42 }
 0xb35   : > { %v7243_v62 = vmul.f32 %v11379_v35, %v13764_v14  ;;  %10832 = vmatprep.subr.bf16.mxu0 %v14947_v42 }
 0xb36   : > { %v7195_v37 = vpop.xlane.xlu0 %7194 }
 0xb37   : > { %v7259_v30 = vpack.c.bf16 %v7243_v62, %v7243_v62  ;;  %11386 = vrcp.f32 %v7195_v37 }
 0xb38   : > { %v11381_v24 = vpop.eup %11380  ;;  %v7204_v58 = vpop.xlane.xlu1 %7203 }
 0xb39   : > { %v7246_v3 = vmul.f32 %v11381_v24, %v13769_v15  ;;  %11388 = vrcp.f32 %v7204_v58  ;;  %10805 = vmatmul.mubr.msk.bf16.vlgmr.msra.gmra.mxu1 %vm1019_vm2, %v7259_v30 }
 0xb3a   : > { %10815 = vmatpush3.bf16.msra.mxu1 %v7424_v29  ;;  %10816 = vmatprep.mubr.msk.bf16.mxu1 %vm11614_vm1, %v14947_v42 }
 0xb3b   : > { %v7262_v14 = vpack.c.bf16 %v7246_v3, %v7246_v3  ;;  %10826 = vmatprep.subr.bf16.mxu1 %v14947_v42 }
 0xb3c   : > { %v11383_v17 = vpop.eup %11382 }
 0xb3d   : > { %v7245_v27 = vmul.f32 %v11383_v17, %v13774_v16  ;;  %10823 = vmatmul.mubr.msk.bf16.vlgmr.msra.gmra.mxu0 %vm1019_vm2, %v7262_v14 }
 0xb3e   : > { %v11385_v52 = vpop.eup %11384  ;;  %10833 = vmatpush3.bf16.msra.mxu0 %v7568_v10  ;;  %v7201_v15 = vpop.xlane.xlu0 %7200  ;;  %10834 = vmatprep.mubr.msk.bf16.mxu0 %vm11614_vm1, %v14947_v42 }
 0xb3f   : > { %v7261_v33 = vpack.c.bf16 %v7245_v27, %v7245_v27  ;;  %v7248_v36 = vmul.f32 %v11385_v52, %v13779_v39  ;;  %11390 = vrcp.f32 %v7201_v15  ;;  %10844 = vmatprep.subr.bf16.mxu0 %v14947_v42  ;;  %v7664_v39 = vsel %vm1998_vm3, %v13749_v11, 0 }
 0xb40   : > { %v7210_v31 = vpop.xlane.xlu1 %7209 }
 0xb41   : > { %11392 = vrcp.f32 %v7210_v31  ;;  %10817 = vmatmul.mubr.msk.bf16.vlgmr.msra.gmra.mxu1 %vm1019_vm2, %v7261_v33  ;;  %v7264_v16 = vpack.c.bf16 %v7248_v36, %v7248_v36 }
 0xb42   : > { %10827 = vmatpush3.bf16.msra.mxu1 %v7520_v21  ;;  %10828 = vmatprep.mubr.msk.bf16.mxu1 %vm11614_vm1, %v14947_v42 }
 0xb43   : > { %10838 = vmatprep.subr.bf16.mxu1 %v14947_v42 }
 0xb44   : > { %v11387_v44 = vpop.eup %11386  ;;  %v7899_v40 = vpop.permute.xlu1 %7898 }
 0xb45   : > { %v7247_v26 = vmul.f32 %v11387_v44, %v13784_v55  ;;  %10835 = vmatmul.mubr.msk.bf16.vlgmr.msra.gmra.mxu0 %vm1019_vm2, %v7264_v16  ;;  %v7904_v56 = vsel %vm1998_vm3, %v7899_v40, 0  ;;  %v11142_v44 = vld [vmem:[%s14874_s7 + $0x8] sm:$0xff]  }
 0xb46   : > { %v11389_v0 = vpop.eup %11388  ;;  %10845 = vmatpush3.bf16.msra.mxu0 %v7664_v39  ;;  %v7207_v34 = vpop.xlane.xlu0 %7206  ;;  %10846 = vmatprep.mubr.msk.bf16.mxu0 %vm11614_vm1, %v14947_v42 }
 0xb47   : > { %v7263_v19 = vpack.c.bf16 %v7247_v26, %v7247_v26  ;;  %v7250_v22 = vmul.f32 %v11389_v0, %v13788_v38  ;;  %11394 = vrcp.f32 %v7207_v34  ;;  %10856 = vmatprep.subr.bf16.mxu0 %v14947_v42 }
 0xb49   : > { %10829 = vmatmul.mubr.msk.bf16.vlgmr.msra.gmra.mxu1 %vm1019_vm2, %v7263_v19  ;;  %v7266_v11 = vpack.c.bf16 %v7250_v22, %v7250_v22 }
 0xb4a   : > { %10839 = vmatpush3.bf16.msra.mxu1 %v7616_v23  ;;  %10840 = vmatprep.mubr.msk.bf16.mxu1 %vm11614_vm1, %v14947_v42 }
 0xb4b   : > { %10850 = vmatprep.subr.bf16.mxu1 %v14947_v42 }
 0xb4c   : > { %v11391_v55 = vpop.eup %11390 }
 0xb4d   : > { %v7249_v38 = vmul.f32 %v11391_v55, %v13793_v60  ;;  %10847 = vmatmul.mubr.msk.bf16.vlgmr.msra.gmra.mxu0 %vm1019_vm2, %v7266_v11  ;;  %v14983_v55 = vpack.i.bf16 %v13629_v8, %v13621_v25 }
 0xb4e   : > { %v11393_v18 = vpop.eup %11392  ;;  %10857 = vmatpush3.bf16.msra.mxu0 %v7760_v45  ;;  %v7213_v46 = vpop.xlane.xlu0 %7212  ;;  %10858 = vmatprep.mubr.msk.bf16.mxu0 %vm11614_vm1, %v14947_v42 }
 0xb4f   : > { %v7265_v54 = vpack.c.bf16 %v7249_v38, %v7249_v38  ;;  %v7252_v4 = vmul.f32 %v11393_v18, %v13797_v63  ;;  %11396 = vrcp.f32 %v7213_v46  ;;  %10868 = vmatprep.subr.bf16.mxu0 %v14947_v42 }
 0xb51   : > { %10841 = vmatmul.mubr.msk.bf16.vlgmr.msra.gmra.mxu1 %vm1019_vm2, %v7265_v54  ;;  %v7268_v7 = vpack.c.bf16 %v7252_v4, %v7252_v4 }
 0xb52   : > { %10851 = vmatpush3.bf16.msra.mxu1 %v7712_v59  ;;  %v7851_v60 = vpop.permute.xlu0 %7850  ;;  %10852 = vmatprep.mubr.msk.bf16.mxu1 %vm11614_vm1, %v14947_v42 }
 0xb53   : > { %v7856_v53 = vsel %vm1998_vm3, %v7851_v60, 0  ;;  %10862 = vmatprep.subr.bf16.mxu1 %v14947_v42 }
 0xb54   : > { %v11395_v61 = vpop.eup %11394 }
 0xb55   : > { %v7251_v63 = vmul.f32 %v11395_v61, %v13801_v2  ;;  %10859 = vmatmul.mubr.msk.bf16.vlgmr.msra.gmra.mxu0 %vm1019_vm2, %v7268_v7 }
 0xb56   : > { %10869 = vmatpush3.bf16.msra.mxu0 %v7856_v53  ;;  %10870 = vmatprep.mubr.msk.bf16.mxu0 %vm11614_vm1, %v14947_v42  ;;  %v14984_v53 = vpack.i.bf16 %v13635_v57, %v13627_v28 }
 0xb57   : > { %v7267_v5 = vpack.c.bf16 %v7251_v63, %v7251_v63  ;;  %10880 = vmatprep.subr.bf16.mxu0 %v14947_v42 }
 0xb59   : > { %10853 = vmatmul.mubr.msk.bf16.vlgmr.msra.gmra.mxu1 %vm1019_vm2, %v7267_v5 }
 0xb5a   : > { %10863 = vmatpush3.bf16.msra.mxu1 %v7808_v13  ;;  %10864 = vmatprep.mubr.msk.bf16.mxu1 %vm11614_vm1, %v14947_v42 }
 0xb5b   : > { %10874 = vmatprep.subr.bf16.mxu1 %v14947_v42 }
 0xb5c   : > { %v11397_v2 = vpop.eup %11396 }
 0xb5d   : > { %v7253_v12 = vmul.f32 %v11397_v2, %v13805_v48 }
 0xb5f   : > { %v7269_v50 = vpack.c.bf16 %v7253_v12, %v7253_v12 }
 0xb61   : > { %10865 = vmatmul.mubr.msk.bf16.vlgmr.msra.gmra.mxu1 %vm1019_vm2, %v7269_v50  ;;  %v14985_v50 = vld [vmem:[#allocation40_spill] sm:$0xff] }
 0xb62   : > { %10875 = vmatpush3.bf16.msra.mxu1 %v7904_v56  ;;  %10876 = vmatprep.mubr.msk.bf16.mxu1 %vm11614_vm1, %v14947_v42  ;;  %v14986_v56 = vld [vmem:[#allocation39_spill] sm:$0xff] }
 0xb63   : > { %10886 = vmatprep.subr.bf16.mxu1 %v14947_v42 }
 0xb75   : > { %v7216_v20 = vpop.xlane.xlu1 %7215 }
 0xb76   : > { %11398 = vrcp.f32 %v7216_v20  ;;  %v14987_v20 = vpack.i.bf16 %v14985_v50, %v14986_v56  ;;  %v14995_v50 = vld [vmem:[#allocation21_spill] sm:$0xff] }
 0xb79   : > { %v7222_v9 = vpop.xlane.xlu1 %7221 }
 0xb7a   : > { %11400 = vrcp.f32 %v7222_v9 }
 0xb7d   : > { %v7995_v17 = vpop.permute.xlu1 %7994 }
 0xb7e   : > { %v8000_v52 = vsel %vm1998_vm3, %v7995_v17, 0 }
 0xb83   : > { %v11399_v49 = vpop.eup %11398  ;;  %v7219_v35 = vpop.xlane.xlu0 %7218 }
 0xb84   : > { %v7254_v48 = vmul.f32 %v11399_v49, %v13817_v51  ;;  %11402 = vrcp.f32 %v7219_v35 }
 0xb86   : > { %v7270_v62 = vpack.c.bf16 %v7254_v48, %v7254_v48 }
 0xb87   : > { %v11401_v37 = vpop.eup %11400  ;;  %v7225_v30 = vpop.xlane.xlu0 %7224 }
 0xb88   : > { %11404 = vrcp.f32 %v7225_v30  ;;  %10871 = vmatmul.mubr.msk.bf16.vlgmr.msra.gmra.mxu0 %vm1019_vm2, %v7270_v62  ;;  %v7256_v24 = vmul.f32 %v11401_v37, %v13821_v1 }
 0xb89   : > { %10882 = vmatprep.mubr.msk.bf16.mxu0 %vm11614_vm1, %v14947_v42 }
 0xb8a   : > { %v7272_v3 = vpack.c.bf16 %v7256_v24, %v7256_v24  ;;  %v14988_v24 = vld [vmem:[#allocation42_spill] sm:$0xff] }
 0xb8b   : > { %v7947_v58 = vpop.permute.xlu0 %7946 }
 0xb8c   : > { %v7952_v29 = vsel %vm1998_vm3, %v7947_v58, 0  ;;  %v14989_v58 = vld [vmem:[#allocation41_spill] sm:$0xff] }
 0xb8d   : > { %10881 = vmatpush3.bf16.msra.mxu0 %v7952_v29  ;;  %v14990_v29 = vpack.i.bf16 %v14988_v24, %v14989_v58 }
 0xb8e   : > { %10892 = vmatprep.subr.bf16.mxu0 %v11142_v44 }
 0xb90   : > { %10883 = vmatmul.mubr.msk.bf16.vlgmr.msra.gmra.mxu0 %vm1019_vm2, %v7272_v3 }
 0xb91   : > { %v11403_v51 = vpop.eup %11402  ;;  %10893 = vmatpush3.bf16.msra.mxu0 %v11142_v44 }
 0xb92   : > { %v7255_v14 = vmul.f32 %v11403_v51, %v13825_v43 }
 0xb94   : > { %v7271_v10 = vpack.c.bf16 %v7255_v14, %v7255_v14 }
 0xb95   : > { %v11405_v27 = vpop.eup %11404 }
 0xb96   : > { %10877 = vmatmul.mubr.msk.bf16.vlgmr.msra.gmra.mxu1 %vm1019_vm2, %v7271_v10  ;;  %v7257_v1 = vmul.f32 %v11405_v27, %v13829_v41  ;;  %v11143_v41 = vld [vmem:[%s14874_s7] sm:$0xff]  }
 0xb97   : > { %10887 = vmatpush3.bf16.msra.mxu1 %v8000_v52  ;;  %10888 = vmatprep.mubr.msk.bf16.mxu1 %vm11614_vm1, %v14947_v42 }
 0xb98   : > { %v7273_v15 = vpack.c.bf16 %v7257_v1, %v7257_v1  ;;  %10894 = vmatprep.subr.bf16.mxu0 %v11143_v41  ;;  %v14991_v1 = vpack.i.bf16 %v13639_v6, %v13633_v47 }
 0xb99   : > { %10895 = vmatpush3.bf16.msra.mxu0 %v11143_v41 }
 0xb9e   : > { %10889 = vmatmul.mubr.msk.bf16.vlgmr.msra.gmra.mxu1 %vm1019_vm2, %v7273_v15 }
 0xbeb   : > { %v7316_v33 = vpop.f32.mrf.mxu0 }
 0xbed   : > { %v10800_v36 = vpop.f32.mrf.mxu0 }
 0xbef   : > { %v7319_v31 = vpop.f32.mrf.mxu0 }
 0xbf1   : > { %v10801_v43 = vpop.f32.mrf.mxu0 }
 0xbf3   : > { %v7412_v21 = vpop.f32.mrf.mxu0 }
 0xbf5   : > { %v10812_v16 = vpop.f32.mrf.mxu0 }
 0xbf7   : > { %v7415_v39 = vpop.f32.mrf.mxu0 }
 0xbf9   : > { %v7364_v26 = vpop.f32.mrf.mxu1  ;;  %v10813_v42 = vpop.f32.mrf.mxu0 }
 0xbfa   : > { %v11070_v0 = vpack.i.bf16 %v7364_v26, %v7316_v33 }
 0xbfb   : > { %v10806_v34 = vpop.f32.mrf.mxu1 }
 0xbfc   : > { %11071 = vrot.lane.b32.xlu0 %v11070_v0, %s11628_s18  ;;  %v11022_v0 = vpop.permute.xlu0 %11021 }
 0xbfd   : > { %v7367_v19 = vpop.f32.mrf.mxu1  ;;  %v7508_v22 = vpop.f32.mrf.mxu0 }
 0xbff   : > { %v10807_v23 = vpop.f32.mrf.mxu1  ;;  %v10824_v11 = vpop.f32.mrf.mxu0 }
 0xc00   : > { %11076 = vrot.lane.b32.xlu0 %v14983_v55, %s11627_s22  ;;  %v11032_v23 = vpop.permute.xlu0 %11031  ;;  %v11027_v55 = vpop.permute.xlu1 %11026 }
 0xc01   : > { %v7460_v45 = vpop.f32.mrf.mxu1  ;;  %v7511_v38 = vpop.f32.mrf.mxu0 }
 0xc02   : > { %v11080_v18 = vpack.i.bf16 %v7460_v45, %v7412_v21  ;;  %v14992_v21 = vld [vmem:[#allocation43_spill] sm:$0xff] }
 0xc03   : > { %v10818_v46 = vpop.f32.mrf.mxu1  ;;  %v10825_v54 = vpop.f32.mrf.mxu0  ;;  %v14993_v16 = vpack.i.bf16 %v13650_v32, %v14992_v21 }
 0xc04   : > { %11081 = vrot.lane.b32.xlu1 %v11080_v18, %s11628_s18  ;;  %v11042_v32 = vpop.permute.xlu0 %11041  ;;  %v11037_v54 = vpop.permute.xlu1 %11036 }
 0xc05   : > { %v7463_v4 = vpop.f32.mrf.mxu1  ;;  %v7604_v59 = vpop.f32.mrf.mxu0  ;;  %v11039_v24 = vunpack.i.h.bf16 %v11037_v54  ;;  %v11038_v58 = vunpack.i.l.bf16 %v11037_v54  ;;  %v11043_v21 = vunpack.i.l.bf16 %v11042_v32  ;;  %v15000_v54 = vld [vmem:[#allocation29_spill] sm:$0xff] }
 0xc07   : > { %v10819_v60 = vpop.f32.mrf.mxu1  ;;  %v10836_v7 = vpop.f32.mrf.mxu0 }
 0xc08   : > { %11086 = vrot.lane.b32.xlu1 %v14984_v53, %s11627_s22  ;;  %v11052_v60 = vpop.permute.xlu0 %11051  ;;  %v11047_v53 = vpop.permute.xlu1 %11046 }
 0xc09   : > { %v7556_v61 = vpop.f32.mrf.mxu1  ;;  %v7607_v63 = vpop.f32.mrf.mxu0 }
 0xc0a   : > { %v11090_v25 = vpack.i.bf16 %v7556_v61, %v7508_v22  ;;  %v11024_v63 = vunpack.i.h.bf16 %v11022_v0 }
 0xc0b   : > { %v10830_v8 = vpop.f32.mrf.mxu1  ;;  %v10837_v5 = vpop.f32.mrf.mxu0 }
 0xc0c   : > { %11091 = vrot.lane.b32.xlu0 %v11090_v25, %s11628_s18  ;;  %v14017_v61 = vpop.permute.xlu0 %11061  ;;  %v11023_v25 = vunpack.i.l.bf16 %v11022_v0  ;;  %v11057_v8 = vpop.permute.xlu1 %11056  ;;  %v11034_v5 = vunpack.i.h.bf16 %v11032_v23 }
 0xc0d   : > { %v7559_v13 = vpop.f32.mrf.mxu1  ;;  %v7700_v2 = vpop.f32.mrf.mxu0 }
 0xc0e   : > { %v11033_v13 = vunpack.i.l.bf16 %v11032_v23  ;;  %v8234_v56 = vsel %vm1019_vm2, %v14995_v50, %v11023_v25 }
 0xc0f   : > { %v10831_v12 = vpop.f32.mrf.mxu1  ;;  %v10848_v40 = vpop.f32.mrf.mxu0 }
 0xc10   : > { %11096 = vrot.lane.b32.xlu0 %v14987_v20, %s14912_s3  ;;  %v14994_v12 = vld [vmem:[#allocation22_spill] sm:$0xff] }
 0xc11   : > { %v7652_v9 = vpop.f32.mrf.mxu1  ;;  %v7703_v49 = vpop.f32.mrf.mxu0  ;;  %v8235_v40 = vsel %vm1019_vm2, %v14994_v12, %v11024_v63  ;;  %v11064_v12 = vunpack.i.h.bf16 %v14017_v61 }
 0xc12   : > { %v11100_v28 = vpack.i.bf16 %v7652_v9, %v7604_v59  ;;  %v8251_v49 = vsel %vm8250_vm4, %v8234_v56, %v11033_v13 }
 0xc13   : > { %v10842_v57 = vpop.f32.mrf.mxu1  ;;  %v10849_v35 = vpop.f32.mrf.mxu0 }
 0xc14   : > { %11101 = vrot.lane.b32.xlu1 %v11100_v28, %s11628_s18  ;;  %v8252_v28 = vsel %vm8250_vm4, %v8235_v40, %v11034_v5  ;;  %v11063_v40 = vunpack.i.l.bf16 %v14017_v61 }
 0xc15   : > { %v7655_v48 = vpop.f32.mrf.mxu1  ;;  %v7796_v62 = vpop.f32.mrf.mxu0 }
 0xc16   : > { %v14027_v48 = vpop.permute.xlu1 %11066 }
 0xc17   : > { %v10843_v37 = vpop.f32.mrf.mxu1  ;;  %v10860_v30 = vpop.f32.mrf.mxu0 }
 0xc18   : > { %11106 = vrot.lane.b32.xlu1 %v14990_v29, %s14912_s3  ;;  %v11029_v37 = vunpack.i.h.bf16 %v11027_v55  ;;  %v11028_v30 = vunpack.i.l.bf16 %v11027_v55  ;;  %s556_s3 = sand.u32 1, %s11602_s25  }
 0xc19   : > { %v7748_v3 = vpop.f32.mrf.mxu1  ;;  %v7799_v51 = vpop.f32.mrf.mxu0  ;;  %s14826_s28 = scalar_lea.sflag [#allocation3], %s556_s3 }
 0xc1a   : > { %v11110_v14 = vpack.i.bf16 %v7748_v3, %v7700_v2  ;;  %v14996_v3 = vld [vmem:[#allocation25_spill] sm:$0xff] }
 0xc1b   : > { %v10854_v17 = vpop.f32.mrf.mxu1  ;;  %v10861_v10 = vpop.f32.mrf.mxu0  ;;  %v8237_v51 = vsel %vm1019_vm2, %v14996_v3, %v11029_v37  ;;  %v11069_v3 = vunpack.i.h.bf16 %v14027_v48 }
 0xc1c   : > { %11111 = vrot.lane.b32.xlu0 %v11110_v14, %s11628_s18  ;;  %v14997_v14 = vld [vmem:[#allocation23_spill] sm:$0xff] }
 0xc1d   : > { %v7751_v27 = vpop.f32.mrf.mxu1  ;;  %v8236_v17 = vsel %vm1019_vm2, %v14997_v14, %v11028_v30 }
 0xc1f   : > { %v10855_v52 = vpop.f32.mrf.mxu1 }
 0xc20   : > { %11116 = vrot.lane.b32.xlu0 %v14991_v1, %s11627_s22  ;;  %v8253_v52 = vsel %vm8250_vm4, %v8236_v17, %v11038_v58  ;;  %v8254_v1 = vsel %vm8250_vm4, %v8237_v51, %v11039_v24  ;;  %v11068_v51 = vunpack.i.l.bf16 %v14027_v48 }
 0xc21   : > { %v7844_v15 = vpop.f32.mrf.mxu1 }
 0xc22   : > { %v11120_v33 = vpack.i.bf16 %v7844_v15, %v7796_v62 }
 0xc23   : > { %v10866_v36 = vpop.f32.mrf.mxu1 }
 0xc24   : > { %11121 = vrot.lane.b32.xlu1 %v11120_v33, %s11628_s18 }
 0xc25   : > { %v7847_v31 = vpop.f32.mrf.mxu1 }
 0xc27   : > { %v10867_v43 = vpop.f32.mrf.mxu1 }
 0xc28   : > { %11126 = vrot.lane.b32.xlu1 %v14993_v16, %s11627_s22  ;;  %v11044_v43 = vunpack.i.h.bf16 %v11042_v32  ;;  %v11054_v16 = vunpack.i.h.bf16 %v11052_v60  ;;  %v11059_v32 = vunpack.i.h.bf16 %v11057_v8 }
 0xc48   : > { %v7892_v44 = vpop.f32.mrf.mxu0 }
 0xc4a   : > { %v10872_v39 = vpop.f32.mrf.mxu0 }
 0xc4c   : > { %v7895_v26 = vpop.f32.mrf.mxu0 }
 0xc4d   : > { %v14998_v26 = vld [vmem:[#allocation27_spill] sm:$0xff] }
 0xc4e   : > { %v10873_v42 = vpop.f32.mrf.mxu0 }
 0xc4f   : > { %v8239_v42 = vsel %vm1019_vm2, %v14998_v26, %v11044_v43 }
 0xc50   : > { %v7988_v41 = vpop.f32.mrf.mxu0 }
 0xc52   : > { %v10884_v47 = vpop.f32.mrf.mxu0 }
 0xc54   : > { %v7991_v6 = vpop.f32.mrf.mxu0 }
 0xc56   : > { %v7940_v34 = vpop.f32.mrf.mxu1  ;;  %v10885_v19 = vpop.f32.mrf.mxu0 }
 0xc57   : > { %v11130_v22 = vpack.i.bf16 %v7940_v34, %v7892_v44  ;;  %v11053_v44 = vunpack.i.l.bf16 %v11052_v60  ;;  %v8256_v19 = vsel %vm8250_vm4, %v8239_v42, %v11054_v16 }
 0xc58   : > { %v10878_v11 = vpop.f32.mrf.mxu1 }
 0xc59   : > { %11131 = vrot.lane.b32.xlu0 %v11130_v22, %s11628_s18 }
 0xc5a   : > { %v7943_v45 = vpop.f32.mrf.mxu1 }
 0xc5b   : > { %v11049_v45 = vunpack.i.h.bf16 %v11047_v53 }
 0xc5c   : > { %v10879_v38 = vpop.f32.mrf.mxu1 }
 0xc5d   : > { %v11048_v38 = vunpack.i.l.bf16 %v11047_v53 }
 0xc5e   : > { %v8036_v18 = vpop.f32.mrf.mxu1 }
 0xc5f   : > { %v11135_v46 = vpack.i.bf16 %v8036_v18, %v7988_v41  ;;  %v14999_v41 = vld [vmem:[#allocation24_spill] sm:$0xff]  ;;  %v11058_v18 = vunpack.i.l.bf16 %v11057_v8 }
 0xc60   : > { %v10890_v4 = vpop.f32.mrf.mxu1  ;;  %v8238_v0 = vsel %vm1019_vm2, %v14999_v41, %v11043_v21 }
 0xc61   : > { %11136 = vrot.lane.b32.xlu1 %v11135_v46, %s11628_s18  ;;  %v8255_v34 = vsel %vm8250_vm4, %v8238_v0, %v11053_v44  ;;  %v8241_v4 = vsel %vm1019_vm2, %v15000_v54, %v11049_v45  ;;  %s9598_s18 = sshll.u32 %s556_s3, 5 }
 0xc62   : > { %v8039_v59 = vpop.f32.mrf.mxu1  ;;  %v8258_v5 = vsel %vm8250_vm4, %v8241_v4, %v11059_v32  ;;  %s14761_s22 = scalar_lea.vmem [#allocation2], %s9598_s18 }
 0xc63   : > { %v15001_v59 = vld [vmem:[#allocation26_spill] sm:$0xff]  ;;  %s9523_s30 = sshll.u32 %s14761_s22, 4  ;;  %s14820_s30 = int_to_ptr.vmem [resolvable:$true] %s9523_s30 }
 0xc64   : > { %v10891_v7 = vpop.f32.mrf.mxu1  ;;  %v8240_v60 = vsel %vm1019_vm2, %v15001_v59, %v11048_v38  ;;  %s11550_s18 = scalar_lea.vmem %s14820_s30, 512 }
 0xc65   : > { %v8257_v25 = vsel %vm8250_vm4, %v8240_v60, %v11058_v18  ;;  %p11551_p12 = scmp.ne.s32.totalorder %s14820_s30, %s11550_s18 }
 0xc67   : > { %p11552_p13 = pnand %p11551_p12, %p11760_p5 }
 0xc69   : > { %p11553_p0 = pneg %p11552_p13 }
 0xc6e   : > { %v11072_v2 = vpop.permute.xlu0 %11071 }
 0xc6f   : > { %v11074_v20 = vunpack.i.h.bf16 %v11072_v2  ;;  %v11073_v9 = vunpack.i.l.bf16 %v11072_v2 }
 0xc71   : > { %v8268_v57 = vsel %vm8267_vm5, %v8251_v49, %v11073_v9  ;;  %v8269_v35 = vsel %vm8267_vm5, %v8252_v28, %v11074_v20  ;;  %v15002_v9 = vld [vmem:[#allocation30_spill] sm:$0xff]  ;;  %v15003_v28 = vld [vmem:[#allocation28_spill] sm:$0xff] }
 0xc72   : > { %v8284_v62 = vpack.c.bf16 %v8269_v35, %v8268_v57  ;;  %v11077_v36 = vpop.permute.xlu0 %11076  ;;  %v8243_v49 = vsel %vm1019_vm2, %v15002_v9, %v11064_v12  ;;  %v8242_v57 = vsel %vm1019_vm2, %v15003_v28, %v11063_v40 }
 0xc73   : > { %v11079_v50 = vunpack.i.h.bf16 %v11077_v36  ;;  %v11078_v56 = vunpack.i.l.bf16 %v11077_v36 }
 0xc74   : > { %10896 = vmatprep.mubr.msk.bf16.mxu0 %vm766_vm0, %v8284_v62 }
 0xc75   : > { %v8259_v37 = vsel %vm8250_vm4, %v8242_v57, %v11078_v56  ;;  %v8260_v30 = vsel %vm8250_vm4, %v8243_v49, %v11079_v50 }
 0xc76   : > { %v11082_v29 = vpop.permute.xlu1 %11081 }
 0xc77   : > { %v11084_v10 = vunpack.i.h.bf16 %v11082_v29  ;;  %v11083_v27 = vunpack.i.l.bf16 %v11082_v29 }
 0xc79   : > { %v8271_v15 = vsel %vm8267_vm5, %v8254_v1, %v11084_v10  ;;  %v8270_v33 = vsel %vm8267_vm5, %v8253_v52, %v11083_v27  ;;  %v15004_v27 = vld [vmem:[#allocation31_spill] sm:$0xff]  ;;  %v15005_v1 = vld [vmem:[#allocation33_spill] sm:$0xff] }
 0xc7a   : > { %v8285_v31 = vpack.c.bf16 %v8271_v15, %v8270_v33  ;;  %v11087_v11 = vpop.permute.xlu1 %11086  ;;  %v8245_v52 = vsel %vm1019_vm2, %v15004_v27, %v11069_v3  ;;  %v8244_v15 = vsel %vm1019_vm2, %v15005_v1, %v11068_v51  ;;  %v15012_v3 = vld [vmem:[#allocation8_spill] sm:$0xff] }
 0xc7b   : > { %v11089_v14 = vunpack.i.h.bf16 %v11087_v11  ;;  %v11088_v17 = vunpack.i.l.bf16 %v11087_v11 }
 0xc7c   : > { %10897 = vmatmul.mubr.msk.bf16.vlgmr.msra.gmra.mxu0 %vm766_vm0, %v8285_v31 }
 0xc7d   : > { %v8262_v31 = vsel %vm8250_vm4, %v8245_v52, %v11089_v14  ;;  %v8261_v43 = vsel %vm8250_vm4, %v8244_v15, %v11088_v17  ;;  %v15013_v14 = vld [vmem:[#allocation7_spill] sm:$0xff] }
 0xc7e   : > { %v11092_v39 = vpop.permute.xlu0 %11091 }
 0xc7f   : > { %v11094_v47 = vunpack.i.h.bf16 %v11092_v39  ;;  %v11093_v6 = vunpack.i.l.bf16 %v11092_v39 }
 0xc81   : > { %v8272_v22 = vsel %vm8267_vm5, %v8255_v34, %v11093_v6  ;;  %v8273_v23 = vsel %vm8267_vm5, %v8256_v19, %v11094_v47  ;;  %v15006_v47 = vld [vmem:[#allocation32_spill] sm:$0xff]  ;;  %v15007_v34 = vld [vmem:[#allocation34_spill] sm:$0xff] }
 0xc82   : > { %v8286_v55 = vpack.c.bf16 %v8273_v23, %v8272_v22  ;;  %v11097_v8 = vpop.permute.xlu0 %11096 }
 0xc83   : > { %v11099_v39 = vunpack.i.h.bf16 %v11097_v8  ;;  %v11098_v26 = vunpack.i.l.bf16 %v11097_v8 }
 0xc84   : > { %10900 = vmatprep.mubr.msk.bf16.mxu0 %vm766_vm0, %v8286_v55 }
 0xc85   : > { %v8247_v6 = vsel %vm1019_vm2, %v15006_v47, %v11099_v39  ;;  %v8246_v19 = vsel %vm1019_vm2, %v15007_v34, %v11098_v26  ;;  %v15017_v47 = vld [vmem:[#allocation11_spill] sm:$0xff] }
 0xc86   : > { %v11102_v46 = vpop.permute.xlu1 %11101 }
 0xc87   : > { %v11104_v7 = vunpack.i.h.bf16 %v11102_v46  ;;  %v11103_v63 = vunpack.i.l.bf16 %v11102_v46 }
 0xc89   : > { %v8275_v13 = vsel %vm8267_vm5, %v8258_v5, %v11104_v7  ;;  %v8274_v53 = vsel %vm8267_vm5, %v8257_v25, %v11103_v63  ;;  %v15008_v7 = vld [vmem:[#allocation36_spill] sm:$0xff]  ;;  %v15009_v25 = vld [vmem:[#allocation35_spill] sm:$0xff] }
 0xc8a   : > { %v8287_v2 = vpack.c.bf16 %v8275_v13, %v8274_v53  ;;  %v11107_v58 = vpop.permute.xlu1 %11106 }
 0xc8b   : > { %v11109_v46 = vunpack.i.h.bf16 %v11107_v58  ;;  %v11108_v54 = vunpack.i.l.bf16 %v11107_v58 }
 0xc8c   : > { %10901 = vmatmul.mubr.msk.bf16.gmra.mxu0 %vm766_vm0, %v8287_v2 }
 0xc8d   : > { %v8249_v63 = vsel %vm1019_vm2, %v15008_v7, %v11109_v46  ;;  %v8248_v5 = vsel %vm1019_vm2, %v15009_v25, %v11108_v54  ;;  %v15019_v54 = vld [vmem:[#allocation16_spill] sm:$0xff] }
 0xc8e   : > { %v11112_v20 = vpop.permute.xlu0 %11111 }
 0xc8f   : > { %v11114_v35 = vunpack.i.h.bf16 %v11112_v20  ;;  %v11113_v62 = vunpack.i.l.bf16 %v11112_v20  ;;  %v14100_v20 = vld [vmem:[%s14875_s8] ss:$0 sm:$0xff] }
 0xc91   : > { %v8276_v24 = vsel %vm8267_vm5, %v8259_v37, %v11113_v62  ;;  %v8277_v61 = vsel %vm8267_vm5, %v8260_v30, %v11114_v35  ;;  %v15010_v35 = vld [vmem:[#allocation6_spill] sm:$0xff]  ;;  %v15011_v30 = vld [vmem:[#allocation5_spill] sm:$0xff] }
 0xc92   : > { %v8288_v29 = vpack.c.bf16 %v8277_v61, %v8276_v24  ;;  %v11117_v44 = vpop.permute.xlu0 %11116 }
 0xc93   : > { %v11119_v42 = vunpack.i.h.bf16 %v11117_v44  ;;  %v11118_v41 = vunpack.i.l.bf16 %v11117_v44 }
 0xc94   : > { %10904 = vmatprep.mubr.msk.bf16.mxu0 %vm766_vm0, %v8288_v29 }
 0xc95   : > { %v8263_v11 = vsel %vm8250_vm4, %v8246_v19, %v11118_v41  ;;  %v8264_v55 = vsel %vm8250_vm4, %v8247_v6, %v11119_v42  ;;  %v15016_v41 = vld [vmem:[#allocation9_spill] sm:$0xff] }
 0xc96   : > { %v11122_v10 = vpop.permute.xlu1 %11121 }
 0xc97   : > { %v11124_v33 = vunpack.i.h.bf16 %v11122_v10  ;;  %v11123_v36 = vunpack.i.l.bf16 %v11122_v10 }
 0xc99   : > { %v8279_v21 = vsel %vm8267_vm5, %v8262_v31, %v11124_v33  ;;  %v8278_v48 = vsel %vm8267_vm5, %v8261_v43, %v11123_v36  ;;  %v15014_v43 = vld [vmem:[#allocation10_spill] sm:$0xff] }
 0xc9a   : > { %v8289_v16 = vpack.c.bf16 %v8279_v21, %v8278_v48  ;;  %v11127_v45 = vpop.permute.xlu1 %11126 }
 0xc9b   : > { %v11129_v4 = vunpack.i.h.bf16 %v11127_v45  ;;  %v11128_v59 = vunpack.i.l.bf16 %v11127_v45 }
 0xc9c   : > { %10905 = vmatmul.mubr.msk.bf16.gmra.mxu0 %vm766_vm0, %v8289_v16  ;;  %v15015_v16 = vld [vmem:[#allocation12_spill] sm:$0xff] }
 0xc9d   : > { %v8266_v8 = vsel %vm8250_vm4, %v8249_v63, %v11129_v4  ;;  %v8265_v2 = vsel %vm8250_vm4, %v8248_v5, %v11128_v59  ;;  %v15020_v63 = vld [vmem:[#allocation14_spill] sm:$0xff]  ;;  %v15021_v5 = vld [vmem:[#allocation15_spill] sm:$0xff] }
 0xccb   : > { %v11132_v0 = vpop.permute.xlu0 %11131 }
 0xccc   : > { %v11134_v22 = vunpack.i.h.bf16 %v11132_v0  ;;  %v11133_v23 = vunpack.i.l.bf16 %v11132_v0 }
 0xcce   : > { %v8280_v38 = vsel %vm8267_vm5, %v8263_v11, %v11133_v23  ;;  %v8281_v32 = vsel %vm8267_vm5, %v8264_v55, %v11134_v22 }
 0xccf   : > { %v8290_v18 = vpack.c.bf16 %v8281_v32, %v8280_v38  ;;  %v15018_v32 = vld [vmem:[#allocation13_spill] sm:$0xff] }
 0xcd1   : > { %10908 = vmatprep.mubr.msk.bf16.mxu0 %vm766_vm0, %v8290_v18 }
 0xcd3   : > { %v11137_v60 = vpop.permute.xlu1 %11136 }
 0xcd4   : > { %v11139_v13 = vunpack.i.h.bf16 %v11137_v60  ;;  %v11138_v53 = vunpack.i.l.bf16 %v11137_v60 }
 0xcd6   : > { %v8283_v12 = vsel %vm8267_vm5, %v8266_v8, %v11139_v13  ;;  %v8282_v40 = vsel %vm8267_vm5, %v8265_v2, %v11138_v53 }
 0xcd7   : > { %v8291_v50 = vpack.c.bf16 %v8283_v12, %v8282_v40 }
 0xcd9   : > { %10909 = vmatmul.mubr.msk.bf16.gmra.mxu0 %vm766_vm0, %v8291_v50 }
 0xd3c   : > { %v10898_v56 = vpop.f32.mrf.mxu0 }
 0xd3d   : > { %v8382_v49 = vadd.f32 %v10898_v56, %v14100_v20 }
 0xd3e   : > { %v8373_v9 = vpop.f32.mrf.mxu0 }
 0xd3f   : > { %v8374_v28 = vadd.f32 %v14100_v20, %v8373_v9  ;;  %v14108_v24 = vadd.f32 %v8382_v49, %v15011_v30  ;;  %v15022_v49 = vld [vmem:[#allocation18_spill] sm:$0xff] }
 0xd40   : > { %v10899_v57 = vpop.f32.mrf.mxu0 }
 0xd41   : > { %v14105_v62 = vadd.f32 %v8374_v28, %v15010_v35  ;;  %v8385_v61 = vadd.f32 %v10899_v57, %v14100_v20  ;;  %v8460_v27 = vsel %vm766_vm0, %v14108_v24, 0.0  ;;  %v15023_v35 = vld [vmem:[#allocation20_spill] sm:$0xff] }
 0xd42   : > { %v8376_v37 = vpop.f32.mrf.mxu0 }
 0xd43   : > { %v8377_v58 = vadd.f32 %v14100_v20, %v8376_v37  ;;  %v8454_v29 = vsel %vm766_vm0, %v14105_v62, 0.0  ;;  %v14118_v17 = vadd.f32 %v8385_v61, %v15013_v14  ;;  %v15025_v14 = vld [vmem:[#allocation19_spill] sm:$0xff] }
 0xd44   : > { %8455 = vadd.xlane.f32.xlu0 %v8454_v29  ;;  %v15024_v29 = vld [vmem:[#allocation17_spill] sm:$0xff] }
 0xd45   : > { %v14115_v51 = vadd.f32 %v8377_v58, %v15012_v3  ;;  %v8463_v52 = vsel %vm766_vm0, %v14118_v17, 0.0 }
 0xd47   : > { %v8457_v10 = vsel %vm766_vm0, %v14115_v51, 0.0 }
 0xd48   : > { %8458 = vadd.xlane.f32.xlu1 %v8457_v10  ;;  %8461 = vadd.xlane.f32.xlu0 %v8460_v27 }
 0xd4c   : > { %v10902_v1 = vpop.f32.mrf.mxu0  ;;  %8464 = vadd.xlane.f32.xlu0 %v8463_v52 }
 0xd4d   : > { %v8398_v33 = vadd.f32 %v10902_v1, %v14100_v20 }
 0xd4e   : > { %v8389_v15 = vpop.f32.mrf.mxu0 }
 0xd4f   : > { %v8390_v36 = vadd.f32 %v14100_v20, %v8389_v15  ;;  %v14132_v44 = vadd.f32 %v8398_v33, %v15015_v16 }
 0xd50   : > { %v10903_v31 = vpop.f32.mrf.mxu0 }
 0xd51   : > { %v14129_v21 = vadd.f32 %v8390_v36, %v15014_v43  ;;  %v8401_v39 = vadd.f32 %v10903_v31, %v14100_v20  ;;  %v8472_v34 = vsel %vm766_vm0, %v14132_v44, 0.0 }
 0xd52   : > { %v8392_v48 = vpop.f32.mrf.mxu0 }
 0xd53   : > { %v8393_v26 = vadd.f32 %v14100_v20, %v8392_v48  ;;  %v8466_v42 = vsel %vm766_vm0, %v14129_v21, 0.0  ;;  %v14142_v6 = vadd.f32 %v8401_v39, %v15017_v47 }
 0xd54   : > { %8467 = vadd.xlane.f32.xlu1 %v8466_v42 }
 0xd55   : > { %v14139_v0 = vadd.f32 %v8393_v26, %v15016_v41  ;;  %v8475_v22 = vsel %vm766_vm0, %v14142_v6, 0.0 }
 0xd57   : > { %v8469_v19 = vsel %vm766_vm0, %v14139_v0, 0.0 }
 0xd58   : > { %8473 = vadd.xlane.f32.xlu1 %v8472_v34  ;;  %8470 = vadd.xlane.f32.xlu0 %v8469_v19 }
 0xd5c   : > { %v10906_v23 = vpop.f32.mrf.mxu0  ;;  %8476 = vadd.xlane.f32.xlu0 %v8475_v22 }
 0xd5d   : > { %v8414_v55 = vadd.f32 %v10906_v23, %v14100_v20 }
 0xd5e   : > { %v8405_v11 = vpop.f32.mrf.mxu0 }
 0xd5f   : > { %v8406_v45 = vadd.f32 %v14100_v20, %v8405_v11  ;;  %v14156_v4 = vadd.f32 %v8414_v55, %v15019_v54 }
 0xd60   : > { %v10907_v38 = vpop.f32.mrf.mxu0 }
 0xd61   : > { %v14153_v18 = vadd.f32 %v8406_v45, %v15018_v32  ;;  %v8417_v59 = vadd.f32 %v10907_v38, %v14100_v20  ;;  %v8484_v53 = vsel %vm766_vm0, %v14156_v4, 0.0 }
 0xd62   : > { %v8408_v46 = vpop.f32.mrf.mxu0 }
 0xd63   : > { %v8409_v60 = vadd.f32 %v14100_v20, %v8408_v46  ;;  %v8478_v7 = vsel %vm766_vm0, %v14153_v18, 0.0  ;;  %v14166_v13 = vadd.f32 %v8417_v59, %v15021_v5 }
 0xd64   : > { %8479 = vadd.xlane.f32.xlu1 %v8478_v7 }
 0xd65   : > { %v14163_v25 = vadd.f32 %v8409_v60, %v15020_v63  ;;  %v8487_v2 = vsel %vm766_vm0, %v14166_v13, 0.0 }
 0xd67   : > { %v8481_v8 = vsel %vm766_vm0, %v14163_v25, 0.0 }
 0xd68   : > { %8485 = vadd.xlane.f32.xlu1 %v8484_v53  ;;  %8482 = vadd.xlane.f32.xlu0 %v8481_v8 }
 0xd6c   : > { %8488 = vadd.xlane.f32.xlu0 %v8487_v2 }
 0xd99   : > { %v10910_v12 = vpop.f32.mrf.mxu0 }
 0xd9a   : > { %v8430_v50 = vadd.f32 %v10910_v12, %v14100_v20 }
 0xd9b   : > { %v8421_v40 = vpop.f32.mrf.mxu0 }
 0xd9c   : > { %v8422_v56 = vadd.f32 %v14100_v20, %v8421_v40  ;;  %v14180_v37 = vadd.f32 %v8430_v50, %v15023_v35 }
 0xd9d   : > { %v10911_v9 = vpop.f32.mrf.mxu0 }
 0xd9e   : > { %v14177_v28 = vadd.f32 %v8422_v56, %v15022_v49  ;;  %v8433_v30 = vadd.f32 %v10911_v9, %v14100_v20  ;;  %v8496_v27 = vsel %vm766_vm0, %v14180_v37, 0.0 }
 0xd9f   : > { %v8424_v57 = vpop.f32.mrf.mxu0 }
 0xda0   : > { %v8425_v61 = vadd.f32 %v14100_v20, %v8424_v57  ;;  %v8490_v58 = vsel %vm766_vm0, %v14177_v28, 0.0  ;;  %v14190_v10 = vadd.f32 %v8433_v30, %v15025_v14 }
 0xda1   : > { %8491 = vadd.xlane.f32.xlu1 %v8490_v58 }
 0xda2   : > { %v14187_v3 = vadd.f32 %v8425_v61, %v15024_v29  ;;  %v8499_v20 = vsel %vm766_vm0, %v14190_v10, 0.0 }
 0xda4   : > { %v8493_v52 = vsel %vm766_vm0, %v14187_v3, 0.0 }
 0xda5   : > { %8497 = vadd.xlane.f32.xlu1 %v8496_v27  ;;  %8494 = vadd.xlane.f32.xlu0 %v8493_v52 }
 0xda9   : > { %8500 = vadd.xlane.f32.xlu0 %v8499_v20 }
 0xdcd   : > { %v8456_v1 = vpop.xlane.xlu0 %8455 }
 0xdce   : > { %v8503_v15 = vmul.f32 0.03125, %v8456_v1  ;;  %v11144_v1 = vld [vmem:[%s14878_s11 + $0x8] sm:$0xff]  }
 0xdcf   : > { %10912 = vmatprep.subr.bf16.mxu1 %v11144_v1 }
 0xdd0   : > { %v14199_v33 = vsub.f32 %v14105_v62, %v8503_v15  ;;  %10913 = vmatpush3.bf16.msra.mxu1 %v11144_v1 }
 0xdd1   : > { %v8459_v36 = vpop.xlane.xlu1 %8458  ;;  %v8462_v31 = vpop.xlane.xlu0 %8461 }
 0xdd2   : > { %v8504_v43 = vmul.f32 0.03125, %v8459_v36  ;;  %v8505_v48 = vmul.f32 0.03125, %v8462_v31  ;;  %v8535_v16 = vmul.f32 %v14199_v33, %v14199_v33 }
 0xdd4   : > { %v14204_v39 = vsub.f32 %v14115_v51, %v8504_v43  ;;  %v14207_v26 = vsub.f32 %v14108_v24, %v8505_v48  ;;  %v8551_v42 = vsel %vm766_vm0, %v8535_v16, 0.0 }
 0xdd5   : > { %8552 = vadd.xlane.f32.xlu1 %v8551_v42  ;;  %v8465_v41 = vpop.xlane.xlu0 %8464 }
 0xdd6   : > { %v8506_v47 = vmul.f32 0.03125, %v8465_v41  ;;  %v8536_v62 = vmul.f32 %v14204_v39, %v14204_v39  ;;  %v8537_v34 = vmul.f32 %v14207_v26, %v14207_v26 }
 0xdd8   : > { %v14215_v19 = vsub.f32 %v14118_v17, %v8506_v47  ;;  %v8554_v51 = vsel %vm766_vm0, %v8536_v62, 0.0  ;;  %v8557_v22 = vsel %vm766_vm0, %v8537_v34, 0.0 }
 0xdd9   : > { %8555 = vadd.xlane.f32.xlu0 %v8554_v51  ;;  %8558 = vadd.xlane.f32.xlu1 %v8557_v22 }
 0xdda   : > { %v8538_v24 = vmul.f32 %v14215_v19, %v14215_v19 }
 0xddc   : > { %v8560_v23 = vsel %vm766_vm0, %v8538_v24, 0.0 }
 0xddd   : > { %v8468_v11 = vpop.xlane.xlu1 %8467  ;;  %8561 = vadd.xlane.f32.xlu0 %v8560_v23 }
 0xdde   : > { %v8507_v55 = vmul.f32 0.03125, %v8468_v11 }
 0xde0   : > { %v14223_v45 = vsub.f32 %v14129_v21, %v8507_v55 }
 0xde1   : > { %v8474_v38 = vpop.xlane.xlu1 %8473  ;;  %v8471_v17 = vpop.xlane.xlu0 %8470 }
 0xde2   : > { %v8509_v32 = vmul.f32 0.03125, %v8474_v38  ;;  %v8508_v46 = vmul.f32 0.03125, %v8471_v17  ;;  %v8539_v54 = vmul.f32 %v14223_v45, %v14223_v45 }
 0xde4   : > { %v14228_v59 = vsub.f32 %v14132_v44, %v8509_v32  ;;  %v14231_v60 = vsub.f32 %v14139_v0, %v8508_v46  ;;  %v8563_v7 = vsel %vm766_vm0, %v8539_v54, 0.0 }
 0xde5   : > { %8564 = vadd.xlane.f32.xlu1 %v8563_v7  ;;  %v8477_v63 = vpop.xlane.xlu0 %8476 }
 0xde6   : > { %v8510_v5 = vmul.f32 0.03125, %v8477_v63  ;;  %v8541_v21 = vmul.f32 %v14228_v59, %v14228_v59  ;;  %v8540_v53 = vmul.f32 %v14231_v60, %v14231_v60 }
 0xde8   : > { %v14239_v8 = vsub.f32 %v14142_v6, %v8510_v5  ;;  %v8569_v44 = vsel %vm766_vm0, %v8541_v21, 0.0  ;;  %v8566_v2 = vsel %vm766_vm0, %v8540_v53, 0.0 }
 0xde9   : > { %8570 = vadd.xlane.f32.xlu1 %v8569_v44  ;;  %8567 = vadd.xlane.f32.xlu0 %v8566_v2 }
 0xdea   : > { %v8542_v0 = vmul.f32 %v14239_v8, %v14239_v8 }
 0xdec   : > { %v8572_v12 = vsel %vm766_vm0, %v8542_v0, 0.0 }
 0xded   : > { %v8480_v40 = vpop.xlane.xlu1 %8479  ;;  %8573 = vadd.xlane.f32.xlu0 %v8572_v12 }
 0xdee   : > { %v8511_v50 = vmul.f32 0.03125, %v8480_v40 }
 0xdf0   : > { %v14247_v56 = vsub.f32 %v14153_v18, %v8511_v50 }
 0xdf1   : > { %v8486_v9 = vpop.xlane.xlu1 %8485  ;;  %v8483_v6 = vpop.xlane.xlu0 %8482 }
 0xdf2   : > { %v8513_v49 = vmul.f32 0.03125, %v8486_v9  ;;  %v8512_v57 = vmul.f32 0.03125, %v8483_v6  ;;  %v8543_v35 = vmul.f32 %v14247_v56, %v14247_v56 }
 0xdf4   : > { %v14252_v30 = vsub.f32 %v14156_v4, %v8513_v49  ;;  %v14255_v61 = vsub.f32 %v14163_v25, %v8512_v57  ;;  %v8575_v58 = vsel %vm766_vm0, %v8543_v35, 0.0  ;;  %v14304_v57 = vld [vmem:[%s14876_s9] ss:$0 sm:$0xff] }
 0xdf5   : > { %8576 = vadd.xlane.f32.xlu1 %v8575_v58  ;;  %v8489_v29 = vpop.xlane.xlu0 %8488 }
 0xdf6   : > { %v8514_v14 = vmul.f32 0.03125, %v8489_v29  ;;  %v8545_v18 = vmul.f32 %v14252_v30, %v14252_v30  ;;  %v8544_v27 = vmul.f32 %v14255_v61, %v14255_v61 }
 0xdf8   : > { %v14263_v52 = vsub.f32 %v14166_v13, %v8514_v14  ;;  %v8581_v4 = vsel %vm766_vm0, %v8545_v18, 0.0  ;;  %v8578_v20 = vsel %vm766_vm0, %v8544_v27, 0.0  ;;  %v11145_v13 = vld [vmem:[%s14878_s11] sm:$0xff]  }
 0xdf9   : > { %8582 = vadd.xlane.f32.xlu1 %v8581_v4  ;;  %8579 = vadd.xlane.f32.xlu0 %v8578_v20 }
 0xdfa   : > { %v8546_v25 = vmul.f32 %v14263_v52, %v14263_v52  ;;  %10914 = vmatprep.subr.bf16.mxu1 %v11145_v13 }
 0xdfb   : > { %10915 = vmatpush3.bf16.msra.mxu1 %v11145_v13 }
 0xdfc   : > { %v8584_v15 = vsel %vm766_vm0, %v8546_v25, 0.0 }
 0xdfd   : > { %8585 = vadd.xlane.f32.xlu0 %v8584_v15  ;;  %v14312_v15 = vld [vmem:[%s14877_s10] ss:$0 sm:$0xff] }
 0xe2a   : > { %v8492_v36 = vpop.xlane.xlu1 %8491 }
 0xe2b   : > { %v8515_v31 = vmul.f32 0.03125, %v8492_v36 }
 0xe2d   : > { %v14277_v43 = vsub.f32 %v14177_v28, %v8515_v31 }
 0xe2e   : > { %v8498_v48 = vpop.xlane.xlu1 %8497  ;;  %v8495_v16 = vpop.xlane.xlu0 %8494 }
 0xe2f   : > { %v8517_v42 = vmul.f32 0.03125, %v8498_v48  ;;  %v8516_v41 = vmul.f32 0.03125, %v8495_v16  ;;  %v8547_v47 = vmul.f32 %v14277_v43, %v14277_v43 }
 0xe31   : > { %v14282_v62 = vsub.f32 %v14180_v37, %v8517_v42  ;;  %v14285_v34 = vsub.f32 %v14187_v3, %v8516_v41  ;;  %v8587_v51 = vsel %vm766_vm0, %v8547_v47, 0.0 }
 0xe32   : > { %8588 = vadd.xlane.f32.xlu1 %v8587_v51  ;;  %v8501_v22 = vpop.xlane.xlu0 %8500 }
 0xe33   : > { %v8518_v24 = vmul.f32 0.03125, %v8501_v22  ;;  %v8549_v28 = vmul.f32 %v14282_v62, %v14282_v62  ;;  %v8548_v23 = vmul.f32 %v14285_v34, %v14285_v34 }
 0xe35   : > { %v14293_v11 = vsub.f32 %v14190_v10, %v8518_v24  ;;  %v8593_v37 = vsel %vm766_vm0, %v8549_v28, 0.0  ;;  %v8590_v55 = vsel %vm766_vm0, %v8548_v23, 0.0 }
 0xe36   : > { %8594 = vadd.xlane.f32.xlu1 %v8593_v37  ;;  %8591 = vadd.xlane.f32.xlu0 %v8590_v55 }
 0xe37   : > { %v8550_v3 = vmul.f32 %v14293_v11, %v14293_v11 }
 0xe39   : > { %v8596_v38 = vsel %vm766_vm0, %v8550_v3, 0.0 }
 0xe3a   : > { %8597 = vadd.xlane.f32.xlu0 %v8596_v38 }
 0xe5e   : > { %v8553_v17 = vpop.xlane.xlu1 %8552 }
 0xe5f   : > { %v8599_v32 = vmul.f32 0.03125, %v8553_v17 }
 0xe61   : > { %v8615_v46 = vadd.f32 1e-05, %v8599_v32 }
 0xe62   : > { %v8559_v54 = vpop.xlane.xlu1 %8558  ;;  %v8556_v7 = vpop.xlane.xlu0 %8555 }
 0xe63   : > { %11406 = vrsqrt.f32 %v8615_v46  ;;  %v8601_v10 = vmul.f32 0.03125, %v8559_v54  ;;  %v8600_v63 = vmul.f32 0.03125, %v8556_v7 }
 0xe65   : > { %v8617_v5 = vadd.f32 1e-05, %v8601_v10  ;;  %v8616_v21 = vadd.f32 1e-05, %v8600_v63 }
 0xe66   : > { %v8562_v53 = vpop.xlane.xlu0 %8561 }
 0xe67   : > { %11408 = vrsqrt.f32 %v8617_v5  ;;  %v8602_v44 = vmul.f32 0.03125, %v8562_v53 }
 0xe68   : > { %11410 = vrsqrt.f32 %v8616_v21 }
 0xe69   : > { %v8618_v2 = vadd.f32 1e-05, %v8602_v44 }
 0xe6b   : > { %11412 = vrsqrt.f32 %v8618_v2 }
 0xe6e   : > { %v8565_v0 = vpop.xlane.xlu1 %8564 }
 0xe6f   : > { %v8603_v12 = vmul.f32 0.03125, %v8565_v0 }
 0xe70   : > { %v11407_v40 = vpop.eup %11406 }
 0xe71   : > { %v8619_v50 = vadd.f32 1e-05, %v8603_v12  ;;  %v8647_v49 = vmul.f32 %v11407_v40, %v14199_v33 }
 0xe72   : > { %v8571_v9 = vpop.xlane.xlu1 %8570  ;;  %v8568_v6 = vpop.xlane.xlu0 %8567 }
 0xe73   : > { %11414 = vrsqrt.f32 %v8619_v50  ;;  %v8605_v35 = vmul.f32 0.03125, %v8571_v9  ;;  %v8604_v58 = vmul.f32 0.03125, %v8568_v6  ;;  %v8669_v1 = vmul.f32 %v14304_v57, %v8647_v49 }
 0xe74   : > { %v11409_v29 = vpop.eup %11408 }
 0xe75   : > { %v11411_v14 = vpop.eup %11410  ;;  %v8649_v18 = vmul.f32 %v11409_v29, %v14207_v26  ;;  %v8621_v27 = vadd.f32 1e-05, %v8605_v35  ;;  %v8620_v4 = vadd.f32 1e-05, %v8604_v58 }
 0xe76   : > { %v8574_v20 = vpop.xlane.xlu0 %8573  ;;  %v8648_v25 = vmul.f32 %v11411_v14, %v14204_v39  ;;  %v14318_v39 = vadd.f32 %v14312_v15, %v8669_v1 }
 0xe77   : > { %11416 = vrsqrt.f32 %v8621_v27  ;;  %v8606_v33 = vmul.f32 0.03125, %v8574_v20  ;;  %v8671_v26 = vmul.f32 %v14304_v57, %v8649_v18 }
 0xe78   : > { %v11413_v13 = vpop.eup %11412  ;;  %11418 = vrsqrt.f32 %v8620_v4  ;;  %v8670_v36 = vmul.f32 %v14304_v57, %v8648_v25 }
 0xe79   : > { %v8650_v31 = vmul.f32 %v11413_v13, %v14215_v19  ;;  %v8622_v48 = vadd.f32 1e-05, %v8606_v33  ;;  %v14327_v47 = vadd.f32 %v14312_v15, %v8671_v26 }
 0xe7a   : > { %v14321_v16 = vadd.f32 %v14312_v15, %v8670_v36 }
 0xe7b   : > { %v8672_v42 = vmul.f32 %v14304_v57, %v8650_v31  ;;  %11420 = vrsqrt.f32 %v8622_v48 }
 0xe7c   : > { %v8707_v41 = vpack.c.bf16 %v14321_v16, %v14318_v39 }
 0xe7d   : > { %v14330_v51 = vadd.f32 %v14312_v15, %v8672_v42 }
 0xe7e   : > { %10916 = vmatprep.mubr.msk.bf16.mxu1 %vm766_vm0, %v8707_v41  ;;  %v8577_v19 = vpop.xlane.xlu1 %8576 }
 0xe7f   : > { %v8607_v22 = vmul.f32 0.03125, %v8577_v19  ;;  %v8708_v24 = vpack.c.bf16 %v14330_v51, %v14327_v47 }
 0xe80   : > { %v11415_v28 = vpop.eup %11414 }
 0xe81   : > { %v8623_v23 = vadd.f32 1e-05, %v8607_v22  ;;  %10917 = vmatmul.mubr.msk.bf16.vlgmr.msra.gmra.mxu1 %vm766_vm0, %v8708_v24  ;;  %v8651_v3 = vmul.f32 %v11415_v28, %v14223_v45 }
 0xe82   : > { %v8583_v37 = vpop.xlane.xlu1 %8582  ;;  %v8580_v55 = vpop.xlane.xlu0 %8579 }
 0xe83   : > { %11422 = vrsqrt.f32 %v8623_v23  ;;  %v8609_v38 = vmul.f32 0.03125, %v8583_v37  ;;  %v8608_v17 = vmul.f32 0.03125, %v8580_v55  ;;  %v8673_v21 = vmul.f32 %v14304_v57, %v8651_v3 }
 0xe84   : > { %v11417_v32 = vpop.eup %11416 }
 0xe85   : > { %v11419_v46 = vpop.eup %11418  ;;  %v8653_v54 = vmul.f32 %v11417_v32, %v14228_v59  ;;  %v8625_v7 = vadd.f32 1e-05, %v8609_v38  ;;  %v8624_v10 = vadd.f32 1e-05, %v8608_v17  ;;  %v14344_v59 = vadd.f32 %v14312_v15, %v8673_v21 }
 0xe86   : > { %v8586_v63 = vpop.xlane.xlu0 %8585  ;;  %v8652_v5 = vmul.f32 %v11419_v46, %v14231_v60 }
 0xe87   : > { %11424 = vrsqrt.f32 %v8625_v7  ;;  %v8610_v53 = vmul.f32 0.03125, %v8586_v63  ;;  %v8675_v12 = vmul.f32 %v14304_v57, %v8653_v54 }
 0xe88   : > { %v11421_v44 = vpop.eup %11420  ;;  %11426 = vrsqrt.f32 %v8624_v10  ;;  %v8674_v45 = vmul.f32 %v14304_v57, %v8652_v5 }
 0xe89   : > { %v8654_v2 = vmul.f32 %v11421_v44, %v14239_v8  ;;  %v8626_v0 = vadd.f32 1e-05, %v8610_v53  ;;  %v14353_v9 = vadd.f32 %v14312_v15, %v8675_v12  ;;  %v14429_v12 = vld [vmem:[%s14879_s12] ss:$0 sm:$0xff] }
 0xe8a   : > { %v14347_v40 = vadd.f32 %v14312_v15, %v8674_v45 }
 0xe8b   : > { %11428 = vrsqrt.f32 %v8626_v0  ;;  %v8676_v60 = vmul.f32 %v14304_v57, %v8654_v2  ;;  %v11149_v0 = vld [vmem:[%s14880_s13] sm:$0xff]  }
 0xe8c   : > { %v8709_v50 = vpack.c.bf16 %v14347_v40, %v14344_v59 }
 0xe8d   : > { %v14356_v8 = vadd.f32 %v14312_v15, %v8676_v60 }
 0xe8e   : > { %10920 = vmatprep.mubr.msk.bf16.mxu1 %vm766_vm0, %v8709_v50 }
 0xe8f   : > { %v8710_v6 = vpack.c.bf16 %v14356_v8, %v14353_v9 }
 0xe90   : > { %v11423_v49 = vpop.eup %11422 }
 0xe91   : > { %10921 = vmatmul.mubr.msk.bf16.gmra.mxu1 %vm766_vm0, %v8710_v6  ;;  %v8655_v35 = vmul.f32 %v11423_v49, %v14247_v56 }
 0xe93   : > { %v8677_v27 = vmul.f32 %v14304_v57, %v8655_v35 }
 0xe94   : > { %v11425_v58 = vpop.eup %11424 }
 0xe95   : > { %v11427_v29 = vpop.eup %11426  ;;  %v8657_v14 = vmul.f32 %v11425_v58, %v14252_v30  ;;  %v14370_v33 = vadd.f32 %v14312_v15, %v8677_v27 }
 0xe96   : > { %v8656_v18 = vmul.f32 %v11427_v29, %v14255_v61 }
 0xe97   : > { %v8679_v1 = vmul.f32 %v14304_v57, %v8657_v14 }
 0xe98   : > { %v11429_v4 = vpop.eup %11428  ;;  %v8678_v20 = vmul.f32 %v14304_v57, %v8656_v18 }
 0xe99   : > { %v8658_v25 = vmul.f32 %v11429_v4, %v14263_v52  ;;  %v14379_v61 = vadd.f32 %v14312_v15, %v8679_v1 }
 0xe9a   : > { %v14373_v56 = vadd.f32 %v14312_v15, %v8678_v20 }
 0xe9b   : > { %v8680_v13 = vmul.f32 %v14304_v57, %v8658_v25 }
 0xe9c   : > { %v8711_v30 = vpack.c.bf16 %v14373_v56, %v14370_v33 }
 0xe9d   : > { %v14382_v36 = vadd.f32 %v14312_v15, %v8680_v13 }
 0xe9e   : > { %10924 = vmatprep.mubr.msk.bf16.mxu1 %vm766_vm0, %v8711_v30 }
 0xe9f   : > { %v8712_v52 = vpack.c.bf16 %v14382_v36, %v14379_v61 }
 0xea1   : > { %10925 = vmatmul.mubr.msk.bf16.gmra.mxu1 %vm766_vm0, %v8712_v52 }
 0xebb   : > { %v8589_v26 = vpop.xlane.xlu1 %8588 }
 0xebc   : > { %v8611_v31 = vmul.f32 0.03125, %v8589_v26 }
 0xebe   : > { %v8627_v48 = vadd.f32 1e-05, %v8611_v31 }
 0xebf   : > { %v8595_v42 = vpop.xlane.xlu1 %8594  ;;  %v8592_v41 = vpop.xlane.xlu0 %8591 }
 0xec0   : > { %11430 = vrsqrt.f32 %v8627_v48  ;;  %v8613_v19 = vmul.f32 0.03125, %v8595_v42  ;;  %v8612_v22 = vmul.f32 0.03125, %v8592_v41 }
 0xec2   : > { %v8629_v24 = vadd.f32 1e-05, %v8613_v19  ;;  %v8628_v28 = vadd.f32 1e-05, %v8612_v22 }
 0xec3   : > { %v8598_v23 = vpop.xlane.xlu0 %8597 }
 0xec4   : > { %11432 = vrsqrt.f32 %v8629_v24  ;;  %v8614_v37 = vmul.f32 0.03125, %v8598_v23 }
 0xec5   : > { %11434 = vrsqrt.f32 %v8628_v28 }
 0xec6   : > { %v8630_v55 = vadd.f32 1e-05, %v8614_v37 }
 0xec8   : > { %11436 = vrsqrt.f32 %v8630_v55 }
 0xecd   : > { %v11431_v3 = vpop.eup %11430 }
 0xece   : > { %v8659_v38 = vmul.f32 %v11431_v3, %v14277_v43 }
 0xed0   : > { %v8681_v7 = vmul.f32 %v14304_v57, %v8659_v38 }
 0xed1   : > { %v11433_v17 = vpop.eup %11432 }
 0xed2   : > { %v11435_v32 = vpop.eup %11434  ;;  %v8661_v46 = vmul.f32 %v11433_v17, %v14282_v62  ;;  %v14396_v53 = vadd.f32 %v14312_v15, %v8681_v7 }
 0xed3   : > { %v8660_v54 = vmul.f32 %v11435_v32, %v14285_v34 }
 0xed4   : > { %v8683_v21 = vmul.f32 %v14304_v57, %v8661_v46 }
 0xed5   : > { %v11437_v10 = vpop.eup %11436  ;;  %v8682_v63 = vmul.f32 %v14304_v57, %v8660_v54 }
 0xed6   : > { %v8662_v5 = vmul.f32 %v11437_v10, %v14293_v11  ;;  %v14405_v34 = vadd.f32 %v14312_v15, %v8683_v21  ;;  %v11146_v11 = vld [vmem:[%s14880_s13 + $0x18] sm:$0xff]  }
 0xed7   : > { %v14399_v43 = vadd.f32 %v14312_v15, %v8682_v63  ;;  %10932 = vmatprep.subr.bf16.mxu0 %v11146_v11 }
 0xed8   : > { %v8684_v44 = vmul.f32 %v14304_v57, %v8662_v5  ;;  %10933 = vmatpush3.bf16.msra.mxu0 %v11146_v11  ;;  %v11147_v57 = vld [vmem:[%s14880_s13 + $0x10] sm:$0xff]  }
 0xed9   : > { %v8713_v62 = vpack.c.bf16 %v14399_v43, %v14396_v53  ;;  %10934 = vmatprep.subr.bf16.mxu0 %v11147_v57 }
 0xeda   : > { %v14408_v45 = vadd.f32 %v14312_v15, %v8684_v44  ;;  %v11148_v15 = vld [vmem:[%s14880_s13 + $0x8] sm:$0xff]  }
 0xedb   : > { %10928 = vmatprep.mubr.msk.bf16.mxu1 %vm766_vm0, %v8713_v62 }
 0xedc   : > { %v8714_v2 = vpack.c.bf16 %v14408_v45, %v14405_v34  ;;  %10935 = vmatpush3.bf16.msra.mxu0 %v11147_v57 }
 0xedd   : > { %10936 = vmatprep.subr.bf16.mxu0 %v11148_v15 }
 0xede   : > { %10929 = vmatmul.mubr.msk.bf16.gmra.mxu1 %vm766_vm0, %v8714_v2 }
 0xee0   : > { %10937 = vmatpush3.bf16.msra.mxu0 %v11148_v15 }
 0xee1   : > { %10938 = vmatprep.subr.bf16.mxu0 %v11149_v0 }
 0xee4   : > { %10939 = vmatpush3.bf16.msra.mxu0 %v11149_v0 }
 0xf41   : > { %v10918_v60 = vpop.f32.mrf.mxu1 }
 0xf42   : > { %v14432_v50 = vadd.f32 %v10918_v60, %v14429_v12 }
 0xf43   : > { %v8796_v6 = vpop.f32.mrf.mxu1 }
 0xf44   : > { %v8877_v49 = vmul.f32 0.044715, %v14432_v50  ;;  %v14436_v35 = vadd.f32 %v14429_v12, %v8796_v6 }
 0xf45   : > { %v10919_v58 = vpop.f32.mrf.mxu1 }
 0xf46   : > { %v8893_v29 = vmul.f32 %v8877_v49, %v14432_v50  ;;  %v8875_v14 = vmul.f32 0.044715, %v14436_v35  ;;  %v8808_v18 = vadd.f32 %v10919_v58, %v14429_v12 }
 0xf47   : > { %v8799_v27 = vpop.f32.mrf.mxu1 }
 0xf48   : > { %v8909_v4 = vmul.f32 %v8893_v29, %v14432_v50  ;;  %v8891_v20 = vmul.f32 %v8875_v14, %v14436_v35  ;;  %v8878_v25 = vmul.f32 0.044715, %v8808_v18  ;;  %v8800_v1 = vadd.f32 %v14429_v12, %v8799_v27 }
 0xf4a   : > { %v8925_v13 = vadd.f32 %v8909_v4, %v14432_v50  ;;  %v8907_v30 = vmul.f32 %v8891_v20, %v14436_v35  ;;  %v8894_v52 = vmul.f32 %v8878_v25, %v8808_v18  ;;  %v8876_v26 = vmul.f32 0.044715, %v8800_v1 }
 0xf4c   : > { %v8941_v31 = vmul.f32 0.7978846, %v8925_v13  ;;  %v8923_v48 = vadd.f32 %v8907_v30, %v14436_v35  ;;  %v8910_v42 = vmul.f32 %v8894_v52, %v8808_v18  ;;  %v8892_v41 = vmul.f32 %v8876_v26, %v8800_v1 }
 0xf4e   : > { %v8939_v19 = vmul.f32 0.7978846, %v8923_v48  ;;  %v8926_v22 = vadd.f32 %v8910_v42, %v8808_v18  ;;  %v8908_v24 = vmul.f32 %v8892_v41, %v8800_v1  ;;  %11438 = vtanh.f32 %v8941_v31 }
 0xf4f   : > { %v8862_v42 = vmul.f32 0.5, %v8808_v18 }
 0xf50   : > { %v8942_v28 = vmul.f32 0.7978846, %v8926_v22  ;;  %11440 = vtanh.f32 %v8939_v19  ;;  %v8924_v23 = vadd.f32 %v8908_v24, %v8800_v1  ;;  %v8859_v24 = vmul.f32 0.5, %v14436_v35 }
 0xf51   : > { %v10922_v37 = vpop.f32.mrf.mxu1 }
 0xf52   : > { %11442 = vtanh.f32 %v8942_v28  ;;  %v14448_v55 = vadd.f32 %v10922_v37, %v14429_v12  ;;  %v8940_v3 = vmul.f32 0.7978846, %v8924_v23  ;;  %v8860_v28 = vmul.f32 0.5, %v8800_v1 }
 0xf53   : > { %v8812_v38 = vpop.f32.mrf.mxu1  ;;  %v8861_v37 = vmul.f32 0.5, %v14432_v50 }
 0xf54   : > { %v8881_v17 = vmul.f32 0.044715, %v14448_v55  ;;  %v14452_v32 = vadd.f32 %v14429_v12, %v8812_v38  ;;  %11444 = vtanh.f32 %v8940_v3 }
 0xf55   : > { %v10923_v46 = vpop.f32.mrf.mxu1 }
 0xf56   : > { %v8897_v54 = vmul.f32 %v8881_v17, %v14448_v55  ;;  %v8879_v7 = vmul.f32 0.044715, %v14452_v32  ;;  %v14457_v10 = vadd.f32 %v10923_v46, %v14429_v12 }
 0xf57   : > { %v8815_v63 = vpop.f32.mrf.mxu1 }
 0xf58   : > { %v8913_v5 = vmul.f32 %v8897_v54, %v14448_v55  ;;  %v8895_v21 = vmul.f32 %v8879_v7, %v14452_v32  ;;  %v8882_v44 = vmul.f32 0.044715, %v14457_v10  ;;  %v14463_v62 = vadd.f32 %v14429_v12, %v8815_v63 }
 0xf5a   : > { %v8929_v11 = vadd.f32 %v8913_v5, %v14448_v55  ;;  %v8911_v2 = vmul.f32 %v8895_v21, %v14452_v32  ;;  %v8898_v57 = vmul.f32 %v8882_v44, %v14457_v10  ;;  %v8880_v15 = vmul.f32 0.044715, %v14463_v62 }
 0xf5b   : > { %v11439_v49 = vpop.eup %11438 }
 0xf5c   : > { %v8945_v0 = vmul.f32 0.7978846, %v8929_v11  ;;  %v8927_v60 = vadd.f32 %v8911_v2, %v14452_v32  ;;  %v8914_v6 = vmul.f32 %v8898_v57, %v14457_v10  ;;  %v8896_v58 = vmul.f32 %v8880_v15, %v14463_v62 }
 0xf5d   : > { %v11441_v29 = vpop.eup %11440  ;;  %v8973_v48 = vadd.f32 1.0, %v11439_v49 }
 0xf5e   : > { %v8943_v14 = vmul.f32 0.7978846, %v8927_v60  ;;  %v8930_v27 = vadd.f32 %v8914_v6, %v14457_v10  ;;  %v8912_v20 = vmul.f32 %v8896_v58, %v14463_v62  ;;  %11446 = vtanh.f32 %v8945_v0 }
 0xf5f   : > { %v11443_v4 = vpop.eup %11442  ;;  %v8971_v26 = vadd.f32 1.0, %v11441_v29  ;;  %v8989_v7 = vmul.f32 %v8973_v48, %v8861_v37 }
 0xf60   : > { %v8974_v25 = vadd.f32 1.0, %v11443_v4  ;;  %v8946_v13 = vmul.f32 0.7978846, %v8930_v27  ;;  %11448 = vtanh.f32 %v8943_v14  ;;  %v8928_v30 = vadd.f32 %v8912_v20, %v14463_v62 }
 0xf61   : > { %v10926_v52 = vpop.f32.mrf.mxu1  ;;  %v11445_v31 = vpop.eup %11444  ;;  %v8987_v46 = vmul.f32 %v8971_v26, %v8859_v24 }
 0xf62   : > { %11450 = vtanh.f32 %v8946_v13  ;;  %v14476_v41 = vadd.f32 %v10926_v52, %v14429_v12  ;;  %v8944_v19 = vmul.f32 0.7978846, %v8928_v30  ;;  %v8972_v23 = vadd.f32 1.0, %v11445_v31 }
 0xf63   : > { %v8828_v22 = vpop.f32.mrf.mxu1  ;;  %v8990_v3 = vmul.f32 %v8974_v25, %v8862_v42 }
 0xf64   : > { %v8885_v38 = vmul.f32 0.044715, %v14476_v41  ;;  %v14482_v17 = vadd.f32 %v14429_v12, %v8828_v22  ;;  %11452 = vtanh.f32 %v8944_v19  ;;  %v8988_v54 = vmul.f32 %v8972_v23, %v8860_v28 }
 0xf65   : > { %v10927_v18 = vpop.f32.mrf.mxu1  ;;  %v9004_v21 = vpack.c.bf16 %v8990_v3, %v8989_v7  ;;  %v8866_v19 = vmul.f32 0.5, %v14457_v10  ;;  %v8863_v28 = vmul.f32 0.5, %v14452_v32  ;;  %v8864_v23 = vmul.f32 0.5, %v14463_v62 }
 0xf66   : > { %v8901_v63 = vmul.f32 %v8885_v38, %v14476_v41  ;;  %v8883_v35 = vmul.f32 0.044715, %v14482_v17  ;;  %v8840_v1 = vadd.f32 %v10927_v18, %v14429_v12  ;;  %v9003_v50 = vpack.c.bf16 %v8988_v54, %v8987_v46 }
 0xf67   : > { %v8831_v5 = vpop.f32.mrf.mxu1  ;;  %v8865_v3 = vmul.f32 0.5, %v14448_v55  ;;  %v8867_v55 = vmul.f32 0.5, %v14482_v17 }
 0xf68   : > { %v8917_v44 = vmul.f32 %v8901_v63, %v14476_v41  ;;  %v8899_v11 = vmul.f32 %v8883_v35, %v14482_v17  ;;  %v8886_v2 = vmul.f32 0.044715, %v8840_v1  ;;  %v8832_v57 = vadd.f32 %v14429_v12, %v8831_v5  ;;  %10940 = vmatprep.mubr.msk.bf16.mxu0 %vm9050_vm6, %v9003_v50 }
 0xf69   : > { %10941 = vmatmul.mubr.msk.bf16.vlgmr.msra.gmra.mxu0 %vm9050_vm6, %v9004_v21  ;;  %v8870_v21 = vmul.f32 0.5, %v8840_v1 }
 0xf6a   : > { %v8933_v15 = vadd.f32 %v8917_v44, %v14476_v41  ;;  %v8915_v0 = vmul.f32 %v8899_v11, %v14482_v17  ;;  %v8902_v60 = vmul.f32 %v8886_v2, %v8840_v1  ;;  %v8884_v6 = vmul.f32 0.044715, %v8832_v57 }
 0xf6b   : > { %v11447_v14 = vpop.eup %11446  ;;  %v8868_v11 = vmul.f32 0.5, %v8832_v57 }
 0xf6c   : > { %v8949_v49 = vmul.f32 0.7978846, %v8933_v15  ;;  %v8931_v58 = vadd.f32 %v8915_v0, %v14482_v17  ;;  %v8918_v29 = vmul.f32 %v8902_v60, %v8840_v1  ;;  %v8900_v27 = vmul.f32 %v8884_v6, %v8832_v57 }
 0xf6d   : > { %v11449_v4 = vpop.eup %11448  ;;  %v8977_v22 = vadd.f32 1.0, %v11447_v14  ;;  %v8869_v15 = vmul.f32 0.5, %v14476_v41 }
 0xf6e   : > { %v8947_v20 = vmul.f32 0.7978846, %v8931_v58  ;;  %v8934_v25 = vadd.f32 %v8918_v29, %v8840_v1  ;;  %v8916_v30 = vmul.f32 %v8900_v27, %v8832_v57  ;;  %11454 = vtanh.f32 %v8949_v49 }
 0xf6f   : > { %v11451_v13 = vpop.eup %11450  ;;  %v8975_v48 = vadd.f32 1.0, %v11449_v4  ;;  %v8993_v54 = vmul.f32 %v8977_v22, %v8865_v3 }
 0xf70   : > { %v8950_v52 = vmul.f32 0.7978846, %v8934_v25  ;;  %v8978_v26 = vadd.f32 1.0, %v11451_v13  ;;  %11456 = vtanh.f32 %v8947_v20  ;;  %v8932_v31 = vadd.f32 %v8916_v30, %v8832_v57 }
 0xf71   : > { %v11453_v42 = vpop.eup %11452  ;;  %v8991_v18 = vmul.f32 %v8975_v48, %v8863_v28 }
 0xf72   : > { %11458 = vtanh.f32 %v8950_v52  ;;  %v8948_v24 = vmul.f32 0.7978846, %v8932_v31  ;;  %v8976_v37 = vadd.f32 1.0, %v11453_v42  ;;  %v8994_v38 = vmul.f32 %v8978_v26, %v8866_v19 }
 0xf74   : > { %11460 = vtanh.f32 %v8948_v24  ;;  %v8992_v46 = vmul.f32 %v8976_v37, %v8864_v23  ;;  %v9006_v63 = vpack.c.bf16 %v8994_v38, %v8993_v54 }
 0xf76   : > { %v9005_v7 = vpack.c.bf16 %v8992_v46, %v8991_v18 }
 0xf78   : > { %10944 = vmatprep.mubr.msk.bf16.mxu0 %vm9050_vm6, %v9005_v7 }
 0xf79   : > { %10945 = vmatmul.mubr.msk.bf16.gmra.mxu0 %vm9050_vm6, %v9006_v63 }
 0xf7b   : > { %v11455_v10 = vpop.eup %11454 }
 0xf7c   : > { %v8981_v44 = vadd.f32 1.0, %v11455_v10 }
 0xf7d   : > { %v11457_v35 = vpop.eup %11456 }
 0xf7e   : > { %v8979_v50 = vadd.f32 1.0, %v11457_v35  ;;  %v8997_v49 = vmul.f32 %v8981_v44, %v8869_v15 }
 0xf7f   : > { %v11459_v5 = vpop.eup %11458 }
 0xf80   : > { %v8982_v32 = vadd.f32 1.0, %v11459_v5  ;;  %v8995_v60 = vmul.f32 %v8979_v50, %v8867_v55 }
 0xf81   : > { %v11461_v62 = vpop.eup %11460 }
 0xf82   : > { %v8980_v2 = vadd.f32 1.0, %v11461_v62  ;;  %v8998_v0 = vmul.f32 %v8982_v32, %v8870_v21 }
 0xf84   : > { %v8996_v6 = vmul.f32 %v8980_v2, %v8868_v11  ;;  %v9008_v29 = vpack.c.bf16 %v8998_v0, %v8997_v49 }
 0xf86   : > { %v9007_v58 = vpack.c.bf16 %v8996_v6, %v8995_v60 }
 0xf88   : > { %10948 = vmatprep.mubr.msk.bf16.mxu0 %vm9050_vm6, %v9007_v58  ;;  %v14514_v58 = vld [vmem:[%s14881_s14] ss:$0 sm:$0xff] }
 0xf89   : > { %10949 = vmatmul.mubr.msk.bf16.gmra.mxu0 %vm9050_vm6, %v9008_v29 }
 0xf9e   : > { %v10930_v14 = vpop.f32.mrf.mxu1 }
 0xf9f   : > { %v8853_v1 = vadd.f32 %v10930_v14, %v14429_v12 }
 0xfa0   : > { %v8844_v27 = vpop.f32.mrf.mxu1 }
 0xfa1   : > { %v8889_v4 = vmul.f32 0.044715, %v8853_v1  ;;  %v8845_v17 = vadd.f32 %v14429_v12, %v8844_v27  ;;  %v8873_v11 = vmul.f32 0.5, %v8853_v1 }
 0xfa2   : > { %v10931_v57 = vpop.f32.mrf.mxu1 }
 0xfa3   : > { %v8905_v20 = vmul.f32 %v8889_v4, %v8853_v1  ;;  %v8887_v41 = vmul.f32 0.044715, %v8845_v17  ;;  %v8856_v25 = vadd.f32 %v10931_v57, %v14429_v12  ;;  %v8871_v21 = vmul.f32 0.5, %v8845_v17 }
 0xfa4   : > { %v8847_v13 = vpop.f32.mrf.mxu1 }
 0xfa5   : > { %v8921_v30 = vmul.f32 %v8905_v20, %v8853_v1  ;;  %v8903_v52 = vmul.f32 %v8887_v41, %v8845_v17  ;;  %v8890_v26 = vmul.f32 0.044715, %v8856_v25  ;;  %v8848_v31 = vadd.f32 %v14429_v12, %v8847_v13 }
 0xfa6   : > { %v8874_v50 = vmul.f32 0.5, %v8856_v25 }
 0xfa7   : > { %v8937_v48 = vadd.f32 %v8921_v30, %v8853_v1  ;;  %v8919_v42 = vmul.f32 %v8903_v52, %v8845_v17  ;;  %v8906_v19 = vmul.f32 %v8890_v26, %v8856_v25  ;;  %v8888_v22 = vmul.f32 0.044715, %v8848_v31 }
 0xfa8   : > { %v8872_v44 = vmul.f32 0.5, %v8848_v31 }
 0xfa9   : > { %v8953_v24 = vmul.f32 0.7978846, %v8937_v48  ;;  %v8935_v28 = vadd.f32 %v8919_v42, %v8845_v17  ;;  %v8922_v23 = vmul.f32 %v8906_v19, %v8856_v25  ;;  %v8904_v37 = vmul.f32 %v8888_v22, %v8848_v31 }
 0xfab   : > { %v8951_v3 = vmul.f32 0.7978846, %v8935_v28  ;;  %v8938_v38 = vadd.f32 %v8922_v23, %v8856_v25  ;;  %v8920_v18 = vmul.f32 %v8904_v37, %v8848_v31  ;;  %11462 = vtanh.f32 %v8953_v24 }
 0xfad   : > { %v8954_v46 = vmul.f32 0.7978846, %v8938_v38  ;;  %11464 = vtanh.f32 %v8951_v3  ;;  %v8936_v54 = vadd.f32 %v8920_v18, %v8848_v31 }
 0xfaf   : > { %11466 = vtanh.f32 %v8954_v46  ;;  %v8952_v7 = vmul.f32 0.7978846, %v8936_v54 }
 0xfb1   : > { %11468 = vtanh.f32 %v8952_v7 }
 0xfb8   : > { %v11463_v63 = vpop.eup %11462 }
 0xfb9   : > { %v8985_v62 = vadd.f32 1.0, %v11463_v63 }
 0xfba   : > { %v11465_v12 = vpop.eup %11464 }
 0xfbb   : > { %v8983_v5 = vadd.f32 1.0, %v11465_v12  ;;  %v9001_v60 = vmul.f32 %v8985_v62, %v8873_v11 }
 0xfbc   : > { %v11467_v10 = vpop.eup %11466 }
 0xfbd   : > { %v8986_v35 = vadd.f32 1.0, %v11467_v10  ;;  %v8999_v15 = vmul.f32 %v8983_v5, %v8871_v21 }
 0xfbe   : > { %v11469_v32 = vpop.eup %11468 }
 0xfbf   : > { %v8984_v55 = vadd.f32 1.0, %v11469_v32  ;;  %v9002_v2 = vmul.f32 %v8986_v35, %v8874_v50 }
 0xfc1   : > { %v9000_v0 = vmul.f32 %v8984_v55, %v8872_v44  ;;  %v9010_v49 = vpack.c.bf16 %v9002_v2, %v9001_v60 }
 0xfc3   : > { %v9009_v6 = vpack.c.bf16 %v9000_v0, %v8999_v15 }
 0xfc5   : > { %10952 = vmatprep.mubr.msk.bf16.mxu0 %vm9050_vm6, %v9009_v6 }
 0xfc6   : > { %10953 = vmatmul.mubr.msk.bf16.gmra.mxu0 %vm9050_vm6, %v9010_v49 }
0x1029   : > { %v10942_v29 = vpop.f32.mrf.mxu0 }
0x102a   : > { %v9118_v14 = vadd.f32 %v10942_v29, %v14514_v58 }
0x102b   : > { %v9109_v27 = vpop.f32.mrf.mxu0 }
0x102c   : > { %v14518_v1 = vadd.f32 %v9118_v14, %v14327_v47  ;;  %v9110_v12 = vadd.f32 %v14514_v58, %v9109_v27 }
0x102d   : > { %v10943_v4 = vpop.f32.mrf.mxu0 }
0x102e   : > { %v9121_v17 = vadd.f32 %v10943_v4, %v14514_v58  ;;  %v9196_v57 = vsel %vm766_vm0, %v14518_v1, 0.0  ;;  %v14570_v35 = vadd.f32 %v9110_v12, %v14318_v39 }
0x102f   : > { %9197 = vadd.xlane.f32.xlu1 %v9196_v57  ;;  %v9112_v20 = vpop.f32.mrf.mxu0 }
0x1030   : > { %v14524_v41 = vadd.f32 %v9121_v17, %v14330_v51  ;;  %v9113_v25 = vadd.f32 %v14514_v58, %v9112_v20 }
0x1032   : > { %v14528_v13 = vadd.f32 %v9113_v25, %v14321_v16  ;;  %v9199_v47 = vsel %vm766_vm0, %v14524_v41, 0.0 }
0x1033   : > { %9200 = vadd.xlane.f32.xlu1 %v9199_v47 }
0x1034   : > { %v9193_v30 = vsel %vm766_vm0, %v14528_v13, 0.0 }
0x1037   : > { %9194 = vadd.xlane.f32.xlu1 %v9193_v30 }
0x1039   : > { %v10946_v52 = vpop.f32.mrf.mxu0 }
0x103a   : > { %v9134_v26 = vadd.f32 %v10946_v52, %v14514_v58 }
0x103b   : > { %v9125_v31 = vpop.f32.mrf.mxu0 }
0x103c   : > { %v14536_v51 = vadd.f32 %v9134_v26, %v14353_v9  ;;  %v9126_v60 = vadd.f32 %v14514_v58, %v9125_v31 }
0x103d   : > { %v10947_v48 = vpop.f32.mrf.mxu0 }
0x103e   : > { %v9137_v42 = vadd.f32 %v10947_v48, %v14514_v58  ;;  %v9208_v16 = vsel %vm766_vm0, %v14536_v51, 0.0  ;;  %v14600_v49 = vadd.f32 %v9126_v60, %v14344_v59 }
0x103f   : > { %9209 = vadd.xlane.f32.xlu0 %v9208_v16  ;;  %v9128_v19 = vpop.f32.mrf.mxu0 }
0x1040   : > { %v14542_v22 = vadd.f32 %v9137_v42, %v14356_v8  ;;  %v9129_v24 = vadd.f32 %v14514_v58, %v9128_v19 }
0x1042   : > { %v14546_v28 = vadd.f32 %v9129_v24, %v14347_v40  ;;  %v9211_v9 = vsel %vm766_vm0, %v14542_v22, 0.0 }
0x1043   : > { %9212 = vadd.xlane.f32.xlu0 %v9211_v9 }
0x1044   : > { %v9205_v23 = vsel %vm766_vm0, %v14546_v28, 0.0 }
0x1047   : > { %9206 = vadd.xlane.f32.xlu0 %v9205_v23 }
0x1049   : > { %v10950_v37 = vpop.f32.mrf.mxu0 }
0x104a   : > { %v9150_v3 = vadd.f32 %v10950_v37, %v14514_v58 }
0x104b   : > { %v9141_v38 = vpop.f32.mrf.mxu0 }
0x104c   : > { %v14554_v8 = vadd.f32 %v9150_v3, %v14379_v61  ;;  %v9142_v5 = vadd.f32 %v14514_v58, %v9141_v38 }
0x104d   : > { %v10951_v18 = vpop.f32.mrf.mxu0 }
0x104e   : > { %v9220_v40 = vsel %vm766_vm0, %v14554_v8, 0.0  ;;  %v9153_v54 = vadd.f32 %v10951_v18, %v14514_v58 }
0x104f   : > { %9221 = vadd.xlane.f32.xlu1 %v9220_v40  ;;  %v9144_v46 = vpop.f32.mrf.mxu0 }
0x1050   : > { %v9145_v7 = vadd.f32 %v14514_v58, %v9144_v46  ;;  %v14565_v10 = vadd.f32 %v9153_v54, %v14382_v36  ;;  %v9190_v36 = vsel %vm766_vm0, %v14570_v35, 0.0 }
0x1052   : > { %v14561_v63 = vadd.f32 %v9145_v7, %v14373_v56  ;;  %v9223_v32 = vsel %vm766_vm0, %v14565_v10, 0.0  ;;  %v14576_v56 = vadd.f32 %v9142_v5, %v14370_v33 }
0x1054   : > { %v9217_v61 = vsel %vm766_vm0, %v14561_v63, 0.0  ;;  %v9214_v50 = vsel %vm766_vm0, %v14576_v56, 0.0 }
0x1055   : > { %9218 = vadd.xlane.f32.xlu1 %v9217_v61 }
0x1059   : > { %9224 = vadd.xlane.f32.xlu1 %v9223_v32 }
0x105d   : > { %9191 = vadd.xlane.f32.xlu1 %v9190_v36 }
0x1061   : > { %9215 = vadd.xlane.f32.xlu1 %v9214_v50 }
0x1086   : > { %v10954_v62 = vpop.f32.mrf.mxu0 }
0x1087   : > { %v9166_v39 = vadd.f32 %v10954_v62, %v14514_v58 }
0x1088   : > { %v9157_v21 = vpop.f32.mrf.mxu0 }
0x1089   : > { %v14584_v44 = vadd.f32 %v9166_v39, %v14405_v34  ;;  %v9158_v29 = vadd.f32 %v14514_v58, %v9157_v21 }
0x108a   : > { %v10955_v55 = vpop.f32.mrf.mxu0 }
0x108b   : > { %v9232_v33 = vsel %vm766_vm0, %v14584_v44, 0.0  ;;  %v9169_v2 = vadd.f32 %v10955_v55, %v14514_v58 }
0x108c   : > { %9233 = vadd.xlane.f32.xlu0 %v9232_v33  ;;  %v9160_v11 = vpop.f32.mrf.mxu0 }
0x108d   : > { %v9161_v15 = vadd.f32 %v14514_v58, %v9160_v11  ;;  %v14595_v6 = vadd.f32 %v9169_v2, %v14408_v45  ;;  %v9202_v45 = vsel %vm766_vm0, %v14600_v49, 0.0 }
0x108f   : > { %v14591_v0 = vadd.f32 %v9161_v15, %v14399_v43  ;;  %v9235_v14 = vsel %vm766_vm0, %v14595_v6, 0.0  ;;  %v14606_v43 = vadd.f32 %v9158_v29, %v14396_v53 }
0x1091   : > { %v9229_v34 = vsel %vm766_vm0, %v14591_v0, 0.0  ;;  %v9226_v27 = vsel %vm766_vm0, %v14606_v43, 0.0 }
0x1092   : > { %9230 = vadd.xlane.f32.xlu0 %v9229_v34 }
0x1096   : > { %9236 = vadd.xlane.f32.xlu0 %v9235_v14 }
0x109a   : > { %9203 = vadd.xlane.f32.xlu0 %v9202_v45 }
0x109e   : > { %9227 = vadd.xlane.f32.xlu0 %v9226_v27 }
0x10b8   : > { %v9198_v4 = vpop.xlane.xlu1 %9197 }
0x10b9   : > { %v9240_v59 = vmul.f32 0.03125, %v9198_v4 }
0x10bb   : > { %v14613_v17 = vsub.f32 %v14518_v1, %v9240_v59 }
0x10bc   : > { %v9201_v58 = vpop.xlane.xlu1 %9200 }
0x10bd   : > { %v9241_v57 = vmul.f32 0.03125, %v9201_v58  ;;  %v9272_v20 = vmul.f32 %v14613_v17, %v14613_v17 }
0x10bf   : > { %v14618_v53 = vsub.f32 %v14524_v41, %v9241_v57  ;;  %v9292_v25 = vsel %vm766_vm0, %v9272_v20, 0.0 }
0x10c0   : > { %v9195_v47 = vpop.xlane.xlu1 %9194  ;;  %9293 = vadd.xlane.f32.xlu1 %v9292_v25 }
0x10c1   : > { %v9239_v30 = vmul.f32 0.03125, %v9195_v47  ;;  %v9273_v52 = vmul.f32 %v14618_v53, %v14618_v53 }
0x10c3   : > { %v14624_v26 = vsub.f32 %v14528_v13, %v9239_v30  ;;  %v9295_v1 = vsel %vm766_vm0, %v9273_v52, 0.0 }
0x10c4   : > { %9296 = vadd.xlane.f32.xlu1 %v9295_v1 }
0x10c5   : > { %v9271_v31 = vmul.f32 %v14624_v26, %v14624_v26 }
0x10c7   : > { %v9289_v41 = vsel %vm766_vm0, %v9271_v31, 0.0 }
0x10c8   : > { %9290 = vadd.xlane.f32.xlu1 %v9289_v41  ;;  %v9210_v48 = vpop.xlane.xlu0 %9209 }
0x10c9   : > { %v9244_v42 = vmul.f32 0.03125, %v9210_v48 }
0x10cb   : > { %v14631_v16 = vsub.f32 %v14536_v51, %v9244_v42 }
0x10cc   : > { %v9213_v19 = vpop.xlane.xlu0 %9212 }
0x10cd   : > { %v9245_v24 = vmul.f32 0.03125, %v9213_v19  ;;  %v9276_v13 = vmul.f32 %v14631_v16, %v14631_v16 }
0x10cf   : > { %v14636_v9 = vsub.f32 %v14542_v22, %v9245_v24  ;;  %v9304_v23 = vsel %vm766_vm0, %v9276_v13, 0.0 }
0x10d0   : > { %9305 = vadd.xlane.f32.xlu0 %v9304_v23  ;;  %v9207_v37 = vpop.xlane.xlu0 %9206 }
0x10d1   : > { %v9243_v3 = vmul.f32 0.03125, %v9207_v37  ;;  %v9277_v38 = vmul.f32 %v14636_v9, %v14636_v9 }
0x10d3   : > { %v14642_v18 = vsub.f32 %v14546_v28, %v9243_v3  ;;  %v9307_v51 = vsel %vm766_vm0, %v9277_v38, 0.0 }
0x10d4   : > { %9308 = vadd.xlane.f32.xlu0 %v9307_v51 }
0x10d5   : > { %v9275_v40 = vmul.f32 %v14642_v18, %v14642_v18 }
0x10d7   : > { %v9301_v22 = vsel %vm766_vm0, %v9275_v40, 0.0 }
0x10d8   : > { %v9222_v46 = vpop.xlane.xlu1 %9221  ;;  %9302 = vadd.xlane.f32.xlu0 %v9301_v22 }
0x10d9   : > { %v9248_v54 = vmul.f32 0.03125, %v9222_v46 }
0x10db   : > { %v14649_v7 = vsub.f32 %v14554_v8, %v9248_v54 }
0x10dd   : > { %v9280_v12 = vmul.f32 %v14649_v7, %v14649_v7 }
0x10de   : > { %v9219_v61 = vpop.xlane.xlu1 %9218 }
0x10df   : > { %v9247_v28 = vmul.f32 0.03125, %v9219_v61  ;;  %v9316_v5 = vsel %vm766_vm0, %v9280_v12, 0.0 }
0x10e0   : > { %9317 = vadd.xlane.f32.xlu1 %v9316_v5 }
0x10e1   : > { %v14655_v32 = vsub.f32 %v14561_v63, %v9247_v28  ;;  %v14711_v28 = vld [vmem:[%s14882_s15] ss:$0 sm:$0xff] }
0x10e2   : > { %v9225_v36 = vpop.xlane.xlu1 %9224 }
0x10e3   : > { %v9249_v50 = vmul.f32 0.03125, %v9225_v36  ;;  %v9279_v62 = vmul.f32 %v14655_v32, %v14655_v32 }
0x10e5   : > { %v14660_v39 = vsub.f32 %v14565_v10, %v9249_v50  ;;  %v9313_v8 = vsel %vm766_vm0, %v9279_v62, 0.0  ;;  %v14717_v62 = vld [vmem:[%s14883_s16] ss:$0 sm:$0xff] }
0x10e6   : > { %v9192_v21 = vpop.xlane.xlu1 %9191  ;;  %9314 = vadd.xlane.f32.xlu1 %v9313_v8 }
0x10e7   : > { %v9238_v55 = vmul.f32 0.03125, %v9192_v21  ;;  %v9281_v33 = vmul.f32 %v14660_v39, %v14660_v39 }
0x10e9   : > { %v14666_v11 = vsub.f32 %v14570_v35, %v9238_v55  ;;  %v9319_v63 = vsel %vm766_vm0, %v9281_v33, 0.0 }
0x10ea   : > { %9320 = vadd.xlane.f32.xlu1 %v9319_v63  ;;  %v9216_v2 = vpop.xlane.xlu1 %9215 }
0x10eb   : > { %v9246_v15 = vmul.f32 0.03125, %v9216_v2  ;;  %v9270_v10 = vmul.f32 %v14666_v11, %v14666_v11 }
0x10ed   : > { %v14672_v60 = vsub.f32 %v14576_v56, %v9246_v15  ;;  %v9286_v34 = vsel %vm766_vm0, %v9270_v10, 0.0 }
0x10ee   : > { %9287 = vadd.xlane.f32.xlu1 %v9286_v34 }
0x10ef   : > { %v9278_v29 = vmul.f32 %v14672_v60, %v14672_v60 }
0x10f1   : > { %v9310_v35 = vsel %vm766_vm0, %v9278_v29, 0.0 }
0x10f2   : > { %9311 = vadd.xlane.f32.xlu1 %v9310_v35 }
0x1115   : > { %v9234_v14 = vpop.xlane.xlu0 %9233 }
0x1116   : > { %v9252_v45 = vmul.f32 0.03125, %v9234_v14 }
0x1118   : > { %v14679_v27 = vsub.f32 %v14584_v44, %v9252_v45 }
0x111a   : > { %v9284_v4 = vmul.f32 %v14679_v27, %v14679_v27 }
0x111b   : > { %v9231_v59 = vpop.xlane.xlu0 %9230 }
0x111c   : > { %v9251_v56 = vmul.f32 0.03125, %v9231_v59  ;;  %v9328_v58 = vsel %vm766_vm0, %v9284_v4, 0.0 }
0x111d   : > { %9329 = vadd.xlane.f32.xlu0 %v9328_v58 }
0x111e   : > { %v14685_v57 = vsub.f32 %v14591_v0, %v9251_v56 }
0x111f   : > { %v9237_v20 = vpop.xlane.xlu0 %9236 }
0x1120   : > { %v9253_v25 = vmul.f32 0.03125, %v9237_v20  ;;  %v9283_v47 = vmul.f32 %v14685_v57, %v14685_v57 }
0x1122   : > { %v14690_v30 = vsub.f32 %v14595_v6, %v9253_v25  ;;  %v9325_v44 = vsel %vm766_vm0, %v9283_v47, 0.0 }
0x1123   : > { %9326 = vadd.xlane.f32.xlu0 %v9325_v44  ;;  %v9204_v52 = vpop.xlane.xlu0 %9203 }
0x1124   : > { %v9242_v1 = vmul.f32 0.03125, %v9204_v52  ;;  %v9285_v31 = vmul.f32 %v14690_v30, %v14690_v30 }
0x1126   : > { %v14696_v41 = vsub.f32 %v14600_v49, %v9242_v1  ;;  %v9331_v0 = vsel %vm766_vm0, %v9285_v31, 0.0 }
0x1127   : > { %9332 = vadd.xlane.f32.xlu0 %v9331_v0  ;;  %v9228_v48 = vpop.xlane.xlu0 %9227 }
0x1128   : > { %v9250_v42 = vmul.f32 0.03125, %v9228_v48  ;;  %v9274_v6 = vmul.f32 %v14696_v41, %v14696_v41 }
0x112a   : > { %v14702_v19 = vsub.f32 %v14606_v43, %v9250_v42  ;;  %v9298_v24 = vsel %vm766_vm0, %v9274_v6, 0.0 }
0x112b   : > { %9299 = vadd.xlane.f32.xlu0 %v9298_v24 }
0x112c   : > { %v9282_v13 = vmul.f32 %v14702_v19, %v14702_v19 }
0x112e   : > { %v9322_v49 = vsel %vm766_vm0, %v9282_v13, 0.0 }
0x112f   : > { %9323 = vadd.xlane.f32.xlu0 %v9322_v49 }
0x1149   : > { %v9294_v23 = vpop.xlane.xlu1 %9293 }
0x114a   : > { %v9336_v37 = vmul.f32 0.03125, %v9294_v23 }
0x114c   : > { %v9352_v3 = vadd.f32 1e-05, %v9336_v37 }
0x114d   : > { %v9297_v38 = vpop.xlane.xlu1 %9296 }
0x114e   : > { %11470 = vrsqrt.f32 %v9352_v3  ;;  %v9337_v51 = vmul.f32 0.03125, %v9297_v38 }
0x1150   : > { %v9353_v40 = vadd.f32 1e-05, %v9337_v51 }
0x1151   : > { %v9291_v22 = vpop.xlane.xlu1 %9290 }
0x1152   : > { %11472 = vrsqrt.f32 %v9353_v40  ;;  %v9335_v43 = vmul.f32 0.03125, %v9291_v22 }
0x1154   : > { %v9351_v46 = vadd.f32 1e-05, %v9335_v43 }
0x1156   : > { %11474 = vrsqrt.f32 %v9351_v46 }
0x1159   : > { %v9306_v54 = vpop.xlane.xlu0 %9305 }
0x115a   : > { %v9340_v12 = vmul.f32 0.03125, %v9306_v54 }
0x115b   : > { %v11471_v61 = vpop.eup %11470 }
0x115c   : > { %v9356_v5 = vadd.f32 1e-05, %v9340_v12  ;;  %v9384_v36 = vmul.f32 %v11471_v61, %v14613_v17 }
0x115d   : > { %v9309_v50 = vpop.xlane.xlu0 %9308 }
0x115e   : > { %11476 = vrsqrt.f32 %v9356_v5  ;;  %v9341_v8 = vmul.f32 0.03125, %v9309_v50  ;;  %v9406_v21 = vmul.f32 %v14711_v28, %v9384_v36 }
0x115f   : > { %v11473_v55 = vpop.eup %11472 }
0x1160   : > { %v9357_v33 = vadd.f32 1e-05, %v9341_v8  ;;  %v9428_v63 = vadd.f32 %v14717_v62, %v9406_v21  ;;  %v9385_v2 = vmul.f32 %v11473_v55, %v14618_v53 }
0x1161   : > { %v9303_v15 = vpop.xlane.xlu0 %9302 }
0x1162   : > { %11478 = vrsqrt.f32 %v9357_v33  ;;  %v9339_v10 = vmul.f32 0.03125, %v9303_v15  ;;  %9471 = vrot.lane.b32.xlu0 %v9428_v63, %s15026_s21  ;;  %v9407_v17 = vmul.f32 %v14711_v28, %v9385_v2 }
0x1163   : > { %v11475_v34 = vpop.eup %11474 }
0x1164   : > { %v9355_v29 = vadd.f32 1e-05, %v9339_v10  ;;  %v9429_v35 = vadd.f32 %v14717_v62, %v9407_v17  ;;  %v9383_v14 = vmul.f32 %v11475_v34, %v14624_v26 }
0x1166   : > { %11480 = vrsqrt.f32 %v9355_v29  ;;  %9492 = vrot.lane.b32.xlu0 %v9429_v35, %s15027_s23  ;;  %v9405_v45 = vmul.f32 %v14711_v28, %v9383_v14 }
0x1168   : > { %v9427_v53 = vadd.f32 %v14717_v62, %v9405_v45 }
0x1169   : > { %v9318_v4 = vpop.xlane.xlu1 %9317 }
0x116a   : > { %v9344_v59 = vmul.f32 0.03125, %v9318_v4  ;;  %9450 = vrot.lane.b32.xlu1 %v9427_v53, %s11629_s29 }
0x116b   : > { %v11477_v56 = vpop.eup %11476 }
0x116c   : > { %v9360_v58 = vadd.f32 1e-05, %v9344_v59  ;;  %v9388_v20 = vmul.f32 %v11477_v56, %v14631_v16 }
0x116e   : > { %11482 = vrsqrt.f32 %v9360_v58  ;;  %v9410_v25 = vmul.f32 %v14711_v28, %v9388_v20 }
0x116f   : > { %v11479_v26 = vpop.eup %11478  ;;  %v9315_v47 = vpop.xlane.xlu1 %9314 }
0x1170   : > { %v9343_v44 = vmul.f32 0.03125, %v9315_v47  ;;  %v9432_v52 = vadd.f32 %v14717_v62, %v9410_v25  ;;  %v9389_v1 = vmul.f32 %v11479_v26, %v14636_v9 }
0x1172   : > { %v9359_v31 = vadd.f32 1e-05, %v9343_v44  ;;  %9473 = vrot.lane.b32.xlu1 %v9432_v52, %s15026_s21  ;;  %v9411_v0 = vmul.f32 %v14711_v28, %v9389_v1 }
0x1173   : > { %v11481_v48 = vpop.eup %11480  ;;  %v9321_v42 = vpop.xlane.xlu1 %9320 }
0x1174   : > { %11484 = vrsqrt.f32 %v9359_v31  ;;  %v9345_v6 = vmul.f32 0.03125, %v9321_v42  ;;  %v9433_v16 = vadd.f32 %v14717_v62, %v9411_v0  ;;  %v9387_v24 = vmul.f32 %v11481_v48, %v14642_v18 }
0x1176   : > { %v9361_v13 = vadd.f32 1e-05, %v9345_v6  ;;  %9494 = vrot.lane.b32.xlu1 %v9433_v16, %s15027_s23  ;;  %v9409_v49 = vmul.f32 %v14711_v28, %v9387_v24 }
0x1177   : > { %v9288_v23 = vpop.xlane.xlu1 %9287 }
0x1178   : > { %11486 = vrsqrt.f32 %v9361_v13  ;;  %v9334_v9 = vmul.f32 0.03125, %v9288_v23  ;;  %v9431_v37 = vadd.f32 %v14717_v62, %v9409_v49 }
0x117a   : > { %v9350_v3 = vadd.f32 1e-05, %v9334_v9  ;;  %9452 = vrot.lane.b32.xlu0 %v9431_v37, %s11629_s29 }
0x117b   : > { %v11483_v38 = vpop.eup %11482  ;;  %v9312_v51 = vpop.xlane.xlu1 %9311 }
0x117c   : > { %11488 = vrsqrt.f32 %v9350_v3  ;;  %v9342_v40 = vmul.f32 0.03125, %v9312_v51  ;;  %v9392_v18 = vmul.f32 %v11483_v38, %v14649_v7 }
0x117e   : > { %v9358_v22 = vadd.f32 1e-05, %v9342_v40  ;;  %v9414_v43 = vmul.f32 %v14711_v28, %v9392_v18 }
0x1180   : > { %11490 = vrsqrt.f32 %v9358_v22  ;;  %v9436_v46 = vadd.f32 %v14717_v62, %v9414_v43 }
0x1181   : > { %v11485_v54 = vpop.eup %11484 }
0x1182   : > { %9475 = vrot.lane.b32.xlu0 %v9436_v46, %s15026_s21  ;;  %v9391_v12 = vmul.f32 %v11485_v54, %v14655_v32 }
0x1184   : > { %v9413_v61 = vmul.f32 %v14711_v28, %v9391_v12 }
0x1185   : > { %v11487_v5 = vpop.eup %11486 }
0x1186   : > { %v9435_v36 = vadd.f32 %v14717_v62, %v9413_v61  ;;  %v9393_v50 = vmul.f32 %v11487_v5, %v14660_v39 }
0x1188   : > { %9454 = vrot.lane.b32.xlu1 %v9435_v36, %s11629_s29  ;;  %v9415_v7 = vmul.f32 %v14711_v28, %v9393_v50 }
0x1189   : > { %v11489_v8 = vpop.eup %11488 }
0x118a   : > { %v9382_v21 = vmul.f32 %v11489_v8, %v14666_v11  ;;  %v9437_v55 = vadd.f32 %v14717_v62, %v9415_v7 }
0x118c   : > { %9496 = vrot.lane.b32.xlu0 %v9437_v55, %s15027_s23  ;;  %v9404_v32 = vmul.f32 %v14711_v28, %v9382_v21 }
0x118d   : > { %v11491_v33 = vpop.eup %11490 }
0x118e   : > { %v9390_v63 = vmul.f32 %v11491_v33, %v14672_v60  ;;  %v9426_v39 = vadd.f32 %v14717_v62, %v9404_v32 }
0x1190   : > { %9442 = vst.msk [vmem:[%s14761_s22] sm:$0xff] %vm766_vm0, %v9426_v39  ;;  %v9412_v11 = vmul.f32 %v14711_v28, %v9390_v63 }
0x1192   : > { %v9434_v2 = vadd.f32 %v14717_v62, %v9412_v11 }
0x1194   : > { %9444 = vst.msk [vmem:[%s14761_s22 + $0x10] sm:$0xff] %vm766_vm0, %v9434_v2 }
0x11a6   : > { %v9330_v15 = vpop.xlane.xlu0 %9329 }
0x11a7   : > { %v9348_v10 = vmul.f32 0.03125, %v9330_v15 }
0x11a9   : > { %v9364_v17 = vadd.f32 1e-05, %v9348_v10 }
0x11ab   : > { %11492 = vrsqrt.f32 %v9364_v17 }
0x11ac   : > { %v9327_v34 = vpop.xlane.xlu0 %9326 }
0x11ad   : > { %v9347_v60 = vmul.f32 0.03125, %v9327_v34 }
0x11af   : > { %v9363_v29 = vadd.f32 1e-05, %v9347_v60 }
0x11b0   : > { %v9333_v35 = vpop.xlane.xlu0 %9332 }
0x11b1   : > { %11494 = vrsqrt.f32 %v9363_v29  ;;  %v9349_v14 = vmul.f32 0.03125, %v9333_v35 }
0x11b3   : > { %v9365_v45 = vadd.f32 1e-05, %v9349_v14 }
0x11b4   : > { %v9300_v53 = vpop.xlane.xlu0 %9299 }
0x11b5   : > { %11496 = vrsqrt.f32 %v9365_v45  ;;  %v9338_v4 = vmul.f32 0.03125, %v9300_v53 }
0x11b7   : > { %v9354_v59 = vadd.f32 1e-05, %v9338_v4 }
0x11b8   : > { %v11493_v56 = vpop.eup %11492  ;;  %v9324_v58 = vpop.xlane.xlu0 %9323 }
0x11b9   : > { %11498 = vrsqrt.f32 %v9354_v59  ;;  %v9346_v20 = vmul.f32 0.03125, %v9324_v58  ;;  %v9396_v25 = vmul.f32 %v11493_v56, %v14679_v27 }
0x11bb   : > { %v9362_v26 = vadd.f32 1e-05, %v9346_v20  ;;  %v9418_v47 = vmul.f32 %v14711_v28, %v9396_v25 }
0x11bd   : > { %11500 = vrsqrt.f32 %v9362_v26  ;;  %v9440_v44 = vadd.f32 %v14717_v62, %v9418_v47 }
0x11be   : > { %v11495_v52 = vpop.eup %11494 }
0x11bf   : > { %9477 = vrot.lane.b32.xlu1 %v9440_v44, %s15026_s21  ;;  %v9395_v1 = vmul.f32 %v11495_v52, %v14685_v57  ;;  %s11554_s21 = sshll.u32 %s11630_s2, 4  ;;  %s11555_s21 = int_to_ptr.vmem [resolvable:$false] %s11554_s21 }
0x11c0   : > { %p11557_p1 = scmp.lt.s32.totalorder %s14820_s30, %s11555_s21 }
0x11c1   : > { %v9417_v31 = vmul.f32 %v14711_v28, %v9395_v1 }
0x11c2   : > { %v11497_v0 = vpop.eup %11496 }
0x11c3   : > { %v9439_v48 = vadd.f32 %v14717_v62, %v9417_v31  ;;  %v9397_v27 = vmul.f32 %v11497_v0, %v14690_v30 }
0x11c5   : > { %9456 = vrot.lane.b32.xlu1 %v9439_v48, %s11629_s29  ;;  %v9419_v42 = vmul.f32 %v14711_v28, %v9397_v27  ;;  %s14818_s29 = scalar_lea.hbm %s14884_s17, %s9805_s4  ;;  %s11556_s4 = scalar_lea.vmem %s11555_s21, 1024 }
0x11c6   : > { %v11499_v6 = vpop.eup %11498  ;;  %p11558_p2 = scmp.lt.s32.totalorder %s11556_s4, %s11550_s18 }
0x11c7   : > { %v9386_v16 = vmul.f32 %v11499_v6, %v14696_v41  ;;  %v9441_v24 = vadd.f32 %v14717_v62, %v9419_v42 }
0x11c8   : > { %p11559_p3 = por %p11558_p2, %p11557_p1 }
0x11c9   : > { %9498 = vrot.lane.b32.xlu1 %v9441_v24, %s15027_s23  ;;  %v9408_v57 = vmul.f32 %v14711_v28, %v9386_v16 }
0x11ca   : > { %v11501_v13 = vpop.eup %11500  ;;  %p11560_p4 = pnand %p11559_p3, %p11553_p0 }
0x11cb   : > { %v9394_v49 = vmul.f32 %v11501_v13, %v14702_v19  ;;  %v9430_v30 = vadd.f32 %v14717_v62, %v9408_v57 }
0x11cd   : > { %9443 = vst.msk [vmem:[%s14761_s22 + $0x8] sm:$0xff] %vm766_vm0, %v9430_v30  ;;  %v9416_v23 = vmul.f32 %v14711_v28, %v9394_v49 }
0x11cf   : > { %v9438_v41 = vadd.f32 %v14717_v62, %v9416_v23 }
0x11d1   : > { %9445 = vst.msk [vmem:[%s14761_s22 + $0x18] sm:$0xff] %vm766_vm0, %v9438_v41 }
0x11d4   : > { %v9472_v9 = vpop.permute.xlu0 %9471 }
0x11d8   : > { %v9493_v19 = vpop.permute.xlu0 %9492 }
0x11dc   : > { %v9451_v37 = vpop.permute.xlu1 %9450 }
0x11dd   : > { %9463 = vst.msk [vmem:[%s14761_s22] sm:$0xff] %vm9462_vm7, %v9451_v37 }
0x11de   : > { %9484 = vst.msk [vmem:[%s14761_s22] sm:$0xff] %vm9483_vm8, %v9472_v9 }
0x11df   : > { %9505 = vst.msk [vmem:[%s14761_s22] sm:$0xff] %vm9504_vm9, %v9493_v19 }
0x11e4   : > { %v9474_v28 = vpop.permute.xlu1 %9473 }
0x11e8   : > { %v9495_v3 = vpop.permute.xlu1 %9494 }
0x11ec   : > { %v9453_v62 = vpop.permute.xlu0 %9452 }
0x11ed   : > { %9464 = vst.msk [vmem:[%s14761_s22 + $0x8] sm:$0xff] %vm9462_vm7, %v9453_v62 }
0x11ee   : > { %9485 = vst.msk [vmem:[%s14761_s22 + $0x8] sm:$0xff] %vm9483_vm8, %v9474_v28 }
0x11ef   : > { %9506 = vst.msk [vmem:[%s14761_s22 + $0x8] sm:$0xff] %vm9504_vm9, %v9495_v3 }
0x11f4   : > { %v9476_v38 = vpop.permute.xlu0 %9475 }
0x11fa   : > { %v9455_v51 = vpop.permute.xlu1 %9454 }
0x11fb   : > { %9465 = vst.msk [vmem:[%s14761_s22 + $0x10] sm:$0xff] %vm9462_vm7, %v9455_v51 }
0x11fc   : > { %9486 = vst.msk [vmem:[%s14761_s22 + $0x10] sm:$0xff] %vm9483_vm8, %v9476_v38 }
0x11fe   : > { %v9497_v40 = vpop.permute.xlu0 %9496 }
0x11ff   : > { %9507 = vst.msk [vmem:[%s14761_s22 + $0x10] sm:$0xff] %vm9504_vm9, %v9497_v40 }
0x1231   : > { %v9478_v18 = vpop.permute.xlu1 %9477 }
0x1237   : > { %v9457_v22 = vpop.permute.xlu1 %9456 }
0x1238   : > { %9466 = vst.msk [vmem:[%s14761_s22 + $0x18] sm:$0xff] %vm9462_vm7, %v9457_v22 }
0x1239   : > { %9487 = vst.msk [vmem:[%s14761_s22 + $0x18] sm:$0xff] %vm9483_vm8, %v9478_v18 }
0x123b   : > { %v9499_v43 = vpop.permute.xlu1 %9498 }
0x123c   : > { %9508 = vst.msk [vmem:[%s14761_s22 + $0x18] sm:$0xff] %vm9504_vm9, %v9499_v43 }
0x123d   : > { %11563 = shalt.err (!%p11560_p4)
}
0x123e   : > { %s11564_s3 = scalar_lea.hbm %s14818_s29, 512  ;;  %s11568_s2 = scalar_lea.hbm %s14884_s17, 1024 }
0x123f   : > { %p11565_p7 = scmp.ne.s32.totalorder %s14818_s29, %s11564_s3  ;;  %p11569_p10 = scmp.lt.s32.totalorder %s14818_s29, %s14884_s17 }
0x1240   : > { %p11570_p11 = scmp.lt.s32.totalorder %s11568_s2, %s11564_s3 }
0x1241   : > { %p11566_p8 = pnand %p11565_p7, %p11760_p5 }
0x1242   : > { %p11571_p12 = por %p11570_p11, %p11569_p10 }
0x1243   : > { %p11567_p9 = pneg %p11566_p8 }
0x1245   : > { %p11572_p13 = pnand %p11571_p12, %p11567_p9 }
0x1247   : > { %11575 = shalt.err (!%p11572_p13)
}
0x1248   : > { %s11631_s18 = smov 128   ;;  %s15028_s21 = smov 8  }
0x1249   : > { %10960 = dma.vmem_to_hbm [thread:$0]  (%p11760_p5), %s14820_s30, 512, %s14818_s29, %s14826_s28, %s11631_s18, %s11631_s18, %s15028_s21  }
0x124a PF: > { %p10966_p0 = scmp.ge.s32.totalorder %s11610_s27, 2  ;;  %s9538_s4 = sand.u32 1, %s11598_s24  }
0x124b   : > { %s9539_s5 = scalar_lea.sflag [#allocation3], %s9538_s4 }
0x124c   : > { %p10963_p1 = pnand %p10966_p0, %p11764_p6 }
0x124e   : > { %p10964_p2 = pneg %p10963_p1 }
0x1250   : > { %11593 = dma.done.wait (%p10964_p2), %s9539_s5, 512  }
0x1251   : > { %11595 = vsyncadd (%p10964_p2), %s9539_s5, 4294966784  ;;  %p27_p3 = scmp.ge.s32.totalorder %s11747_s0, 4   ;;  %s15029_s24 = smov %s11602_s25 }
0x1252   : > { %s15030_s25 = smov %s11606_s26  ;;  %s15031_s26 = smov %s11758_s19 }
0x1253   : > { %s15032_s27 = smov %s11747_s0  ;;  %29 = sbr.rel (!%p27_p3) target bundleno = 11 (0xb), region = 126 }
0x1258   :  { %9544 = vsyncpa [#allocation3], 1 }
0x1259   :  { %9546 = vsyncpa [#allocation3 + $0x1], 1 }

</bundles_post_ra>
